<compile_context>
chip_gen: v7x
topology: tpu7x:2x2x1
jax: 0.10.0
libtpu: 0.0.40
codegen_flags: <defaults>
</compile_context>

<pallas_src>
import jax
import jax.numpy as jnp
from jax.experimental import pallas as pl
from jax.experimental.pallas import tpu as pltpu

# ----------------------------- model config (scaled down) ---------------------
B_TOTAL = 32          # samples per forward call
CHUNK = 16            # samples per grid step
IN_CH = 3             # image channels
IMG_HW = 28           # image spatial size (28 -> conv out 8 -> pool out 2)
EMB = 32              # emb_size
Q_EMB = 16            # qus_embedding_dim (glove dim, scaled down)
Q_LEN = 4             # question length
WORD_SIZE = 50
DEPTH = 2
TOKEN_DIM = 16
CHANNEL_DIM = 64
ANS_SIZE = 10

CONV_K, CONV_S, CONV_P = 7, 4, 4
POOL_K = POOL_S = 4
LN_EPS = 1e-5
BN_EPS = 1e-5

H_CONV = (IMG_HW + 2 * CONV_P - CONV_K) // CONV_S + 1      # 8
H_POOL = (H_CONV - POOL_K) // POOL_S + 1                   # 2
N_IMG = H_POOL * H_POOL                                    # 4 image tokens
N_TOK = N_IMG + Q_LEN                                      # 8 tokens per sample
K_RAW = IN_CH * CONV_K * CONV_K                            # 147 (no zero-pad)
POOL_GROUP = POOL_K * POOL_K                               # 16 conv rows / pooled token
N_CHUNKS = B_TOTAL // CHUNK
assert B_TOTAL % CHUNK == 0

R_IMG = CHUNK * N_IMG        # image-token rows per grid step   (64)
R_QUS = CHUNK * Q_LEN        # question-token rows per step     (64)
R_TOK = CHUNK * N_TOK        # total token rows per step        (128)
R_HID = CHUNK * TOKEN_DIM    # block-diag token-mix hidden rows (256)
R_PATCH = POOL_GROUP * R_IMG  # im2col rows per step            (1024)

# packed (1, EMB) parameter rows
VEC_IMG_BIAS = 0                       # folded conv_b * BN + img_mod_embed
VEC_QUS_BIAS = 1                       # qus linear bias + qus_mod_embed
VEC_MIX0 = 2                           # per depth: ln1_g, ln1_b, ln2_g, ln2_b, ch_b2
VEC_HEAD_G = VEC_MIX0 + 5 * DEPTH
VEC_HEAD_B = VEC_HEAD_G + 1
VEC_HEAD_BIAS = VEC_HEAD_G + 2
VEC_ROWS = ((VEC_HEAD_BIAS + 1 + 7) // 8) * 8


# ------------------------------ in-kernel helpers ------------------------------
def _erf(x):
    # Abramowitz & Stegun 7.1.26 rational approximation (|err| < 1.5e-7).
    a1, a2, a3, a4, a5 = 0.254829592, -0.284496736, 1.421413741, -1.453152027, 1.061405429
    p = 0.3275911
    sgn = jnp.where(x >= 0.0, 1.0, -1.0)
    ax = jnp.abs(x)
    t = 1.0 / (1.0 + p * ax)
    poly = ((((a5 * t + a4) * t + a3) * t + a2) * t + a1) * t
    return sgn * (1.0 - poly * jnp.exp(-ax * ax))


def _gelu(x):
    # PyTorch nn.GELU default (exact erf form).
    return 0.5 * x * (1.0 + _erf(x * 0.7071067811865476))


def _ln(x, g, b):
    mean = jnp.mean(x, axis=-1, keepdims=True)
    xc = x - mean
    var = jnp.mean(xc * xc, axis=-1, keepdims=True)
    return xc * jax.lax.rsqrt(var + LN_EPS) * g + b


# ------------------------------- fused kernel ----------------------------------
def _fused_forward_kernel(
    patches_ref, qus_ref,
    conv_w_ref, emb_ref,
    tok_w1_ref, tok_b1_ref, tok_w2_ref, tok_b2_ref,
    ch_w1_ref, ch_b1_ref, ch_w2_ref,
    vec_ref, head_w_ref,
    out_ref,
):
    f32 = jnp.float32

    # ---- ImageToTokens: conv (BN folded, bias deferred past pool) -> MaxPool(4,4)
    conv = jnp.dot(patches_ref[...], conv_w_ref[...],
                   preferred_element_type=f32)                     # (R_PATCH, EMB)
    # rows are window-position-major: pool = tree max over 16 contiguous slabs.
    pooled = conv[0:R_IMG, :]
    for j in range(1, POOL_GROUP):
        pooled = jnp.maximum(pooled, conv[j * R_IMG:(j + 1) * R_IMG, :])
    img_tok = pooled + vec_ref[VEC_IMG_BIAS:VEC_IMG_BIAS + 1, :]   # (R_IMG, EMB)

    # ---- QusEmbeddingMap: one-hot gather @ (embedding @ linear) folded table
    onehot = (jax.lax.broadcasted_iota(jnp.int32, (R_QUS, WORD_SIZE), 1)
              == qus_ref[...]).astype(f32)                         # (R_QUS, WORD)
    qus_tok = (jnp.dot(onehot, emb_ref[...], preferred_element_type=f32)
               + vec_ref[VEC_QUS_BIAS:VEC_QUS_BIAS + 1, :])        # (R_QUS, EMB)

    # token rows: [all image tokens (sample-major) ; all question tokens (sample-major)]
    x = jnp.concatenate([img_tok, qus_tok], axis=0)                # (R_TOK, EMB)

    # ---- MLP-Mixer blocks (pre-LN token-mix + channel-mix, residual, dropout=id)
    for d in range(DEPTH):
        r = VEC_MIX0 + 5 * d
        # token mixing: block-diagonal weights cover all CHUNK samples in 2 dots
        y = _ln(x, vec_ref[r:r + 1, :], vec_ref[r + 1:r + 2, :])
        h = jnp.dot(tok_w1_ref[d], y, preferred_element_type=f32) + tok_b1_ref[d]
        x = x + jnp.dot(tok_w2_ref[d], _gelu(h),
                        preferred_element_type=f32) + tok_b2_ref[d]
        # channel mixing
        y = _ln(x, vec_ref[r + 2:r + 3, :], vec_ref[r + 3:r + 4, :])
        h = _gelu(jnp.dot(y, ch_w1_ref[d], preferred_element_type=f32)
                  + ch_b1_ref[d:d + 1, :])
        x = x + jnp.dot(h, ch_w2_ref[d],
                        preferred_element_type=f32) + vec_ref[r + 4:r + 5, :]

    # ---- head: per-sample mean over its N_TOK tokens -> LayerNorm -> Linear
    sid = jax.lax.broadcasted_iota(jnp.int32, (CHUNK, R_TOK), 0)
    cid = jax.lax.broadcasted_iota(jnp.int32, (CHUNK, R_TOK), 1)
    img_sel = (cid >= sid * N_IMG) & (cid < (sid + 1) * N_IMG)
    qus_sel = (cid >= R_IMG + sid * Q_LEN) & (cid < R_IMG + (sid + 1) * Q_LEN)
    pool_mat = jnp.where(img_sel | qus_sel, 1.0 / N_TOK, 0.0).astype(f32)
    feat = jnp.dot(pool_mat, x, preferred_element_type=f32)        # (CHUNK, EMB)
    feat = _ln(feat, vec_ref[VEC_HEAD_G:VEC_HEAD_G + 1, :],
               vec_ref[VEC_HEAD_B:VEC_HEAD_B + 1, :])
    out_ref[...] = (jnp.dot(feat, head_w_ref[...], preferred_element_type=f32)
                    + vec_ref[VEC_HEAD_BIAS:VEC_HEAD_BIAS + 1, 0:ANS_SIZE]
                    ).astype(out_ref.dtype)


# ------------------------------ parameter setup ------------------------------
def xavier_uniform(key, fan_in, fan_out):
    limit = (6.0 / (fan_in + fan_out)) ** 0.5
    return jax.random.uniform(key, (fan_in, fan_out), jnp.float32, -limit, limit)


def init_params(key):
    ks = iter(jax.random.split(key, 64))
    p = {}

    # QusEmbeddingMap: random table stands in for the glove load; Linear folded in.
    emb_table = jax.random.normal(next(ks), (WORD_SIZE, Q_EMB), jnp.float32)
    qus_w = xavier_uniform(next(ks), Q_EMB, EMB)
    qus_b = jnp.zeros((EMB,), jnp.float32)
    p["emb_fold"] = emb_table @ qus_w                                # (WORD, EMB)

    # Conv2d(3, EMB, 7, 4, 4) + eval-mode BatchNorm2d folded; bias deferred past pool.
    bound = 1.0 / (K_RAW ** 0.5)
    conv_w = jax.random.uniform(next(ks), (EMB, IN_CH, CONV_K, CONV_K),
                                jnp.float32, -bound, bound)
    conv_b = jax.random.uniform(next(ks), (EMB,), jnp.float32, -bound, bound)
    bn_gamma = jnp.ones((EMB,), jnp.float32)
    bn_beta = jnp.zeros((EMB,), jnp.float32)
    bn_mean = jnp.zeros((EMB,), jnp.float32)
    bn_var = jnp.ones((EMB,), jnp.float32)
    scale = bn_gamma / jnp.sqrt(bn_var + BN_EPS)
    p["conv_w"] = conv_w.reshape(EMB, K_RAW).T * scale[None, :]      # (K_RAW, EMB)
    conv_bias = (conv_b - bn_mean) * scale + bn_beta                 # (EMB,)

    # modality embeddings (normal std=0.02), folded into per-path bias rows
    img_mod = 0.02 * jax.random.normal(next(ks), (EMB,), jnp.float32)
    qus_mod = 0.02 * jax.random.normal(next(ks), (EMB,), jnp.float32)

    # token-row layout per grid step: [CHUNK*N_IMG image rows ; CHUNK*Q_LEN question rows]
    g_img = jnp.arange(R_IMG)
    std_img = (g_img // N_IMG) * N_TOK + (g_img % N_IMG)
    g_qus = jnp.arange(R_QUS)
    std_qus = (g_qus // Q_LEN) * N_TOK + N_IMG + (g_qus % Q_LEN)
    std_of_global = jnp.concatenate([std_img, std_qus])              # (R_TOK,)
    pos_of_global = std_of_global % N_TOK

    # mixer blocks; token-mix weights stored block-diagonal over the CHUNK samples
    eye = jnp.eye(CHUNK, dtype=jnp.float32)
    tok_w1, tok_b1, tok_w2, tok_b2 = [], [], [], []
    ch_w1, ch_b1, ch_w2 = [], [], []
    vec_rows = [conv_bias + img_mod, qus_b + qus_mod]
    for _ in range(DEPTH):
        a1 = xavier_uniform(next(ks), N_TOK, TOKEN_DIM).T            # (T, N_TOK)
        b1 = jnp.zeros((TOKEN_DIM,), jnp.float32)
        a2 = xavier_uniform(next(ks), TOKEN_DIM, N_TOK).T            # (N_TOK, T)
        b2 = jnp.zeros((N_TOK,), jnp.float32)
        w1_full = jnp.kron(eye, a1)                                  # (R_HID, CHUNK*N_TOK)
        w2_full = jnp.kron(eye, a2)                                  # (CHUNK*N_TOK, R_HID)
        tok_w1.append(w1_full[:, std_of_global])                     # (R_HID, R_TOK)
        tok_w2.append(w2_full[std_of_global, :])                     # (R_TOK, R_HID)
        tok_b1.append(jnp.tile(b1, CHUNK)[:, None])                  # (R_HID, 1)
        tok_b2.append(b2[pos_of_global][:, None])                    # (R_TOK, 1)

        ch_w1.append(xavier_uniform(next(ks), EMB, CHANNEL_DIM))
        ch_b1.append(jnp.zeros((CHANNEL_DIM,), jnp.float32))
        ch_w2.append(xavier_uniform(next(ks), CHANNEL_DIM, EMB))
        vec_rows += [jnp.ones((EMB,), jnp.float32), jnp.zeros((EMB,), jnp.float32),  # ln1
                     jnp.ones((EMB,), jnp.float32), jnp.zeros((EMB,), jnp.float32),  # ln2
                     jnp.zeros((EMB,), jnp.float32)]                                  # ch_b2

    stk = lambda xs: jnp.stack(xs).astype(jnp.float32)
    p["tok_w1"], p["tok_b1"] = stk(tok_w1), stk(tok_b1)
    p["tok_w2"], p["tok_b2"] = stk(tok_w2), stk(tok_b2)
    p["ch_w1"], p["ch_b1"], p["ch_w2"] = stk(ch_w1), stk(ch_b1), stk(ch_w2)

    # classification head (mean-pool -> LayerNorm -> Linear) + packed vector rows
    p["head_w"] = xavier_uniform(next(ks), EMB, ANS_SIZE)
    head_b = jnp.zeros((ANS_SIZE,), jnp.float32)
    vec_rows += [jnp.ones((EMB,), jnp.float32),                      # head LN gamma
                 jnp.zeros((EMB,), jnp.float32),                     # head LN beta
                 jnp.zeros((EMB,), jnp.float32).at[:ANS_SIZE].set(head_b)]
    while len(vec_rows) < VEC_ROWS:
        vec_rows.append(jnp.zeros((EMB,), jnp.float32))
    p["vec"] = jnp.stack(vec_rows).astype(jnp.float32)               # (VEC_ROWS, EMB)
    return p


# --------------------------------- forward ------------------------------------
def _image_to_patches(img):
    """im2col (XLA glue). Rows per chunk are ordered (pool_window_pos, sample,
    pooled_token) so the in-kernel max-pool is a tree of maxima over contiguous
    slabs; K stays at 147 (no zero-pad) to keep HBM traffic minimal."""
    xpad = jnp.pad(img, ((0, 0), (0, 0), (CONV_P, CONV_P), (CONV_P, CONV_P)))
    cols = []
    for kh in range(CONV_K):
        for kw in range(CONV_K):
            cols.append(xpad[:, :, kh:kh + CONV_S * H_CONV:CONV_S,
                             kw:kw + CONV_S * H_CONV:CONV_S])
    pat = jnp.stack(cols, axis=2)                                    # (B,C,49,Ho,Wo)
    pat = pat.transpose(0, 3, 4, 1, 2).reshape(B_TOTAL, H_CONV, H_CONV, K_RAW)
    pat = pat.reshape(B_TOTAL, H_POOL, POOL_K, H_POOL, POOL_K, K_RAW)
    pat = pat.reshape(N_CHUNKS, CHUNK, H_POOL, POOL_K, H_POOL, POOL_K, K_RAW)
    pat = pat.transpose(0, 3, 5, 1, 2, 4, 6)       # (chunk, wi, wj, b, ph, pw, K)
    return pat.reshape(N_CHUNKS * R_PATCH, K_RAW)


@jax.jit
def forward(params, img, qus):
    patches = _image_to_patches(img)                                 # (chunks*1024, 147)
    qus_idx = qus.reshape(B_TOTAL * Q_LEN, 1).astype(jnp.int32)
    c2 = lambda i: (0, 0)
    c3 = lambda i: (0, 0, 0)
    grid_spec = pltpu.PrefetchScalarGridSpec(
        num_scalar_prefetch=0,
        grid=(N_CHUNKS,),
        in_specs=[
            pl.BlockSpec((R_PATCH, K_RAW), lambda i: (i, 0)),            # patches
            pl.BlockSpec((R_QUS, 1), lambda i: (i, 0)),                  # question ids
            pl.BlockSpec((K_RAW, EMB), c2),                              # conv_w (BN folded)
            pl.BlockSpec((WORD_SIZE, EMB), c2),                          # folded embedding
            pl.BlockSpec((DEPTH, R_HID, R_TOK), c3),                     # tok_w1 (block-diag)
            pl.BlockSpec((DEPTH, R_HID, 1), c3),                         # tok_b1
            pl.BlockSpec((DEPTH, R_TOK, R_HID), c3),                     # tok_w2 (block-diag)
            pl.BlockSpec((DEPTH, R_TOK, 1), c3),                         # tok_b2
            pl.BlockSpec((DEPTH, EMB, CHANNEL_DIM), c3),                 # ch_w1
            pl.BlockSpec((DEPTH, CHANNEL_DIM), c2),                      # ch_b1
            pl.BlockSpec((DEPTH, CHANNEL_DIM, EMB), c3),                 # ch_w2
            pl.BlockSpec((VEC_ROWS, EMB), c2),                           # packed (1,EMB) params
            pl.BlockSpec((EMB, ANS_SIZE), c2),                           # head weight
        ],
        out_specs=pl.BlockSpec((CHUNK, ANS_SIZE), lambda i: (i, 0)),
    )
    return pl.pallas_call(
        _fused_forward_kernel,
        out_shape=jax.ShapeDtypeStruct((B_TOTAL, ANS_SIZE), jnp.float32),
        grid_spec=grid_spec,
        compiler_params=pltpu.CompilerParams(
            dimension_semantics=("parallel",)),
        cost_estimate=pl.CostEstimate(flops=60_000_000, transcendentals=66_000,
                                      bytes_accessed=2_400_000),
    )(patches, qus_idx, params["conv_w"], params["emb_fold"],
      params["tok_w1"], params["tok_b1"], params["tok_w2"], params["tok_b2"],
      params["ch_w1"], params["ch_b1"], params["ch_w2"],
      params["vec"], params["head_w"])


# ----------------------------------- main --------------------------------------
if __name__ == "__main__":
    key = jax.random.PRNGKey(0)
    k_param, k_img, k_qus = jax.random.split(key, 3)
    params = init_params(k_param)
    img = jax.random.normal(k_img, (B_TOTAL, IN_CH, IMG_HW, IMG_HW), jnp.float32)
    qus = jax.random.randint(k_qus, (B_TOTAL, Q_LEN), 0, WORD_SIZE, dtype=jnp.int32)

    out = jax.block_until_ready(forward(params, img, qus))
    assert out.shape == (B_TOTAL, ANS_SIZE) and out.dtype == jnp.float32
    assert bool(jnp.all(jnp.isfinite(out)))
    print("KERNEL_OK")
</pallas_src>

<mosaic_0001>
module attributes {stable_mosaic.version = 11 : i64} {
  func.func @_fused_forward_kernel(%arg0: i32, %arg1: memref<1024x147xf32, #tpu.memory_space<vmem>>, %arg2: memref<64x1xi32, #tpu.memory_space<vmem>>, %arg3: memref<147x32xf32, #tpu.memory_space<vmem>>, %arg4: memref<50x32xf32, #tpu.memory_space<vmem>>, %arg5: memref<2x256x128xf32, #tpu.memory_space<vmem>>, %arg6: memref<2x256x1xf32, #tpu.memory_space<vmem>>, %arg7: memref<2x128x256xf32, #tpu.memory_space<vmem>>, %arg8: memref<2x128x1xf32, #tpu.memory_space<vmem>>, %arg9: memref<2x32x64xf32, #tpu.memory_space<vmem>>, %arg10: memref<2x64xf32, #tpu.memory_space<vmem>>, %arg11: memref<2x64x32xf32, #tpu.memory_space<vmem>>, %arg12: memref<16x32xf32, #tpu.memory_space<vmem>>, %arg13: memref<32x10xf32, #tpu.memory_space<vmem>>, %arg14: memref<16x10xf32, #tpu.memory_space<vmem>>) attributes {dimension_semantics = [#tpu.dimension_semantics<parallel>], iteration_bounds = array<i64: 2>, scalar_prefetch = 0 : i64, scratch_operands = 0 : i64, tpu.core_type = #tpu.core_type<tc>, window_params = [{transform_indices = @transform_0, window_bounds = array<i64: 1024, 147>}, {transform_indices = @transform_1, window_bounds = array<i64: 64, 1>}, {pipeline_mode = #tpu.pipeline_mode<synchronous>, transform_indices = @transform_2, window_bounds = array<i64: 147, 32>}, {pipeline_mode = #tpu.pipeline_mode<synchronous>, transform_indices = @transform_3, window_bounds = array<i64: 50, 32>}, {pipeline_mode = #tpu.pipeline_mode<synchronous>, transform_indices = @transform_4, window_bounds = array<i64: 2, 256, 128>}, {pipeline_mode = #tpu.pipeline_mode<synchronous>, transform_indices = @transform_5, window_bounds = array<i64: 2, 256, 1>}, {pipeline_mode = #tpu.pipeline_mode<synchronous>, transform_indices = @transform_6, window_bounds = array<i64: 2, 128, 256>}, {pipeline_mode = #tpu.pipeline_mode<synchronous>, transform_indices = @transform_7, window_bounds = array<i64: 2, 128, 1>}, {pipeline_mode = #tpu.pipeline_mode<synchronous>, transform_indices = @transform_8, window_bounds = array<i64: 2, 32, 64>}, {pipeline_mode = #tpu.pipeline_mode<synchronous>, transform_indices = @transform_9, window_bounds = array<i64: 2, 64>}, {pipeline_mode = #tpu.pipeline_mode<synchronous>, transform_indices = @transform_10, window_bounds = array<i64: 2, 64, 32>}, {pipeline_mode = #tpu.pipeline_mode<synchronous>, transform_indices = @transform_11, window_bounds = array<i64: 16, 32>}, {pipeline_mode = #tpu.pipeline_mode<synchronous>, transform_indices = @transform_12, window_bounds = array<i64: 32, 10>}, {transform_indices = @transform_13, window_bounds = array<i64: 16, 10>}]} {
    %c0 = arith.constant 0 : index
    %c0_0 = arith.constant 0 : index
    %0 = vector.load %arg1[%c0, %c0_0] : memref<1024x147xf32, #tpu.memory_space<vmem>>, vector<1024x147xf32>
    %c0_1 = arith.constant 0 : index
    %c0_2 = arith.constant 0 : index
    %1 = vector.load %arg3[%c0_1, %c0_2] : memref<147x32xf32, #tpu.memory_space<vmem>>, vector<147x32xf32>
    %cst = arith.constant dense<0.000000e+00> : vector<1024x32xf32>
    %2 = tpu.matmul %0, %1, %cst {dimension_numbers = #tpu.dot_dimension_numbers<[1], [0], [0], [1], [0, 0, 1, 1], [], []>} : vector<1024x147xf32>, vector<147x32xf32>, vector<1024x32xf32> -> vector<1024x32xf32>
    %3 = vector.extract_strided_slice %2 {offsets = [0, 0], sizes = [64, 32], strides = [1, 1]} : vector<1024x32xf32> to vector<64x32xf32>
    %4 = vector.extract_strided_slice %2 {offsets = [64, 0], sizes = [64, 32], strides = [1, 1]} : vector<1024x32xf32> to vector<64x32xf32>
    %5 = arith.maximumf %3, %4 : vector<64x32xf32>
    %6 = vector.extract_strided_slice %2 {offsets = [128, 0], sizes = [64, 32], strides = [1, 1]} : vector<1024x32xf32> to vector<64x32xf32>
    %7 = arith.maximumf %5, %6 : vector<64x32xf32>
    %8 = vector.extract_strided_slice %2 {offsets = [192, 0], sizes = [64, 32], strides = [1, 1]} : vector<1024x32xf32> to vector<64x32xf32>
    %9 = arith.maximumf %7, %8 : vector<64x32xf32>
    %10 = vector.extract_strided_slice %2 {offsets = [256, 0], sizes = [64, 32], strides = [1, 1]} : vector<1024x32xf32> to vector<64x32xf32>
    %11 = arith.maximumf %9, %10 : vector<64x32xf32>
    %12 = vector.extract_strided_slice %2 {offsets = [320, 0], sizes = [64, 32], strides = [1, 1]} : vector<1024x32xf32> to vector<64x32xf32>
    %13 = arith.maximumf %11, %12 : vector<64x32xf32>
    %14 = vector.extract_strided_slice %2 {offsets = [384, 0], sizes = [64, 32], strides = [1, 1]} : vector<1024x32xf32> to vector<64x32xf32>
    %15 = arith.maximumf %13, %14 : vector<64x32xf32>
    %16 = vector.extract_strided_slice %2 {offsets = [448, 0], sizes = [64, 32], strides = [1, 1]} : vector<1024x32xf32> to vector<64x32xf32>
    %17 = arith.maximumf %15, %16 : vector<64x32xf32>
    %18 = vector.extract_strided_slice %2 {offsets = [512, 0], sizes = [64, 32], strides = [1, 1]} : vector<1024x32xf32> to vector<64x32xf32>
    %19 = arith.maximumf %17, %18 : vector<64x32xf32>
    %20 = vector.extract_strided_slice %2 {offsets = [576, 0], sizes = [64, 32], strides = [1, 1]} : vector<1024x32xf32> to vector<64x32xf32>
    %21 = arith.maximumf %19, %20 : vector<64x32xf32>
    %22 = vector.extract_strided_slice %2 {offsets = [640, 0], sizes = [64, 32], strides = [1, 1]} : vector<1024x32xf32> to vector<64x32xf32>
    %23 = arith.maximumf %21, %22 : vector<64x32xf32>
    %24 = vector.extract_strided_slice %2 {offsets = [704, 0], sizes = [64, 32], strides = [1, 1]} : vector<1024x32xf32> to vector<64x32xf32>
    %25 = arith.maximumf %23, %24 : vector<64x32xf32>
    %26 = vector.extract_strided_slice %2 {offsets = [768, 0], sizes = [64, 32], strides = [1, 1]} : vector<1024x32xf32> to vector<64x32xf32>
    %27 = arith.maximumf %25, %26 : vector<64x32xf32>
    %28 = vector.extract_strided_slice %2 {offsets = [832, 0], sizes = [64, 32], strides = [1, 1]} : vector<1024x32xf32> to vector<64x32xf32>
    %29 = arith.maximumf %27, %28 : vector<64x32xf32>
    %30 = vector.extract_strided_slice %2 {offsets = [896, 0], sizes = [64, 32], strides = [1, 1]} : vector<1024x32xf32> to vector<64x32xf32>
    %31 = arith.maximumf %29, %30 : vector<64x32xf32>
    %32 = vector.extract_strided_slice %2 {offsets = [960, 0], sizes = [64, 32], strides = [1, 1]} : vector<1024x32xf32> to vector<64x32xf32>
    %33 = arith.maximumf %31, %32 : vector<64x32xf32>
    %c0_3 = arith.constant 0 : index
    %c0_4 = arith.constant 0 : index
    %34 = vector.load %arg12[%c0_3, %c0_4] : memref<16x32xf32, #tpu.memory_space<vmem>>, vector<1x32xf32>
    %35 = vector.broadcast %34 : vector<1x32xf32> to vector<64x32xf32>
    %36 = arith.addf %33, %35 : vector<64x32xf32>
    %37 = tpu.iota {dimensions = array<i32: 1>} : vector<64x50xi32>
    %c0_5 = arith.constant 0 : index
    %c0_6 = arith.constant 0 : index
    %38 = vector.load %arg2[%c0_5, %c0_6] : memref<64x1xi32, #tpu.memory_space<vmem>>, vector<64x1xi32>
    %39 = vector.broadcast %38 : vector<64x1xi32> to vector<64x50xi32>
    %40 = arith.cmpi eq, %37, %39 : vector<64x50xi32>
    %41 = arith.extui %40 : vector<64x50xi1> to vector<64x50xi32>
    %42 = arith.sitofp %41 : vector<64x50xi32> to vector<64x50xf32>
    %c0_7 = arith.constant 0 : index
    %c0_8 = arith.constant 0 : index
    %43 = vector.load %arg4[%c0_7, %c0_8] : memref<50x32xf32, #tpu.memory_space<vmem>>, vector<50x32xf32>
    %cst_9 = arith.constant dense<0.000000e+00> : vector<64x32xf32>
    %44 = tpu.matmul %42, %43, %cst_9 {dimension_numbers = #tpu.dot_dimension_numbers<[1], [0], [0], [1], [0, 0, 1, 1], [], []>} : vector<64x50xf32>, vector<50x32xf32>, vector<64x32xf32> -> vector<64x32xf32>
    %c1 = arith.constant 1 : index
    %c0_10 = arith.constant 0 : index
    %45 = vector.load %arg12[%c1, %c0_10] : memref<16x32xf32, #tpu.memory_space<vmem>>, vector<1x32xf32>
    %46 = vector.broadcast %45 : vector<1x32xf32> to vector<64x32xf32>
    %47 = arith.addf %44, %46 : vector<64x32xf32>
    %48 = tpu.concatenate %36, %47 in 0 : vector<64x32xf32>, vector<64x32xf32> -> vector<128x32xf32>
    %c2 = arith.constant 2 : index
    %c0_11 = arith.constant 0 : index
    %49 = vector.load %arg12[%c2, %c0_11] : memref<16x32xf32, #tpu.memory_space<vmem>>, vector<1x32xf32>
    %c3 = arith.constant 3 : index
    %c0_12 = arith.constant 0 : index
    %50 = vector.load %arg12[%c3, %c0_12] : memref<16x32xf32, #tpu.memory_space<vmem>>, vector<1x32xf32>
    %cst_13 = arith.constant dense<0.000000e+00> : vector<128xf32>
    %51 = vector.multi_reduction <add>, %48, %cst_13 [1] : vector<128x32xf32> to vector<128xf32>
    %52 = vector.shape_cast %51 : vector<128xf32> to vector<128x1xf32>
    %cst_14 = arith.constant 3.200000e+01 : f32
    %53 = vector.broadcast %cst_14 : f32 to vector<128x1xf32>
    %54 = arith.divf %52, %53 : vector<128x1xf32>
    %55 = vector.broadcast %54 : vector<128x1xf32> to vector<128x32xf32>
    %56 = arith.subf %48, %55 : vector<128x32xf32>
    %57 = arith.mulf %56, %56 : vector<128x32xf32>
    %cst_15 = arith.constant dense<0.000000e+00> : vector<128xf32>
    %58 = vector.multi_reduction <add>, %57, %cst_15 [1] : vector<128x32xf32> to vector<128xf32>
    %59 = vector.shape_cast %58 : vector<128xf32> to vector<128x1xf32>
    %cst_16 = arith.constant 3.200000e+01 : f32
    %60 = vector.broadcast %cst_16 : f32 to vector<128x1xf32>
    %61 = arith.divf %59, %60 : vector<128x1xf32>
    %cst_17 = arith.constant 9.99999974E-6 : f32
    %62 = vector.broadcast %cst_17 : f32 to vector<128x1xf32>
    %63 = arith.addf %61, %62 : vector<128x1xf32>
    %64 = math.rsqrt %63 : vector<128x1xf32>
    %65 = vector.broadcast %64 : vector<128x1xf32> to vector<128x32xf32>
    %66 = arith.mulf %56, %65 : vector<128x32xf32>
    %67 = vector.broadcast %49 : vector<1x32xf32> to vector<128x32xf32>
    %68 = arith.mulf %66, %67 : vector<128x32xf32>
    %69 = vector.broadcast %50 : vector<1x32xf32> to vector<128x32xf32>
    %70 = arith.addf %68, %69 : vector<128x32xf32>
    %c0_18 = arith.constant 0 : index
    %c0_19 = arith.constant 0 : index
    %c0_20 = arith.constant 0 : index
    %71 = vector.load %arg5[%c0_18, %c0_19, %c0_20] : memref<2x256x128xf32, #tpu.memory_space<vmem>>, vector<1x256x128xf32>
    %72 = vector.shape_cast %71 : vector<1x256x128xf32> to vector<256x128xf32>
    %cst_21 = arith.constant dense<0.000000e+00> : vector<256x32xf32>
    %73 = tpu.matmul %72, %70, %cst_21 {dimension_numbers = #tpu.dot_dimension_numbers<[1], [0], [0], [1], [0, 0, 1, 1], [], []>} : vector<256x128xf32>, vector<128x32xf32>, vector<256x32xf32> -> vector<256x32xf32>
    %c0_22 = arith.constant 0 : index
    %c0_23 = arith.constant 0 : index
    %c0_24 = arith.constant 0 : index
    %74 = vector.load %arg6[%c0_22, %c0_23, %c0_24] : memref<2x256x1xf32, #tpu.memory_space<vmem>>, vector<1x256x1xf32>
    %75 = vector.shape_cast %74 : vector<1x256x1xf32> to vector<256x1xf32>
    %76 = vector.broadcast %75 : vector<256x1xf32> to vector<256x32xf32>
    %77 = arith.addf %73, %76 : vector<256x32xf32>
    %c0_25 = arith.constant 0 : index
    %c0_26 = arith.constant 0 : index
    %c0_27 = arith.constant 0 : index
    %78 = vector.load %arg7[%c0_25, %c0_26, %c0_27] : memref<2x128x256xf32, #tpu.memory_space<vmem>>, vector<1x128x256xf32>
    %79 = vector.shape_cast %78 : vector<1x128x256xf32> to vector<128x256xf32>
    %cst_28 = arith.constant 5.000000e-01 : f32
    %80 = vector.broadcast %cst_28 : f32 to vector<256x32xf32>
    %81 = arith.mulf %80, %77 : vector<256x32xf32>
    %cst_29 = arith.constant 0.707106769 : f32
    %82 = vector.broadcast %cst_29 : f32 to vector<256x32xf32>
    %83 = arith.mulf %77, %82 : vector<256x32xf32>
    %cst_30 = arith.constant 0.000000e+00 : f32
    %84 = vector.broadcast %cst_30 : f32 to vector<256x32xf32>
    %85 = arith.cmpf oge, %83, %84 : vector<256x32xf32>
    %cst_31 = arith.constant 1.000000e+00 : f32
    %cst_32 = arith.constant -1.000000e+00 : f32
    %86 = vector.broadcast %cst_31 : f32 to vector<256x32xf32>
    %87 = vector.broadcast %cst_32 : f32 to vector<256x32xf32>
    %88 = arith.select %85, %86, %87 : vector<256x32xi1>, vector<256x32xf32>
    %89 = math.absf %83 : vector<256x32xf32>
    %cst_33 = arith.constant 0.327591091 : f32
    %90 = vector.broadcast %cst_33 : f32 to vector<256x32xf32>
    %91 = arith.mulf %90, %89 : vector<256x32xf32>
    %cst_34 = arith.constant 1.000000e+00 : f32
    %92 = vector.broadcast %cst_34 : f32 to vector<256x32xf32>
    %93 = arith.addf %92, %91 : vector<256x32xf32>
    %cst_35 = arith.constant 1.000000e+00 : f32
    %94 = vector.broadcast %cst_35 : f32 to vector<256x32xf32>
    %95 = arith.divf %94, %93 : vector<256x32xf32>
    %cst_36 = arith.constant 1.06140542 : f32
    %96 = vector.broadcast %cst_36 : f32 to vector<256x32xf32>
    %97 = arith.mulf %96, %95 : vector<256x32xf32>
    %cst_37 = arith.constant -1.45315206 : f32
    %98 = vector.broadcast %cst_37 : f32 to vector<256x32xf32>
    %99 = arith.addf %97, %98 : vector<256x32xf32>
    %100 = arith.mulf %99, %95 : vector<256x32xf32>
    %cst_38 = arith.constant 1.42141378 : f32
    %101 = vector.broadcast %cst_38 : f32 to vector<256x32xf32>
    %102 = arith.addf %100, %101 : vector<256x32xf32>
    %103 = arith.mulf %102, %95 : vector<256x32xf32>
    %cst_39 = arith.constant -0.284496725 : f32
    %104 = vector.broadcast %cst_39 : f32 to vector<256x32xf32>
    %105 = arith.addf %103, %104 : vector<256x32xf32>
    %106 = arith.mulf %105, %95 : vector<256x32xf32>
    %cst_40 = arith.constant 0.254829586 : f32
    %107 = vector.broadcast %cst_40 : f32 to vector<256x32xf32>
    %108 = arith.addf %106, %107 : vector<256x32xf32>
    %109 = arith.mulf %108, %95 : vector<256x32xf32>
    %cst_41 = arith.constant 0.000000e+00 : f32
    %110 = vector.broadcast %cst_41 : f32 to vector<256x32xf32>
    %111 = arith.subf %110, %89 : vector<256x32xf32>
    %112 = arith.mulf %111, %89 : vector<256x32xf32>
    %113 = math.exp %112 : vector<256x32xf32>
    %114 = arith.mulf %109, %113 : vector<256x32xf32>
    %cst_42 = arith.constant 1.000000e+00 : f32
    %115 = vector.broadcast %cst_42 : f32 to vector<256x32xf32>
    %116 = arith.subf %115, %114 : vector<256x32xf32>
    %117 = arith.mulf %88, %116 : vector<256x32xf32>
    %cst_43 = arith.constant 1.000000e+00 : f32
    %118 = vector.broadcast %cst_43 : f32 to vector<256x32xf32>
    %119 = arith.addf %118, %117 : vector<256x32xf32>
    %120 = arith.mulf %81, %119 : vector<256x32xf32>
    %cst_44 = arith.constant dense<0.000000e+00> : vector<128x32xf32>
    %121 = tpu.matmul %79, %120, %cst_44 {dimension_numbers = #tpu.dot_dimension_numbers<[1], [0], [0], [1], [0, 0, 1, 1], [], []>} : vector<128x256xf32>, vector<256x32xf32>, vector<128x32xf32> -> vector<128x32xf32>
    %122 = arith.addf %48, %121 : vector<128x32xf32>
    %c0_45 = arith.constant 0 : index
    %c0_46 = arith.constant 0 : index
    %c0_47 = arith.constant 0 : index
    %123 = vector.load %arg8[%c0_45, %c0_46, %c0_47] : memref<2x128x1xf32, #tpu.memory_space<vmem>>, vector<1x128x1xf32>
    %124 = vector.shape_cast %123 : vector<1x128x1xf32> to vector<128x1xf32>
    %125 = vector.broadcast %124 : vector<128x1xf32> to vector<128x32xf32>
    %126 = arith.addf %122, %125 : vector<128x32xf32>
    %c4 = arith.constant 4 : index
    %c0_48 = arith.constant 0 : index
    %127 = vector.load %arg12[%c4, %c0_48] : memref<16x32xf32, #tpu.memory_space<vmem>>, vector<1x32xf32>
    %c5 = arith.constant 5 : index
    %c0_49 = arith.constant 0 : index
    %128 = vector.load %arg12[%c5, %c0_49] : memref<16x32xf32, #tpu.memory_space<vmem>>, vector<1x32xf32>
    %cst_50 = arith.constant dense<0.000000e+00> : vector<128xf32>
    %129 = vector.multi_reduction <add>, %126, %cst_50 [1] : vector<128x32xf32> to vector<128xf32>
    %130 = vector.shape_cast %129 : vector<128xf32> to vector<128x1xf32>
    %cst_51 = arith.constant 3.200000e+01 : f32
    %131 = vector.broadcast %cst_51 : f32 to vector<128x1xf32>
    %132 = arith.divf %130, %131 : vector<128x1xf32>
    %133 = vector.broadcast %132 : vector<128x1xf32> to vector<128x32xf32>
    %134 = arith.subf %126, %133 : vector<128x32xf32>
    %135 = arith.mulf %134, %134 : vector<128x32xf32>
    %cst_52 = arith.constant dense<0.000000e+00> : vector<128xf32>
    %136 = vector.multi_reduction <add>, %135, %cst_52 [1] : vector<128x32xf32> to vector<128xf32>
    %137 = vector.shape_cast %136 : vector<128xf32> to vector<128x1xf32>
    %cst_53 = arith.constant 3.200000e+01 : f32
    %138 = vector.broadcast %cst_53 : f32 to vector<128x1xf32>
    %139 = arith.divf %137, %138 : vector<128x1xf32>
    %cst_54 = arith.constant 9.99999974E-6 : f32
    %140 = vector.broadcast %cst_54 : f32 to vector<128x1xf32>
    %141 = arith.addf %139, %140 : vector<128x1xf32>
    %142 = math.rsqrt %141 : vector<128x1xf32>
    %143 = vector.broadcast %142 : vector<128x1xf32> to vector<128x32xf32>
    %144 = arith.mulf %134, %143 : vector<128x32xf32>
    %145 = vector.broadcast %127 : vector<1x32xf32> to vector<128x32xf32>
    %146 = arith.mulf %144, %145 : vector<128x32xf32>
    %147 = vector.broadcast %128 : vector<1x32xf32> to vector<128x32xf32>
    %148 = arith.addf %146, %147 : vector<128x32xf32>
    %c0_55 = arith.constant 0 : index
    %c0_56 = arith.constant 0 : index
    %c0_57 = arith.constant 0 : index
    %149 = vector.load %arg9[%c0_55, %c0_56, %c0_57] : memref<2x32x64xf32, #tpu.memory_space<vmem>>, vector<1x32x64xf32>
    %150 = vector.shape_cast %149 : vector<1x32x64xf32> to vector<32x64xf32>
    %cst_58 = arith.constant dense<0.000000e+00> : vector<128x64xf32>
    %151 = tpu.matmul %148, %150, %cst_58 {dimension_numbers = #tpu.dot_dimension_numbers<[1], [0], [0], [1], [0, 0, 1, 1], [], []>} : vector<128x32xf32>, vector<32x64xf32>, vector<128x64xf32> -> vector<128x64xf32>
    %c0_59 = arith.constant 0 : index
    %c0_60 = arith.constant 0 : index
    %152 = vector.load %arg10[%c0_59, %c0_60] : memref<2x64xf32, #tpu.memory_space<vmem>>, vector<1x64xf32>
    %153 = vector.broadcast %152 : vector<1x64xf32> to vector<128x64xf32>
    %154 = arith.addf %151, %153 : vector<128x64xf32>
    %cst_61 = arith.constant 5.000000e-01 : f32
    %155 = vector.broadcast %cst_61 : f32 to vector<128x64xf32>
    %156 = arith.mulf %155, %154 : vector<128x64xf32>
    %cst_62 = arith.constant 0.707106769 : f32
    %157 = vector.broadcast %cst_62 : f32 to vector<128x64xf32>
    %158 = arith.mulf %154, %157 : vector<128x64xf32>
    %cst_63 = arith.constant 0.000000e+00 : f32
    %159 = vector.broadcast %cst_63 : f32 to vector<128x64xf32>
    %160 = arith.cmpf oge, %158, %159 : vector<128x64xf32>
    %cst_64 = arith.constant 1.000000e+00 : f32
    %cst_65 = arith.constant -1.000000e+00 : f32
    %161 = vector.broadcast %cst_64 : f32 to vector<128x64xf32>
    %162 = vector.broadcast %cst_65 : f32 to vector<128x64xf32>
    %163 = arith.select %160, %161, %162 : vector<128x64xi1>, vector<128x64xf32>
    %164 = math.absf %158 : vector<128x64xf32>
    %cst_66 = arith.constant 0.327591091 : f32
    %165 = vector.broadcast %cst_66 : f32 to vector<128x64xf32>
    %166 = arith.mulf %165, %164 : vector<128x64xf32>
    %cst_67 = arith.constant 1.000000e+00 : f32
    %167 = vector.broadcast %cst_67 : f32 to vector<128x64xf32>
    %168 = arith.addf %167, %166 : vector<128x64xf32>
    %cst_68 = arith.constant 1.000000e+00 : f32
    %169 = vector.broadcast %cst_68 : f32 to vector<128x64xf32>
    %170 = arith.divf %169, %168 : vector<128x64xf32>
    %cst_69 = arith.constant 1.06140542 : f32
    %171 = vector.broadcast %cst_69 : f32 to vector<128x64xf32>
    %172 = arith.mulf %171, %170 : vector<128x64xf32>
    %cst_70 = arith.constant -1.45315206 : f32
    %173 = vector.broadcast %cst_70 : f32 to vector<128x64xf32>
    %174 = arith.addf %172, %173 : vector<128x64xf32>
    %175 = arith.mulf %174, %170 : vector<128x64xf32>
    %cst_71 = arith.constant 1.42141378 : f32
    %176 = vector.broadcast %cst_71 : f32 to vector<128x64xf32>
    %177 = arith.addf %175, %176 : vector<128x64xf32>
    %178 = arith.mulf %177, %170 : vector<128x64xf32>
    %cst_72 = arith.constant -0.284496725 : f32
    %179 = vector.broadcast %cst_72 : f32 to vector<128x64xf32>
    %180 = arith.addf %178, %179 : vector<128x64xf32>
    %181 = arith.mulf %180, %170 : vector<128x64xf32>
    %cst_73 = arith.constant 0.254829586 : f32
    %182 = vector.broadcast %cst_73 : f32 to vector<128x64xf32>
    %183 = arith.addf %181, %182 : vector<128x64xf32>
    %184 = arith.mulf %183, %170 : vector<128x64xf32>
    %cst_74 = arith.constant 0.000000e+00 : f32
    %185 = vector.broadcast %cst_74 : f32 to vector<128x64xf32>
    %186 = arith.subf %185, %164 : vector<128x64xf32>
    %187 = arith.mulf %186, %164 : vector<128x64xf32>
    %188 = math.exp %187 : vector<128x64xf32>
    %189 = arith.mulf %184, %188 : vector<128x64xf32>
    %cst_75 = arith.constant 1.000000e+00 : f32
    %190 = vector.broadcast %cst_75 : f32 to vector<128x64xf32>
    %191 = arith.subf %190, %189 : vector<128x64xf32>
    %192 = arith.mulf %163, %191 : vector<128x64xf32>
    %cst_76 = arith.constant 1.000000e+00 : f32
    %193 = vector.broadcast %cst_76 : f32 to vector<128x64xf32>
    %194 = arith.addf %193, %192 : vector<128x64xf32>
    %195 = arith.mulf %156, %194 : vector<128x64xf32>
    %c0_77 = arith.constant 0 : index
    %c0_78 = arith.constant 0 : index
    %c0_79 = arith.constant 0 : index
    %196 = vector.load %arg11[%c0_77, %c0_78, %c0_79] : memref<2x64x32xf32, #tpu.memory_space<vmem>>, vector<1x64x32xf32>
    %197 = vector.shape_cast %196 : vector<1x64x32xf32> to vector<64x32xf32>
    %cst_80 = arith.constant dense<0.000000e+00> : vector<128x32xf32>
    %198 = tpu.matmul %195, %197, %cst_80 {dimension_numbers = #tpu.dot_dimension_numbers<[1], [0], [0], [1], [0, 0, 1, 1], [], []>} : vector<128x64xf32>, vector<64x32xf32>, vector<128x32xf32> -> vector<128x32xf32>
    %199 = arith.addf %126, %198 : vector<128x32xf32>
    %c6 = arith.constant 6 : index
    %c0_81 = arith.constant 0 : index
    %200 = vector.load %arg12[%c6, %c0_81] : memref<16x32xf32, #tpu.memory_space<vmem>>, vector<1x32xf32>
    %201 = vector.broadcast %200 : vector<1x32xf32> to vector<128x32xf32>
    %202 = arith.addf %199, %201 : vector<128x32xf32>
    %c7 = arith.constant 7 : index
    %c0_82 = arith.constant 0 : index
    %203 = vector.load %arg12[%c7, %c0_82] : memref<16x32xf32, #tpu.memory_space<vmem>>, vector<1x32xf32>
    %c8 = arith.constant 8 : index
    %c0_83 = arith.constant 0 : index
    %204 = vector.load %arg12[%c8, %c0_83] : memref<16x32xf32, #tpu.memory_space<vmem>>, vector<1x32xf32>
    %cst_84 = arith.constant dense<0.000000e+00> : vector<128xf32>
    %205 = vector.multi_reduction <add>, %202, %cst_84 [1] : vector<128x32xf32> to vector<128xf32>
    %206 = vector.shape_cast %205 : vector<128xf32> to vector<128x1xf32>
    %cst_85 = arith.constant 3.200000e+01 : f32
    %207 = vector.broadcast %cst_85 : f32 to vector<128x1xf32>
    %208 = arith.divf %206, %207 : vector<128x1xf32>
    %209 = vector.broadcast %208 : vector<128x1xf32> to vector<128x32xf32>
    %210 = arith.subf %202, %209 : vector<128x32xf32>
    %211 = arith.mulf %210, %210 : vector<128x32xf32>
    %cst_86 = arith.constant dense<0.000000e+00> : vector<128xf32>
    %212 = vector.multi_reduction <add>, %211, %cst_86 [1] : vector<128x32xf32> to vector<128xf32>
    %213 = vector.shape_cast %212 : vector<128xf32> to vector<128x1xf32>
    %cst_87 = arith.constant 3.200000e+01 : f32
    %214 = vector.broadcast %cst_87 : f32 to vector<128x1xf32>
    %215 = arith.divf %213, %214 : vector<128x1xf32>
    %cst_88 = arith.constant 9.99999974E-6 : f32
    %216 = vector.broadcast %cst_88 : f32 to vector<128x1xf32>
    %217 = arith.addf %215, %216 : vector<128x1xf32>
    %218 = math.rsqrt %217 : vector<128x1xf32>
    %219 = vector.broadcast %218 : vector<128x1xf32> to vector<128x32xf32>
    %220 = arith.mulf %210, %219 : vector<128x32xf32>
    %221 = vector.broadcast %203 : vector<1x32xf32> to vector<128x32xf32>
    %222 = arith.mulf %220, %221 : vector<128x32xf32>
    %223 = vector.broadcast %204 : vector<1x32xf32> to vector<128x32xf32>
    %224 = arith.addf %222, %223 : vector<128x32xf32>
    %c1_89 = arith.constant 1 : index
    %c0_90 = arith.constant 0 : index
    %c0_91 = arith.constant 0 : index
    %225 = vector.load %arg5[%c1_89, %c0_90, %c0_91] : memref<2x256x128xf32, #tpu.memory_space<vmem>>, vector<1x256x128xf32>
    %226 = vector.shape_cast %225 : vector<1x256x128xf32> to vector<256x128xf32>
    %cst_92 = arith.constant dense<0.000000e+00> : vector<256x32xf32>
    %227 = tpu.matmul %226, %224, %cst_92 {dimension_numbers = #tpu.dot_dimension_numbers<[1], [0], [0], [1], [0, 0, 1, 1], [], []>} : vector<256x128xf32>, vector<128x32xf32>, vector<256x32xf32> -> vector<256x32xf32>
    %c1_93 = arith.constant 1 : index
    %c0_94 = arith.constant 0 : index
    %c0_95 = arith.constant 0 : index
    %228 = vector.load %arg6[%c1_93, %c0_94, %c0_95] : memref<2x256x1xf32, #tpu.memory_space<vmem>>, vector<1x256x1xf32>
    %229 = vector.shape_cast %228 : vector<1x256x1xf32> to vector<256x1xf32>
    %230 = vector.broadcast %229 : vector<256x1xf32> to vector<256x32xf32>
    %231 = arith.addf %227, %230 : vector<256x32xf32>
    %c1_96 = arith.constant 1 : index
    %c0_97 = arith.constant 0 : index
    %c0_98 = arith.constant 0 : index
    %232 = vector.load %arg7[%c1_96, %c0_97, %c0_98] : memref<2x128x256xf32, #tpu.memory_space<vmem>>, vector<1x128x256xf32>
    %233 = vector.shape_cast %232 : vector<1x128x256xf32> to vector<128x256xf32>
    %cst_99 = arith.constant 5.000000e-01 : f32
    %234 = vector.broadcast %cst_99 : f32 to vector<256x32xf32>
    %235 = arith.mulf %234, %231 : vector<256x32xf32>
    %cst_100 = arith.constant 0.707106769 : f32
    %236 = vector.broadcast %cst_100 : f32 to vector<256x32xf32>
    %237 = arith.mulf %231, %236 : vector<256x32xf32>
    %cst_101 = arith.constant 0.000000e+00 : f32
    %238 = vector.broadcast %cst_101 : f32 to vector<256x32xf32>
    %239 = arith.cmpf oge, %237, %238 : vector<256x32xf32>
    %cst_102 = arith.constant 1.000000e+00 : f32
    %cst_103 = arith.constant -1.000000e+00 : f32
    %240 = vector.broadcast %cst_102 : f32 to vector<256x32xf32>
    %241 = vector.broadcast %cst_103 : f32 to vector<256x32xf32>
    %242 = arith.select %239, %240, %241 : vector<256x32xi1>, vector<256x32xf32>
    %243 = math.absf %237 : vector<256x32xf32>
    %cst_104 = arith.constant 0.327591091 : f32
    %244 = vector.broadcast %cst_104 : f32 to vector<256x32xf32>
    %245 = arith.mulf %244, %243 : vector<256x32xf32>
    %cst_105 = arith.constant 1.000000e+00 : f32
    %246 = vector.broadcast %cst_105 : f32 to vector<256x32xf32>
    %247 = arith.addf %246, %245 : vector<256x32xf32>
    %cst_106 = arith.constant 1.000000e+00 : f32
    %248 = vector.broadcast %cst_106 : f32 to vector<256x32xf32>
    %249 = arith.divf %248, %247 : vector<256x32xf32>
    %cst_107 = arith.constant 1.06140542 : f32
    %250 = vector.broadcast %cst_107 : f32 to vector<256x32xf32>
    %251 = arith.mulf %250, %249 : vector<256x32xf32>
    %cst_108 = arith.constant -1.45315206 : f32
    %252 = vector.broadcast %cst_108 : f32 to vector<256x32xf32>
    %253 = arith.addf %251, %252 : vector<256x32xf32>
    %254 = arith.mulf %253, %249 : vector<256x32xf32>
    %cst_109 = arith.constant 1.42141378 : f32
    %255 = vector.broadcast %cst_109 : f32 to vector<256x32xf32>
    %256 = arith.addf %254, %255 : vector<256x32xf32>
    %257 = arith.mulf %256, %249 : vector<256x32xf32>
    %cst_110 = arith.constant -0.284496725 : f32
    %258 = vector.broadcast %cst_110 : f32 to vector<256x32xf32>
    %259 = arith.addf %257, %258 : vector<256x32xf32>
    %260 = arith.mulf %259, %249 : vector<256x32xf32>
    %cst_111 = arith.constant 0.254829586 : f32
    %261 = vector.broadcast %cst_111 : f32 to vector<256x32xf32>
    %262 = arith.addf %260, %261 : vector<256x32xf32>
    %263 = arith.mulf %262, %249 : vector<256x32xf32>
    %cst_112 = arith.constant 0.000000e+00 : f32
    %264 = vector.broadcast %cst_112 : f32 to vector<256x32xf32>
    %265 = arith.subf %264, %243 : vector<256x32xf32>
    %266 = arith.mulf %265, %243 : vector<256x32xf32>
    %267 = math.exp %266 : vector<256x32xf32>
    %268 = arith.mulf %263, %267 : vector<256x32xf32>
    %cst_113 = arith.constant 1.000000e+00 : f32
    %269 = vector.broadcast %cst_113 : f32 to vector<256x32xf32>
    %270 = arith.subf %269, %268 : vector<256x32xf32>
    %271 = arith.mulf %242, %270 : vector<256x32xf32>
    %cst_114 = arith.constant 1.000000e+00 : f32
    %272 = vector.broadcast %cst_114 : f32 to vector<256x32xf32>
    %273 = arith.addf %272, %271 : vector<256x32xf32>
    %274 = arith.mulf %235, %273 : vector<256x32xf32>
    %cst_115 = arith.constant dense<0.000000e+00> : vector<128x32xf32>
    %275 = tpu.matmul %233, %274, %cst_115 {dimension_numbers = #tpu.dot_dimension_numbers<[1], [0], [0], [1], [0, 0, 1, 1], [], []>} : vector<128x256xf32>, vector<256x32xf32>, vector<128x32xf32> -> vector<128x32xf32>
    %276 = arith.addf %202, %275 : vector<128x32xf32>
    %c1_116 = arith.constant 1 : index
    %c0_117 = arith.constant 0 : index
    %c0_118 = arith.constant 0 : index
    %277 = vector.load %arg8[%c1_116, %c0_117, %c0_118] : memref<2x128x1xf32, #tpu.memory_space<vmem>>, vector<1x128x1xf32>
    %278 = vector.shape_cast %277 : vector<1x128x1xf32> to vector<128x1xf32>
    %279 = vector.broadcast %278 : vector<128x1xf32> to vector<128x32xf32>
    %280 = arith.addf %276, %279 : vector<128x32xf32>
    %c9 = arith.constant 9 : index
    %c0_119 = arith.constant 0 : index
    %281 = vector.load %arg12[%c9, %c0_119] : memref<16x32xf32, #tpu.memory_space<vmem>>, vector<1x32xf32>
    %c10 = arith.constant 10 : index
    %c0_120 = arith.constant 0 : index
    %282 = vector.load %arg12[%c10, %c0_120] : memref<16x32xf32, #tpu.memory_space<vmem>>, vector<1x32xf32>
    %cst_121 = arith.constant dense<0.000000e+00> : vector<128xf32>
    %283 = vector.multi_reduction <add>, %280, %cst_121 [1] : vector<128x32xf32> to vector<128xf32>
    %284 = vector.shape_cast %283 : vector<128xf32> to vector<128x1xf32>
    %cst_122 = arith.constant 3.200000e+01 : f32
    %285 = vector.broadcast %cst_122 : f32 to vector<128x1xf32>
    %286 = arith.divf %284, %285 : vector<128x1xf32>
    %287 = vector.broadcast %286 : vector<128x1xf32> to vector<128x32xf32>
    %288 = arith.subf %280, %287 : vector<128x32xf32>
    %289 = arith.mulf %288, %288 : vector<128x32xf32>
    %cst_123 = arith.constant dense<0.000000e+00> : vector<128xf32>
    %290 = vector.multi_reduction <add>, %289, %cst_123 [1] : vector<128x32xf32> to vector<128xf32>
    %291 = vector.shape_cast %290 : vector<128xf32> to vector<128x1xf32>
    %cst_124 = arith.constant 3.200000e+01 : f32
    %292 = vector.broadcast %cst_124 : f32 to vector<128x1xf32>
    %293 = arith.divf %291, %292 : vector<128x1xf32>
    %cst_125 = arith.constant 9.99999974E-6 : f32
    %294 = vector.broadcast %cst_125 : f32 to vector<128x1xf32>
    %295 = arith.addf %293, %294 : vector<128x1xf32>
    %296 = math.rsqrt %295 : vector<128x1xf32>
    %297 = vector.broadcast %296 : vector<128x1xf32> to vector<128x32xf32>
    %298 = arith.mulf %288, %297 : vector<128x32xf32>
    %299 = vector.broadcast %281 : vector<1x32xf32> to vector<128x32xf32>
    %300 = arith.mulf %298, %299 : vector<128x32xf32>
    %301 = vector.broadcast %282 : vector<1x32xf32> to vector<128x32xf32>
    %302 = arith.addf %300, %301 : vector<128x32xf32>
    %c1_126 = arith.constant 1 : index
    %c0_127 = arith.constant 0 : index
    %c0_128 = arith.constant 0 : index
    %303 = vector.load %arg9[%c1_126, %c0_127, %c0_128] : memref<2x32x64xf32, #tpu.memory_space<vmem>>, vector<1x32x64xf32>
    %304 = vector.shape_cast %303 : vector<1x32x64xf32> to vector<32x64xf32>
    %cst_129 = arith.constant dense<0.000000e+00> : vector<128x64xf32>
    %305 = tpu.matmul %302, %304, %cst_129 {dimension_numbers = #tpu.dot_dimension_numbers<[1], [0], [0], [1], [0, 0, 1, 1], [], []>} : vector<128x32xf32>, vector<32x64xf32>, vector<128x64xf32> -> vector<128x64xf32>
    %c1_130 = arith.constant 1 : index
    %c0_131 = arith.constant 0 : index
    %306 = vector.load %arg10[%c1_130, %c0_131] : memref<2x64xf32, #tpu.memory_space<vmem>>, vector<1x64xf32>
    %307 = vector.broadcast %306 : vector<1x64xf32> to vector<128x64xf32>
    %308 = arith.addf %305, %307 : vector<128x64xf32>
    %cst_132 = arith.constant 5.000000e-01 : f32
    %309 = vector.broadcast %cst_132 : f32 to vector<128x64xf32>
    %310 = arith.mulf %309, %308 : vector<128x64xf32>
    %cst_133 = arith.constant 0.707106769 : f32
    %311 = vector.broadcast %cst_133 : f32 to vector<128x64xf32>
    %312 = arith.mulf %308, %311 : vector<128x64xf32>
    %cst_134 = arith.constant 0.000000e+00 : f32
    %313 = vector.broadcast %cst_134 : f32 to vector<128x64xf32>
    %314 = arith.cmpf oge, %312, %313 : vector<128x64xf32>
    %cst_135 = arith.constant 1.000000e+00 : f32
    %cst_136 = arith.constant -1.000000e+00 : f32
    %315 = vector.broadcast %cst_135 : f32 to vector<128x64xf32>
    %316 = vector.broadcast %cst_136 : f32 to vector<128x64xf32>
    %317 = arith.select %314, %315, %316 : vector<128x64xi1>, vector<128x64xf32>
    %318 = math.absf %312 : vector<128x64xf32>
    %cst_137 = arith.constant 0.327591091 : f32
    %319 = vector.broadcast %cst_137 : f32 to vector<128x64xf32>
    %320 = arith.mulf %319, %318 : vector<128x64xf32>
    %cst_138 = arith.constant 1.000000e+00 : f32
    %321 = vector.broadcast %cst_138 : f32 to vector<128x64xf32>
    %322 = arith.addf %321, %320 : vector<128x64xf32>
    %cst_139 = arith.constant 1.000000e+00 : f32
    %323 = vector.broadcast %cst_139 : f32 to vector<128x64xf32>
    %324 = arith.divf %323, %322 : vector<128x64xf32>
    %cst_140 = arith.constant 1.06140542 : f32
    %325 = vector.broadcast %cst_140 : f32 to vector<128x64xf32>
    %326 = arith.mulf %325, %324 : vector<128x64xf32>
    %cst_141 = arith.constant -1.45315206 : f32
    %327 = vector.broadcast %cst_141 : f32 to vector<128x64xf32>
    %328 = arith.addf %326, %327 : vector<128x64xf32>
    %329 = arith.mulf %328, %324 : vector<128x64xf32>
    %cst_142 = arith.constant 1.42141378 : f32
    %330 = vector.broadcast %cst_142 : f32 to vector<128x64xf32>
    %331 = arith.addf %329, %330 : vector<128x64xf32>
    %332 = arith.mulf %331, %324 : vector<128x64xf32>
    %cst_143 = arith.constant -0.284496725 : f32
    %333 = vector.broadcast %cst_143 : f32 to vector<128x64xf32>
    %334 = arith.addf %332, %333 : vector<128x64xf32>
    %335 = arith.mulf %334, %324 : vector<128x64xf32>
    %cst_144 = arith.constant 0.254829586 : f32
    %336 = vector.broadcast %cst_144 : f32 to vector<128x64xf32>
    %337 = arith.addf %335, %336 : vector<128x64xf32>
    %338 = arith.mulf %337, %324 : vector<128x64xf32>
    %cst_145 = arith.constant 0.000000e+00 : f32
    %339 = vector.broadcast %cst_145 : f32 to vector<128x64xf32>
    %340 = arith.subf %339, %318 : vector<128x64xf32>
    %341 = arith.mulf %340, %318 : vector<128x64xf32>
    %342 = math.exp %341 : vector<128x64xf32>
    %343 = arith.mulf %338, %342 : vector<128x64xf32>
    %cst_146 = arith.constant 1.000000e+00 : f32
    %344 = vector.broadcast %cst_146 : f32 to vector<128x64xf32>
    %345 = arith.subf %344, %343 : vector<128x64xf32>
    %346 = arith.mulf %317, %345 : vector<128x64xf32>
    %cst_147 = arith.constant 1.000000e+00 : f32
    %347 = vector.broadcast %cst_147 : f32 to vector<128x64xf32>
    %348 = arith.addf %347, %346 : vector<128x64xf32>
    %349 = arith.mulf %310, %348 : vector<128x64xf32>
    %c1_148 = arith.constant 1 : index
    %c0_149 = arith.constant 0 : index
    %c0_150 = arith.constant 0 : index
    %350 = vector.load %arg11[%c1_148, %c0_149, %c0_150] : memref<2x64x32xf32, #tpu.memory_space<vmem>>, vector<1x64x32xf32>
    %351 = vector.shape_cast %350 : vector<1x64x32xf32> to vector<64x32xf32>
    %cst_151 = arith.constant dense<0.000000e+00> : vector<128x32xf32>
    %352 = tpu.matmul %349, %351, %cst_151 {dimension_numbers = #tpu.dot_dimension_numbers<[1], [0], [0], [1], [0, 0, 1, 1], [], []>} : vector<128x64xf32>, vector<64x32xf32>, vector<128x32xf32> -> vector<128x32xf32>
    %353 = arith.addf %280, %352 : vector<128x32xf32>
    %c11 = arith.constant 11 : index
    %c0_152 = arith.constant 0 : index
    %354 = vector.load %arg12[%c11, %c0_152] : memref<16x32xf32, #tpu.memory_space<vmem>>, vector<1x32xf32>
    %355 = vector.broadcast %354 : vector<1x32xf32> to vector<128x32xf32>
    %356 = arith.addf %353, %355 : vector<128x32xf32>
    %357 = tpu.iota {dimensions = array<i32: 0>} : vector<16x128xi32>
    %358 = tpu.iota {dimensions = array<i32: 1>} : vector<16x128xi32>
    %c4_i32 = arith.constant 4 : i32
    %359 = vector.broadcast %c4_i32 : i32 to vector<16x128xi32>
    %360 = arith.muli %357, %359 : vector<16x128xi32>
    %361 = arith.cmpi sge, %358, %360 : vector<16x128xi32>
    %c1_i32 = arith.constant 1 : i32
    %362 = vector.broadcast %c1_i32 : i32 to vector<16x128xi32>
    %363 = arith.addi %357, %362 : vector<16x128xi32>
    %c4_i32_153 = arith.constant 4 : i32
    %364 = vector.broadcast %c4_i32_153 : i32 to vector<16x128xi32>
    %365 = arith.muli %363, %364 : vector<16x128xi32>
    %366 = arith.cmpi slt, %358, %365 : vector<16x128xi32>
    %367 = arith.andi %361, %366 : vector<16x128xi1>
    %c4_i32_154 = arith.constant 4 : i32
    %368 = vector.broadcast %c4_i32_154 : i32 to vector<16x128xi32>
    %369 = arith.muli %357, %368 : vector<16x128xi32>
    %c64_i32 = arith.constant 64 : i32
    %370 = vector.broadcast %c64_i32 : i32 to vector<16x128xi32>
    %371 = arith.addi %370, %369 : vector<16x128xi32>
    %372 = arith.cmpi sge, %358, %371 : vector<16x128xi32>
    %c1_i32_155 = arith.constant 1 : i32
    %373 = vector.broadcast %c1_i32_155 : i32 to vector<16x128xi32>
    %374 = arith.addi %357, %373 : vector<16x128xi32>
    %c4_i32_156 = arith.constant 4 : i32
    %375 = vector.broadcast %c4_i32_156 : i32 to vector<16x128xi32>
    %376 = arith.muli %374, %375 : vector<16x128xi32>
    %c64_i32_157 = arith.constant 64 : i32
    %377 = vector.broadcast %c64_i32_157 : i32 to vector<16x128xi32>
    %378 = arith.addi %377, %376 : vector<16x128xi32>
    %379 = arith.cmpi slt, %358, %378 : vector<16x128xi32>
    %380 = arith.andi %372, %379 : vector<16x128xi1>
    %381 = arith.ori %367, %380 : vector<16x128xi1>
    %cst_158 = arith.constant 1.250000e-01 : f32
    %cst_159 = arith.constant 0.000000e+00 : f32
    %382 = vector.broadcast %cst_158 : f32 to vector<16x128xf32>
    %383 = vector.broadcast %cst_159 : f32 to vector<16x128xf32>
    %384 = arith.select %381, %382, %383 : vector<16x128xi1>, vector<16x128xf32>
    %cst_160 = arith.constant dense<0.000000e+00> : vector<16x32xf32>
    %385 = tpu.matmul %384, %356, %cst_160 {dimension_numbers = #tpu.dot_dimension_numbers<[1], [0], [0], [1], [0, 0, 1, 1], [], []>} : vector<16x128xf32>, vector<128x32xf32>, vector<16x32xf32> -> vector<16x32xf32>
    %c12 = arith.constant 12 : index
    %c0_161 = arith.constant 0 : index
    %386 = vector.load %arg12[%c12, %c0_161] : memref<16x32xf32, #tpu.memory_space<vmem>>, vector<1x32xf32>
    %c13 = arith.constant 13 : index
    %c0_162 = arith.constant 0 : index
    %387 = vector.load %arg12[%c13, %c0_162] : memref<16x32xf32, #tpu.memory_space<vmem>>, vector<1x32xf32>
    %cst_163 = arith.constant dense<0.000000e+00> : vector<16xf32>
    %388 = vector.multi_reduction <add>, %385, %cst_163 [1] : vector<16x32xf32> to vector<16xf32>
    %389 = vector.shape_cast %388 : vector<16xf32> to vector<16x1xf32>
    %cst_164 = arith.constant 3.200000e+01 : f32
    %390 = vector.broadcast %cst_164 : f32 to vector<16x1xf32>
    %391 = arith.divf %389, %390 : vector<16x1xf32>
    %392 = vector.broadcast %391 : vector<16x1xf32> to vector<16x32xf32>
    %393 = arith.subf %385, %392 : vector<16x32xf32>
    %394 = arith.mulf %393, %393 : vector<16x32xf32>
    %cst_165 = arith.constant dense<0.000000e+00> : vector<16xf32>
    %395 = vector.multi_reduction <add>, %394, %cst_165 [1] : vector<16x32xf32> to vector<16xf32>
    %396 = vector.shape_cast %395 : vector<16xf32> to vector<16x1xf32>
    %cst_166 = arith.constant 3.200000e+01 : f32
    %397 = vector.broadcast %cst_166 : f32 to vector<16x1xf32>
    %398 = arith.divf %396, %397 : vector<16x1xf32>
    %cst_167 = arith.constant 9.99999974E-6 : f32
    %399 = vector.broadcast %cst_167 : f32 to vector<16x1xf32>
    %400 = arith.addf %398, %399 : vector<16x1xf32>
    %401 = math.rsqrt %400 : vector<16x1xf32>
    %402 = vector.broadcast %401 : vector<16x1xf32> to vector<16x32xf32>
    %403 = arith.mulf %393, %402 : vector<16x32xf32>
    %404 = vector.broadcast %386 : vector<1x32xf32> to vector<16x32xf32>
    %405 = arith.mulf %403, %404 : vector<16x32xf32>
    %406 = vector.broadcast %387 : vector<1x32xf32> to vector<16x32xf32>
    %407 = arith.addf %405, %406 : vector<16x32xf32>
    %c0_168 = arith.constant 0 : index
    %c0_169 = arith.constant 0 : index
    %408 = vector.load %arg13[%c0_168, %c0_169] : memref<32x10xf32, #tpu.memory_space<vmem>>, vector<32x10xf32>
    %cst_170 = arith.constant dense<0.000000e+00> : vector<16x10xf32>
    %409 = tpu.matmul %407, %408, %cst_170 {dimension_numbers = #tpu.dot_dimension_numbers<[1], [0], [0], [1], [0, 0, 1, 1], [], []>} : vector<16x32xf32>, vector<32x10xf32>, vector<16x10xf32> -> vector<16x10xf32>
    %c14 = arith.constant 14 : index
    %c0_171 = arith.constant 0 : index
    %410 = vector.load %arg12[%c14, %c0_171] : memref<16x32xf32, #tpu.memory_space<vmem>>, vector<1x10xf32>
    %411 = vector.broadcast %410 : vector<1x10xf32> to vector<16x10xf32>
    %412 = arith.addf %409, %411 : vector<16x10xf32>
    %c0_172 = arith.constant 0 : index
    %c0_173 = arith.constant 0 : index
    %413 = vector.load %arg14[%c0_172, %c0_173] : memref<16x10xf32, #tpu.memory_space<vmem>>, vector<16x10xf32>
    tpu.vector_store %arg14[%c0_172, %c0_173], %412 {strides = array<i32>} : memref<16x10xf32, #tpu.memory_space<vmem>>, vector<16x10xf32>,
    return
  }
  func.func @transform_0(%arg0: i32) -> (i32, i32) {
    %c0_i32 = arith.constant 0 : i32
    %c0_i32_0 = arith.constant 0 : i32
    return %arg0, %c0_i32 : i32, i32
  }
  func.func @transform_1(%arg0: i32) -> (i32, i32) {
    %c0_i32 = arith.constant 0 : i32
    %c0_i32_0 = arith.constant 0 : i32
    return %arg0, %c0_i32 : i32, i32
  }
  func.func @transform_2(%arg0: i32) -> (i32, i32) {
    %c0_i32 = arith.constant 0 : i32
    %c0_i32_0 = arith.constant 0 : i32
    %c0_i32_1 = arith.constant 0 : i32
    return %c0_i32, %c0_i32_0 : i32, i32
  }
  func.func @transform_3(%arg0: i32) -> (i32, i32) {
    %c0_i32 = arith.constant 0 : i32
    %c0_i32_0 = arith.constant 0 : i32
    %c0_i32_1 = arith.constant 0 : i32
    return %c0_i32, %c0_i32_0 : i32, i32
  }
  func.func @transform_4(%arg0: i32) -> (i32, i32, i32) {
    %c0_i32 = arith.constant 0 : i32
    %c0_i32_0 = arith.constant 0 : i32
    %c0_i32_1 = arith.constant 0 : i32
    %c0_i32_2 = arith.constant 0 : i32
    return %c0_i32, %c0_i32_0, %c0_i32_1 : i32, i32, i32
  }
  func.func @transform_5(%arg0: i32) -> (i32, i32, i32) {
    %c0_i32 = arith.constant 0 : i32
    %c0_i32_0 = arith.constant 0 : i32
    %c0_i32_1 = arith.constant 0 : i32
    %c0_i32_2 = arith.constant 0 : i32
    return %c0_i32, %c0_i32_0, %c0_i32_1 : i32, i32, i32
  }
  func.func @transform_6(%arg0: i32) -> (i32, i32, i32) {
    %c0_i32 = arith.constant 0 : i32
    %c0_i32_0 = arith.constant 0 : i32
    %c0_i32_1 = arith.constant 0 : i32
    %c0_i32_2 = arith.constant 0 : i32
    return %c0_i32, %c0_i32_0, %c0_i32_1 : i32, i32, i32
  }
  func.func @transform_7(%arg0: i32) -> (i32, i32, i32) {
    %c0_i32 = arith.constant 0 : i32
    %c0_i32_0 = arith.constant 0 : i32
    %c0_i32_1 = arith.constant 0 : i32
    %c0_i32_2 = arith.constant 0 : i32
    return %c0_i32, %c0_i32_0, %c0_i32_1 : i32, i32, i32
  }
  func.func @transform_8(%arg0: i32) -> (i32, i32, i32) {
    %c0_i32 = arith.constant 0 : i32
    %c0_i32_0 = arith.constant 0 : i32
    %c0_i32_1 = arith.constant 0 : i32
    %c0_i32_2 = arith.constant 0 : i32
    return %c0_i32, %c0_i32_0, %c0_i32_1 : i32, i32, i32
  }
  func.func @transform_9(%arg0: i32) -> (i32, i32) {
    %c0_i32 = arith.constant 0 : i32
    %c0_i32_0 = arith.constant 0 : i32
    %c0_i32_1 = arith.constant 0 : i32
    return %c0_i32, %c0_i32_0 : i32, i32
  }
  func.func @transform_10(%arg0: i32) -> (i32, i32, i32) {
    %c0_i32 = arith.constant 0 : i32
    %c0_i32_0 = arith.constant 0 : i32
    %c0_i32_1 = arith.constant 0 : i32
    %c0_i32_2 = arith.constant 0 : i32
    return %c0_i32, %c0_i32_0, %c0_i32_1 : i32, i32, i32
  }
  func.func @transform_11(%arg0: i32) -> (i32, i32) {
    %c0_i32 = arith.constant 0 : i32
    %c0_i32_0 = arith.constant 0 : i32
    %c0_i32_1 = arith.constant 0 : i32
    return %c0_i32, %c0_i32_0 : i32, i32
  }
  func.func @transform_12(%arg0: i32) -> (i32, i32) {
    %c0_i32 = arith.constant 0 : i32
    %c0_i32_0 = arith.constant 0 : i32
    %c0_i32_1 = arith.constant 0 : i32
    return %c0_i32, %c0_i32_0 : i32, i32
  }
  func.func @transform_13(%arg0: i32) -> (i32, i32) {
    %c0_i32 = arith.constant 0 : i32
    %c0_i32_0 = arith.constant 0 : i32
    return %arg0, %c0_i32 : i32, i32
  }
}

</mosaic_0001>

<bundles_post_ra>
// kernel: forward.1
= control target key start
LH: loop header
LB: loop body
LE: loop exit
PB: predicated region body
PF: predicated region fallthrough
CT: control target
= control target key end

     0   :  { %s10487_s25 = smov 0   ;;  %s15575_s0 = inlined_call_operand.vmem [shape: f32[2048,147], index: 0, kind: input, shape index: {}]   ;;  %s15576_s1 = inlined_call_operand.vmem [shape: s32[128,1], index: 1, kind: input, shape index: {}]   ;;  %s15577_s2 = inlined_call_operand.vmem [shape: f32[147,32], index: 2, kind: input, shape index: {}]   ;;  %s15578_s3 = inlined_call_operand.vmem [shape: f32[50,32], index: 3, kind: input, shape index: {}]   ;;  %s15579_s4 = inlined_call_operand.vmem [shape: f32[2,256,128], index: 4, kind: input, shape index: {}]   ;;  %s15580_s5 = inlined_call_operand.vmem [shape: f32[2,256,1], index: 5, kind: input, shape index: {}]   ;;  %s15581_s6 = inlined_call_operand.vmem [shape: f32[2,128,256], index: 6, kind: input, shape index: {}]   ;;  %s15582_s7 = inlined_call_operand.vmem [shape: f32[2,128,1], index: 7, kind: input, shape index: {}]   ;;  %s15583_s8 = inlined_call_operand.vmem [shape: f32[2,32,64], index: 8, kind: input, shape index: {}]   ;;  %s15584_s9 = inlined_call_operand.vmem [shape: f32[2,64], index: 9, kind: input, shape index: {}]   ;;  %s15585_s10 = inlined_call_operand.vmem [shape: f32[2,64,32], index: 10, kind: input, shape index: {}]   ;;  %s15586_s11 = inlined_call_operand.vmem [shape: f32[16,32], index: 11, kind: input, shape index: {}]   ;;  %s15587_s12 = inlined_call_operand.vmem [shape: f32[32,10], index: 12, kind: input, shape index: {}]   ;;  %s15588_s13 = inlined_call_operand.vmem [shape: f32[32,10], index: 13, kind: output, shape index: {}]  }
   0x1 LB: > { %s10493_s26 = sadd.s32 4294967295, %s10410_s25   ;;  %p8473_p0 = scmp.ge.s32.totalorder %s10410_s25, 1  ;;  %s10410_s25 = sphi %s10487_s25, %s23_s25  }
   0x2   : > { %p400_p1 = scmp.lt.s32.totalorder %s10410_s25, 3 }
   0x4   : > { %p401_p2 = pnand %p8473_p0, %p400_p1 }
   0x6   : > { %404 = sbr.rel (%p401_p2) target bundleno = 5259 (0x148b), region = 72 }
   0xd   : > { %v725_v0 = vld [vmem:[%s15577_s2] sm:$0xff]  ;;  %v726_v1 = vld [vmem:[%s15577_s2 + $0x8] sm:$0xff]  ;;  %v727_v2 = vld [vmem:[%s15577_s2 + $0x10] sm:$0xff]  ;;  %v10412_v3 = vmov 0.0|0.0   ;;  %s8474_s18 = sshll.u32 %s10493_s26, 7  ;;  %vm744_vm0 = vcmask 154624  }
   0xe   : > { %9598 = vmatprep.subr.bf16.mxu0 %v10412_v3  ;;  %v9599_v4 = vpack.c.bf16 %v726_v1, %v725_v0  ;;  %v728_v5 = vld [vmem:[%s15577_s2 + $0x18] sm:$0xff]  ;;  %9853 = vmatprep.subr.bf16.mxu1 %v10412_v3  ;;  %p451_p3 = scmp.lt.s32.totalorder %s8474_s18, 255  ;;  %v729_v7 = vld [vmem:[%s15577_s2 + $0x20] sm:$0xff]  ;;  %v730_v8 = vld [vmem:[%s15577_s2 + $0x28] sm:$0xff]  ;;  %v10413_v29 = vmov 0.0   ;;  %vm1129_vm1 = vcmask 1042432  }
   0xf   : > { %v9602_v6 = vpack.c.bf16 %v728_v5, %v727_v2  ;;  %v9605_v9 = vpack.c.bf16 %v730_v8, %v729_v7  ;;  %v731_v10 = vld [vmem:[%s15577_s2 + $0x30] sm:$0xff]  ;;  %v732_v11 = vld [vmem:[%s15577_s2 + $0x38] sm:$0xff]  ;;  %v733_v14 = vld [vmem:[%s15577_s2 + $0x40] sm:$0xff]  ;;  %s8477_s24 = sshll.u32 %s10493_s26, 3  ;;  %vm2066_vm3 = vcmask 1041408   ;;  %vm2041_vm5 = vcmask 408576  }
  0x10   : > { %9600 = vmatpush1.bf16.msra.mxu0 %v9599_v4  ;;  %9863 = vmatpush1.bf16.msra.mxu1 %v9599_v4  ;;  %s15833_s18 = smov (!%p451_p3, %s8474_s18), 255  ;;  %v9608_v13 = vpack.c.bf16 %v732_v11, %v731_v10  ;;  %v734_v15 = vld [vmem:[%s15577_s2 + $0x48] sm:$0xff]  ;;  %v735_v17 = vld [vmem:[%s15577_s2 + $0x50] sm:$0xff]  ;;  %v736_v18 = vld [vmem:[%s15577_s2 + $0x58] sm:$0xff]  ;;  %p458_p4 = scmp.lt.s32.totalorder %s8477_s24, 15  ;;  %vm2177_vm12 = vcmask 261120  }
  0x11   : > { %9601 = vmatprep.subr.bf16.mxu0 %v10412_v3  ;;  %9854 = vmatprep.subr.bf16.mxu1 %v10412_v3  ;;  %s8838_s23 = sshll.u32 %s15833_s18, 4  ;;  %v9611_v16 = vpack.c.bf16 %v734_v15, %v733_v14  ;;  %v9614_v19 = vpack.c.bf16 %v736_v18, %v735_v17  ;;  %v737_v20 = vld [vmem:[%s15577_s2 + $0x60] sm:$0xff]  ;;  %v738_v21 = vld [vmem:[%s15577_s2 + $0x68] sm:$0xff]  ;;  %v739_v23 = vld [vmem:[%s15577_s2 + $0x70] sm:$0xff] }
  0x12   : > { %s10523_s28 = scalar_lea.vmem %s15575_s0, %s8838_s23  ;;  %v9617_v22 = vpack.c.bf16 %v738_v21, %v737_v20  ;;  %v740_v24 = vld [vmem:[%s15577_s2 + $0x78] sm:$0xff]  ;;  %v741_v26 = vld [vmem:[%s15577_s2 + $0x80] sm:$0xff]  ;;  %v742_v27 = vld [vmem:[%s15577_s2 + $0x88] sm:$0xff]  ;;  %s15835_s24 = smov (!%p458_p4, %s8477_s24), 15 }
  0x13   : > { %v470_v12 = vld [vmem:[%s10523_s28 + $0x8] sm:$0xff]  ;;  %v9620_v25 = vpack.c.bf16 %v740_v24, %v739_v23  ;;  %v9623_v28 = vpack.c.bf16 %v742_v27, %v741_v26  ;;  %v743_v30 = vld [vmem:[%s15577_s2 + $0x90] sm:$0x7]  ;;  %v469_v31 = vld [vmem:[%s10523_s28] sm:$0xff]  ;;  %s8478_s27 = sshll.u32 %s15835_s24, 3 }
  0x14   : > { %9603 = vmatpush1.bf16.msra.mxu0 %v9602_v6  ;;  %9864 = vmatpush1.bf16.msra.mxu1 %v9602_v6  ;;  %v472_v32 = vld [vmem:[%s10523_s28 + $0x18] sm:$0xff]  ;;  %v471_v33 = vld [vmem:[%s10523_s28 + $0x10] sm:$0xff]  ;;  %v474_v34 = vld [vmem:[%s10523_s28 + $0x28] sm:$0xff]  ;;  %s10741_s14 = scalar_lea.vmem %s15576_s1, %s8478_s27  ;;  %s8479_s27 = sshll.u32 %s10493_s26, 1 }
  0x15   : > { %9604 = vmatprep.subr.bf16.mxu0 %v10412_v3  ;;  %9855 = vmatprep.subr.bf16.mxu1 %v10412_v3  ;;  %v473_v35 = vld [vmem:[%s10523_s28 + $0x20] sm:$0xff]  ;;  %v476_v36 = vld [vmem:[%s10523_s28 + $0x38] sm:$0xff]  ;;  %v475_v37 = vld [vmem:[%s10523_s28 + $0x30] sm:$0xff]  ;;  %p464_p5 = scmp.lt.s32.totalorder %s8479_s27, 3 }
  0x16   : > { %8482 = vmatprep.mubr.msk.f32.mxu0 %vm744_vm0, %v470_v12  ;;  %v478_v38 = vld [vmem:[%s10523_s28 + $0x48] sm:$0xff]  ;;  %v477_v39 = vld [vmem:[%s10523_s28 + $0x40] sm:$0xff]  ;;  %v480_v40 = vld [vmem:[%s10523_s28 + $0x58] sm:$0xff] }
  0x17   : > { %v479_v41 = vld [vmem:[%s10523_s28 + $0x50] sm:$0xff]  ;;  %v482_v42 = vld [vmem:[%s10523_s28 + $0x68] sm:$0xff]  ;;  %v481_v43 = vld [vmem:[%s10523_s28 + $0x60] sm:$0xff]  ;;  %s15837_s27 = smov (!%p464_p5, %s8479_s27), 3 }
  0x18   : > { %9606 = vmatpush1.bf16.msra.mxu0 %v9605_v9  ;;  %9865 = vmatpush1.bf16.msra.mxu1 %v9605_v9  ;;  %v484_v44 = vld [vmem:[%s10523_s28 + $0x78] sm:$0xff]  ;;  %v483_v45 = vld [vmem:[%s10523_s28 + $0x70] sm:$0xff]  ;;  %v486_v46 = vld [vmem:[%s10523_s28 + $0x88] sm:$0xff]  ;;  %s8480_s29 = sshll.u32 %s15837_s27, 3 }
  0x19   : > { %9607 = vmatprep.subr.bf16.mxu0 %v10412_v3  ;;  %9856 = vmatprep.subr.bf16.mxu1 %v10412_v3  ;;  %v485_v47 = vld [vmem:[%s10523_s28 + $0x80] sm:$0xff]  ;;  %v488_v48 = vld [vmem:[%s10523_s28 + $0x98] sm:$0xff]  ;;  %v487_v49 = vld [vmem:[%s10523_s28 + $0x90] sm:$0xff]  ;;  %s467_s16 = scalar_lea.vmem %s15588_s13, %s8480_s29 }
  0x1a   : > { %v490_v50 = vld [vmem:[%s10523_s28 + $0xa8] sm:$0xff]  ;;  %v489_v51 = vld [vmem:[%s10523_s28 + $0xa0] sm:$0xff]  ;;  %v492_v52 = vld [vmem:[%s10523_s28 + $0xb8] sm:$0xff] }
  0x1b   : > { %v491_v53 = vld [vmem:[%s10523_s28 + $0xb0] sm:$0xff]  ;;  %v494_v54 = vld [vmem:[%s10523_s28 + $0xc8] sm:$0xff]  ;;  %v493_v55 = vld [vmem:[%s10523_s28 + $0xc0] sm:$0xff] }
  0x1c   : > { %9609 = vmatpush1.bf16.msra.mxu0 %v9608_v13  ;;  %9866 = vmatpush1.bf16.msra.mxu1 %v9608_v13  ;;  %v496_v56 = vld [vmem:[%s10523_s28 + $0xd8] sm:$0xff]  ;;  %v495_v57 = vld [vmem:[%s10523_s28 + $0xd0] sm:$0xff]  ;;  %v498_v58 = vld [vmem:[%s10523_s28 + $0xe8] sm:$0xff] }
  0x1d   : > { %9610 = vmatprep.subr.bf16.mxu0 %v10412_v3  ;;  %9857 = vmatprep.subr.bf16.mxu1 %v10412_v3  ;;  %v497_v59 = vld [vmem:[%s10523_s28 + $0xe0] sm:$0xff]  ;;  %v500_v60 = vld [vmem:[%s10523_s28 + $0xf8] sm:$0xff]  ;;  %v499_v61 = vld [vmem:[%s10523_s28 + $0xf0] sm:$0xff] }
  0x1e   : > { %v502_v62 = vld [vmem:[%s10523_s28 + $0x108] sm:$0xff]  ;;  %v501_v63 = vld [vmem:[%s10523_s28 + $0x100] sm:$0xff]  ;;  %v504_v0 = vld [vmem:[%s10523_s28 + $0x118] sm:$0xff] }
  0x1f   : > { %v503_v1 = vld [vmem:[%s10523_s28 + $0x110] sm:$0xff]  ;;  %v506_v2 = vld [vmem:[%s10523_s28 + $0x128] sm:$0xff]  ;;  %v508_v4 = vld [vmem:[%s10523_s28 + $0x138] sm:$0xff] }
  0x20   : > { %9612 = vmatpush1.bf16.msra.mxu0 %v9611_v16  ;;  %9867 = vmatpush1.bf16.msra.mxu1 %v9611_v16  ;;  %v507_v5 = vld [vmem:[%s10523_s28 + $0x130] sm:$0xff]  ;;  %v510_v6 = vld [vmem:[%s10523_s28 + $0x148] sm:$0xff]  ;;  %v509_v7 = vld [vmem:[%s10523_s28 + $0x140] sm:$0xff] }
  0x21   : > { %9613 = vmatprep.subr.bf16.mxu0 %v10412_v3  ;;  %9858 = vmatprep.subr.bf16.mxu1 %v10412_v3  ;;  %v512_v8 = vld [vmem:[%s10523_s28 + $0x158] sm:$0xff]  ;;  %v511_v9 = vld [vmem:[%s10523_s28 + $0x150] sm:$0xff]  ;;  %v514_v10 = vld [vmem:[%s10523_s28 + $0x168] sm:$0xff] }
  0x22   : > { %v513_v11 = vld [vmem:[%s10523_s28 + $0x160] sm:$0xff]  ;;  %v516_v12 = vld [vmem:[%s10523_s28 + $0x178] sm:$0xff]  ;;  %v515_v13 = vld [vmem:[%s10523_s28 + $0x170] sm:$0xff] }
  0x23   : > { %v518_v14 = vld [vmem:[%s10523_s28 + $0x188] sm:$0xff]  ;;  %v517_v15 = vld [vmem:[%s10523_s28 + $0x180] sm:$0xff]  ;;  %v520_v16 = vld [vmem:[%s10523_s28 + $0x198] sm:$0xff] }
  0x24   : > { %9615 = vmatpush1.bf16.msra.mxu0 %v9614_v19  ;;  %9868 = vmatpush1.bf16.msra.mxu1 %v9614_v19  ;;  %v519_v17 = vld [vmem:[%s10523_s28 + $0x190] sm:$0xff]  ;;  %v522_v18 = vld [vmem:[%s10523_s28 + $0x1a8] sm:$0xff]  ;;  %v521_v19 = vld [vmem:[%s10523_s28 + $0x1a0] sm:$0xff] }
  0x25   : > { %9616 = vmatprep.subr.bf16.mxu0 %v10412_v3  ;;  %9859 = vmatprep.subr.bf16.mxu1 %v10412_v3  ;;  %v524_v20 = vld [vmem:[%s10523_s28 + $0x1b8] sm:$0xff]  ;;  %v523_v21 = vld [vmem:[%s10523_s28 + $0x1b0] sm:$0xff]  ;;  %v525_v23 = vld [vmem:[%s10523_s28 + $0x1c0] sm:$0xff] }
  0x26   : > { %v528_v24 = vld [vmem:[%s10523_s28 + $0x1d8] sm:$0xff]  ;;  %v530_v26 = vld [vmem:[%s10523_s28 + $0x1e8] sm:$0xff]  ;;  %v529_v27 = vld [vmem:[%s10523_s28 + $0x1e0] sm:$0xff] }
  0x28   : > { %9618 = vmatpush1.bf16.msra.mxu0 %v9617_v22  ;;  %9869 = vmatpush1.bf16.msra.mxu1 %v9617_v22  ;;  %v526_v22 = vld [vmem:[%s10523_s28 + $0x1c8] sm:$0xff] }
  0x29   : > { %9619 = vmatprep.subr.bf16.mxu0 %v10412_v3  ;;  %9860 = vmatprep.subr.bf16.mxu1 %v10412_v3 }
  0x2c   : > { %9621 = vmatpush1.bf16.msra.mxu0 %v9620_v25  ;;  %9870 = vmatpush1.bf16.msra.mxu1 %v9620_v25  ;;  %v527_v25 = vld [vmem:[%s10523_s28 + $0x1d0] sm:$0xff] }
  0x2d   : > { %9622 = vmatprep.subr.bf16.mxu0 %v10412_v3  ;;  %9861 = vmatprep.subr.bf16.mxu1 %v10412_v3  ;;  %v505_v3 = vld [vmem:[%s10523_s28 + $0x120] sm:$0xff] }
  0x30   : > { %9624 = vmatpush1.bf16.msra.mxu0 %v9623_v28  ;;  %9871 = vmatpush1.bf16.msra.mxu1 %v9623_v28  ;;  %v532_v28 = vld [vmem:[%s10523_s28 + $0x1f8] sm:$0xff] }
  0x31   : > { %1169 = vmatprep.subr.mxu0 %v10413_v29  ;;  %9862 = vmatprep.subr.mxu1 %v10413_v29 }
  0x34   : > { %8481 = vmatpush1.msk.msra.mxu0 %vm1129_vm1, %v743_v30  ;;  %9872 = vmatpush1.msk.msra.mxu1 %vm1129_vm1, %v743_v30  ;;  %v531_v30 = vld [vmem:[%s10523_s28 + $0x1f0] sm:$0xff] }
  0x35   : > { %1198 = vmatmul.mubr.f32.vlgmr.msra.gmra.mrb[0].mxu0 %v469_v31  ;;  %v534_v31 = vld [vmem:[%s10523_s28 + $0x208] sm:$0xff] }
  0x36   : > { %8483 = vmatprep.mubr.msk.f32.mxu0 %vm744_vm0, %v472_v32  ;;  %v533_v32 = vld [vmem:[%s10523_s28 + $0x200] sm:$0xff] }
  0x39   : > { %1203 = vmatmul.mubr.f32.gmra.mrb[2].mxu0 %v471_v33  ;;  %v536_v33 = vld [vmem:[%s10523_s28 + $0x218] sm:$0xff] }
  0x3a   : > { %8484 = vmatprep.mubr.msk.f32.mxu0 %vm744_vm0, %v474_v34  ;;  %v535_v34 = vld [vmem:[%s10523_s28 + $0x210] sm:$0xff] }
  0x3d   : > { %1208 = vmatmul.mubr.f32.gmra.mrb[4].mxu0 %v473_v35  ;;  %v538_v35 = vld [vmem:[%s10523_s28 + $0x228] sm:$0xff] }
  0x3e   : > { %8485 = vmatprep.mubr.msk.f32.mxu0 %vm744_vm0, %v476_v36  ;;  %v537_v36 = vld [vmem:[%s10523_s28 + $0x220] sm:$0xff] }
  0x41   : > { %1213 = vmatmul.mubr.f32.gmra.mrb[6].mxu0 %v475_v37  ;;  %v540_v37 = vld [vmem:[%s10523_s28 + $0x238] sm:$0xff] }
  0x42   : > { %8486 = vmatprep.mubr.msk.f32.mxu0 %vm744_vm0, %v478_v38  ;;  %v539_v38 = vld [vmem:[%s10523_s28 + $0x230] sm:$0xff] }
  0x45   : > { %1218 = vmatmul.mubr.f32.gmra.mrb[8].mxu0 %v477_v39  ;;  %v542_v39 = vld [vmem:[%s10523_s28 + $0x248] sm:$0xff] }
  0x46   : > { %8487 = vmatprep.mubr.msk.f32.mxu0 %vm744_vm0, %v480_v40  ;;  %v541_v40 = vld [vmem:[%s10523_s28 + $0x240] sm:$0xff] }
  0x49   : > { %1223 = vmatmul.mubr.f32.gmra.mrb[10].mxu0 %v479_v41  ;;  %v544_v41 = vld [vmem:[%s10523_s28 + $0x258] sm:$0xff] }
  0x4a   : > { %8488 = vmatprep.mubr.msk.f32.mxu0 %vm744_vm0, %v482_v42  ;;  %v543_v42 = vld [vmem:[%s10523_s28 + $0x250] sm:$0xff] }
  0x4d   : > { %1228 = vmatmul.mubr.f32.gmra.mrb[12].mxu0 %v481_v43  ;;  %v546_v43 = vld [vmem:[%s10523_s28 + $0x268] sm:$0xff] }
  0x4e   : > { %8489 = vmatprep.mubr.msk.f32.mxu0 %vm744_vm0, %v484_v44  ;;  %v545_v44 = vld [vmem:[%s10523_s28 + $0x260] sm:$0xff] }
  0x51   : > { %1233 = vmatmul.mubr.f32.gmra.mrb[14].mxu0 %v483_v45  ;;  %v548_v45 = vld [vmem:[%s10523_s28 + $0x278] sm:$0xff] }
  0x52   : > { %8490 = vmatprep.mubr.msk.f32.mxu0 %vm744_vm0, %v486_v46  ;;  %v547_v46 = vld [vmem:[%s10523_s28 + $0x270] sm:$0xff] }
  0x55   : > { %1238 = vmatmul.mubr.f32.gmra.mrb[16].mxu0 %v485_v47  ;;  %v550_v47 = vld [vmem:[%s10523_s28 + $0x288] sm:$0xff] }
  0x56   : > { %8491 = vmatprep.mubr.msk.f32.mxu0 %vm744_vm0, %v488_v48  ;;  %v549_v48 = vld [vmem:[%s10523_s28 + $0x280] sm:$0xff] }
  0x59   : > { %1243 = vmatmul.mubr.f32.gmra.mrb[18].mxu0 %v487_v49  ;;  %v552_v49 = vld [vmem:[%s10523_s28 + $0x298] sm:$0xff] }
  0x5a   : > { %8492 = vmatprep.mubr.msk.f32.mxu0 %vm744_vm0, %v490_v50  ;;  %v551_v50 = vld [vmem:[%s10523_s28 + $0x290] sm:$0xff] }
  0x5d   : > { %1248 = vmatmul.mubr.f32.gmra.mrb[20].mxu0 %v489_v51  ;;  %v554_v51 = vld [vmem:[%s10523_s28 + $0x2a8] sm:$0xff] }
  0x5e   : > { %8493 = vmatprep.mubr.msk.f32.mxu0 %vm744_vm0, %v492_v52  ;;  %v553_v52 = vld [vmem:[%s10523_s28 + $0x2a0] sm:$0xff] }
  0x61   : > { %1253 = vmatmul.mubr.f32.gmra.mrb[22].mxu0 %v491_v53  ;;  %v556_v53 = vld [vmem:[%s10523_s28 + $0x2b8] sm:$0xff] }
  0x62   : > { %8494 = vmatprep.mubr.msk.f32.mxu0 %vm744_vm0, %v494_v54  ;;  %v555_v54 = vld [vmem:[%s10523_s28 + $0x2b0] sm:$0xff] }
  0x65   : > { %1258 = vmatmul.mubr.f32.gmra.mrb[24].mxu0 %v493_v55  ;;  %v558_v55 = vld [vmem:[%s10523_s28 + $0x2c8] sm:$0xff] }
  0x66   : > { %8495 = vmatprep.mubr.msk.f32.mxu0 %vm744_vm0, %v496_v56  ;;  %v557_v56 = vld [vmem:[%s10523_s28 + $0x2c0] sm:$0xff] }
  0x69   : > { %1263 = vmatmul.mubr.f32.gmra.mrb[26].mxu0 %v495_v57  ;;  %v560_v57 = vld [vmem:[%s10523_s28 + $0x2d8] sm:$0xff] }
  0x6a   : > { %8496 = vmatprep.mubr.msk.f32.mxu0 %vm744_vm0, %v498_v58  ;;  %v559_v58 = vld [vmem:[%s10523_s28 + $0x2d0] sm:$0xff] }
  0x6d   : > { %1268 = vmatmul.mubr.f32.gmra.mrb[28].mxu0 %v497_v59  ;;  %v562_v59 = vld [vmem:[%s10523_s28 + $0x2e8] sm:$0xff] }
  0x6e   : > { %8497 = vmatprep.mubr.msk.f32.mxu0 %vm744_vm0, %v500_v60  ;;  %v561_v60 = vld [vmem:[%s10523_s28 + $0x2e0] sm:$0xff] }
  0x71   : > { %1273 = vmatmul.mubr.f32.gmra.mrb[30].mxu0 %v499_v61  ;;  %v564_v61 = vld [vmem:[%s10523_s28 + $0x2f8] sm:$0xff] }
  0x72   : > { %8498 = vmatprep.mubr.msk.f32.mxu0 %vm744_vm0, %v502_v62  ;;  %v563_v62 = vld [vmem:[%s10523_s28 + $0x2f0] sm:$0xff] }
  0x75   : > { %1278 = vmatmul.mubr.f32.gmra.mrb[32].mxu0 %v501_v63  ;;  %v566_v63 = vld [vmem:[%s10523_s28 + $0x308] sm:$0xff] }
  0x76   : > { %8499 = vmatprep.mubr.msk.f32.mxu0 %vm744_vm0, %v504_v0  ;;  %v565_v0 = vld [vmem:[%s10523_s28 + $0x300] sm:$0xff] }
  0x79   : > { %1283 = vmatmul.mubr.f32.gmra.mrb[34].mxu0 %v503_v1  ;;  %v568_v1 = vld [vmem:[%s10523_s28 + $0x318] sm:$0xff] }
  0x7a   : > { %8500 = vmatprep.mubr.msk.f32.mxu0 %vm744_vm0, %v506_v2  ;;  %v567_v2 = vld [vmem:[%s10523_s28 + $0x310] sm:$0xff] }
  0x7d   : > { %1288 = vmatmul.mubr.f32.gmra.mrb[36].mxu0 %v505_v3  ;;  %v570_v3 = vld [vmem:[%s10523_s28 + $0x328] sm:$0xff] }
  0x7e   : > { %8501 = vmatprep.mubr.msk.f32.mxu0 %vm744_vm0, %v508_v4  ;;  %v569_v4 = vld [vmem:[%s10523_s28 + $0x320] sm:$0xff] }
  0x81   : > { %1293 = vmatmul.mubr.f32.gmra.mrb[38].mxu0 %v507_v5  ;;  %v572_v5 = vld [vmem:[%s10523_s28 + $0x338] sm:$0xff] }
  0x82   : > { %8502 = vmatprep.mubr.msk.f32.mxu0 %vm744_vm0, %v510_v6  ;;  %v571_v6 = vld [vmem:[%s10523_s28 + $0x330] sm:$0xff] }
  0x85   : > { %1298 = vmatmul.mubr.f32.gmra.mrb[40].mxu0 %v509_v7  ;;  %v10414_v7 = vmov 0  }
  0x86   : > { %8503 = vmatprep.mubr.msk.f32.mxu0 %vm744_vm0, %v512_v8  ;;  %9886 = vset.pattern.permute.xlu0 %v10414_v7  ;;  %v574_v8 = vld [vmem:[%s10523_s28 + $0x348] sm:$0xff] }
  0x87   : > { %9887 = vset.pattern.permute.xlu1 %v10414_v7 }
  0x89   : > { %1303 = vmatmul.mubr.f32.gmra.mrb[42].mxu0 %v511_v9  ;;  %v1973_v9 = vld [vmem:[%s10741_s14] sm:$0xff] }
  0x8a   : > { %8504 = vmatprep.mubr.msk.f32.mxu0 %vm744_vm0, %v514_v10  ;;  %1982 = vperm.xlu0 %9886, %v1973_v9   ;;  %v573_v10 = vld [vmem:[%s10523_s28 + $0x340] sm:$0xff]  ;;  %v602_v9 = vld [vmem:[%s10523_s28 + $0x428] sm:$0xff] }
  0x8d   : > { %1308 = vmatmul.mubr.f32.gmra.mrb[44].mxu0 %v513_v11  ;;  %v576_v11 = vld [vmem:[%s10523_s28 + $0x358] sm:$0xff] }
  0x8e   : > { %8505 = vmatprep.mubr.msk.f32.mxu0 %vm744_vm0, %v516_v12  ;;  %v1975_v12 = vld [vmem:[%s10741_s14 + $0x10] sm:$0xff] }
  0x8f   : > { %1988 = vperm.xlu1 %9887, %v1975_v12  }
  0x91   : > { %1313 = vmatmul.mubr.f32.gmra.mrb[46].mxu0 %v515_v13  ;;  %v1974_v13 = vld [vmem:[%s10741_s14 + $0x8] sm:$0xff] }
  0x92   : > { %8506 = vmatprep.mubr.msk.f32.mxu0 %vm744_vm0, %v518_v14  ;;  %v575_v14 = vld [vmem:[%s10523_s28 + $0x350] sm:$0xff]  ;;  %1985 = vperm.xlu0 %9886, %v1974_v13   ;;  %v601_v13 = vld [vmem:[%s10523_s28 + $0x420] sm:$0xff] }
  0x95   : > { %1318 = vmatmul.mubr.f32.gmra.mrb[48].mxu0 %v517_v15  ;;  %v578_v15 = vld [vmem:[%s10523_s28 + $0x368] sm:$0xff] }
  0x96   : > { %8507 = vmatprep.mubr.msk.f32.mxu0 %vm744_vm0, %v520_v16 }
  0x99   : > { %1323 = vmatmul.mubr.f32.gmra.mrb[50].mxu0 %v519_v17  ;;  %v1976_v17 = vld [vmem:[%s10741_s14 + $0x18] sm:$0xff] }
  0x9a   : > { %8508 = vmatprep.mubr.msk.f32.mxu0 %vm744_vm0, %v522_v18  ;;  %1991 = vperm.xlu1 %9887, %v1976_v17  }
  0x9d   : > { %1328 = vmatmul.mubr.f32.gmra.mrb[52].mxu0 %v521_v19  ;;  %v1977_v19 = vld [vmem:[%s10741_s14 + $0x20] sm:$0xff] }
  0x9e   : > { %8509 = vmatprep.mubr.msk.f32.mxu0 %vm744_vm0, %v524_v20  ;;  %v577_v20 = vld [vmem:[%s10523_s28 + $0x360] sm:$0xff]  ;;  %1994 = vperm.xlu0 %9886, %v1977_v19   ;;  %v606_v19 = vld [vmem:[%s10523_s28 + $0x448] sm:$0xff] }
  0xa1   : > { %1333 = vmatmul.mubr.f32.gmra.mrb[54].mxu0 %v523_v21  ;;  %v580_v21 = vld [vmem:[%s10523_s28 + $0x378] sm:$0xff] }
  0xa2   : > { %8510 = vmatprep.mubr.msk.f32.mxu0 %vm744_vm0, %v526_v22 }
  0xa5   : > { %1338 = vmatmul.mubr.f32.gmra.mrb[56].mxu0 %v525_v23  ;;  %v1978_v23 = vld [vmem:[%s10741_s14 + $0x28] sm:$0xff] }
  0xa6   : > { %8511 = vmatprep.mubr.msk.f32.mxu0 %vm744_vm0, %v528_v24  ;;  %1997 = vperm.xlu1 %9887, %v1978_v23   ;;  %v605_v23 = vld [vmem:[%s10523_s28 + $0x440] sm:$0xff] }
  0xa9   : > { %1343 = vmatmul.mubr.f32.gmra.mrb[58].mxu0 %v527_v25  ;;  %v1979_v25 = vld [vmem:[%s10741_s14 + $0x30] sm:$0xff] }
  0xaa   : > { %8512 = vmatprep.mubr.msk.f32.mxu0 %vm744_vm0, %v530_v26  ;;  %v579_v26 = vld [vmem:[%s10523_s28 + $0x370] sm:$0xff]  ;;  %2000 = vperm.xlu0 %9886, %v1979_v25  }
  0xad   : > { %1348 = vmatmul.mubr.f32.gmra.mrb[60].mxu0 %v529_v27  ;;  %v582_v27 = vld [vmem:[%s10523_s28 + $0x388] sm:$0xff] }
  0xae   : > { %8513 = vmatprep.mubr.msk.f32.mxu0 %vm744_vm0, %v532_v28 }
  0xb1   : > { %1353 = vmatmul.mubr.f32.gmra.mrb[62].mxu0 %v531_v30  ;;  %v1980_v30 = vld [vmem:[%s10741_s14 + $0x38] sm:$0xff] }
  0xb2   : > { %8514 = vmatprep.mubr.msk.f32.mxu0 %vm744_vm0, %v534_v31  ;;  %2003 = vperm.xlu1 %9887, %v1980_v30   ;;  %v610_v30 = vld [vmem:[%s10523_s28 + $0x468] sm:$0xff] }
  0xb5   : > { %1358 = vmatmul.mubr.f32.gmra.mrb[64].mxu0 %v533_v32  ;;  %v581_v32 = vld [vmem:[%s10523_s28 + $0x380] sm:$0xff] }
  0xb6   : > { %8515 = vmatprep.mubr.msk.f32.mxu0 %vm744_vm0, %v536_v33  ;;  %v584_v33 = vld [vmem:[%s10523_s28 + $0x398] sm:$0xff] }
  0xb9   : > { %1363 = vmatmul.mubr.f32.gmra.mrb[66].mxu0 %v535_v34 }
  0xba   : > { %8516 = vmatprep.mubr.msk.f32.mxu0 %vm744_vm0, %v538_v35 }
  0xbd   : > { %1368 = vmatmul.mubr.f32.gmra.mrb[68].mxu0 %v537_v36  ;;  %v583_v36 = vld [vmem:[%s10523_s28 + $0x390] sm:$0xff] }
  0xbe   : > { %8517 = vmatprep.mubr.msk.f32.mxu0 %vm744_vm0, %v540_v37  ;;  %v586_v37 = vld [vmem:[%s10523_s28 + $0x3a8] sm:$0xff] }
  0xc1   : > { %1373 = vmatmul.mubr.f32.gmra.mrb[70].mxu0 %v539_v38 }
  0xc2   : > { %8518 = vmatprep.mubr.msk.f32.mxu0 %vm744_vm0, %v542_v39 }
  0xc5   : > { %1378 = vmatmul.mubr.f32.gmra.mrb[72].mxu0 %v541_v40  ;;  %v585_v40 = vld [vmem:[%s10523_s28 + $0x3a0] sm:$0xff] }
  0xc6   : > { %8519 = vmatprep.mubr.msk.f32.mxu0 %vm744_vm0, %v544_v41  ;;  %v588_v41 = vld [vmem:[%s10523_s28 + $0x3b8] sm:$0xff] }
  0xc9   : > { %1383 = vmatmul.mubr.f32.gmra.mrb[74].mxu0 %v543_v42 }
  0xca   : > { %8520 = vmatprep.mubr.msk.f32.mxu0 %vm744_vm0, %v546_v43 }
  0xcd   : > { %1388 = vmatmul.mubr.f32.gmra.mrb[76].mxu0 %v545_v44  ;;  %v587_v44 = vld [vmem:[%s10523_s28 + $0x3b0] sm:$0xff] }
  0xce   : > { %8521 = vmatprep.mubr.msk.f32.mxu0 %vm744_vm0, %v548_v45  ;;  %v590_v45 = vld [vmem:[%s10523_s28 + $0x3c8] sm:$0xff] }
  0xd1   : > { %1393 = vmatmul.mubr.f32.gmra.mrb[78].mxu0 %v547_v46 }
  0xd2   : > { %8522 = vmatprep.mubr.msk.f32.mxu0 %vm744_vm0, %v550_v47 }
  0xd5   : > { %1398 = vmatmul.mubr.f32.gmra.mrb[80].mxu0 %v549_v48  ;;  %v589_v48 = vld [vmem:[%s10523_s28 + $0x3c0] sm:$0xff] }
  0xd6   : > { %8523 = vmatprep.mubr.msk.f32.mxu0 %vm744_vm0, %v552_v49  ;;  %v592_v49 = vld [vmem:[%s10523_s28 + $0x3d8] sm:$0xff] }
  0xd9   : > { %1403 = vmatmul.mubr.f32.gmra.mrb[82].mxu0 %v551_v50 }
  0xda   : > { %8524 = vmatprep.mubr.msk.f32.mxu0 %vm744_vm0, %v554_v51 }
  0xdd   : > { %1408 = vmatmul.mubr.f32.gmra.mrb[84].mxu0 %v553_v52  ;;  %v591_v52 = vld [vmem:[%s10523_s28 + $0x3d0] sm:$0xff] }
  0xde   : > { %8525 = vmatprep.mubr.msk.f32.mxu0 %vm744_vm0, %v556_v53  ;;  %v594_v53 = vld [vmem:[%s10523_s28 + $0x3e8] sm:$0xff] }
  0xe1   : > { %1413 = vmatmul.mubr.f32.gmra.mrb[86].mxu0 %v555_v54 }
  0xe2   : > { %8526 = vmatprep.mubr.msk.f32.mxu0 %vm744_vm0, %v558_v55 }
  0xe5   : > { %1418 = vmatmul.mubr.f32.gmra.mrb[88].mxu0 %v557_v56 }
  0xe6   : > { %8527 = vmatprep.mubr.msk.f32.mxu0 %vm744_vm0, %v560_v57  ;;  %v593_v57 = vld [vmem:[%s10523_s28 + $0x3e0] sm:$0xff] }
  0xe9   : > { %1423 = vmatmul.mubr.f32.gmra.mrb[90].mxu0 %v559_v58  ;;  %v596_v58 = vld [vmem:[%s10523_s28 + $0x3f8] sm:$0xff] }
  0xea   : > { %8528 = vmatprep.mubr.msk.f32.mxu0 %vm744_vm0, %v562_v59 }
  0xed   : > { %1428 = vmatmul.mubr.f32.gmra.mrb[92].mxu0 %v561_v60 }
  0xee   : > { %8529 = vmatprep.mubr.msk.f32.mxu0 %vm744_vm0, %v564_v61 }
  0xf1   : > { %1433 = vmatmul.mubr.f32.gmra.mrb[94].mxu0 %v563_v62  ;;  %v595_v62 = vld [vmem:[%s10523_s28 + $0x3f0] sm:$0xff] }
  0xf2   : > { %8530 = vmatprep.mubr.msk.f32.mxu0 %vm744_vm0, %v566_v63  ;;  %v598_v63 = vld [vmem:[%s10523_s28 + $0x408] sm:$0xff] }
  0xf5   : > { %1438 = vmatmul.mubr.f32.gmra.mrb[96].mxu0 %v565_v0 }
  0xf6   : > { %8531 = vmatprep.mubr.msk.f32.mxu0 %vm744_vm0, %v568_v1 }
  0xf9   : > { %1443 = vmatmul.mubr.f32.gmra.mrb[98].mxu0 %v567_v2 }
  0xfa   : > { %8532 = vmatprep.mubr.msk.f32.mxu0 %vm744_vm0, %v570_v3  ;;  %v597_v3 = vld [vmem:[%s10523_s28 + $0x400] sm:$0xff] }
  0xfd   : > { %1448 = vmatmul.mubr.f32.gmra.mrb[100].mxu0 %v569_v4  ;;  %v600_v4 = vld [vmem:[%s10523_s28 + $0x418] sm:$0xff] }
  0xfe   : > { %8533 = vmatprep.mubr.msk.f32.mxu0 %vm744_vm0, %v572_v5 }
 0x101   : > { %1453 = vmatmul.mubr.f32.gmra.mrb[102].mxu0 %v571_v6 }
 0x102   : > { %8534 = vmatprep.mubr.msk.f32.mxu0 %vm744_vm0, %v574_v8  ;;  %v599_v8 = vld [vmem:[%s10523_s28 + $0x410] sm:$0xff] }
 0x105   : > { %1458 = vmatmul.mubr.f32.gmra.mrb[104].mxu0 %v573_v10 }
 0x106   : > { %8535 = vmatprep.mubr.msk.f32.mxu0 %vm744_vm0, %v576_v11 }
 0x108   : > { %v10752_v16 = vpop.f32.mrb[0].mxu0 }
 0x109   : > { %v1201_v18 = vpop.f32.mrb[1].mxu0  ;;  %1463 = vmatmul.mubr.f32.gmra.mrb[106].mxu0 %v575_v14  ;;  %v604_v14 = vld [vmem:[%s10523_s28 + $0x438] sm:$0xff] }
 0x10a   : > { %8536 = vmatprep.mubr.msk.f32.mxu0 %vm744_vm0, %v578_v15  ;;  %v603_v18 = vld [vmem:[%s10523_s28 + $0x430] sm:$0xff] }
 0x10c   : > { %v10759_v22 = vpop.f32.mrb[2].mxu0 }
 0x10d   : > { %v1206_v24 = vpop.f32.mrb[3].mxu0  ;;  %1468 = vmatmul.mubr.f32.gmra.mrb[108].mxu0 %v577_v20 }
 0x10e   : > { %8537 = vmatprep.mubr.msk.f32.mxu0 %vm744_vm0, %v580_v21  ;;  %v608_v24 = vld [vmem:[%s10523_s28 + $0x458] sm:$0xff] }
 0x110   : > { %v10766_v28 = vpop.f32.mrb[4].mxu0 }
 0x111   : > { %v1211_v31 = vpop.f32.mrb[5].mxu0  ;;  %1473 = vmatmul.mubr.f32.gmra.mrb[110].mxu0 %v579_v26 }
 0x112   : > { %8538 = vmatprep.mubr.msk.f32.mxu0 %vm744_vm0, %v582_v27 }
 0x114   : > { %v10772_v34 = vpop.f32.mrb[6].mxu0 }
 0x115   : > { %v1216_v35 = vpop.f32.mrb[7].mxu0  ;;  %1478 = vmatmul.mubr.f32.gmra.mrb[112].mxu0 %v581_v32 }
 0x116   : > { %8539 = vmatprep.mubr.msk.f32.mxu0 %vm744_vm0, %v584_v33  ;;  %v609_v35 = vld [vmem:[%s10523_s28 + $0x460] sm:$0xff] }
 0x118   : > { %v10777_v38 = vpop.f32.mrb[8].mxu0 }
 0x119   : > { %v1221_v39 = vpop.f32.mrb[9].mxu0  ;;  %1483 = vmatmul.mubr.f32.gmra.mrb[114].mxu0 %v583_v36  ;;  %v612_v36 = vld [vmem:[%s10523_s28 + $0x478] sm:$0xff] }
 0x11a   : > { %8540 = vmatprep.mubr.msk.f32.mxu0 %vm744_vm0, %v586_v37 }
 0x11c   : > { %v10782_v42 = vpop.f32.mrb[10].mxu0 }
 0x11d   : > { %v1226_v43 = vpop.f32.mrb[11].mxu0  ;;  %1488 = vmatmul.mubr.f32.gmra.mrb[116].mxu0 %v585_v40 }
 0x11e   : > { %8541 = vmatprep.mubr.msk.f32.mxu0 %vm744_vm0, %v588_v41  ;;  %v611_v41 = vld [vmem:[%s10523_s28 + $0x470] sm:$0xff]  ;;  %v614_v43 = vld [vmem:[%s10523_s28 + $0x488] sm:$0xff] }
 0x120   : > { %v10787_v46 = vpop.f32.mrb[12].mxu0 }
 0x121   : > { %v1231_v47 = vpop.f32.mrb[13].mxu0  ;;  %1493 = vmatmul.mubr.f32.gmra.mrb[118].mxu0 %v587_v44  ;;  %v706_v44 = vld [vmem:[%s10523_s28 + $0x768] sm:$0xff] }
 0x122   : > { %8542 = vmatprep.mubr.msk.f32.mxu0 %vm744_vm0, %v590_v45  ;;  %8600 = vmatprep.mubr.msk.f32.mxu1 %vm744_vm0, %v706_v44  ;;  %v705_v47 = vld [vmem:[%s10523_s28 + $0x760] sm:$0xff] }
 0x123   : > { %1788 = vmatmul.mubr.f32.vlgmr.msra.gmra.mrb[0].mxu1 %v705_v47  ;;  %v629_v44 = vld [vmem:[%s10523_s28 + $0x500] sm:$0xff]  ;;  %v724_v47 = vld [vmem:[%s10523_s28 + $0x7f8] sm:$0xff] }
 0x124   : > { %v10792_v50 = vpop.f32.mrb[14].mxu0 }
 0x125   : > { %v1236_v51 = vpop.f32.mrb[15].mxu0  ;;  %1498 = vmatmul.mubr.f32.gmra.mrb[120].mxu0 %v589_v48 }
 0x126   : > { %8543 = vmatprep.mubr.msk.f32.mxu0 %vm744_vm0, %v592_v49  ;;  %v613_v51 = vld [vmem:[%s10523_s28 + $0x480] sm:$0xff] }
 0x128   : > { %v1239_v54 = vpop.f32.mrb[16].mxu0 }
 0x129   : > { %v1838_v55 = vmax.f32 %v10752_v16, %v1239_v54  ;;  %v1241_v56 = vpop.f32.mrb[17].mxu0  ;;  %1503 = vmatmul.mubr.f32.gmra.mrb[122].mxu0 %v591_v52  ;;  %v616_v52 = vld [vmem:[%s10523_s28 + $0x498] sm:$0xff] }
 0x12a   : > { %8544 = vmatprep.mubr.msk.f32.mxu0 %vm744_vm0, %v594_v53  ;;  %v708_v53 = vld [vmem:[%s10523_s28 + $0x778] sm:$0xff] }
 0x12b   : > { %8601 = vmatprep.mubr.msk.f32.mxu1 %vm744_vm0, %v708_v53 }
 0x12c   : > { %v1244_v59 = vpop.f32.mrb[18].mxu0 }
 0x12d   : > { %v1839_v60 = vmax.f32 %v10759_v22, %v1244_v59  ;;  %v1246_v61 = vpop.f32.mrb[19].mxu0  ;;  %1508 = vmatmul.mubr.f32.gmra.mrb[124].mxu0 %v593_v57  ;;  %v618_v59 = vld [vmem:[%s10523_s28 + $0x4a8] sm:$0xff] }
 0x12e   : > { %8545 = vmatprep.mubr.msk.f32.mxu0 %vm744_vm0, %v596_v58  ;;  %v615_v58 = vld [vmem:[%s10523_s28 + $0x490] sm:$0xff] }
 0x130   : > { %v1249_v0 = vpop.f32.mrb[20].mxu0 }
 0x131   : > { %v1840_v1 = vmax.f32 %v10766_v28, %v1249_v0  ;;  %v1251_v2 = vpop.f32.mrb[21].mxu0  ;;  %1513 = vmatmul.mubr.f32.gmra.mrb[126].mxu0 %v595_v62  ;;  %v607_v28 = vld [vmem:[%s10523_s28 + $0x450] sm:$0xff]  ;;  %v709_v62 = vld [vmem:[%s10523_s28 + $0x780] sm:$0xff] }
 0x132   : > { %8546 = vmatprep.mubr.msk.f32.mxu0 %vm744_vm0, %v598_v63  ;;  %v617_v0 = vld [vmem:[%s10523_s28 + $0x4a0] sm:$0xff]  ;;  %v712_v2 = vld [vmem:[%s10523_s28 + $0x798] sm:$0xff] }
 0x134   : > { %v10809_v5 = vpop.f32.mrb[22].mxu0 }
 0x135   : > { %v1841_v6 = vmax.f32 %v10772_v34, %v10809_v5  ;;  %v1256_v7 = vpop.f32.mrb[23].mxu0  ;;  %1518 = vmatmul.mubr.f32.gmra.mrb[128].mxu0 %v597_v3 }
 0x136   : > { %8547 = vmatprep.mubr.msk.f32.mxu0 %vm744_vm0, %v600_v4  ;;  %v711_v4 = vld [vmem:[%s10523_s28 + $0x790] sm:$0xff]  ;;  %v622_v7 = vld [vmem:[%s10523_s28 + $0x4c8] sm:$0xff] }
 0x138   : > { %v10816_v10 = vpop.f32.mrb[24].mxu0 }
 0x139   : > { %v1842_v11 = vmax.f32 %v10777_v38, %v10816_v10  ;;  %v1261_v12 = vpop.f32.mrb[25].mxu0  ;;  %1523 = vmatmul.mubr.f32.gmra.mrb[130].mxu0 %v599_v8  ;;  %v714_v8 = vld [vmem:[%s10523_s28 + $0x7a8] sm:$0xff]  ;;  %v713_v10 = vld [vmem:[%s10523_s28 + $0x7a0] sm:$0xff] }
 0x13a   : > { %8548 = vmatprep.mubr.msk.f32.mxu0 %vm744_vm0, %v602_v9  ;;  %v621_v12 = vld [vmem:[%s10523_s28 + $0x4c0] sm:$0xff] }
 0x13c   : > { %v10823_v15 = vpop.f32.mrb[26].mxu0 }
 0x13d   : > { %v1843_v16 = vmax.f32 %v10782_v42, %v10823_v15  ;;  %v1266_v17 = vpop.f32.mrb[27].mxu0  ;;  %1528 = vmatmul.mubr.f32.gmra.mrb[132].mxu0 %v601_v13  ;;  %v624_v13 = vld [vmem:[%s10523_s28 + $0x4d8] sm:$0xff] }
 0x13e   : > { %8549 = vmatprep.mubr.msk.f32.mxu0 %vm744_vm0, %v604_v14  ;;  %v716_v14 = vld [vmem:[%s10523_s28 + $0x7b8] sm:$0xff] }
 0x140   : > { %v10830_v20 = vpop.f32.mrb[28].mxu0 }
 0x141   : > { %v1844_v21 = vmax.f32 %v10787_v46, %v10830_v20  ;;  %v1271_v22 = vpop.f32.mrb[29].mxu0  ;;  %1533 = vmatmul.mubr.f32.gmra.mrb[134].mxu0 %v603_v18  ;;  %v623_v18 = vld [vmem:[%s10523_s28 + $0x4d0] sm:$0xff]  ;;  %v718_v20 = vld [vmem:[%s10523_s28 + $0x7c8] sm:$0xff] }
 0x142   : > { %8550 = vmatprep.mubr.msk.f32.mxu0 %vm744_vm0, %v606_v19  ;;  %v626_v19 = vld [vmem:[%s10523_s28 + $0x4e8] sm:$0xff]  ;;  %v717_v22 = vld [vmem:[%s10523_s28 + $0x7c0] sm:$0xff] }
 0x144   : > { %v10837_v25 = vpop.f32.mrb[30].mxu0 }
 0x145   : > { %v1845_v26 = vmax.f32 %v10792_v50, %v10837_v25  ;;  %v1276_v27 = vpop.f32.mrb[31].mxu0  ;;  %1538 = vmatmul.mubr.f32.gmra.mrb[136].mxu0 %v605_v23  ;;  %v628_v25 = vld [vmem:[%s10523_s28 + $0x4f8] sm:$0xff] }
 0x146   : > { %8551 = vmatprep.mubr.msk.f32.mxu0 %vm744_vm0, %v608_v24  ;;  %v625_v24 = vld [vmem:[%s10523_s28 + $0x4e0] sm:$0xff] }
 0x148   : > { %v1279_v31 = vpop.f32.mrb[32].mxu0 }
 0x149   : > { %v10844_v32 = vmax.f32 %v1838_v55, %v1279_v31  ;;  %v1281_v33 = vpop.f32.mrb[33].mxu0  ;;  %1543 = vmatmul.mubr.f32.gmra.mrb[138].mxu0 %v607_v28  ;;  %v707_v55 = vld [vmem:[%s10523_s28 + $0x770] sm:$0xff] }
 0x14a   : > { %8552 = vmatprep.mubr.msk.f32.mxu0 %vm744_vm0, %v610_v30  ;;  %1793 = vmatmul.mubr.f32.gmra.mrb[2].mxu1 %v707_v55  ;;  %v719_v28 = vld [vmem:[%s10523_s28 + $0x7d0] sm:$0xff]  ;;  %v2029_v55 = vld [vmem:[%s15578_s3] sm:$0xff] }
 0x14b   : > { %v627_v33 = vld [vmem:[%s10523_s28 + $0x4f0] sm:$0xff] }
 0x14c   : > { %v1284_v37 = vpop.f32.mrb[34].mxu0 }
 0x14d   : > { %v10849_v39 = vmax.f32 %v1839_v60, %v1284_v37  ;;  %v1286_v40 = vpop.f32.mrb[35].mxu0  ;;  %1548 = vmatmul.mubr.f32.gmra.mrb[140].mxu0 %v609_v35  ;;  %v710_v60 = vld [vmem:[%s10523_s28 + $0x788] sm:$0xff] }
 0x14e   : > { %8553 = vmatprep.mubr.msk.f32.mxu0 %vm744_vm0, %v612_v36  ;;  %8602 = vmatprep.mubr.msk.f32.mxu1 %vm744_vm0, %v710_v60  ;;  %v630_v35 = vld [vmem:[%s10523_s28 + $0x508] sm:$0xff]  ;;  %v721_v40 = vld [vmem:[%s10523_s28 + $0x7e0] sm:$0xff] }
 0x14f   : > { %1798 = vmatmul.mubr.f32.gmra.mrb[4].mxu1 %v709_v62  ;;  %v722_v36 = vld [vmem:[%s10523_s28 + $0x7e8] sm:$0xff] }
 0x150   : > { %v1289_v45 = vpop.f32.mrb[36].mxu0  ;;  %8603 = vmatprep.mubr.msk.f32.mxu1 %vm744_vm0, %v712_v2  ;;  %v636_v2 = vld [vmem:[%s10523_s28 + $0x538] sm:$0xff] }
 0x151   : > { %v10857_v48 = vmax.f32 %v1840_v1, %v1289_v45  ;;  %v1291_v49 = vpop.f32.mrb[37].mxu0  ;;  %1553 = vmatmul.mubr.f32.gmra.mrb[142].mxu0 %v611_v41  ;;  %v620_v1 = vld [vmem:[%s10523_s28 + $0x4b8] sm:$0xff] }
 0x152   : > { %8554 = vmatprep.mubr.msk.f32.mxu0 %vm744_vm0, %v614_v43  ;;  %v632_v45 = vld [vmem:[%s10523_s28 + $0x518] sm:$0xff] }
 0x153   : > { %1803 = vmatmul.mubr.f32.gmra.mrb[6].mxu1 %v711_v4 }
 0x154   : > { %v1294_v54 = vpop.f32.mrb[38].mxu0  ;;  %8604 = vmatprep.mubr.msk.f32.mxu1 %vm744_vm0, %v714_v8  ;;  %v635_v8 = vld [vmem:[%s10523_s28 + $0x530] sm:$0xff] }
 0x155   : > { %v10868_v56 = vmax.f32 %v1841_v6, %v1294_v54  ;;  %v1296_v57 = vpop.f32.mrb[39].mxu0  ;;  %1558 = vmatmul.mubr.f32.gmra.mrb[144].mxu0 %v613_v51  ;;  %v619_v6 = vld [vmem:[%s10523_s28 + $0x4b0] sm:$0xff] }
 0x156   : > { %8555 = vmatprep.mubr.msk.f32.mxu0 %vm744_vm0, %v616_v52  ;;  %v723_v51 = vld [vmem:[%s10523_s28 + $0x7f0] sm:$0xff]  ;;  %v2030_v57 = vld [vmem:[%s15578_s3 + $0x8] sm:$0xff] }
 0x157   : > { %1808 = vmatmul.mubr.f32.gmra.mrb[8].mxu1 %v713_v10  ;;  %v631_v54 = vld [vmem:[%s10523_s28 + $0x510] sm:$0xff]  ;;  %v2034_v10 = vld [vmem:[%s15578_s3 + $0x28] sm:$0xff] }
 0x158   : > { %v1299_v61 = vpop.f32.mrb[40].mxu0  ;;  %8605 = vmatprep.mubr.msk.f32.mxu1 %vm744_vm0, %v716_v14 }
 0x159   : > { %v10879_v34 = vmax.f32 %v1842_v11, %v1299_v61  ;;  %v1301_v63 = vpop.f32.mrb[41].mxu0  ;;  %1563 = vmatmul.mubr.f32.gmra.mrb[146].mxu0 %v615_v58  ;;  %v634_v58 = vld [vmem:[%s10523_s28 + $0x528] sm:$0xff] }
 0x15a   : > { %8556 = vmatprep.mubr.msk.f32.mxu0 %vm744_vm0, %v618_v59  ;;  %v9625_v59 = vpack.c.bf16 %v2030_v57, %v2029_v55  ;;  %v633_v63 = vld [vmem:[%s10523_s28 + $0x520] sm:$0xff] }
 0x15c   : > { %v1304_v3 = vpop.f32.mrb[42].mxu0  ;;  %9626 = vmatprep.subr.bf16.mxu1 %v9625_v59 }
 0x15d   : > { %v10890_v38 = vmax.f32 %v1843_v16, %v1304_v3  ;;  %v1306_v5 = vpop.f32.mrb[43].mxu0  ;;  %1568 = vmatmul.mubr.f32.gmra.mrb[148].mxu0 %v617_v0  ;;  %v715_v16 = vld [vmem:[%s10523_s28 + $0x7b0] sm:$0xff]  ;;  %9628 = vmatpush3.bf16.msra.mxu1 %v9625_v59 }
 0x15e   : > { %8557 = vmatprep.mubr.msk.f32.mxu0 %vm744_vm0, %v620_v1  ;;  %1813 = vmatmul.mubr.f32.gmra.mrb[10].mxu1 %v715_v16  ;;  %v2031_v0 = vld [vmem:[%s15578_s3 + $0x10] sm:$0xff]  ;;  %v2032_v1 = vld [vmem:[%s15578_s3 + $0x18] sm:$0xff] }
 0x15f   : > { %8606 = vmatprep.mubr.msk.f32.mxu1 %vm744_vm0, %v718_v20  ;;  %v9629_v3 = vpack.c.bf16 %v2032_v1, %v2031_v0  ;;  %v643_v59 = vld [vmem:[%s10523_s28 + $0x570] sm:$0xff] }
 0x160   : > { %v1309_v9 = vpop.f32.mrb[44].mxu0 }
 0x161   : > { %v10901_v42 = vmax.f32 %v1844_v21, %v1309_v9  ;;  %v1311_v11 = vpop.f32.mrb[45].mxu0  ;;  %1573 = vmatmul.mubr.f32.gmra.mrb[150].mxu0 %v619_v6  ;;  %9630 = vmatprep.subr.bf16.mxu1 %v9629_v3  ;;  %v2033_v9 = vld [vmem:[%s15578_s3 + $0x20] sm:$0xff] }
 0x162   : > { %8558 = vmatprep.mubr.msk.f32.mxu0 %vm744_vm0, %v622_v7  ;;  %1818 = vmatmul.mubr.f32.gmra.mrb[12].mxu1 %v717_v22  ;;  %v15589_v7 = vlaneseq  ;;  %v638_v11 = vld [vmem:[%s10523_s28 + $0x548] sm:$0xff] }
 0x163   : > { %9632 = vmatpush3.bf16.msra.mxu1 %v9629_v3 }
 0x164   : > { %v1314_v15 = vpop.f32.mrb[46].mxu0 }
 0x165   : > { %v10912_v46 = vmax.f32 %v1845_v26, %v1314_v15  ;;  %v1316_v17 = vpop.f32.mrb[47].mxu0  ;;  %1578 = vmatmul.mubr.f32.gmra.mrb[152].mxu0 %v621_v12  ;;  %v720_v26 = vld [vmem:[%s10523_s28 + $0x7d8] sm:$0xff]  ;;  %v10990_v12 = vand.u32 127, %v15589_v7  ;;  %v1983_v15 = vpop.permute.xlu0 %1982 }
 0x166   : > { %8559 = vmatprep.mubr.msk.f32.mxu0 %vm744_vm0, %v624_v13  ;;  %8607 = vmatprep.mubr.msk.f32.mxu1 %vm744_vm0, %v720_v26  ;;  %v9633_v13 = vpack.c.bf16 %v2034_v10, %v2033_v9  ;;  %v650_v9 = vld [vmem:[%s10523_s28 + $0x5a8] sm:$0xff] }
 0x167   : > { %1823 = vmatmul.mubr.f32.gmra.mrb[14].mxu1 %v719_v28  ;;  %15648 = vst [vmem:[#allocation2_spill] sm:$0xff] %v10990_v12  ;;  %vm2005_vm2 = vcmp.eq.s32.totalorder %v10990_v12, %v1983_v15 }
 0x168   : > { %v10918_v21 = vpop.f32.mrb[48].mxu0  ;;  %8608 = vmatprep.mubr.msk.f32.mxu1 %vm744_vm0, %v722_v36  ;;  %9634 = vmatprep.subr.bf16.mxu1 %v9633_v13  ;;  %v8611_v22 = vsel %vm2005_vm2, 1.0, %v10413_v29 }
 0x169   : > { %v1854_v50 = vmax.f32 %v10844_v32, %v10918_v21  ;;  %v1321_v23 = vpop.f32.mrb[49].mxu0  ;;  %1583 = vmatmul.mubr.f32.gmra.mrb[154].mxu0 %v623_v18  ;;  %v637_v18 = vld [vmem:[%s10523_s28 + $0x540] sm:$0xff]  ;;  %9636 = vmatpush3.bf16.msra.mxu1 %v9633_v13  ;;  %v1986_v28 = vpop.permute.xlu0 %1985 }
 0x16a   : > { %8560 = vmatprep.mubr.msk.f32.mxu0 %vm744_vm0, %v626_v19  ;;  %v640_v19 = vld [vmem:[%s10523_s28 + $0x558] sm:$0xff]  ;;  %v1989_v23 = vpop.permute.xlu1 %1988  ;;  %vm2006_vm6 = vcmp.eq.s32.totalorder %v10990_v12, %v1986_v28 }
 0x16b   : > { %1828 = vmatmul.mubr.f32.gmra.mrb[16].mxu1 %v721_v40  ;;  %vm2007_vm4 = vcmp.eq.s32.totalorder %v10990_v12, %v1989_v23  ;;  %v8612_v36 = vsel %vm2006_vm6, 1.0, %v10413_v29 }
 0x16c   : > { %v10928_v27 = vpop.f32.mrb[50].mxu0  ;;  %8609 = vmatprep.mubr.msk.f32.mxu1 %vm744_vm0, %v724_v47 }
 0x16d   : > { %v1855_v30 = vmax.f32 %v10849_v39, %v10928_v27  ;;  %v1326_v31 = vpop.f32.mrb[51].mxu0  ;;  %1588 = vmatmul.mubr.f32.gmra.mrb[156].mxu0 %v625_v24  ;;  %v2035_v24 = vld [vmem:[%s15578_s3 + $0x30] sm:$0x3]  ;;  %v1995_v47 = vpop.permute.xlu0 %1994 }
 0x16e   : > { %8561 = vmatprep.mubr.msk.f32.mxu0 %vm744_vm0, %v628_v25  ;;  %9234 = vmatprep.subr.msk.mxu1 %vm2066_vm3, %v2035_v24  ;;  %v639_v31 = vld [vmem:[%s10523_s28 + $0x550] sm:$0xff]  ;;  %vm2009_vm8 = vcmp.eq.s32.totalorder %v10990_v12, %v1995_v47 }
 0x16f   : > { %1833 = vmatmul.mubr.f32.gmra.mrb[18].mxu1 %v723_v51  ;;  %v641_v51 = vld [vmem:[%s10523_s28 + $0x560] sm:$0xff]  ;;  %v8615_v32 = vsel %vm2009_vm8, 1.0, %v10413_v29 }
 0x170   : > { %v10938_v37 = vpop.f32.mrb[52].mxu0  ;;  %9235 = vmatpush3.msk.msra.mxu1 %vm2066_vm3, %v2035_v24  ;;  %9236 = vmatprep.mubr.msk.f32.mxu1 %vm2041_vm5, %v8611_v22 }
 0x171   : > { %v1856_v41 = vmax.f32 %v10857_v48, %v10938_v37  ;;  %v1331_v43 = vpop.f32.mrb[53].mxu0  ;;  %1593 = vmatmul.mubr.f32.gmra.mrb[158].mxu0 %v627_v33  ;;  %v8613_v33 = vsel %vm2007_vm4, 1.0, %v10413_v29 }
 0x172   : > { %8562 = vmatprep.mubr.msk.f32.mxu0 %vm744_vm0, %v630_v35  ;;  %v642_v35 = vld [vmem:[%s10523_s28 + $0x568] sm:$0xff]  ;;  %v1992_v43 = vpop.permute.xlu1 %1991 }
 0x173   : > { %9237 = vmatmul.mubr.msk.f32.vlgmr.msra.gmra.mrb[20].mxu1 %vm2041_vm5, %v8612_v36  ;;  %vm2008_vm7 = vcmp.eq.s32.totalorder %v10990_v12, %v1992_v43  ;;  %v661_v43 = vld [vmem:[%s10523_s28 + $0x600] sm:$0xff] }
 0x174   : > { %v10948_v49 = vpop.f32.mrb[54].mxu0  ;;  %9239 = vmatprep.mubr.msk.f32.mxu1 %vm2041_vm5, %v8613_v33  ;;  %v662_v33 = vld [vmem:[%s10523_s28 + $0x608] sm:$0xff] }
 0x175   : > { %v1857_v52 = vmax.f32 %v10868_v56, %v10948_v49  ;;  %v1336_v53 = vpop.f32.mrb[55].mxu0  ;;  %1598 = vmatmul.mubr.f32.gmra.mrb[160].mxu0 %v629_v44  ;;  %v649_v56 = vld [vmem:[%s10523_s28 + $0x5a0] sm:$0xff]  ;;  %v652_v49 = vld [vmem:[%s10523_s28 + $0x5b8] sm:$0xff] }
 0x176   : > { %8563 = vmatprep.mubr.msk.f32.mxu0 %vm744_vm0, %v632_v45  ;;  %v8614_v53 = vsel %vm2008_vm7, 1.0, %v10413_v29 }
 0x177   : > { %9240 = vmatmul.mubr.msk.f32.gmra.mrb[22].mxu1 %vm2041_vm5, %v8614_v53  ;;  %v663_v53 = vld [vmem:[%s10523_s28 + $0x610] sm:$0xff] }
 0x178   : > { %v10963_v60 = vpop.f32.mrb[56].mxu0  ;;  %9242 = vmatprep.mubr.msk.f32.mxu1 %vm2041_vm5, %v8615_v32 }
 0x179   : > { %v1858_v61 = vmax.f32 %v10879_v34, %v10963_v60  ;;  %v1341_v62 = vpop.f32.mrb[57].mxu0  ;;  %1603 = vmatmul.mubr.f32.gmra.mrb[162].mxu0 %v631_v54  ;;  %v644_v54 = vld [vmem:[%s10523_s28 + $0x578] sm:$0xff]  ;;  %v651_v34 = vld [vmem:[%s10523_s28 + $0x5b0] sm:$0xff]  ;;  %v654_v60 = vld [vmem:[%s10523_s28 + $0x5c8] sm:$0xff] }
 0x17a   : > { %8564 = vmatprep.mubr.msk.f32.mxu0 %vm744_vm0, %v634_v58  ;;  %v2001_v58 = vpop.permute.xlu0 %2000 }
 0x17b   : > { %vm2011_vm10 = vcmp.eq.s32.totalorder %v10990_v12, %v2001_v58 }
 0x17c   : > { %v10976_v4 = vpop.f32.mrb[58].mxu0  ;;  %v8617_v39 = vsel %vm2011_vm10, 1.0, %v10413_v29 }
 0x17d   : > { %v1859_v5 = vmax.f32 %v10890_v38, %v10976_v4  ;;  %v1346_v6 = vpop.f32.mrb[59].mxu0  ;;  %1608 = vmatmul.mubr.f32.gmra.mrb[164].mxu0 %v633_v63  ;;  %v646_v63 = vld [vmem:[%s10523_s28 + $0x588] sm:$0xff]  ;;  %v653_v38 = vld [vmem:[%s10523_s28 + $0x5c0] sm:$0xff]  ;;  %v656_v4 = vld [vmem:[%s10523_s28 + $0x5d8] sm:$0xff] }
 0x17e   : > { %8565 = vmatprep.mubr.msk.f32.mxu0 %vm744_vm0, %v636_v2  ;;  %v645_v2 = vld [vmem:[%s10523_s28 + $0x580] sm:$0xff]  ;;  %v648_v6 = vld [vmem:[%s10523_s28 + $0x598] sm:$0xff] }
 0x180   : > { %v10992_v14 = vpop.f32.mrb[60].mxu0 }
 0x181   : > { %v1860_v16 = vmax.f32 %v10901_v42, %v10992_v14  ;;  %v1351_v17 = vpop.f32.mrb[61].mxu0  ;;  %1613 = vmatmul.mubr.f32.gmra.mrb[166].mxu0 %v635_v8  ;;  %v655_v42 = vld [vmem:[%s10523_s28 + $0x5d0] sm:$0xff]  ;;  %v658_v14 = vld [vmem:[%s10523_s28 + $0x5e8] sm:$0xff] }
 0x182   : > { %8566 = vmatprep.mubr.msk.f32.mxu0 %vm744_vm0, %v638_v11 }
 0x184   : > { %v11000_v20 = vpop.f32.mrb[62].mxu0 }
 0x185   : > { %v1861_v25 = vmax.f32 %v10912_v46, %v11000_v20  ;;  %v1356_v26 = vpop.f32.mrb[63].mxu0  ;;  %1618 = vmatmul.mubr.f32.gmra.mrb[168].mxu0 %v637_v18  ;;  %v657_v46 = vld [vmem:[%s10523_s28 + $0x5e0] sm:$0xff]  ;;  %v660_v20 = vld [vmem:[%s10523_s28 + $0x5f8] sm:$0xff] }
 0x186   : > { %8567 = vmatprep.mubr.msk.f32.mxu0 %vm744_vm0, %v640_v19 }
 0x188   : > { %v1359_v40 = vpop.f32.mrb[64].mxu0 }
 0x189   : > { %v11020_v44 = vmax.f32 %v1854_v50, %v1359_v40  ;;  %v1361_v45 = vpop.f32.mrb[65].mxu0  ;;  %1623 = vmatmul.mubr.f32.gmra.mrb[170].mxu0 %v639_v31  ;;  %v1998_v50 = vpop.permute.xlu1 %1997  ;;  %v659_v31 = vld [vmem:[%s10523_s28 + $0x5f0] sm:$0xff] }
 0x18a   : > { %8568 = vmatprep.mubr.msk.f32.mxu0 %vm744_vm0, %v642_v35  ;;  %vm2010_vm9 = vcmp.eq.s32.totalorder %v10990_v12, %v1998_v50 }
 0x18b   : > { %v8616_v62 = vsel %vm2010_vm9, 1.0, %v10413_v29 }
 0x18c   : > { %v1364_v21 = vpop.f32.mrb[66].mxu0  ;;  %9243 = vmatmul.mubr.msk.f32.gmra.mrb[24].mxu1 %vm2041_vm5, %v8616_v62 }
 0x18d   : > { %v11034_v55 = vmax.f32 %v1855_v30, %v1364_v21  ;;  %v1366_v57 = vpop.f32.mrb[67].mxu0  ;;  %1628 = vmatmul.mubr.f32.gmra.mrb[172].mxu0 %v641_v51  ;;  %v2004_v30 = vpop.permute.xlu1 %2003  ;;  %9245 = vmatprep.mubr.msk.f32.mxu1 %vm2041_vm5, %v8617_v39  ;;  %v670_v39 = vld [vmem:[%s10523_s28 + $0x648] sm:$0xff] }
 0x18e   : > { %8569 = vmatprep.mubr.msk.f32.mxu0 %vm744_vm0, %v644_v54  ;;  %vm2012_vm11 = vcmp.eq.s32.totalorder %v10990_v12, %v2004_v30  ;;  %v666_v54 = vld [vmem:[%s10523_s28 + $0x628] sm:$0xff]  ;;  %v668_v57 = vld [vmem:[%s10523_s28 + $0x638] sm:$0xff] }
 0x18f   : > { %v8618_v3 = vsel %vm2012_vm11, 1.0, %v10413_v29 }
 0x190   : > { %v1369_v27 = vpop.f32.mrb[68].mxu0  ;;  %9246 = vmatmul.mubr.msk.f32.gmra.mrb[26].mxu1 %vm2041_vm5, %v8618_v3 }
 0x191   : > { %v11048_v0 = vmax.f32 %v1856_v41, %v1369_v27  ;;  %v1371_v1 = vpop.f32.mrb[69].mxu0  ;;  %1633 = vmatmul.mubr.f32.gmra.mrb[174].mxu0 %v643_v59  ;;  %v647_v41 = vld [vmem:[%s10523_s28 + $0x590] sm:$0xff] }
 0x192   : > { %8570 = vmatprep.mubr.msk.f32.mxu0 %vm744_vm0, %v646_v63  ;;  %v667_v63 = vld [vmem:[%s10523_s28 + $0x630] sm:$0xff]  ;;  %v669_v1 = vld [vmem:[%s10523_s28 + $0x640] sm:$0xff] }
 0x194   : > { %v1374_v8 = vpop.f32.mrb[70].mxu0 }
 0x195   : > { %v11060_v48 = vmax.f32 %v1857_v52, %v1374_v8  ;;  %v1376_v37 = vpop.f32.mrb[71].mxu0  ;;  %1638 = vmatmul.mubr.f32.gmra.mrb[176].mxu0 %v645_v2  ;;  %v672_v2 = vld [vmem:[%s10523_s28 + $0x658] sm:$0xff] }
 0x196   : > { %8571 = vmatprep.mubr.msk.f32.mxu0 %vm744_vm0, %v648_v6  ;;  %v674_v37 = vld [vmem:[%s10523_s28 + $0x668] sm:$0xff] }
 0x198   : > { %v1379_v10 = vpop.f32.mrb[72].mxu0 }
 0x199   : > { %v11068_v29 = vmax.f32 %v1858_v61, %v1379_v10  ;;  %v1381_v11 = vpop.f32.mrb[73].mxu0  ;;  %1643 = vmatmul.mubr.f32.gmra.mrb[178].mxu0 %v647_v41 }
 0x19a   : > { %8572 = vmatprep.mubr.msk.f32.mxu0 %vm744_vm0, %v650_v9  ;;  %v676_v11 = vld [vmem:[%s10523_s28 + $0x678] sm:$0xff] }
 0x19c   : > { %v1384_v52 = vpop.f32.mrb[74].mxu0 }
 0x19d   : > { %v11076_v13 = vmax.f32 %v1859_v5, %v1384_v52  ;;  %v1386_v15 = vpop.f32.mrb[75].mxu0  ;;  %1648 = vmatmul.mubr.f32.gmra.mrb[180].mxu0 %v649_v56 }
 0x19e   : > { %8573 = vmatprep.mubr.msk.f32.mxu0 %vm744_vm0, %v652_v49  ;;  %v678_v15 = vld [vmem:[%s10523_s28 + $0x688] sm:$0xff] }
 0x1a0   : > { %v1389_v61 = vpop.f32.mrb[76].mxu0 }
 0x1a1   : > { %v11084_v17 = vmax.f32 %v1860_v16, %v1389_v61  ;;  %v1391_v18 = vpop.f32.mrb[77].mxu0  ;;  %1653 = vmatmul.mubr.f32.gmra.mrb[182].mxu0 %v651_v34 }
 0x1a2   : > { %8574 = vmatprep.mubr.msk.f32.mxu0 %vm744_vm0, %v654_v60  ;;  %v680_v18 = vld [vmem:[%s10523_s28 + $0x698] sm:$0xff] }
 0x1a4   : > { %v1394_v5 = vpop.f32.mrb[78].mxu0 }
 0x1a5   : > { %v11092_v19 = vmax.f32 %v1861_v25, %v1394_v5  ;;  %v1396_v22 = vpop.f32.mrb[79].mxu0  ;;  %1658 = vmatmul.mubr.f32.gmra.mrb[184].mxu0 %v653_v38 }
 0x1a6   : > { %8575 = vmatprep.mubr.msk.f32.mxu0 %vm744_vm0, %v656_v4  ;;  %v682_v22 = vld [vmem:[%s10523_s28 + $0x6a8] sm:$0xff] }
 0x1a8   : > { %v1399_v16 = vpop.f32.mrb[80].mxu0 }
 0x1a9   : > { %v1870_v23 = vmax.f32 %v11020_v44, %v1399_v16  ;;  %v1401_v24 = vpop.f32.mrb[81].mxu0  ;;  %1663 = vmatmul.mubr.f32.gmra.mrb[186].mxu0 %v655_v42  ;;  %v664_v44 = vld [vmem:[%s10523_s28 + $0x618] sm:$0xff] }
 0x1aa   : > { %8576 = vmatprep.mubr.msk.f32.mxu0 %vm744_vm0, %v658_v14  ;;  %v684_v24 = vld [vmem:[%s10523_s28 + $0x6b8] sm:$0xff] }
 0x1ac   : > { %v1404_v25 = vpop.f32.mrb[82].mxu0 }
 0x1ad   : > { %v1871_v26 = vmax.f32 %v11034_v55, %v1404_v25  ;;  %v1406_v28 = vpop.f32.mrb[83].mxu0  ;;  %1668 = vmatmul.mubr.f32.gmra.mrb[188].mxu0 %v657_v46  ;;  %v665_v55 = vld [vmem:[%s10523_s28 + $0x620] sm:$0xff] }
 0x1ae   : > { %8577 = vmatprep.mubr.msk.f32.mxu0 %vm744_vm0, %v660_v20  ;;  %v686_v28 = vld [vmem:[%s10523_s28 + $0x6c8] sm:$0xff] }
 0x1b0   : > { %v1409_v35 = vpop.f32.mrb[84].mxu0 }
 0x1b1   : > { %v1872_v36 = vmax.f32 %v11048_v0, %v1409_v35  ;;  %v1411_v40 = vpop.f32.mrb[85].mxu0  ;;  %1673 = vmatmul.mubr.f32.gmra.mrb[190].mxu0 %v659_v31 }
 0x1b2   : > { %8578 = vmatprep.mubr.msk.f32.mxu0 %vm744_vm0, %v662_v33  ;;  %v688_v40 = vld [vmem:[%s10523_s28 + $0x6d8] sm:$0xff] }
 0x1b4   : > { %v1414_v45 = vpop.f32.mrb[86].mxu0 }
 0x1b5   : > { %v1873_v47 = vmax.f32 %v11060_v48, %v1414_v45  ;;  %v1416_v51 = vpop.f32.mrb[87].mxu0  ;;  %1678 = vmatmul.mubr.f32.gmra.mrb[192].mxu0 %v661_v43  ;;  %v671_v48 = vld [vmem:[%s10523_s28 + $0x650] sm:$0xff] }
 0x1b6   : > { %8579 = vmatprep.mubr.msk.f32.mxu0 %vm744_vm0, %v664_v44  ;;  %v690_v51 = vld [vmem:[%s10523_s28 + $0x6e8] sm:$0xff] }
 0x1b8   : > { %v1419_v32 = vpop.f32.mrb[88].mxu0 }
 0x1b9   : > { %v1874_v21 = vmax.f32 %v11068_v29, %v1419_v32  ;;  %v1421_v50 = vpop.f32.mrb[89].mxu0  ;;  %1683 = vmatmul.mubr.f32.gmra.mrb[194].mxu0 %v663_v53  ;;  %v673_v29 = vld [vmem:[%s10523_s28 + $0x660] sm:$0xff] }
 0x1ba   : > { %8580 = vmatprep.mubr.msk.f32.mxu0 %vm744_vm0, %v666_v54  ;;  %v692_v50 = vld [vmem:[%s10523_s28 + $0x6f8] sm:$0xff] }
 0x1bc   : > { %v1424_v58 = vpop.f32.mrb[90].mxu0 }
 0x1bd   : > { %v1875_v59 = vmax.f32 %v11076_v13, %v1424_v58  ;;  %v1426_v62 = vpop.f32.mrb[91].mxu0  ;;  %1688 = vmatmul.mubr.f32.gmra.mrb[196].mxu0 %v665_v55  ;;  %v675_v13 = vld [vmem:[%s10523_s28 + $0x670] sm:$0xff] }
 0x1be   : > { %8581 = vmatprep.mubr.msk.f32.mxu0 %vm744_vm0, %v668_v57  ;;  %v694_v62 = vld [vmem:[%s10523_s28 + $0x708] sm:$0xff] }
 0x1c0   : > { %v1429_v27 = vpop.f32.mrb[92].mxu0 }
 0x1c1   : > { %v1876_v30 = vmax.f32 %v11084_v17, %v1429_v27  ;;  %v1431_v0 = vpop.f32.mrb[93].mxu0  ;;  %1693 = vmatmul.mubr.f32.gmra.mrb[198].mxu0 %v667_v63  ;;  %v677_v17 = vld [vmem:[%s10523_s28 + $0x680] sm:$0xff] }
 0x1c2   : > { %8582 = vmatprep.mubr.msk.f32.mxu0 %vm744_vm0, %v670_v39  ;;  %v696_v0 = vld [vmem:[%s10523_s28 + $0x718] sm:$0xff] }
 0x1c4   : > { %v1434_v3 = vpop.f32.mrb[94].mxu0 }
 0x1c5   : > { %v1877_v6 = vmax.f32 %v11092_v19, %v1434_v3  ;;  %v1436_v8 = vpop.f32.mrb[95].mxu0  ;;  %1698 = vmatmul.mubr.f32.gmra.mrb[200].mxu0 %v669_v1  ;;  %v679_v19 = vld [vmem:[%s10523_s28 + $0x690] sm:$0xff] }
 0x1c6   : > { %8583 = vmatprep.mubr.msk.f32.mxu0 %vm744_vm0, %v672_v2  ;;  %v698_v8 = vld [vmem:[%s10523_s28 + $0x728] sm:$0xff] }
 0x1c8   : > { %v1439_v41 = vpop.f32.mrb[96].mxu0 }
 0x1c9   : > { %v11129_v9 = vmax.f32 %v1870_v23, %v1439_v41  ;;  %v1441_v10 = vpop.f32.mrb[97].mxu0  ;;  %1703 = vmatmul.mubr.f32.gmra.mrb[202].mxu0 %v671_v48  ;;  %v681_v23 = vld [vmem:[%s10523_s28 + $0x6a0] sm:$0xff] }
 0x1ca   : > { %8584 = vmatprep.mubr.msk.f32.mxu0 %vm744_vm0, %v674_v37  ;;  %v700_v10 = vld [vmem:[%s10523_s28 + $0x738] sm:$0xff] }
 0x1cc   : > { %v1444_v56 = vpop.f32.mrb[98].mxu0 }
 0x1cd   : > { %v11134_v49 = vmax.f32 %v1871_v26, %v1444_v56  ;;  %v1446_v52 = vpop.f32.mrb[99].mxu0  ;;  %1708 = vmatmul.mubr.f32.gmra.mrb[204].mxu0 %v673_v29  ;;  %v683_v26 = vld [vmem:[%s10523_s28 + $0x6b0] sm:$0xff] }
 0x1ce   : > { %8585 = vmatprep.mubr.msk.f32.mxu0 %vm744_vm0, %v676_v11  ;;  %v702_v52 = vld [vmem:[%s10523_s28 + $0x748] sm:$0xff] }
 0x1d0   : > { %v1449_v34 = vpop.f32.mrb[100].mxu0 }
 0x1d1   : > { %v11139_v60 = vmax.f32 %v1872_v36, %v1449_v34  ;;  %v1451_v61 = vpop.f32.mrb[101].mxu0  ;;  %1713 = vmatmul.mubr.f32.gmra.mrb[206].mxu0 %v675_v13  ;;  %v685_v36 = vld [vmem:[%s10523_s28 + $0x6c0] sm:$0xff] }
 0x1d2   : > { %8586 = vmatprep.mubr.msk.f32.mxu0 %vm744_vm0, %v678_v15  ;;  %v704_v61 = vld [vmem:[%s10523_s28 + $0x758] sm:$0xff] }
 0x1d4   : > { %v1454_v38 = vpop.f32.mrb[102].mxu0 }
 0x1d5   : > { %v11144_v4 = vmax.f32 %v1873_v47, %v1454_v38  ;;  %v1456_v5 = vpop.f32.mrb[103].mxu0  ;;  %1718 = vmatmul.mubr.f32.gmra.mrb[208].mxu0 %v677_v17  ;;  %v687_v47 = vld [vmem:[%s10523_s28 + $0x6d0] sm:$0xff] }
 0x1d6   : > { %8587 = vmatprep.mubr.msk.f32.mxu0 %vm744_vm0, %v680_v18 }
 0x1d8   : > { %v1459_v42 = vpop.f32.mrb[104].mxu0 }
 0x1d9   : > { %v11149_v14 = vmax.f32 %v1874_v21, %v1459_v42  ;;  %v1461_v16 = vpop.f32.mrb[105].mxu0  ;;  %1723 = vmatmul.mubr.f32.gmra.mrb[210].mxu0 %v679_v19  ;;  %v689_v21 = vld [vmem:[%s10523_s28 + $0x6e0] sm:$0xff] }
 0x1da   : > { %8588 = vmatprep.mubr.msk.f32.mxu0 %vm744_vm0, %v682_v22 }
 0x1dc   : > { %v1464_v46 = vpop.f32.mrb[106].mxu0 }
 0x1dd   : > { %v11154_v20 = vmax.f32 %v1875_v59, %v1464_v46  ;;  %v1466_v25 = vpop.f32.mrb[107].mxu0  ;;  %1728 = vmatmul.mubr.f32.gmra.mrb[212].mxu0 %v681_v23  ;;  %v691_v59 = vld [vmem:[%s10523_s28 + $0x6f0] sm:$0xff] }
 0x1de   : > { %8589 = vmatprep.mubr.msk.f32.mxu0 %vm744_vm0, %v684_v24 }
 0x1e0   : > { %v1469_v31 = vpop.f32.mrb[108].mxu0 }
 0x1e1   : > { %v11159_v33 = vmax.f32 %v1876_v30, %v1469_v31  ;;  %v1471_v35 = vpop.f32.mrb[109].mxu0  ;;  %1733 = vmatmul.mubr.f32.gmra.mrb[214].mxu0 %v683_v26  ;;  %v693_v30 = vld [vmem:[%s10523_s28 + $0x700] sm:$0xff] }
 0x1e2   : > { %8590 = vmatprep.mubr.msk.f32.mxu0 %vm744_vm0, %v686_v28 }
 0x1e4   : > { %v1474_v43 = vpop.f32.mrb[110].mxu0 }
 0x1e5   : > { %v11164_v44 = vmax.f32 %v1877_v6, %v1474_v43  ;;  %v1476_v45 = vpop.f32.mrb[111].mxu0  ;;  %1738 = vmatmul.mubr.f32.gmra.mrb[216].mxu0 %v685_v36  ;;  %v695_v6 = vld [vmem:[%s10523_s28 + $0x710] sm:$0xff] }
 0x1e6   : > { %8591 = vmatprep.mubr.msk.f32.mxu0 %vm744_vm0, %v688_v40 }
 0x1e8   : > { %v1479_v53 = vpop.f32.mrb[112].mxu0 }
 0x1e9   : > { %v1886_v54 = vmax.f32 %v11129_v9, %v1479_v53  ;;  %v1481_v32 = vpop.f32.mrb[113].mxu0  ;;  %1743 = vmatmul.mubr.f32.gmra.mrb[218].mxu0 %v687_v47  ;;  %v697_v9 = vld [vmem:[%s10523_s28 + $0x720] sm:$0xff] }
 0x1ea   : > { %8592 = vmatprep.mubr.msk.f32.mxu0 %vm744_vm0, %v690_v51 }
 0x1ec   : > { %v1484_v55 = vpop.f32.mrb[114].mxu0 }
 0x1ed   : > { %v1887_v57 = vmax.f32 %v11134_v49, %v1484_v55  ;;  %v1486_v58 = vpop.f32.mrb[115].mxu0  ;;  %1748 = vmatmul.mubr.f32.gmra.mrb[220].mxu0 %v689_v21  ;;  %v699_v49 = vld [vmem:[%s10523_s28 + $0x730] sm:$0xff] }
 0x1ee   : > { %8593 = vmatprep.mubr.msk.f32.mxu0 %vm744_vm0, %v692_v50 }
 0x1f0   : > { %v1489_v63 = vpop.f32.mrb[116].mxu0 }
 0x1f1   : > { %v1888_v39 = vmax.f32 %v11139_v60, %v1489_v63  ;;  %v1491_v27 = vpop.f32.mrb[117].mxu0  ;;  %1753 = vmatmul.mubr.f32.gmra.mrb[222].mxu0 %v691_v59  ;;  %v701_v60 = vld [vmem:[%s10523_s28 + $0x740] sm:$0xff] }
 0x1f2   : > { %8594 = vmatprep.mubr.msk.f32.mxu0 %vm744_vm0, %v694_v62 }
 0x1f4   : > { %v1494_v1 = vpop.f32.mrb[118].mxu0 }
 0x1f5   : > { %v1889_v2 = vmax.f32 %v11144_v4, %v1494_v1  ;;  %v1496_v3 = vpop.f32.mrb[119].mxu0  ;;  %1758 = vmatmul.mubr.f32.gmra.mrb[224].mxu0 %v693_v30  ;;  %v703_v4 = vld [vmem:[%s10523_s28 + $0x750] sm:$0xff] }
 0x1f6   : > { %8595 = vmatprep.mubr.msk.f32.mxu0 %vm744_vm0, %v696_v0 }
 0x1f8   : > { %v1499_v48 = vpop.f32.mrb[120].mxu0 }
 0x1f9   : > { %v1890_v37 = vmax.f32 %v11149_v14, %v1499_v48  ;;  %v1501_v41 = vpop.f32.mrb[121].mxu0  ;;  %1763 = vmatmul.mubr.f32.gmra.mrb[226].mxu0 %v695_v6 }
 0x1fa   : > { %8596 = vmatprep.mubr.msk.f32.mxu0 %vm744_vm0, %v698_v8 }
 0x1fc   : > { %v1504_v29 = vpop.f32.mrb[122].mxu0 }
 0x1fd   : > { %v1891_v11 = vmax.f32 %v11154_v20, %v1504_v29  ;;  %v1506_v56 = vpop.f32.mrb[123].mxu0  ;;  %1768 = vmatmul.mubr.f32.gmra.mrb[228].mxu0 %v697_v9 }
 0x1fe   : > { %8597 = vmatprep.mubr.msk.f32.mxu0 %vm744_vm0, %v700_v10 }
 0x200   : > { %v1509_v13 = vpop.f32.mrb[124].mxu0 }
 0x201   : > { %v1892_v15 = vmax.f32 %v11159_v33, %v1509_v13  ;;  %v1511_v34 = vpop.f32.mrb[125].mxu0  ;;  %1773 = vmatmul.mubr.f32.gmra.mrb[230].mxu0 %v699_v49 }
 0x202   : > { %8598 = vmatprep.mubr.msk.f32.mxu0 %vm744_vm0, %v702_v52 }
 0x204   : > { %v1514_v17 = vpop.f32.mrb[126].mxu0 }
 0x205   : > { %v1893_v18 = vmax.f32 %v11164_v44, %v1514_v17  ;;  %v1516_v38 = vpop.f32.mrb[127].mxu0  ;;  %1778 = vmatmul.mubr.f32.gmra.mrb[232].mxu0 %v701_v60 }
 0x206   : > { %8599 = vmatprep.mubr.msk.f32.mxu0 %vm744_vm0, %v704_v61 }
 0x208   : > { %v1519_v5 = vpop.f32.mrb[128].mxu0 }
 0x209   : > { %v11200_v19 = vmax.f32 %v1886_v54, %v1519_v5  ;;  %v1521_v22 = vpop.f32.mrb[129].mxu0  ;;  %1783 = vmatmul.mubr.f32.gmra.mrb[234].mxu0 %v703_v4 }
 0x20c   : > { %v1524_v42 = vpop.f32.mrb[130].mxu0 }
 0x20d   : > { %v11202_v14 = vmax.f32 %v1887_v57, %v1524_v42  ;;  %v1526_v16 = vpop.f32.mrb[131].mxu0 }
 0x210   : > { %v1529_v23 = vpop.f32.mrb[132].mxu0 }
 0x211   : > { %v11204_v24 = vmax.f32 %v1888_v39, %v1529_v23  ;;  %v1531_v46 = vpop.f32.mrb[133].mxu0  ;;  %v11219_v39 = vpop.f32.mrb[0].mxu1 }
 0x212   : > { %v1791_v0 = vpop.f32.mrb[1].mxu1 }
 0x214   : > { %v1534_v20 = vpop.f32.mrb[134].mxu0 }
 0x215   : > { %v11206_v25 = vmax.f32 %v1889_v2, %v1534_v20  ;;  %v1536_v26 = vpop.f32.mrb[135].mxu0 }
 0x218   : > { %v1539_v28 = vpop.f32.mrb[136].mxu0 }
 0x219   : > { %v11208_v31 = vmax.f32 %v1890_v37, %v1539_v28  ;;  %v1541_v33 = vpop.f32.mrb[137].mxu0 }
 0x21c   : > { %v1544_v35 = vpop.f32.mrb[138].mxu0 }
 0x21d   : > { %v11210_v36 = vmax.f32 %v1891_v11, %v1544_v35  ;;  %v1546_v40 = vpop.f32.mrb[139].mxu0  ;;  %v11222_v1 = vpop.f32.mrb[2].mxu1 }
 0x21e   : > { %v1796_v2 = vpop.f32.mrb[3].mxu1 }
 0x220   : > { %v1549_v43 = vpop.f32.mrb[140].mxu0 }
 0x221   : > { %v11212_v44 = vmax.f32 %v1892_v15, %v1549_v43  ;;  %v1551_v45 = vpop.f32.mrb[141].mxu0 }
 0x222   : > { %v11224_v6 = vpop.f32.mrb[4].mxu1 }
 0x223   : > { %v1801_v37 = vpop.f32.mrb[5].mxu1 }
 0x224   : > { %v1554_v47 = vpop.f32.mrb[142].mxu0 }
 0x225   : > { %v11214_v51 = vmax.f32 %v1893_v18, %v1554_v47  ;;  %v1556_v53 = vpop.f32.mrb[143].mxu0 }
 0x226   : > { %v11227_v41 = vpop.f32.mrb[6].mxu1 }
 0x227   : > { %v1806_v9 = vpop.f32.mrb[7].mxu1 }
 0x228   : > { %v1559_v54 = vpop.f32.mrb[144].mxu0 }
 0x229   : > { %v1902_v32 = vmax.f32 %v11200_v19, %v1559_v54  ;;  %v1561_v21 = vpop.f32.mrb[145].mxu0 }
 0x22a   : > { %v11229_v29 = vpop.f32.mrb[8].mxu1 }
 0x22b   : > { %v1811_v49 = vpop.f32.mrb[9].mxu1 }
 0x22c   : > { %v1564_v50 = vpop.f32.mrb[146].mxu0 }
 0x22d   : > { %v1903_v55 = vmax.f32 %v11202_v14, %v1564_v50  ;;  %v1566_v57 = vpop.f32.mrb[147].mxu0 }
 0x230   : > { %v1569_v58 = vpop.f32.mrb[148].mxu0 }
 0x231   : > { %v1904_v59 = vmax.f32 %v11204_v24, %v1569_v58  ;;  %v1571_v62 = vpop.f32.mrb[149].mxu0  ;;  %v11232_v52 = vpop.f32.mrb[10].mxu1 }
 0x232   : > { %v1816_v13 = vpop.f32.mrb[11].mxu1 }
 0x234   : > { %v1574_v63 = vpop.f32.mrb[150].mxu0 }
 0x235   : > { %v1905_v27 = vmax.f32 %v11206_v25, %v1574_v63  ;;  %v1576_v30 = vpop.f32.mrb[151].mxu0  ;;  %v11234_v34 = vpop.f32.mrb[12].mxu1 }
 0x236   : > { %v1821_v17 = vpop.f32.mrb[13].mxu1 }
 0x238   : > { %v1579_v3 = vpop.f32.mrb[152].mxu0 }
 0x239   : > { %v1906_v8 = vmax.f32 %v11208_v31, %v1579_v3  ;;  %v1581_v48 = vpop.f32.mrb[153].mxu0 }
 0x23a   : > { %v11237_v18 = vpop.f32.mrb[14].mxu1 }
 0x23b   : > { %v1826_v38 = vpop.f32.mrb[15].mxu1 }
 0x23c   : > { %v1584_v10 = vpop.f32.mrb[154].mxu0 }
 0x23d   : > { %v1907_v11 = vmax.f32 %v11210_v36, %v1584_v10  ;;  %v1586_v56 = vpop.f32.mrb[155].mxu0 }
 0x23e   : > { %v11239_v5 = vpop.f32.mrb[16].mxu1 }
 0x23f   : > { %v1831_v42 = vpop.f32.mrb[17].mxu1 }
 0x240   : > { %v1589_v15 = vpop.f32.mrb[156].mxu0 }
 0x241   : > { %v1908_v60 = vmax.f32 %v11212_v44, %v1589_v15  ;;  %v1591_v61 = vpop.f32.mrb[157].mxu0 }
 0x242   : > { %v11242_v16 = vpop.f32.mrb[18].mxu1 }
 0x243   : > { %v1836_v46 = vpop.f32.mrb[19].mxu1 }
 0x244   : > { %v1594_v4 = vpop.f32.mrb[158].mxu0 }
 0x245   : > { %v1909_v19 = vmax.f32 %v11214_v51, %v1594_v4  ;;  %v1596_v22 = vpop.f32.mrb[159].mxu0 }
 0x246   : > { %v11244_v21 = vpop.f32.mrb[20].mxu1 }
 0x247   : > { %v11246_v57 = vpop.f32.mrb[21].mxu1 }
 0x248   : > { %v1599_v14 = vpop.f32.mrb[160].mxu0 }
 0x249   : > { %v1910_v23 = vmax.f32 %v1902_v32, %v1599_v14  ;;  %v1601_v24 = vpop.f32.mrb[161].mxu0 }
 0x24c   : > { %v1604_v20 = vpop.f32.mrb[162].mxu0 }
 0x24d   : > { %v1911_v25 = vmax.f32 %v1903_v55, %v1604_v20  ;;  %v1606_v26 = vpop.f32.mrb[163].mxu0  ;;  %v11248_v55 = vpop.f32.mrb[22].mxu1 }
 0x24e   : > { %v11250_v58 = vpop.f32.mrb[23].mxu1 }
 0x250   : > { %v1609_v28 = vpop.f32.mrb[164].mxu0 }
 0x251   : > { %v1912_v31 = vmax.f32 %v1904_v59, %v1609_v28  ;;  %v1611_v33 = vpop.f32.mrb[165].mxu0 }
 0x254   : > { %v1614_v35 = vpop.f32.mrb[166].mxu0 }
 0x255   : > { %v1913_v36 = vmax.f32 %v1905_v27, %v1614_v35  ;;  %v1616_v40 = vpop.f32.mrb[167].mxu0 }
 0x258   : > { %v1619_v43 = vpop.f32.mrb[168].mxu0 }
 0x259   : > { %v1914_v44 = vmax.f32 %v1906_v8, %v1619_v43  ;;  %v1621_v45 = vpop.f32.mrb[169].mxu0 }
 0x25c   : > { %v1624_v47 = vpop.f32.mrb[170].mxu0 }
 0x25d   : > { %v1915_v51 = vmax.f32 %v1907_v11, %v1624_v47  ;;  %v1626_v53 = vpop.f32.mrb[171].mxu0 }
 0x25f   : > { %v11252_v62 = vpop.f32.mrb[24].mxu1 }
 0x260   : > { %v1629_v54 = vpop.f32.mrb[172].mxu0  ;;  %v11254_v30 = vpop.f32.mrb[25].mxu1 }
 0x261   : > { %v1916_v32 = vmax.f32 %v1908_v60, %v1629_v54  ;;  %v1631_v50 = vpop.f32.mrb[173].mxu0 }
 0x263   : > { %v11256_v0 = vpop.f32.mrb[26].mxu1 }
 0x264   : > { %v1634_v59 = vpop.f32.mrb[174].mxu0  ;;  %v11258_v3 = vpop.f32.mrb[27].mxu1 }
 0x265   : > { %v1917_v63 = vmax.f32 %v1909_v19, %v1634_v59  ;;  %v1636_v27 = vpop.f32.mrb[175].mxu0 }
 0x268   : > { %v1639_v2 = vpop.f32.mrb[176].mxu0 }
 0x269   : > { %v1918_v8 = vmax.f32 %v1910_v23, %v1639_v2  ;;  %v1641_v48 = vpop.f32.mrb[177].mxu0 }
 0x26c   : > { %v1644_v37 = vpop.f32.mrb[178].mxu0 }
 0x26d   : > { %v1919_v9 = vmax.f32 %v1911_v25, %v1644_v37  ;;  %v1646_v10 = vpop.f32.mrb[179].mxu0 }
 0x270   : > { %v1649_v11 = vpop.f32.mrb[180].mxu0 }
 0x271   : > { %v1920_v56 = vmax.f32 %v1912_v31, %v1649_v11  ;;  %v1651_v49 = vpop.f32.mrb[181].mxu0 }
 0x274   : > { %v1654_v13 = vpop.f32.mrb[182].mxu0 }
 0x275   : > { %v1921_v15 = vmax.f32 %v1913_v36, %v1654_v13  ;;  %v1656_v60 = vpop.f32.mrb[183].mxu0 }
 0x278   : > { %v1659_v61 = vpop.f32.mrb[184].mxu0 }
 0x279   : > { %v1922_v17 = vmax.f32 %v1914_v44, %v1659_v61  ;;  %v1661_v38 = vpop.f32.mrb[185].mxu0 }
 0x27c   : > { %v1664_v4 = vpop.f32.mrb[186].mxu0 }
 0x27d   : > { %v1923_v19 = vmax.f32 %v1915_v51, %v1664_v4  ;;  %v1666_v22 = vpop.f32.mrb[187].mxu0 }
 0x280   : > { %v1669_v42 = vpop.f32.mrb[188].mxu0 }
 0x281   : > { %v1924_v14 = vmax.f32 %v1916_v32, %v1669_v42  ;;  %v1671_v24 = vpop.f32.mrb[189].mxu0 }
 0x284   : > { %v1674_v23 = vpop.f32.mrb[190].mxu0 }
 0x285   : > { %v1925_v46 = vmax.f32 %v1917_v63, %v1674_v23  ;;  %v1676_v20 = vpop.f32.mrb[191].mxu0 }
 0x288   : > { %v1679_v25 = vpop.f32.mrb[192].mxu0 }
 0x289   : > { %v1926_v26 = vmax.f32 %v1918_v8, %v1679_v25  ;;  %v1681_v28 = vpop.f32.mrb[193].mxu0 }
 0x28c   : > { %v1684_v31 = vpop.f32.mrb[194].mxu0 }
 0x28d   : > { %v1927_v33 = vmax.f32 %v1919_v9, %v1684_v31  ;;  %v1686_v35 = vpop.f32.mrb[195].mxu0 }
 0x290   : > { %v1689_v36 = vpop.f32.mrb[196].mxu0 }
 0x291   : > { %v1928_v40 = vmax.f32 %v1920_v56, %v1689_v36  ;;  %v1691_v43 = vpop.f32.mrb[197].mxu0 }
 0x294   : > { %v1694_v44 = vpop.f32.mrb[198].mxu0 }
 0x295   : > { %v11260_v45 = vmax.f32 %v1921_v15, %v1694_v44  ;;  %v1696_v47 = vpop.f32.mrb[199].mxu0 }
 0x298   : > { %v1699_v51 = vpop.f32.mrb[200].mxu0 }
 0x299   : > { %v11262_v53 = vmax.f32 %v1922_v17, %v1699_v51  ;;  %v1701_v54 = vpop.f32.mrb[201].mxu0  ;;  %v8610_v51 = vld [vmem:[%s15586_s11] ss:$0 sm:$0xff] }
 0x29c   : > { %v1704_v32 = vpop.f32.mrb[202].mxu0 }
 0x29d   : > { %v11264_v50 = vmax.f32 %v1923_v19, %v1704_v32  ;;  %v1706_v59 = vpop.f32.mrb[203].mxu0 }
 0x2a0   : > { %v1709_v63 = vpop.f32.mrb[204].mxu0 }
 0x2a1   : > { %v1932_v27 = vmax.f32 %v1924_v14, %v1709_v63  ;;  %v1711_v2 = vpop.f32.mrb[205].mxu0 }
 0x2a4   : > { %v1714_v8 = vpop.f32.mrb[206].mxu0 }
 0x2a5   : > { %v1933_v48 = vmax.f32 %v1925_v46, %v1714_v8  ;;  %v1716_v37 = vpop.f32.mrb[207].mxu0 }
 0x2a8   : > { %v1719_v9 = vpop.f32.mrb[208].mxu0 }
 0x2a9   : > { %v1934_v10 = vmax.f32 %v1926_v26, %v1719_v9  ;;  %v1721_v11 = vpop.f32.mrb[209].mxu0 }
 0x2ac   : > { %v1724_v56 = vpop.f32.mrb[210].mxu0 }
 0x2ad   : > { %v1935_v49 = vmax.f32 %v1927_v33, %v1724_v56  ;;  %v1726_v13 = vpop.f32.mrb[211].mxu0 }
 0x2b0   : > { %v1729_v15 = vpop.f32.mrb[212].mxu0 }
 0x2b1   : > { %v1936_v60 = vmax.f32 %v1928_v40, %v1729_v15  ;;  %v1731_v61 = vpop.f32.mrb[213].mxu0 }
 0x2b4   : > { %v1734_v17 = vpop.f32.mrb[214].mxu0 }
 0x2b5   : > { %v1937_v38 = vmax.f32 %v11260_v45, %v1734_v17  ;;  %v1736_v4 = vpop.f32.mrb[215].mxu0  ;;  %v8619_v17 = vld [vmem:[%s15586_s11 + $0x1] ss:$0 sm:$0xff] }
 0x2b8   : > { %v1739_v19 = vpop.f32.mrb[216].mxu0 }
 0x2b9   : > { %v1938_v22 = vmax.f32 %v11262_v53, %v1739_v19  ;;  %v1741_v42 = vpop.f32.mrb[217].mxu0 }
 0x2bc   : > { %v1744_v14 = vpop.f32.mrb[218].mxu0 }
 0x2bd   : > { %v1939_v24 = vmax.f32 %v11264_v50, %v1744_v14  ;;  %v1746_v23 = vpop.f32.mrb[219].mxu0 }
 0x2c0   : > { %v1749_v46 = vpop.f32.mrb[220].mxu0 }
 0x2c1   : > { %v1940_v20 = vmax.f32 %v1932_v27, %v1749_v46  ;;  %v1751_v25 = vpop.f32.mrb[221].mxu0  ;;  %v11324_v46 = vadd.f32 %v11244_v21, %v8619_v17  ;;  %v11339_v21 = vadd.f32 %v11252_v62, %v8619_v17 }
 0x2c2   : > { %v11331_v25 = vadd.f32 %v11248_v55, %v8619_v17 }
 0x2c3   : > { %v1948_v26 = vmax.f32 %v1940_v20, %v11219_v39  ;;  %15659 = vst [vmem:[#allocation13_spill] sm:$0xff] %v11324_v46  ;;  %15662 = vst [vmem:[#allocation16_spill] sm:$0xff] %v11339_v21  ;;  %v2217_v62 = vsel %vm2177_vm12, %v11339_v21, 0.0 }
 0x2c4   : > { %v1754_v28 = vpop.f32.mrb[222].mxu0  ;;  %15660 = vst [vmem:[#allocation14_spill] sm:$0xff] %v11331_v25  ;;  %v2211_v55 = vsel %vm2177_vm12, %v11331_v25, 0.0 }
 0x2c5   : > { %v1941_v31 = vmax.f32 %v1933_v48, %v1754_v28  ;;  %v1956_v33 = vmax.f32 %v1948_v26, %v11239_v5  ;;  %v1756_v35 = vpop.f32.mrb[223].mxu0  ;;  %v2205_v26 = vsel %vm2177_vm12, %v11324_v46, 0.0  ;;  %v11342_v28 = vadd.f32 %v8619_v17, %v11258_v3 }
 0x2c7   : > { %v1949_v36 = vmax.f32 %v1941_v31, %v11222_v1  ;;  %15663 = vst [vmem:[#allocation17_spill] sm:$0xff] %v11342_v28 }
 0x2c8   : > { %v1759_v40 = vpop.f32.mrb[224].mxu0 }
 0x2c9   : > { %v1942_v43 = vmax.f32 %v1934_v10, %v1759_v40  ;;  %v1957_v44 = vmax.f32 %v1949_v36, %v11242_v16  ;;  %v1761_v45 = vpop.f32.mrb[225].mxu0 }
 0x2cb   : > { %v1950_v47 = vmax.f32 %v1942_v43, %v11224_v6  ;;  %v11312_v42 = vadd.f32 %v8610_v51, %v1957_v44 }
 0x2cc   : > { %v1764_v53 = vpop.f32.mrb[226].mxu0 }
 0x2cd   : > { %v11277_v39 = vadd.f32 %v8610_v51, %v1950_v47  ;;  %v1943_v54 = vmax.f32 %v1935_v49, %v1764_v53  ;;  %v1766_v32 = vpop.f32.mrb[227].mxu0  ;;  %15657 = vst [vmem:[#allocation11_spill] sm:$0xff] %v11312_v42 }
 0x2cf   : > { %15649 = vst [vmem:[#allocation3_spill] sm:$0xff] %v11277_v39  ;;  %v1951_v5 = vmax.f32 %v1943_v54, %v11227_v41  ;;  %v2178_v1 = vsel %vm2177_vm12, %v11277_v39, 0.0 }
 0x2d0   : > { %2179 = vadd.xlane.f32.xlu0 %v2178_v1  ;;  %v1769_v16 = vpop.f32.mrb[228].mxu0 }
 0x2d1   : > { %v11282_v50 = vadd.f32 %v8610_v51, %v1951_v5  ;;  %v1944_v6 = vmax.f32 %v1936_v60, %v1769_v16  ;;  %v1771_v59 = vpop.f32.mrb[229].mxu0 }
 0x2d3   : > { %15650 = vst [vmem:[#allocation4_spill] sm:$0xff] %v11282_v50  ;;  %v1952_v63 = vmax.f32 %v1944_v6, %v11229_v29  ;;  %v2181_v27 = vsel %vm2177_vm12, %v11282_v50, 0.0 }
 0x2d4   : > { %2182 = vadd.xlane.f32.xlu1 %v2181_v27  ;;  %v1774_v2 = vpop.f32.mrb[230].mxu0 }
 0x2d5   : > { %v11287_v8 = vadd.f32 %v8610_v51, %v1952_v63  ;;  %v1945_v48 = vmax.f32 %v1937_v38, %v1774_v2  ;;  %v1776_v41 = vpop.f32.mrb[231].mxu0  ;;  %v11302_v38 = vadd.f32 %v8610_v51, %v1956_v33  ;;  %v2220_v33 = vsel %vm2177_vm12, %v11342_v28, 0.0 }
 0x2d7   : > { %15651 = vst [vmem:[#allocation5_spill] sm:$0xff] %v11287_v8  ;;  %v1953_v37 = vmax.f32 %v1945_v48, %v11232_v52  ;;  %v2184_v9 = vsel %vm2177_vm12, %v11287_v8, 0.0  ;;  %15654 = vst [vmem:[#allocation8_spill] sm:$0xff] %v11302_v38  ;;  %v2196_v14 = vsel %vm2177_vm12, %v11302_v38, 0.0 }
 0x2d8   : > { %2185 = vadd.xlane.f32.xlu0 %v2184_v9  ;;  %v1779_v10 = vpop.f32.mrb[232].mxu0 }
 0x2d9   : > { %v11292_v11 = vadd.f32 %v8610_v51, %v1953_v37  ;;  %v1946_v56 = vmax.f32 %v1938_v22, %v1779_v10  ;;  %v1781_v29 = vpop.f32.mrb[233].mxu0  ;;  %v11310_v22 = vadd.f32 %v8619_v17, %v11246_v57  ;;  %v2199_v57 = vsel %vm2177_vm12, %v11312_v42, 0.0 }
 0x2db   : > { %15652 = vst [vmem:[#allocation6_spill] sm:$0xff] %v11292_v11  ;;  %v1954_v49 = vmax.f32 %v1946_v56, %v11234_v34  ;;  %v2187_v13 = vsel %vm2177_vm12, %v11292_v11, 0.0  ;;  %15656 = vst [vmem:[#allocation10_spill] sm:$0xff] %v11310_v22  ;;  %v2202_v23 = vsel %vm2177_vm12, %v11310_v22, 0.0 }
 0x2dc   : > { %2188 = vadd.xlane.f32.xlu0 %v2187_v13  ;;  %v1784_v15 = vpop.f32.mrb[234].mxu0 }
 0x2dd   : > { %v11297_v60 = vadd.f32 %v8610_v51, %v1954_v49  ;;  %v1947_v61 = vmax.f32 %v1939_v24, %v1784_v15  ;;  %v1786_v52 = vpop.f32.mrb[235].mxu0 }
 0x2df   : > { %15653 = vst [vmem:[#allocation7_spill] sm:$0xff] %v11297_v60  ;;  %v1955_v4 = vmax.f32 %v1947_v61, %v11237_v18  ;;  %v2190_v34 = vsel %vm2177_vm12, %v11297_v60, 0.0  ;;  %v11319_v18 = vadd.f32 %v8619_v17, %v11250_v58  ;;  %v11334_v58 = vadd.f32 %v8619_v17, %v11254_v30 }
 0x2e0   : > { %2191 = vadd.xlane.f32.xlu1 %v2190_v34  ;;  %v11349_v30 = vadd.f32 %v11256_v0, %v8619_v17 }
 0x2e1   : > { %v11307_v19 = vadd.f32 %v8610_v51, %v1955_v4  ;;  %15658 = vst [vmem:[#allocation12_spill] sm:$0xff] %v11319_v18  ;;  %v2208_v20 = vsel %vm2177_vm12, %v11319_v18, 0.0  ;;  %15661 = vst [vmem:[#allocation15_spill] sm:$0xff] %v11334_v58  ;;  %v2214_v31 = vsel %vm2177_vm12, %v11334_v58, 0.0 }
 0x2e2   : > { %15664 = vst [vmem:[#allocation18_spill] sm:$0xff] %v11349_v30  ;;  %v2223_v3 = vsel %vm2177_vm12, %v11349_v30, 0.0 }
 0x2e3   : > { %15655 = vst [vmem:[#allocation9_spill] sm:$0xff] %v11307_v19  ;;  %v2193_v24 = vsel %vm2177_vm12, %v11307_v19, 0.0 }
 0x2e4   : > { %2197 = vadd.xlane.f32.xlu1 %v2196_v14  ;;  %2194 = vadd.xlane.f32.xlu0 %v2193_v24 }
 0x2e8   : > { %2203 = vadd.xlane.f32.xlu1 %v2202_v23  ;;  %2200 = vadd.xlane.f32.xlu0 %v2199_v57 }
 0x2ec   : > { %2209 = vadd.xlane.f32.xlu1 %v2208_v20  ;;  %2206 = vadd.xlane.f32.xlu0 %v2205_v26 }
 0x2f0   : > { %2215 = vadd.xlane.f32.xlu1 %v2214_v31  ;;  %2212 = vadd.xlane.f32.xlu0 %v2211_v55 }
 0x2f4   : > { %2221 = vadd.xlane.f32.xlu1 %v2220_v33  ;;  %2218 = vadd.xlane.f32.xlu0 %v2217_v62 }
 0x2f8   : > { %2224 = vadd.xlane.f32.xlu0 %v2223_v3 }
 0x35d   : > { %v2180_v35 = vpop.xlane.xlu0 %2179 }
 0x35e   : > { %v2227_v36 = vmul.f32 0.03125, %v2180_v35 }
 0x360   : > { %v11358_v40 = vsub.f32 %v11277_v39, %v2227_v36 }
 0x361   : > { %v2183_v43 = vpop.xlane.xlu1 %2182 }
 0x362   : > { %v2228_v0 = vmul.f32 0.03125, %v2183_v43  ;;  %v2259_v44 = vmul.f32 %v11358_v40, %v11358_v40 }
 0x364   : > { %v11363_v45 = vsub.f32 %v11282_v50, %v2228_v0  ;;  %v2275_v47 = vsel %vm2177_vm12, %v2259_v44, 0.0 }
 0x365   : > { %v2186_v51 = vpop.xlane.xlu0 %2185  ;;  %2276 = vadd.xlane.f32.xlu1 %v2275_v47 }
 0x366   : > { %v2229_v53 = vmul.f32 0.03125, %v2186_v51  ;;  %v2260_v54 = vmul.f32 %v11363_v45, %v11363_v45 }
 0x368   : > { %v11369_v32 = vsub.f32 %v11287_v8, %v2229_v53  ;;  %v2278_v5 = vsel %vm2177_vm12, %v2260_v54, 0.0 }
 0x369   : > { %v2189_v1 = vpop.xlane.xlu0 %2188  ;;  %2279 = vadd.xlane.f32.xlu0 %v2278_v5 }
 0x36a   : > { %v2230_v16 = vmul.f32 0.03125, %v2189_v1  ;;  %v2261_v6 = vmul.f32 %v11369_v32, %v11369_v32 }
 0x36c   : > { %v11375_v59 = vsub.f32 %v11292_v11, %v2230_v16  ;;  %v2281_v63 = vsel %vm2177_vm12, %v2261_v6, 0.0 }
 0x36d   : > { %2282 = vadd.xlane.f32.xlu1 %v2281_v63  ;;  %v2192_v27 = vpop.xlane.xlu1 %2191 }
 0x36e   : > { %v2231_v2 = vmul.f32 0.03125, %v2192_v27  ;;  %v2262_v48 = vmul.f32 %v11375_v59, %v11375_v59 }
 0x370   : > { %v11381_v41 = vsub.f32 %v11297_v60, %v2231_v2  ;;  %v2284_v37 = vsel %vm2177_vm12, %v2262_v48, 0.0 }
 0x371   : > { %v2198_v9 = vpop.xlane.xlu1 %2197  ;;  %2285 = vadd.xlane.f32.xlu0 %v2284_v37  ;;  %v2195_v10 = vpop.xlane.xlu0 %2194 }
 0x372   : > { %v2233_v56 = vmul.f32 0.03125, %v2198_v9  ;;  %v2232_v29 = vmul.f32 0.03125, %v2195_v10  ;;  %v2263_v49 = vmul.f32 %v11381_v41, %v11381_v41 }
 0x374   : > { %v11387_v13 = vsub.f32 %v11302_v38, %v2233_v56  ;;  %v11390_v15 = vsub.f32 %v11307_v19, %v2232_v29  ;;  %v2287_v61 = vsel %vm2177_vm12, %v2263_v49, 0.0 }
 0x375   : > { %2288 = vadd.xlane.f32.xlu1 %v2287_v61  ;;  %v2204_v52 = vpop.xlane.xlu1 %2203  ;;  %v2201_v17 = vpop.xlane.xlu0 %2200 }
 0x376   : > { %v2235_v4 = vmul.f32 0.03125, %v2204_v52  ;;  %v2234_v34 = vmul.f32 0.03125, %v2201_v17  ;;  %v2265_v14 = vmul.f32 %v11387_v13, %v11387_v13  ;;  %v2264_v24 = vmul.f32 %v11390_v15, %v11390_v15 }
 0x378   : > { %v11398_v23 = vsub.f32 %v11310_v22, %v2235_v4  ;;  %v11401_v57 = vsub.f32 %v11312_v42, %v2234_v34  ;;  %v2293_v20 = vsel %vm2177_vm12, %v2265_v14, 0.0  ;;  %v2290_v26 = vsel %vm2177_vm12, %v2264_v24, 0.0 }
 0x379   : > { %2294 = vadd.xlane.f32.xlu1 %v2293_v20  ;;  %v2210_v31 = vpop.xlane.xlu1 %2209  ;;  %2291 = vadd.xlane.f32.xlu0 %v2290_v26  ;;  %v2207_v55 = vpop.xlane.xlu0 %2206 }
 0x37a   : > { %v2237_v33 = vmul.f32 0.03125, %v2210_v31  ;;  %v2236_v62 = vmul.f32 0.03125, %v2207_v55  ;;  %v2267_v3 = vmul.f32 %v11398_v23, %v11398_v23  ;;  %v2266_v35 = vmul.f32 %v11401_v57, %v11401_v57 }
 0x37c   : > { %v11410_v36 = vsub.f32 %v11319_v18, %v2237_v33  ;;  %v11413_v43 = vsub.f32 %v11324_v46, %v2236_v62  ;;  %v2299_v0 = vsel %vm2177_vm12, %v2267_v3, 0.0  ;;  %v2296_v44 = vsel %vm2177_vm12, %v2266_v35, 0.0  ;;  %v2475_v33 = vld [vmem:[%s15580_s5 + $0x80] sm:$0xff]  ;;  %v2460_v3 = vld [vmem:[%s15580_s5 + $0x8] sm:$0xff] }
 0x37d   : > { %2300 = vadd.xlane.f32.xlu1 %v2299_v0  ;;  %v2216_v47 = vpop.xlane.xlu1 %2215  ;;  %2297 = vadd.xlane.f32.xlu0 %v2296_v44  ;;  %v2213_v51 = vpop.xlane.xlu0 %2212  ;;  %v2459_v62 = vld [vmem:[%s15580_s5] sm:$0xff]  ;;  %v2476_v35 = vld [vmem:[%s15580_s5 + $0x88] sm:$0xff]  ;;  %v2478_v0 = vld [vmem:[%s15580_s5 + $0x98] sm:$0xff] }
 0x37e   : > { %v2239_v53 = vmul.f32 0.03125, %v2216_v47  ;;  %v2238_v54 = vmul.f32 0.03125, %v2213_v51  ;;  %v2269_v5 = vmul.f32 %v11410_v36, %v11410_v36  ;;  %v2268_v1 = vmul.f32 %v11413_v43, %v11413_v43  ;;  %v2477_v44 = vld [vmem:[%s15580_s5 + $0x90] sm:$0xff]  ;;  %v2462_v47 = vld [vmem:[%s15580_s5 + $0x18] sm:$0xff] }
 0x37f   : > { %v2461_v51 = vld [vmem:[%s15580_s5 + $0x10] sm:$0xff] }
 0x380   : > { %v11422_v16 = vsub.f32 %v11334_v58, %v2239_v53  ;;  %v11425_v6 = vsub.f32 %v11331_v25, %v2238_v54  ;;  %v2305_v63 = vsel %vm2177_vm12, %v2269_v5, 0.0  ;;  %v2302_v27 = vsel %vm2177_vm12, %v2268_v1, 0.0  ;;  %v2480_v53 = vld [vmem:[%s15580_s5 + $0xa8] sm:$0xff]  ;;  %v2479_v54 = vld [vmem:[%s15580_s5 + $0xa0] sm:$0xff] }
 0x381   : > { %2306 = vadd.xlane.f32.xlu1 %v2305_v63  ;;  %v2222_v2 = vpop.xlane.xlu1 %2221  ;;  %2303 = vadd.xlane.f32.xlu0 %v2302_v27  ;;  %v2219_v48 = vpop.xlane.xlu0 %2218  ;;  %v2464_v5 = vld [vmem:[%s15580_s5 + $0x28] sm:$0xff]  ;;  %v2463_v1 = vld [vmem:[%s15580_s5 + $0x20] sm:$0xff]  ;;  %v2482_v63 = vld [vmem:[%s15580_s5 + $0xb8] sm:$0xff] }
 0x382   : > { %v2241_v37 = vmul.f32 0.03125, %v2222_v2  ;;  %v2240_v9 = vmul.f32 0.03125, %v2219_v48  ;;  %v2271_v10 = vmul.f32 %v11422_v16, %v11422_v16  ;;  %v2270_v56 = vmul.f32 %v11425_v6, %v11425_v6  ;;  %v2481_v27 = vld [vmem:[%s15580_s5 + $0xb0] sm:$0xff]  ;;  %v2427_v2 = vld [vmem:[%s15579_s4] sm:$0xff]  ;;  %v2466_v48 = vld [vmem:[%s15580_s5 + $0x38] sm:$0xff] }
 0x383   : > { %9280 = vmatprep.mubr.f32.mxu1 %v2427_v2  ;;  %v3943_v2 = vld [vmem:[%s15582_s7 + $0x50] sm:$0xff] }
 0x384   : > { %v11434_v29 = vsub.f32 %v11342_v28, %v2241_v37  ;;  %v11437_v49 = vsub.f32 %v11339_v21, %v2240_v9  ;;  %v2311_v61 = vsel %vm2177_vm12, %v2271_v10, 0.0  ;;  %v2308_v52 = vsel %vm2177_vm12, %v2270_v56, 0.0  ;;  %v2465_v37 = vld [vmem:[%s15580_s5 + $0x30] sm:$0xff]  ;;  %v2484_v9 = vld [vmem:[%s15580_s5 + $0xc8] sm:$0xff]  ;;  %v2483_v10 = vld [vmem:[%s15580_s5 + $0xc0] sm:$0xff] }
 0x385   : > { %2312 = vadd.xlane.f32.xlu1 %v2311_v61  ;;  %2309 = vadd.xlane.f32.xlu0 %v2308_v52  ;;  %v2225_v17 = vpop.xlane.xlu0 %2224  ;;  %v2468_v56 = vld [vmem:[%s15580_s5 + $0x48] sm:$0xff]  ;;  %v2467_v61 = vld [vmem:[%s15580_s5 + $0x40] sm:$0xff]  ;;  %v2486_v52 = vld [vmem:[%s15580_s5 + $0xd8] sm:$0xff] }
 0x386   : > { %v2242_v4 = vmul.f32 0.03125, %v2225_v17  ;;  %v2273_v34 = vmul.f32 %v11434_v29, %v11434_v29  ;;  %v2272_v14 = vmul.f32 %v11437_v49, %v11437_v49  ;;  %v2485_v17 = vld [vmem:[%s15580_s5 + $0xd0] sm:$0xff] }
 0x388   : > { %v11446_v24 = vsub.f32 %v11349_v30, %v2242_v4  ;;  %v2317_v20 = vsel %vm2177_vm12, %v2273_v34, 0.0  ;;  %v2314_v26 = vsel %vm2177_vm12, %v2272_v14, 0.0  ;;  %v2470_v4 = vld [vmem:[%s15580_s5 + $0x58] sm:$0xff]  ;;  %v2469_v34 = vld [vmem:[%s15580_s5 + $0x50] sm:$0xff]  ;;  %v2488_v14 = vld [vmem:[%s15580_s5 + $0xe8] sm:$0xff] }
 0x389   : > { %2318 = vadd.xlane.f32.xlu1 %v2317_v20  ;;  %2315 = vadd.xlane.f32.xlu0 %v2314_v26  ;;  %v2487_v20 = vld [vmem:[%s15580_s5 + $0xe0] sm:$0xff]  ;;  %v2472_v26 = vld [vmem:[%s15580_s5 + $0x68] sm:$0xff] }
 0x38a   : > { %v2274_v31 = vmul.f32 %v11446_v24, %v11446_v24 }
 0x38c   : > { %v2320_v55 = vsel %vm2177_vm12, %v2274_v31, 0.0  ;;  %v2471_v31 = vld [vmem:[%s15580_s5 + $0x60] sm:$0xff] }
 0x38d   : > { %2321 = vadd.xlane.f32.xlu0 %v2320_v55  ;;  %v2490_v55 = vld [vmem:[%s15580_s5 + $0xf8] sm:$0xff] }
 0x39a   : > { %2573 = vperm.xlu1 %9887, %v2475_v33   ;;  %v2489_v33 = vld [vmem:[%s15580_s5 + $0xf0] sm:$0xff] }
 0x39e   : > { %2493 = vperm.xlu1 %9887, %v2459_v62   ;;  %v2474_v62 = vld [vmem:[%s15580_s5 + $0x78] sm:$0xff] }
 0x3a2   : > { %2498 = vperm.xlu1 %9887, %v2460_v3   ;;  %v2473_v3 = vld [vmem:[%s15580_s5 + $0x70] sm:$0xff] }
 0x3a3   : > { %2578 = vperm.xlu0 %9886, %v2476_v35   ;;  %v3934_v35 = vld [vmem:[%s15582_s7 + $0x8] sm:$0xff] }
 0x3a6   : > { %2588 = vperm.xlu1 %9887, %v2478_v0   ;;  %v3933_v0 = vld [vmem:[%s15582_s7] sm:$0xff] }
 0x3a7   : > { %2583 = vperm.xlu0 %9886, %v2477_v44   ;;  %v3936_v44 = vld [vmem:[%s15582_s7 + $0x18] sm:$0xff] }
 0x3aa   : > { %2508 = vperm.xlu1 %9887, %v2462_v47   ;;  %v3935_v47 = vld [vmem:[%s15582_s7 + $0x10] sm:$0xff] }
 0x3ab   : > { %2503 = vperm.xlu0 %9886, %v2461_v51   ;;  %v3938_v51 = vld [vmem:[%s15582_s7 + $0x28] sm:$0xff] }
 0x3ae   : > { %2598 = vperm.xlu1 %9887, %v2480_v53   ;;  %v3937_v53 = vld [vmem:[%s15582_s7 + $0x20] sm:$0xff] }
 0x3af   : > { %2593 = vperm.xlu0 %9886, %v2479_v54   ;;  %v3940_v54 = vld [vmem:[%s15582_s7 + $0x38] sm:$0xff] }
 0x3b2   : > { %2518 = vperm.xlu1 %9887, %v2464_v5   ;;  %v3939_v5 = vld [vmem:[%s15582_s7 + $0x30] sm:$0xff] }
 0x3b3   : > { %2513 = vperm.xlu0 %9886, %v2463_v1   ;;  %v3942_v1 = vld [vmem:[%s15582_s7 + $0x48] sm:$0xff] }
 0x3b6   : > { %2608 = vperm.xlu1 %9887, %v2482_v63   ;;  %v3941_v63 = vld [vmem:[%s15582_s7 + $0x40] sm:$0xff] }
 0x3b7   : > { %2603 = vperm.xlu0 %9886, %v2481_v27   ;;  %v3944_v27 = vld [vmem:[%s15582_s7 + $0x58] sm:$0xff] }
 0x3ba   : > { %2528 = vperm.xlu1 %9887, %v2466_v48  }
 0x3bb   : > { %2523 = vperm.xlu0 %9886, %v2465_v37  }
 0x3be   : > { %2618 = vperm.xlu1 %9887, %v2484_v9   ;;  %v3946_v9 = vld [vmem:[%s15582_s7 + $0x68] sm:$0xff] }
 0x3bf   : > { %2613 = vperm.xlu0 %9886, %v2483_v10   ;;  %v3945_v10 = vld [vmem:[%s15582_s7 + $0x60] sm:$0xff] }
 0x3c2   : > { %2538 = vperm.xlu1 %9887, %v2468_v56  }
 0x3c3   : > { %2533 = vperm.xlu0 %9886, %v2467_v61  }
 0x3c6   : > { %2628 = vperm.xlu1 %9887, %v2486_v52  }
 0x3c7   : > { %2623 = vperm.xlu0 %9886, %v2485_v17   ;;  %v3948_v17 = vld [vmem:[%s15582_s7 + $0x78] sm:$0xff] }
 0x3ca   : > { %2548 = vperm.xlu1 %9887, %v2470_v4   ;;  %v3947_v4 = vld [vmem:[%s15582_s7 + $0x70] sm:$0xff] }
 0x3cb   : > { %2543 = vperm.xlu0 %9886, %v2469_v34  }
 0x3ce   : > { %2638 = vperm.xlu1 %9887, %v2488_v14  }
 0x3cf   : > { %2633 = vperm.xlu0 %9886, %v2487_v20  }
 0x3d2   : > { %2558 = vperm.xlu1 %9887, %v2472_v26  }
 0x3d3   : > { %2553 = vperm.xlu0 %9886, %v2471_v31  }
 0x3d6   : > { %2648 = vperm.xlu1 %9887, %v2490_v55  }
 0x3d7   : > { %2643 = vperm.xlu0 %9886, %v2489_v33  }
 0x3da   : > { %2568 = vperm.xlu1 %9887, %v2474_v62  }
 0x3db   : > { %2563 = vperm.xlu0 %9886, %v2473_v3  }
 0x3de   : > { %3956 = vperm.xlu1 %9887, %v3934_v35  }
 0x3df   : > { %3951 = vperm.xlu0 %9886, %v3933_v0  }
 0x3e2   : > { %3966 = vperm.xlu1 %9887, %v3936_v44   ;;  %v11604_v44 = vld [vmem:[%s15586_s11 + $0x2] ss:$0 sm:$0xff] }
 0x3e3   : > { %3961 = vperm.xlu0 %9886, %v3935_v47  }
 0x3e6   : > { %3976 = vperm.xlu1 %9887, %v3938_v51  }
 0x3e7   : > { %3971 = vperm.xlu0 %9886, %v3937_v53  }
 0x3ea   : > { %3986 = vperm.xlu1 %9887, %v3940_v54  }
 0x3eb   : > { %3981 = vperm.xlu0 %9886, %v3939_v5  }
 0x3ee   : > { %3996 = vperm.xlu1 %9887, %v3942_v1  }
 0x3ef   : > { %3991 = vperm.xlu0 %9886, %v3941_v63  }
 0x3f2   : > { %4006 = vperm.xlu1 %9887, %v3944_v27   ;;  %v2277_v48 = vpop.xlane.xlu1 %2276 }
 0x3f3   : > { %v2323_v37 = vmul.f32 0.03125, %v2277_v48  ;;  %4001 = vperm.xlu0 %9886, %v3943_v2  }
 0x3f5   : > { %v2339_v56 = vadd.f32 1e-05, %v2323_v37 }
 0x3f6   : > { %4016 = vperm.xlu1 %9887, %v3946_v9   ;;  %v2280_v61 = vpop.xlane.xlu0 %2279 }
 0x3f7   : > { %9888 = vrsqrt.f32 %v2339_v56  ;;  %v2324_v52 = vmul.f32 0.03125, %v2280_v61  ;;  %4011 = vperm.xlu0 %9886, %v3945_v10  }
 0x3f9   : > { %v2340_v34 = vadd.f32 1e-05, %v2324_v52 }
 0x3fa   : > { %4026 = vperm.xlu1 %9887, %v3948_v17   ;;  %v2283_v14 = vpop.xlane.xlu1 %2282 }
 0x3fb   : > { %9890 = vrsqrt.f32 %v2340_v34  ;;  %v2325_v20 = vmul.f32 0.03125, %v2283_v14  ;;  %4021 = vperm.xlu0 %9886, %v3947_v4  }
 0x3fd   : > { %v2341_v26 = vadd.f32 1e-05, %v2325_v20 }
 0x3fe   : > { %v2286_v31 = vpop.xlane.xlu0 %2285 }
 0x3ff   : > { %9892 = vrsqrt.f32 %v2341_v26  ;;  %v2326_v55 = vmul.f32 0.03125, %v2286_v31 }
 0x401   : > { %v9889_v33 = vpop.eup %9888  ;;  %v2342_v62 = vadd.f32 1e-05, %v2326_v55 }
 0x402   : > { %v2289_v3 = vpop.xlane.xlu1 %2288  ;;  %v2371_v35 = vmul.f32 %v9889_v33, %v11358_v40  ;;  %v11611_v40 = vld [vmem:[%s15586_s11 + $0x3] ss:$0 sm:$0xff] }
 0x403   : > { %9894 = vrsqrt.f32 %v2342_v62  ;;  %v2327_v0 = vmul.f32 0.03125, %v2289_v3 }
 0x404   : > { %v2391_v1 = vmul.f32 %v11604_v44, %v2371_v35 }
 0x405   : > { %v9891_v47 = vpop.eup %9890  ;;  %v2343_v51 = vadd.f32 1e-05, %v2327_v0 }
 0x406   : > { %v2295_v53 = vpop.xlane.xlu1 %2294  ;;  %v2292_v54 = vpop.xlane.xlu0 %2291  ;;  %v2372_v5 = vmul.f32 %v9891_v47, %v11363_v45  ;;  %v2411_v61 = vadd.f32 %v11611_v40, %v2391_v1 }
 0x407   : > { %9896 = vrsqrt.f32 %v2343_v51  ;;  %v2329_v63 = vmul.f32 0.03125, %v2295_v53  ;;  %v2328_v27 = vmul.f32 0.03125, %v2292_v54 }
 0x408   : > { %v2392_v2 = vmul.f32 %v11604_v44, %v2372_v5 }
 0x409   : > { %v9893_v48 = vpop.eup %9892  ;;  %v2345_v37 = vadd.f32 1e-05, %v2329_v63  ;;  %v2344_v9 = vadd.f32 1e-05, %v2328_v27 }
 0x40a   : > { %v2301_v10 = vpop.xlane.xlu1 %2300  ;;  %v2298_v56 = vpop.xlane.xlu0 %2297  ;;  %v2412_v45 = vadd.f32 %v11611_v40, %v2392_v2  ;;  %v2373_v52 = vmul.f32 %v9893_v48, %v11369_v32 }
 0x40b   : > { %9898 = vrsqrt.f32 %v2345_v37  ;;  %v2331_v17 = vmul.f32 0.03125, %v2301_v10  ;;  %v2330_v4 = vmul.f32 0.03125, %v2298_v56 }
 0x40c   : > { %9900 = vrsqrt.f32 %v2344_v9  ;;  %v9637_v34 = vpack.c.bf16 %v2412_v45, %v2411_v61  ;;  %v2393_v62 = vmul.f32 %v11604_v44, %v2373_v52 }
 0x40d   : > { %v9895_v14 = vpop.eup %9894  ;;  %v2347_v20 = vadd.f32 1e-05, %v2331_v17  ;;  %v2346_v26 = vadd.f32 1e-05, %v2330_v4 }
 0x40e   : > { %v2307_v31 = vpop.xlane.xlu1 %2306  ;;  %9638 = vmatprep.subr.bf16.mxu1 %v9637_v34  ;;  %v2304_v55 = vpop.xlane.xlu0 %2303  ;;  %v2374_v33 = vmul.f32 %v9895_v14, %v11375_v59  ;;  %v2413_v5 = vadd.f32 %v11611_v40, %v2393_v62 }
 0x40f   : > { %9902 = vrsqrt.f32 %v2347_v20  ;;  %v2333_v3 = vmul.f32 0.03125, %v2307_v31  ;;  %v2332_v35 = vmul.f32 0.03125, %v2304_v55  ;;  %9640 = vmatpush3.bf16.msra.mxu1 %v9637_v34 }
 0x410   : > { %9904 = vrsqrt.f32 %v2346_v26  ;;  %v2394_v32 = vmul.f32 %v11604_v44, %v2374_v33 }
 0x411   : > { %v9897_v0 = vpop.eup %9896  ;;  %v2349_v47 = vadd.f32 1e-05, %v2333_v3  ;;  %v2348_v51 = vadd.f32 1e-05, %v2332_v35 }
 0x412   : > { %v2313_v53 = vpop.xlane.xlu1 %2312  ;;  %v2310_v54 = vpop.xlane.xlu0 %2309  ;;  %v2414_v1 = vadd.f32 %v11611_v40, %v2394_v32  ;;  %v2375_v59 = vmul.f32 %v9897_v0, %v11381_v41 }
 0x413   : > { %9906 = vrsqrt.f32 %v2349_v47  ;;  %v2335_v63 = vmul.f32 0.03125, %v2313_v53  ;;  %v2334_v27 = vmul.f32 0.03125, %v2310_v54 }
 0x414   : > { %9908 = vrsqrt.f32 %v2348_v51  ;;  %v9641_v2 = vpack.c.bf16 %v2414_v1, %v2413_v5  ;;  %v2395_v45 = vmul.f32 %v11604_v44, %v2375_v59 }
 0x415   : > { %v9899_v48 = vpop.eup %9898  ;;  %v2351_v37 = vadd.f32 1e-05, %v2335_v63  ;;  %v2350_v9 = vadd.f32 1e-05, %v2334_v27 }
 0x416   : > { %v9901_v10 = vpop.eup %9900  ;;  %v2319_v56 = vpop.xlane.xlu1 %2318  ;;  %9642 = vmatprep.subr.bf16.mxu1 %v9641_v2  ;;  %v2377_v52 = vmul.f32 %v9899_v48, %v11387_v13  ;;  %v2415_v33 = vadd.f32 %v11611_v40, %v2395_v45 }
 0x417   : > { %v2316_v61 = vpop.xlane.xlu0 %2315  ;;  %9910 = vrsqrt.f32 %v2351_v37  ;;  %v2337_v17 = vmul.f32 0.03125, %v2319_v56  ;;  %9644 = vmatpush3.bf16.msra.mxu1 %v9641_v2  ;;  %v2376_v41 = vmul.f32 %v9901_v10, %v11390_v15 }
 0x418   : > { %v2336_v4 = vmul.f32 0.03125, %v2316_v61  ;;  %9912 = vrsqrt.f32 %v2350_v9  ;;  %v2397_v62 = vmul.f32 %v11604_v44, %v2377_v52 }
 0x419   : > { %v9903_v34 = vpop.eup %9902  ;;  %v2353_v14 = vadd.f32 1e-05, %v2337_v17  ;;  %v2396_v26 = vmul.f32 %v11604_v44, %v2376_v41 }
 0x41a   : > { %v2352_v20 = vadd.f32 1e-05, %v2336_v4  ;;  %v9905_v31 = vpop.eup %9904  ;;  %v2379_v13 = vmul.f32 %v9903_v34, %v11398_v23  ;;  %v2417_v54 = vadd.f32 %v11611_v40, %v2397_v62 }
 0x41b   : > { %v2322_v55 = vpop.xlane.xlu0 %2321  ;;  %9914 = vrsqrt.f32 %v2353_v14  ;;  %v2416_v35 = vadd.f32 %v11611_v40, %v2396_v26  ;;  %v2378_v15 = vmul.f32 %v9905_v31, %v11401_v57 }
 0x41c   : > { %v2338_v3 = vmul.f32 0.03125, %v2322_v55  ;;  %9916 = vrsqrt.f32 %v2352_v20  ;;  %v2399_v5 = vmul.f32 %v11604_v44, %v2379_v13 }
 0x41d   : > { %v9907_v32 = vpop.eup %9906  ;;  %v9645_v47 = vpack.c.bf16 %v2416_v35, %v2415_v33  ;;  %v2398_v51 = vmul.f32 %v11604_v44, %v2378_v15  ;;  %v2432_v35 = vld [vmem:[%s15579_s4 + $0x28] sm:$0xff]  ;;  %v2433_v15 = vld [vmem:[%s15579_s4 + $0x30] sm:$0xff] }
 0x41e   : > { %v2354_v0 = vadd.f32 1e-05, %v2338_v3  ;;  %v9909_v53 = vpop.eup %9908  ;;  %v2381_v59 = vmul.f32 %v9907_v32, %v11410_v36  ;;  %v2419_v48 = vadd.f32 %v11611_v40, %v2399_v5  ;;  %v2429_v3 = vld [vmem:[%s15579_s4 + $0x10] sm:$0xff]  ;;  %v2434_v32 = vld [vmem:[%s15579_s4 + $0x38] sm:$0xff]  ;;  %v2440_v5 = vld [vmem:[%s15579_s4 + $0x68] sm:$0xff] }
 0x41f   : > { %9646 = vmatprep.subr.bf16.mxu1 %v9645_v47  ;;  %v2418_v23 = vadd.f32 %v11611_v40, %v2398_v51  ;;  %v2380_v1 = vmul.f32 %v9909_v53, %v11413_v43  ;;  %v2437_v51 = vld [vmem:[%s15579_s4 + $0x50] sm:$0xff]  ;;  %v2438_v53 = vld [vmem:[%s15579_s4 + $0x58] sm:$0xff] }
 0x420   : > { %9918 = vrsqrt.f32 %v2354_v0  ;;  %9648 = vmatpush3.bf16.msra.mxu1 %v9645_v47  ;;  %v2401_v10 = vmul.f32 %v11604_v44, %v2381_v59  ;;  %v2435_v0 = vld [vmem:[%s15579_s4 + $0x40] sm:$0xff]  ;;  %v2436_v47 = vld [vmem:[%s15579_s4 + $0x48] sm:$0xff] }
 0x421   : > { %v9911_v57 = vpop.eup %9910  ;;  %v9649_v63 = vpack.c.bf16 %v2418_v23, %v2417_v54  ;;  %v2400_v27 = vmul.f32 %v11604_v44, %v2380_v1  ;;  %v2439_v54 = vld [vmem:[%s15579_s4 + $0x60] sm:$0xff]  ;;  %v2441_v23 = vld [vmem:[%s15579_s4 + $0x70] sm:$0xff]  ;;  %v2442_v1 = vld [vmem:[%s15579_s4 + $0x78] sm:$0xff] }
 0x422   : > { %v9913_v2 = vpop.eup %9912  ;;  %v2383_v56 = vmul.f32 %v9911_v57, %v11422_v16  ;;  %v2421_v17 = vadd.f32 %v11611_v40, %v2401_v10  ;;  %v2443_v59 = vld [vmem:[%s15579_s4 + $0x80] sm:$0xff]  ;;  %v2444_v57 = vld [vmem:[%s15579_s4 + $0x88] sm:$0xff] }
 0x423   : > { %9650 = vmatprep.subr.bf16.mxu1 %v9649_v63  ;;  %v2420_v37 = vadd.f32 %v11611_v40, %v2400_v27  ;;  %v2382_v9 = vmul.f32 %v9913_v2, %v11425_v6  ;;  %v2446_v27 = vld [vmem:[%s15579_s4 + $0x98] sm:$0xff]  ;;  %v2447_v2 = vld [vmem:[%s15579_s4 + $0xa0] sm:$0xff] }
 0x424   : > { %9652 = vmatpush3.bf16.msra.mxu1 %v9649_v63  ;;  %v2403_v6 = vmul.f32 %v11604_v44, %v2383_v56  ;;  %v2445_v63 = vld [vmem:[%s15579_s4 + $0x90] sm:$0xff]  ;;  %v2451_v10 = vld [vmem:[%s15579_s4 + $0xc0] sm:$0xff]  ;;  %v2452_v56 = vld [vmem:[%s15579_s4 + $0xc8] sm:$0xff] }
 0x425   : > { %v9915_v43 = vpop.eup %9914  ;;  %v9653_v36 = vpack.c.bf16 %v2420_v37, %v2419_v48  ;;  %v2402_v61 = vmul.f32 %v11604_v44, %v2382_v9  ;;  %v2448_v48 = vld [vmem:[%s15579_s4 + $0xa8] sm:$0xff]  ;;  %v2449_v37 = vld [vmem:[%s15579_s4 + $0xb0] sm:$0xff]  ;;  %v2450_v9 = vld [vmem:[%s15579_s4 + $0xb8] sm:$0xff] }
 0x426   : > { %v9917_v45 = vpop.eup %9916  ;;  %v2385_v52 = vmul.f32 %v9915_v43, %v11434_v29  ;;  %v2423_v29 = vadd.f32 %v11611_v40, %v2403_v6  ;;  %v2453_v43 = vld [vmem:[%s15579_s4 + $0xd0] sm:$0xff] }
 0x427   : > { %9654 = vmatprep.subr.bf16.mxu1 %v9653_v36  ;;  %v2422_v4 = vadd.f32 %v11611_v40, %v2402_v61  ;;  %v2384_v41 = vmul.f32 %v9917_v45, %v11437_v49  ;;  %v2455_v61 = vld [vmem:[%s15579_s4 + $0xe0] sm:$0xff]  ;;  %v2456_v45 = vld [vmem:[%s15579_s4 + $0xe8] sm:$0xff] }
 0x428   : > { %9656 = vmatpush3.bf16.msra.mxu1 %v9653_v36  ;;  %v2405_v26 = vmul.f32 %v11604_v44, %v2385_v52  ;;  %v2454_v36 = vld [vmem:[%s15579_s4 + $0xd8] sm:$0xff]  ;;  %v2457_v52 = vld [vmem:[%s15579_s4 + $0xf0] sm:$0xff] }
 0x429   : > { %v9657_v16 = vpack.c.bf16 %v2422_v4, %v2421_v17  ;;  %v2404_v14 = vmul.f32 %v11604_v44, %v2384_v41  ;;  %v2458_v17 = vld [vmem:[%s15579_s4 + $0xf8] sm:$0xff]  ;;  %v11751_v4 = vpop.permute.xlu1 %2573 }
 0x42a   : > { %v9919_v34 = vpop.eup %9918  ;;  %v2425_v33 = vadd.f32 %v11611_v40, %v2405_v26 }
 0x42b   : > { %v2386_v20 = vmul.f32 %v9919_v34, %v11446_v24  ;;  %9658 = vmatprep.subr.bf16.mxu1 %v9657_v16  ;;  %v2424_v31 = vadd.f32 %v11611_v40, %v2404_v14  ;;  %v2428_v24 = vld [vmem:[%s15579_s4 + $0x8] sm:$0xff]  ;;  %v11753_v34 = vpop.permute.xlu0 %2578 }
 0x42c   : > { %9660 = vmatpush3.bf16.msra.mxu1 %v9657_v16 }
 0x42d   : > { %v2406_v55 = vmul.f32 %v11604_v44, %v2386_v20  ;;  %v9661_v49 = vpack.c.bf16 %v2424_v31, %v2423_v29  ;;  %v2430_v44 = vld [vmem:[%s15579_s4 + $0x18] sm:$0xff]  ;;  %v2494_v41 = vpop.permute.xlu1 %2493 }
 0x42f   : > { %v2426_v62 = vadd.f32 %v11611_v40, %v2406_v55  ;;  %9662 = vmatprep.subr.bf16.mxu1 %v9661_v49  ;;  %v2431_v40 = vld [vmem:[%s15579_s4 + $0x20] sm:$0xff]  ;;  %v11757_v14 = vpop.permute.xlu0 %2583 }
 0x430   : > { %9664 = vmatpush3.bf16.msra.mxu1 %v9661_v49 }
 0x431   : > { %v9665_v13 = vpack.c.bf16 %v2426_v62, %v2425_v33  ;;  %v2499_v6 = vpop.permute.xlu1 %2498 }
 0x433   : > { %9666 = vmatprep.subr.bf16.mxu1 %v9665_v13  ;;  %v2504_v26 = vpop.permute.xlu0 %2503 }
 0x434   : > { %9668 = vmatpush3.bf16.msra.mxu1 %v9665_v13 }
 0x435   : > { %v11755_v16 = vpop.permute.xlu1 %2588 }
 0x437   : > { %9281 = vmatmul.mubr.f32.vlgmr.msra.gmra.mrb[28].mxu1 %v2428_v24  ;;  %v11761_v62 = vpop.permute.xlu0 %2593 }
 0x438   : > { %9283 = vmatprep.mubr.f32.mxu1 %v2429_v3  ;;  %15666 = vst [vmem:[#allocation20_spill] sm:$0xff] %v11761_v62 }
 0x439   : > { %v2509_v20 = vpop.permute.xlu1 %2508 }
 0x43b   : > { %9284 = vmatmul.mubr.f32.gmra.mrb[30].mxu1 %v2430_v44 }
 0x43c   : > { %9286 = vmatprep.mubr.f32.mxu1 %v2431_v40 }
 0x43d   : > { %v11759_v31 = vpop.permute.xlu1 %2598 }
 0x43e   : > { %15665 = vst [vmem:[#allocation19_spill] sm:$0xff] %v11759_v31 }
 0x43f   : > { %9287 = vmatmul.mubr.f32.gmra.mrb[32].mxu1 %v2432_v35 }
 0x440   : > { %9289 = vmatprep.mubr.f32.mxu1 %v2433_v15 }
 0x443   : > { %9290 = vmatmul.mubr.f32.gmra.mrb[34].mxu1 %v2434_v32 }
 0x444   : > { %9292 = vmatprep.mubr.f32.mxu1 %v2435_v0  ;;  %v2519_v0 = vpop.permute.xlu1 %2518 }
 0x447   : > { %9293 = vmatmul.mubr.f32.gmra.mrb[36].mxu1 %v2436_v47 }
 0x448   : > { %9295 = vmatprep.mubr.f32.mxu1 %v2437_v51 }
 0x44b   : > { %9296 = vmatmul.mubr.f32.gmra.mrb[38].mxu1 %v2438_v53 }
 0x44c   : > { %9298 = vmatprep.mubr.f32.mxu1 %v2439_v54  ;;  %v2514_v54 = vpop.permute.xlu0 %2513 }
 0x44f   : > { %9299 = vmatmul.mubr.f32.gmra.mrb[40].mxu1 %v2440_v5 }
 0x450   : > { %9301 = vmatprep.mubr.f32.mxu1 %v2441_v23 }
 0x453   : > { %9302 = vmatmul.mubr.f32.gmra.mrb[42].mxu1 %v2442_v1 }
 0x454   : > { %9304 = vmatprep.mubr.f32.mxu1 %v2443_v59 }
 0x457   : > { %9305 = vmatmul.mubr.f32.gmra.mrb[44].mxu1 %v2444_v57 }
 0x458   : > { %9307 = vmatprep.mubr.f32.mxu1 %v2445_v63 }
 0x45b   : > { %9308 = vmatmul.mubr.f32.gmra.mrb[46].mxu1 %v2446_v27 }
 0x45c   : > { %9310 = vmatprep.mubr.f32.mxu1 %v2447_v2 }
 0x45f   : > { %9311 = vmatmul.mubr.f32.gmra.mrb[48].mxu1 %v2448_v48 }
 0x460   : > { %9313 = vmatprep.mubr.f32.mxu1 %v2449_v37  ;;  %v11768_v37 = vpop.permute.xlu1 %2608 }
 0x461   : > { %15667 = vst [vmem:[#allocation21_spill] sm:$0xff] %v11768_v37 }
 0x463   : > { %9314 = vmatmul.mubr.f32.gmra.mrb[50].mxu1 %v2450_v9 }
 0x464   : > { %9316 = vmatprep.mubr.f32.mxu1 %v2451_v10 }
 0x467   : > { %9317 = vmatmul.mubr.f32.gmra.mrb[52].mxu1 %v2452_v56 }
 0x468   : > { %9319 = vmatprep.mubr.f32.mxu1 %v2453_v43 }
 0x46b   : > { %9320 = vmatmul.mubr.f32.gmra.mrb[54].mxu1 %v2454_v36 }
 0x46c   : > { %9322 = vmatprep.mubr.f32.mxu1 %v2455_v61 }
 0x46f   : > { %9323 = vmatmul.mubr.f32.gmra.mrb[56].mxu1 %v2456_v45 }
 0x470   : > { %9325 = vmatprep.mubr.f32.mxu1 %v2457_v52 }
 0x473   : > { %9326 = vmatmul.mubr.f32.gmra.mrb[58].mxu1 %v2458_v17  ;;  %v11779_v17 = vpop.permute.xlu0 %2603 }
 0x474   : > { %15668 = vst [vmem:[#allocation22_spill] sm:$0xff] %v11779_v17 }
 0x50a   : > { %v9282_v29 = vpop.f32.mrb[28].mxu1 }
 0x50b   : > { %v2723_v55 = vadd.f32 %v9282_v29, %v2499_v6  ;;  %v2717_v49 = vpop.f32.mrb[29].mxu1 }
 0x50c   : > { %v2718_v33 = vadd.f32 %v2717_v49, %v2494_v41 }
 0x50d   : > { %v2941_v13 = vmul.f32 0.70710677, %v2723_v55  ;;  %v11770_v9 = vmul.f32 0.5, %v2723_v55 }
 0x50e   : > { %v2940_v24 = vmul.f32 0.70710677, %v2718_v33  ;;  %v9285_v3 = vpop.f32.mrb[30].mxu1  ;;  %v11775_v61 = vmul.f32 0.5, %v2718_v33  ;;  %v15590_v33 = vmov -1.0  }
 0x50f   : > { %v3037_v44 = vand.u32 2147483647, %v2941_v13  ;;  %v2733_v40 = vadd.f32 %v9285_v3, %v2509_v20  ;;  %v2727_v35 = vpop.f32.mrb[31].mxu1  ;;  %vm2973_vm13 = vcmp.ge.f32.partialorder %v2941_v13, 0.0 }
 0x510   : > { %v3036_v15 = vand.u32 2147483647, %v2940_v24  ;;  %v2728_v32 = vadd.f32 %v2727_v35, %v2504_v26  ;;  %vm2972_vm14 = vcmp.ge.f32.partialorder %v2940_v24, 0.0  ;;  %v11790_v13 = vsel %vm2973_vm13, 1.0, %v15590_v33 }
 0x511   : > { %v3069_v47 = vmul.f32 0.3275911, %v3037_v44  ;;  %v11763_v53 = vmul.f32 0.70710677, %v2733_v40  ;;  %v3485_v27 = vsub.f32 0.0, %v3037_v44 }
 0x512   : > { %v3068_v51 = vmul.f32 0.3275911, %v3036_v15  ;;  %v11765_v23 = vmul.f32 0.70710677, %v2728_v32  ;;  %v9288_v1 = vpop.f32.mrb[32].mxu1  ;;  %v3484_v10 = vsub.f32 0.0, %v3036_v15 }
 0x513   : > { %v3101_v5 = vadd.f32 1.0, %v3069_v47  ;;  %v3039_v57 = vand.u32 2147483647, %v11763_v53  ;;  %v2737_v63 = vpop.f32.mrb[33].mxu1  ;;  %v11773_v43 = vadd.f32 %v9288_v1, %v2519_v0  ;;  %v3517_v26 = vmul.f32 %v3485_v27, %v3037_v44 }
 0x514   : > { %v3100_v59 = vadd.f32 1.0, %v3068_v51  ;;  %v3038_v56 = vand.u32 2147483647, %v11765_v23  ;;  %v11777_v52 = vadd.f32 %v2737_v63, %v2514_v54  ;;  %v3516_v3 = vmul.f32 %v3484_v10, %v3036_v15 }
 0x515   : > { %9920 = vrcp.f32 %v3101_v5  ;;  %v3071_v2 = vmul.f32 0.3275911, %v3039_v57  ;;  %v3487_v41 = vsub.f32 0.0, %v3039_v57  ;;  %v11782_v20 = vmul.f32 0.70710677, %v11773_v43  ;;  %v2529_v5 = vpop.permute.xlu1 %2528 }
 0x516   : > { %9922 = vrcp.f32 %v3100_v59  ;;  %v9291_v48 = vpop.f32.mrb[34].mxu1  ;;  %v3070_v6 = vmul.f32 0.3275911, %v3038_v56  ;;  %v3486_v29 = vsub.f32 0.0, %v3038_v56  ;;  %v11785_v55 = vmul.f32 0.70710677, %v11777_v52 }
 0x517   : > { %v2747_v36 = vpop.f32.mrb[35].mxu1  ;;  %v3103_v45 = vadd.f32 1.0, %v3071_v2  ;;  %v3041_v24 = vand.u32 2147483647, %v11782_v20  ;;  %v11796_v47 = vsel %vm2972_vm14, 1.0, %v15590_v33  ;;  %v11798_v44 = vmul.f32 0.5, %v2733_v40  ;;  %v2524_v40 = vpop.permute.xlu0 %2523 }
 0x518   : > { %v3102_v35 = vadd.f32 1.0, %v3070_v6  ;;  %v11800_v51 = vmul.f32 0.5, %v2728_v32  ;;  %v3040_v54 = vand.u32 2147483647, %v11785_v55  ;;  %v3519_v1 = vmul.f32 %v3487_v41, %v3039_v57 }
 0x519   : > { %9924 = vrcp.f32 %v3103_v45  ;;  %v3073_v59 = vmul.f32 0.3275911, %v3041_v24  ;;  %v3489_v63 = vsub.f32 0.0, %v3041_v24  ;;  %v3550_v15 = vmul.f32 1.442695, %v3517_v26 }
 0x51a   : > { %v11787_v49 = vpop.f32.mrb[36].mxu1  ;;  %9926 = vrcp.f32 %v3102_v35  ;;  %v3518_v27 = vmul.f32 %v3486_v29, %v3038_v56  ;;  %v3072_v2 = vmul.f32 0.3275911, %v3040_v54  ;;  %v11803_v10 = vadd.f32 %v9291_v48, %v2529_v5 }
 0x51b   : > { %v11793_v0 = vpop.f32.mrb[37].mxu1  ;;  %v3548_v7 = vmul.f32 1.442695, %v3516_v3  ;;  %vm2975_vm15 = vcmp.ge.f32.partialorder %v11763_v53, 0.0  ;;  %v3105_v32 = vadd.f32 1.0, %v3073_v59  ;;  %v3488_v33 = vsub.f32 0.0, %v3040_v54  ;;  %v11876_v31 = vpop.permute.xlu0 %2613 }
 0x51c   : > { %v3521_v56 = vmul.f32 %v3489_v63, %v3041_v24  ;;  %v3104_v26 = vadd.f32 1.0, %v3072_v2  ;;  %v11815_v48 = vadd.f32 %v2747_v36, %v2524_v40  ;;  %v3554_v35 = vmul.f32 1.442695, %v3519_v1  ;;  %v11832_v2 = vpop.permute.xlu1 %2618  ;;  %15671 = vst [vmem:[#allocation24_spill] sm:$0xff] %v11876_v31 }
 0x51d   : > { %9928 = vrcp.f32 %v3105_v32  ;;  %v11819_v3 = vmul.f32 0.70710677, %v11803_v10  ;;  %v15669_v5 = vmov -1.0   ;;  %v3552_v30 = vmul.f32 1.442695, %v3518_v27  ;;  %15670 = vst [vmem:[#allocation23_spill] sm:$0xff] %v11832_v2 }
 0x51e   : > { %v11805_v45 = vpop.f32.mrb[38].mxu1  ;;  %v11822_v59 = vsel %vm2975_vm15, 1.0, %v15669_v5  ;;  %9930 = vrcp.f32 %v3104_v26  ;;  %vm2974_vm0 = vcmp.ge.f32.partialorder %v11765_v23, 0.0  ;;  %v3558_v32 = vmul.f32 1.442695, %v3521_v56 }
 0x51f   : > { %v11807_v6 = vpop.eup %9920  ;;  %v11810_v12 = vpop.f32.mrb[39].mxu1  ;;  %9932 = vpow2.f32 %v3550_v15  ;;  %v3043_v36 = vand.u32 2147483647, %v11819_v3  ;;  %v11836_v27 = vmul.f32 0.70710677, %v11815_v48  ;;  %v11841_v58 = vsel %vm2974_vm0, 1.0, %v15669_v5 }
 0x520   : > { %v11812_v57 = vpop.eup %9922  ;;  %v3197_v41 = vmul.f32 1.0614054, %v11807_v6  ;;  %9934 = vpow2.f32 %v3548_v7  ;;  %v2539_v11 = vpop.permute.xlu1 %2538  ;;  %vm2977_vm1 = vcmp.ge.f32.partialorder %v11782_v20, 0.0  ;;  %vm2976_vm2 = vcmp.ge.f32.partialorder %v11785_v55, 0.0 }
 0x521   : > { %v3196_v29 = vmul.f32 1.0614054, %v11812_v57  ;;  %v3075_v23 = vmul.f32 0.3275911, %v3043_v36  ;;  %v3042_v25 = vand.u32 2147483647, %v11836_v27 }
 0x522   : > { %v3229_v53 = vadd.f32 -1.4531521, %v3197_v41  ;;  %v11824_v28 = vpop.f32.mrb[40].mxu1  ;;  %v3520_v41 = vmul.f32 %v3488_v33, %v3040_v54  ;;  %vm2979_vm3 = vcmp.ge.f32.partialorder %v11819_v3, 0.0  ;;  %vm2978_vm4 = vcmp.ge.f32.partialorder %v11836_v27, 0.0 }
 0x523   : > { %v3228_v24 = vadd.f32 -1.4531521, %v3196_v29  ;;  %v11828_v63 = vpop.f32.mrb[41].mxu1  ;;  %v11830_v1 = vpop.eup %9924  ;;  %v3491_v29 = vsub.f32 0.0, %v3043_v36  ;;  %v3074_v42 = vmul.f32 0.3275911, %v3042_v25 }
 0x524   : > { %v3261_v40 = vmul.f32 %v11807_v6, %v3229_v53  ;;  %v3199_v26 = vmul.f32 1.0614054, %v11830_v1  ;;  %v11846_v56 = vpop.eup %9926  ;;  %v3107_v53 = vadd.f32 1.0, %v3075_v23  ;;  %v3556_v7 = vmul.f32 1.442695, %v3520_v41 }
 0x525   : > { %v3260_v15 = vmul.f32 %v11812_v57, %v3228_v24  ;;  %v3523_v46 = vmul.f32 %v3491_v29, %v3043_v36  ;;  %v3490_v23 = vsub.f32 0.0, %v3042_v25  ;;  %v3011_v3 = vsel %vm2979_vm3, 1.0, %v15669_v5 }
 0x526   : > { %v3293_v21 = vadd.f32 1.4214138, %v3261_v40  ;;  %v11844_v18 = vpop.f32.mrb[42].mxu1  ;;  %v3231_v54 = vadd.f32 -1.4531521, %v3199_v26  ;;  %9936 = vrcp.f32 %v3107_v53  ;;  %v3106_v26 = vadd.f32 1.0, %v3074_v42 }
 0x527   : > { %v3292_v33 = vadd.f32 1.4214138, %v3260_v15  ;;  %v11848_v24 = vpop.f32.mrb[43].mxu1  ;;  %v3198_v40 = vmul.f32 1.0614054, %v11846_v56  ;;  %v11854_v36 = vpop.eup %9928  ;;  %9938 = vpow2.f32 %v3554_v35 }
 0x528   : > { %v3325_v22 = vmul.f32 %v11807_v6, %v3293_v21  ;;  %v3263_v19 = vmul.f32 %v11830_v1, %v3231_v54  ;;  %v3562_v60 = vmul.f32 1.442695, %v3523_v46  ;;  %v11857_v21 = vadd.f32 %v11787_v49, %v2539_v11 }
 0x529   : > { %v3324_v38 = vmul.f32 %v11812_v57, %v3292_v33  ;;  %v3230_v15 = vadd.f32 -1.4531521, %v3198_v40  ;;  %v11861_v33 = vpop.eup %9930  ;;  %9940 = vrcp.f32 %v3106_v26  ;;  %v3522_v49 = vmul.f32 %v3490_v23, %v3042_v25 }
 0x52a   : > { %v3357_v8 = vadd.f32 -0.28449672, %v3325_v22  ;;  %v3295_v50 = vadd.f32 1.4214138, %v3263_v19  ;;  %v11859_v41 = vpop.f32.mrb[44].mxu1  ;;  %v9933_v53 = vpop.eup %9932  ;;  %9942 = vpow2.f32 %v3552_v30 }
 0x52b   : > { %v3356_v29 = vadd.f32 -0.28449672, %v3324_v38  ;;  %v3262_v46 = vmul.f32 %v11846_v56, %v3230_v15  ;;  %v3201_v22 = vmul.f32 1.0614054, %v11854_v36  ;;  %v11866_v42 = vpop.f32.mrb[45].mxu1  ;;  %9944 = vpow2.f32 %v3558_v32  ;;  %v9935_v17 = vpop.eup %9934 }
 0x52c   : > { %v3389_v54 = vmul.f32 %v11807_v6, %v3357_v8  ;;  %v3327_v19 = vmul.f32 %v11830_v1, %v3295_v50  ;;  %v3200_v11 = vmul.f32 1.0614054, %v11861_v33  ;;  %v3560_v62 = vmul.f32 1.442695, %v3522_v49 }
 0x52d   : > { %v3388_v38 = vmul.f32 %v11812_v57, %v3356_v29  ;;  %v3294_v40 = vadd.f32 1.4214138, %v3262_v46  ;;  %v3233_v39 = vadd.f32 -1.4531521, %v3201_v22  ;;  %v11882_v32 = vmul.f32 0.70710677, %v11857_v21 }
 0x52e   : > { %v3421_v35 = vadd.f32 0.2548296, %v3389_v54  ;;  %v3359_v2 = vadd.f32 -0.28449672, %v3327_v19  ;;  %v3232_v15 = vadd.f32 -1.4531521, %v3200_v11  ;;  %9946 = vpow2.f32 %v3556_v7  ;;  %v11890_v19 = vpop.permute.xlu1 %2628 }
 0x52f   : > { %v3420_v8 = vadd.f32 0.2548296, %v3388_v38  ;;  %v3326_v37 = vmul.f32 %v11846_v56, %v3294_v40  ;;  %v3265_v29 = vmul.f32 %v11854_v36, %v3233_v39  ;;  %v11874_v50 = vpop.f32.mrb[46].mxu1  ;;  %15672 = vst [vmem:[#allocation25_spill] sm:$0xff] %v11890_v19  ;;  %9948 = vpow2.f32 %v3562_v60 }
 0x530   : > { %v3453_v26 = vmul.f32 %v11807_v6, %v3421_v35  ;;  %v3391_v30 = vmul.f32 %v11830_v1, %v3359_v2  ;;  %v3264_v23 = vmul.f32 %v11861_v33, %v3232_v15  ;;  %v11884_v54 = vpop.f32.mrb[47].mxu1  ;;  %v11888_v38 = vpop.eup %9936  ;;  %9950 = vpow2.f32 %v3560_v62 }
 0x531   : > { %v3452_v25 = vmul.f32 %v11812_v57, %v3420_v8  ;;  %v3358_v46 = vadd.f32 -0.28449672, %v3326_v37  ;;  %v3297_v22 = vadd.f32 1.4214138, %v3265_v29  ;;  %v3203_v37 = vmul.f32 1.0614054, %v11888_v38  ;;  %v9939_v7 = vpop.eup %9938 }
 0x532   : > { %v3613_v6 = vmul.f32 %v9933_v53, %v3453_v26  ;;  %v11886_v39 = vpop.f32.mrb[48].mxu1  ;;  %v3423_v11 = vadd.f32 0.2548296, %v3391_v30  ;;  %v3296_v2 = vadd.f32 1.4214138, %v3264_v23  ;;  %v2534_v23 = vpop.permute.xlu0 %2533  ;;  %vm2981_vm5 = vcmp.ge.f32.partialorder %v11882_v32, 0.0 }
 0x533   : > { %v3612_v57 = vmul.f32 %v9935_v17, %v3452_v25  ;;  %v11892_v49 = vpop.f32.mrb[49].mxu1  ;;  %v3390_v40 = vmul.f32 %v11846_v56, %v3358_v46  ;;  %v3329_v53 = vmul.f32 %v11854_v36, %v3297_v22  ;;  %v11899_v17 = vpop.eup %9940  ;;  %v3235_v30 = vadd.f32 -1.4531521, %v3203_v37 }
 0x534   : > { %v3645_v35 = vsub.f32 1.0, %v3613_v6  ;;  %v3455_v15 = vmul.f32 %v11830_v1, %v3423_v11  ;;  %v3328_v26 = vmul.f32 %v11861_v33, %v3296_v2  ;;  %v3202_v1 = vmul.f32 1.0614054, %v11899_v17  ;;  %v9943_v62 = vpop.eup %9942  ;;  %v2549_v37 = vpop.permute.xlu1 %2548 }
 0x535   : > { %v3644_v8 = vsub.f32 1.0, %v3612_v57  ;;  %v3422_v29 = vadd.f32 0.2548296, %v3390_v40  ;;  %v3361_v25 = vadd.f32 -0.28449672, %v3329_v53  ;;  %v9945_v53 = vpop.eup %9944  ;;  %v11968_v55 = vadd.f32 %v11805_v45, %v2549_v37 }
 0x536   : > { %v3677_v60 = vmul.f32 %v3645_v35, %v11790_v13  ;;  %v3615_v46 = vmul.f32 %v9939_v7, %v3455_v15  ;;  %v3360_v22 = vadd.f32 -0.28449672, %v3328_v26  ;;  %v11906_v57 = vpop.f32.mrb[50].mxu1  ;;  %v3267_v35 = vmul.f32 %v11888_v38, %v3235_v30 }
 0x537   : > { %v3676_v6 = vmul.f32 %v3644_v8, %v11796_v47  ;;  %v3454_v13 = vmul.f32 %v11846_v56, %v3422_v29  ;;  %v3393_v2 = vmul.f32 %v11854_v36, %v3361_v25  ;;  %v11911_v40 = vpop.f32.mrb[51].mxu1  ;;  %v3234_v8 = vadd.f32 -1.4531521, %v3202_v1 }
 0x538   : > { %v3709_v11 = vadd.f32 1.0, %v3677_v60  ;;  %v3647_v47 = vsub.f32 1.0, %v3615_v46  ;;  %v3392_v7 = vmul.f32 %v11861_v33, %v3360_v22  ;;  %v3299_v31 = vadd.f32 1.4214138, %v3267_v35  ;;  %v9947_v22 = vpop.eup %9946 }
 0x539   : > { %v3708_v19 = vadd.f32 1.0, %v3676_v6  ;;  %v3614_v26 = vmul.f32 %v9943_v62, %v3454_v13  ;;  %v3425_v60 = vadd.f32 0.2548296, %v3393_v2  ;;  %v3266_v6 = vmul.f32 %v11899_v17, %v3234_v8  ;;  %v9949_v13 = vpop.eup %9948  ;;  %v11931_v2 = vpop.permute.xlu0 %2623 }
 0x53a   : > { %v11915_v15 = vmul.f32 %v3709_v11, %v11770_v9  ;;  %v11917_v56 = vpop.f32.mrb[52].mxu1  ;;  %v3679_v25 = vmul.f32 %v3647_v47, %v11822_v59  ;;  %v3424_v30 = vadd.f32 0.2548296, %v3392_v7  ;;  %v3331_v62 = vmul.f32 %v11888_v38, %v3299_v31  ;;  %15676 = vst [vmem:[#allocation29_spill] sm:$0xff] %v11931_v2 }
 0x53b   : > { %v11920_v29 = vmul.f32 %v3708_v19, %v11775_v61  ;;  %v11924_v46 = vpop.f32.mrb[53].mxu1  ;;  %v3646_v1 = vsub.f32 1.0, %v3614_v26  ;;  %v3457_v9 = vmul.f32 %v11854_v36, %v3425_v60  ;;  %v11929_v11 = vand.u32 2147483647, %v11882_v32  ;;  %v9951_v26 = vpop.eup %9950 }
 0x53c   : > { %15673 = vst [vmem:[#allocation26_spill] sm:$0xff] %v11915_v15  ;;  %15675 = vst [vmem:[#allocation28_spill] sm:$0xff] %v11924_v46  ;;  %v3711_v59 = vadd.f32 1.0, %v3679_v25  ;;  %v3456_v19 = vmul.f32 %v11861_v33, %v3424_v30  ;;  %v3298_v35 = vadd.f32 1.4214138, %v3266_v6  ;;  %v11940_v60 = vpop.permute.xlu1 %2638  ;;  %v11947_v33 = vadd.f32 %v11793_v0, %v2534_v23 }
 0x53d   : > { %15674 = vst [vmem:[#allocation27_spill] sm:$0xff] %v11920_v29  ;;  %v3678_v47 = vmul.f32 %v3646_v1, %v11841_v58  ;;  %v3617_v7 = vmul.f32 %v9945_v53, %v3457_v9  ;;  %v3363_v8 = vadd.f32 -0.28449672, %v3331_v62  ;;  %v3077_v36 = vmul.f32 0.3275911, %v11929_v11 }
 0x53e   : > { %v11938_v31 = vpop.f32.mrb[54].mxu1  ;;  %v11943_v2 = vmul.f32 %v3711_v59, %v11798_v44  ;;  %v3616_v46 = vmul.f32 %v9947_v22, %v3456_v19  ;;  %v3330_v25 = vmul.f32 %v11899_v17, %v3298_v35  ;;  %v3009_v9 = vsel %vm2977_vm1, 1.0, %v15669_v5  ;;  %v2544_v35 = vpop.permute.xlu0 %2543 }
 0x53f   : > { %v11949_v30 = vpop.f32.mrb[55].mxu1  ;;  %v3710_v58 = vadd.f32 1.0, %v3678_v47  ;;  %v3649_v53 = vsub.f32 1.0, %v3617_v7  ;;  %v3395_v6 = vmul.f32 %v11888_v38, %v3363_v8  ;;  %v3109_v1 = vadd.f32 1.0, %v3077_v36 }
 0x540   : > { %15677 = vst [vmem:[#allocation30_spill] sm:$0xff] %v11943_v2  ;;  %v3008_v44 = vsel %vm2976_vm2, 1.0, %v15669_v5  ;;  %v3648_v22 = vsub.f32 1.0, %v3616_v46  ;;  %v3362_v62 = vadd.f32 -0.28449672, %v3330_v25  ;;  %v2913_v8 = vmul.f32 0.5, %v11773_v43 }
 0x541   : > { %v11959_v0 = vmul.f32 %v3710_v58, %v11800_v51  ;;  %v3681_v23 = vmul.f32 %v3649_v53, %v3009_v9  ;;  %v3427_v59 = vadd.f32 0.2548296, %v3395_v6  ;;  %9952 = vrcp.f32 %v3109_v1  ;;  %v2559_v58 = vpop.permute.xlu1 %2558 }
 0x542   : > { %v11961_v19 = vpop.f32.mrb[56].mxu1  ;;  %v3680_v47 = vmul.f32 %v3648_v22, %v3008_v44  ;;  %v3394_v7 = vmul.f32 %v11899_v17, %v3362_v62  ;;  %v11965_v20 = vmul.f32 0.70710677, %v11947_v33  ;;  %v2912_v53 = vmul.f32 0.5, %v11777_v52 }
 0x543   : > { %15678 = vst [vmem:[#allocation31_spill] sm:$0xff] %v11959_v0  ;;  %v11970_v46 = vpop.f32.mrb[57].mxu1  ;;  %v3713_v36 = vadd.f32 1.0, %v3681_v23  ;;  %v3459_v25 = vmul.f32 %v11888_v38, %v3427_v59  ;;  %v3493_v37 = vsub.f32 0.0, %v11929_v11  ;;  %v11988_v62 = vmul.f32 0.70710677, %v11968_v55 }
 0x544   : > { %15679 = vst [vmem:[#allocation32_spill] sm:$0xff] %v11970_v46  ;;  %v3712_v6 = vadd.f32 1.0, %v3680_v47  ;;  %v3426_v1 = vadd.f32 0.2548296, %v3394_v7  ;;  %v3044_v44 = vand.u32 2147483647, %v11965_v20  ;;  %v11996_v47 = vpop.permute.xlu0 %2633 }
 0x545   : > { %v11978_v9 = vmul.f32 %v3713_v36, %v2913_v8  ;;  %v3619_v45 = vmul.f32 %v9949_v13, %v3459_v25  ;;  %v11994_v13 = vadd.f32 %v11810_v12, %v2544_v35  ;;  %v3047_v8 = vand.u32 2147483647, %v11988_v62 }
 0x546   : > { %v11982_v22 = vpop.f32.mrb[58].mxu1  ;;  %v11984_v43 = vmul.f32 %v3712_v6, %v2912_v53  ;;  %v3458_v38 = vmul.f32 %v11899_v17, %v3426_v1  ;;  %v3076_v59 = vmul.f32 0.3275911, %v3044_v44  ;;  %v3525_v25 = vmul.f32 %v3493_v37, %v11929_v11  ;;  %v12003_v6 = vpop.permute.xlu1 %2648 }
 0x547   : > { %15680 = vst [vmem:[#allocation33_spill] sm:$0xff] %v11978_v9  ;;  %15681 = vst [vmem:[#allocation34_spill] sm:$0xff] %v11982_v22  ;;  %v11990_v52 = vpop.f32.mrb[59].mxu1  ;;  %v3651_v23 = vsub.f32 1.0, %v3619_v45  ;;  %v2915_v1 = vmul.f32 0.5, %v11803_v10  ;;  %v3010_v7 = vsel %vm2978_vm4, 1.0, %v15669_v5  ;;  %v12014_v37 = vadd.f32 %v11824_v28, %v2559_v58 }
 0x548   : > { %15682 = vst [vmem:[#allocation35_spill] sm:$0xff] %v11984_v43  ;;  %15683 = vst [vmem:[#allocation36_spill] sm:$0xff] %v11990_v52  ;;  %v3618_v17 = vmul.f32 %v9951_v26, %v3458_v38  ;;  %v3108_v53 = vadd.f32 1.0, %v3076_v59  ;;  %v3079_v35 = vmul.f32 0.3275911, %v3047_v8  ;;  %v2914_v10 = vmul.f32 0.5, %v11815_v48  ;;  %v2554_v59 = vpop.permute.xlu0 %2553 }
 0x549   : > { %v3683_v36 = vmul.f32 %v3651_v23, %v3011_v3  ;;  %15684 = vst [vmem:[#allocation37_spill] sm:$0xff] %v12003_v6  ;;  %v12010_v27 = vmul.f32 0.70710677, %v11994_v13  ;;  %v3566_v3 = vmul.f32 1.442695, %v3525_v25  ;;  %v3492_v58 = vsub.f32 0.0, %v3044_v44 }
 0x54a   : > { %v3650_v12 = vsub.f32 1.0, %v3618_v17  ;;  %9954 = vrcp.f32 %v3108_v53  ;;  %v3111_v11 = vadd.f32 1.0, %v3079_v35  ;;  %v12025_v48 = vmul.f32 0.70710677, %v12014_v37 }
 0x54b   : > { %v12006_v45 = vpop.eup %9952  ;;  %v3715_v51 = vadd.f32 1.0, %v3683_v36  ;;  %v3046_v23 = vand.u32 2147483647, %v12010_v27  ;;  %v3495_v25 = vsub.f32 0.0, %v3047_v8  ;;  %vm2980_vm6 = vcmp.ge.f32.partialorder %v11965_v20, 0.0 }
 0x54c   : > { %v3682_v26 = vmul.f32 %v3650_v12, %v3010_v7  ;;  %v3205_v38 = vmul.f32 1.0614054, %v12006_v45  ;;  %9956 = vrcp.f32 %v3111_v11  ;;  %v2569_v12 = vpop.permute.xlu1 %2568  ;;  %v3049_v11 = vand.u32 2147483647, %v12025_v48 }
 0x54d   : > { %v12018_v17 = vmul.f32 %v3715_v51, %v2915_v1  ;;  %v3078_v7 = vmul.f32 0.3275911, %v3046_v23  ;;  %v12028_v51 = vadd.f32 %v11828_v63, %v2554_v59  ;;  %v12031_v1 = vadd.f32 %v11844_v18, %v2569_v12 }
 0x54e   : > { %v3714_v36 = vadd.f32 1.0, %v3682_v26  ;;  %v3237_v53 = vadd.f32 -1.4531521, %v3205_v38  ;;  %9958 = vpow2.f32 %v3566_v3  ;;  %v3524_v59 = vmul.f32 %v3492_v58, %v3044_v44 }
 0x54f   : > { %15685 = vst [vmem:[#allocation38_spill] sm:$0xff] %v12018_v17  ;;  %v3110_v35 = vadd.f32 1.0, %v3078_v7  ;;  %v3081_v18 = vmul.f32 0.3275911, %v3049_v11  ;;  %v12051_v3 = vsel %vm2981_vm5, 1.0, %v15669_v5  ;;  %v3527_v12 = vmul.f32 %v3495_v25, %v3047_v8 }
 0x550   : > { %v12021_v61 = vmul.f32 %v3714_v36, %v2914_v10  ;;  %v3269_v28 = vmul.f32 %v12006_v45, %v3237_v53  ;;  %v12037_v10 = vmul.f32 0.5, %v11857_v21  ;;  %v12040_v36 = vpop.permute.xlu0 %2643  ;;  %v12044_v53 = vmul.f32 0.70710677, %v12028_v51 }
 0x551   : > { %9960 = vrcp.f32 %v3110_v35  ;;  %15687 = vst [vmem:[#allocation40_spill] sm:$0xff] %v12040_v36  ;;  %v12054_v21 = vmul.f32 0.5, %v11947_v33  ;;  %v3494_v58 = vsub.f32 0.0, %v3046_v23  ;;  %v12063_v26 = vsel %vm2980_vm6, 1.0, %v15669_v5 }
 0x552   : > { %15686 = vst [vmem:[#allocation39_spill] sm:$0xff] %v12021_v61  ;;  %v3301_v38 = vadd.f32 1.4214138, %v3269_v28  ;;  %v12057_v28 = vmul.f32 0.70710677, %v12031_v1  ;;  %v12066_v32 = vmul.f32 0.5, %v11968_v55 }
 0x553   : > { %v3048_v33 = vand.u32 2147483647, %v12044_v53  ;;  %v3564_v17 = vmul.f32 1.442695, %v3524_v59  ;;  %vm2983_vm7 = vcmp.ge.f32.partialorder %v11988_v62, 0.0  ;;  %v3526_v29 = vmul.f32 %v3494_v58, %v3046_v23 }
 0x554   : > { %v3333_v63 = vmul.f32 %v12006_v45, %v3301_v38  ;;  %v12046_v7 = vpop.eup %9954  ;;  %v3113_v38 = vadd.f32 1.0, %v3081_v18  ;;  %v3051_v8 = vand.u32 2147483647, %v12057_v28  ;;  %v3497_v18 = vsub.f32 0.0, %v3049_v11  ;;  %v2564_v9 = vpop.permute.xlu0 %2563 }
 0x555   : > { %v3204_v44 = vmul.f32 1.0614054, %v12046_v7  ;;  %v3080_v43 = vmul.f32 0.3275911, %v3048_v33  ;;  %v3570_v2 = vmul.f32 1.442695, %v3527_v12 }
 0x556   : > { %v3365_v35 = vadd.f32 -0.28449672, %v3333_v63  ;;  %v12070_v25 = vpop.eup %9956  ;;  %9962 = vrcp.f32 %v3113_v38  ;;  %v3083_v36 = vmul.f32 0.3275911, %v3051_v8  ;;  %v3496_v22 = vsub.f32 0.0, %v3048_v33 }
 0x557   : > { %v3236_v61 = vadd.f32 -1.4531521, %v3204_v44  ;;  %v3207_v20 = vmul.f32 1.0614054, %v12070_v25  ;;  %v3112_v52 = vadd.f32 1.0, %v3080_v43  ;;  %9964 = vpow2.f32 %v3564_v17 }
 0x558   : > { %v3397_v63 = vmul.f32 %v12006_v45, %v3365_v35  ;;  %v12077_v35 = vadd.f32 %v11848_v24, %v2564_v9  ;;  %v9959_v59 = vpop.eup %9958  ;;  %v3529_v46 = vmul.f32 %v3497_v18, %v3049_v11  ;;  %v3499_v24 = vsub.f32 0.0, %v3051_v8 }
 0x559   : > { %v3268_v0 = vmul.f32 %v12046_v7, %v3236_v61  ;;  %v3239_v15 = vadd.f32 -1.4531521, %v3207_v20  ;;  %9966 = vrcp.f32 %v3112_v52  ;;  %v3115_v61 = vadd.f32 1.0, %v3083_v36 }
 0x55a   : > { %v3429_v55 = vadd.f32 0.2548296, %v3397_v63  ;;  %9968 = vpow2.f32 %v3570_v2  ;;  %v3568_v58 = vmul.f32 1.442695, %v3526_v29  ;;  %v3528_v20 = vmul.f32 %v3496_v22, %v3048_v33 }
 0x55b   : > { %v3300_v38 = vadd.f32 1.4214138, %v3268_v0  ;;  %v12080_v6 = vpop.eup %9960  ;;  %v3271_v63 = vmul.f32 %v12070_v25, %v3239_v15  ;;  %v12086_v0 = vmul.f32 0.70710677, %v12077_v35  ;;  %9970 = vrcp.f32 %v3115_v61 }
 0x55c   : > { %v3461_v44 = vmul.f32 %v12006_v45, %v3429_v55  ;;  %v3206_v12 = vmul.f32 1.0614054, %v12080_v6  ;;  %v12091_v52 = vsel %vm2983_vm7, 1.0, %v15669_v5  ;;  %v3574_v55 = vmul.f32 1.442695, %v3529_v46 }
 0x55d   : > { %v3332_v43 = vmul.f32 %v12046_v7, %v3300_v38  ;;  %v3303_v9 = vadd.f32 1.4214138, %v3271_v63  ;;  %v12095_v36 = vand.u32 2147483647, %v12086_v0  ;;  %v3531_v22 = vmul.f32 %v3499_v24, %v3051_v8 }
 0x55e   : > { %v3621_v23 = vmul.f32 %v9959_v59, %v3461_v44  ;;  %v3238_v17 = vadd.f32 -1.4531521, %v3206_v12  ;;  %v12105_v44 = vadd.f32 %v11859_v41, %v11753_v34  ;;  %9972 = vpow2.f32 %v3568_v58 }
 0x55f   : > { %v3364_v45 = vadd.f32 -0.28449672, %v3332_v43  ;;  %v3335_v11 = vmul.f32 %v12070_v25, %v3303_v9  ;;  %v3082_v62 = vmul.f32 0.3275911, %v12095_v36  ;;  %v3572_v61 = vmul.f32 1.442695, %v3528_v20 }
 0x560   : > { %v3653_v15 = vsub.f32 1.0, %v3621_v23  ;;  %v12097_v2 = vpop.eup %9962  ;;  %v3270_v18 = vmul.f32 %v12080_v6, %v3238_v17  ;;  %9974 = vpow2.f32 %v3574_v55  ;;  %v12115_v58 = vmul.f32 0.70710677, %v12105_v44 }
 0x561   : > { %v3396_v29 = vmul.f32 %v12046_v7, %v3364_v45  ;;  %v3367_v33 = vadd.f32 -0.28449672, %v3335_v11  ;;  %v3209_v59 = vmul.f32 1.0614054, %v12097_v2  ;;  %v3114_v46 = vadd.f32 1.0, %v3082_v62  ;;  %v9965_v8 = vpop.eup %9964 }
 0x562   : > { %v3302_v63 = vadd.f32 1.4214138, %v3270_v18  ;;  %v3685_v23 = vmul.f32 %v3653_v15, %v12051_v3  ;;  %v3578_v45 = vmul.f32 1.442695, %v3531_v22  ;;  %vm2982_vm8 = vcmp.ge.f32.partialorder %v12010_v27, 0.0 }
 0x563   : > { %v3428_v38 = vadd.f32 0.2548296, %v3396_v29  ;;  %v3399_v43 = vmul.f32 %v12070_v25, %v3367_v33  ;;  %v3241_v12 = vadd.f32 -1.4531521, %v3209_v59  ;;  %v12111_v17 = vpop.eup %9966  ;;  %9976 = vrcp.f32 %v3114_v46 }
 0x564   : > { %v3334_v9 = vmul.f32 %v12080_v6, %v3302_v63  ;;  %v3208_v15 = vmul.f32 1.0614054, %v12111_v17  ;;  %9978 = vpow2.f32 %v3572_v61  ;;  %v3717_v11 = vadd.f32 1.0, %v3685_v23 }
 0x565   : > { %v3460_v24 = vmul.f32 %v12046_v7, %v3428_v38  ;;  %v3431_v34 = vadd.f32 0.2548296, %v3399_v43  ;;  %v3273_v41 = vmul.f32 %v12097_v2, %v3241_v12  ;;  %v9969_v7 = vpop.eup %9968  ;;  %vm2985_vm9 = vcmp.ge.f32.partialorder %v12025_v48, 0.0 }
 0x566   : > { %v3366_v20 = vadd.f32 -0.28449672, %v3334_v9  ;;  %v12122_v55 = vand.u32 2147483647, %v12115_v58  ;;  %v12124_v22 = vpop.eup %9970  ;;  %v3240_v62 = vadd.f32 -1.4531521, %v3208_v15  ;;  %9980 = vpow2.f32 %v3578_v45 }
 0x567   : > { %v3620_v3 = vmul.f32 %v9965_v8, %v3460_v24  ;;  %v3463_v29 = vmul.f32 %v12070_v25, %v3431_v34  ;;  %v3305_v18 = vadd.f32 1.4214138, %v3273_v41  ;;  %v3211_v61 = vmul.f32 1.0614054, %v12124_v22 }
 0x568   : > { %v3398_v59 = vmul.f32 %v12080_v6, %v3366_v20  ;;  %v3498_v25 = vsub.f32 0.0, %v12095_v36  ;;  %v3272_v12 = vmul.f32 %v12111_v17, %v3240_v62  ;;  %v3085_v46 = vmul.f32 0.3275911, %v12122_v55  ;;  %v9973_v34 = vpop.eup %9972 }
 0x569   : > { %v3652_v33 = vsub.f32 1.0, %v3620_v3  ;;  %v3623_v38 = vmul.f32 %v9969_v7, %v3463_v29  ;;  %v3337_v63 = vmul.f32 %v12097_v2, %v3305_v18  ;;  %v12134_v8 = vmul.f32 %v3717_v11, %v12037_v10 }
 0x56a   : > { %v3430_v43 = vadd.f32 0.2548296, %v3398_v59  ;;  %v3243_v45 = vadd.f32 -1.4531521, %v3211_v61  ;;  %v3304_v20 = vadd.f32 1.4214138, %v3272_v12  ;;  %v3530_v18 = vmul.f32 %v3498_v25, %v12095_v36 }
 0x56b   : > { %v3684_v23 = vmul.f32 %v3652_v33, %v12063_v26  ;;  %v3655_v24 = vsub.f32 1.0, %v3623_v38  ;;  %v3369_v9 = vadd.f32 -0.28449672, %v3337_v63  ;;  %v3117_v15 = vadd.f32 1.0, %v3085_v46  ;;  %v9975_v33 = vpop.eup %9974 }
 0x56c   : > { %v3462_v3 = vmul.f32 %v12080_v6, %v3430_v43  ;;  %v3275_v29 = vmul.f32 %v12124_v22, %v3243_v45  ;;  %v3336_v59 = vmul.f32 %v12111_v17, %v3304_v20  ;;  %v2918_v43 = vmul.f32 0.5, %v11994_v13 }
 0x56d   : > { %v3716_v41 = vadd.f32 1.0, %v3684_v23  ;;  %v3687_v7 = vmul.f32 %v3655_v24, %v12091_v52  ;;  %v3401_v26 = vmul.f32 %v12097_v2, %v3369_v9  ;;  %9982 = vrcp.f32 %v3117_v15  ;;  %v12145_v62 = vpop.eup %9976 }
 0x56e   : > { %v3622_v11 = vmul.f32 %v9973_v34, %v3462_v3  ;;  %v3307_v63 = vadd.f32 1.4214138, %v3275_v29  ;;  %v12149_v52 = vadd.f32 %v11866_v42, %v11751_v4  ;;  %v9979_v61 = vpop.eup %9978  ;;  %v3210_v23 = vmul.f32 1.0614054, %v12145_v62 }
 0x56f   : > { %v12142_v10 = vmul.f32 %v3716_v41, %v12054_v21  ;;  %v3719_v6 = vadd.f32 1.0, %v3687_v7  ;;  %v3433_v38 = vadd.f32 0.2548296, %v3401_v26  ;;  %v3368_v21 = vadd.f32 -0.28449672, %v3336_v59 }
 0x570   : > { %v3654_v25 = vsub.f32 1.0, %v3622_v11  ;;  %v3014_v12 = vsel %vm2982_vm8, 1.0, %v15669_v5  ;;  %v3339_v24 = vmul.f32 %v12124_v22, %v3307_v63  ;;  %v9981_v4 = vpop.eup %9980  ;;  %v3017_v9 = vsel %vm2985_vm9, 1.0, %v15669_v5 }
 0x571   : > { %v3465_v46 = vmul.f32 %v12097_v2, %v3433_v38  ;;  %v3400_v45 = vmul.f32 %v12111_v17, %v3368_v21  ;;  %v3242_v34 = vadd.f32 -1.4531521, %v3210_v23  ;;  %v3576_v13 = vmul.f32 1.442695, %v3530_v18 }
 0x572   : > { %v3686_v42 = vmul.f32 %v3654_v25, %v3014_v12  ;;  %v3371_v3 = vadd.f32 -0.28449672, %v3339_v24  ;;  %v12165_v20 = vmul.f32 0.70710677, %v12149_v52  ;;  %v12168_v27 = vmul.f32 %v3719_v6, %v12066_v32 }
 0x573   : > { %v3625_v41 = vmul.f32 %v9975_v33, %v3465_v46  ;;  %v3432_v15 = vadd.f32 0.2548296, %v3400_v45  ;;  %v3274_v7 = vmul.f32 %v12145_v62, %v3242_v34  ;;  %vm2984_vm10 = vcmp.ge.f32.partialorder %v12044_v53, 0.0 }
 0x574   : > { %v3718_v2 = vadd.f32 1.0, %v3686_v42  ;;  %v3403_v48 = vmul.f32 %v12124_v22, %v3371_v3  ;;  %v12174_v29 = vand.u32 2147483647, %v12165_v20  ;;  %v12181_v32 = vadd.f32 %v11874_v50, %v11755_v16 }
 0x575   : > { %v3657_v26 = vsub.f32 1.0, %v3625_v41  ;;  %v3464_v18 = vmul.f32 %v12111_v17, %v3432_v15  ;;  %v3306_v11 = vadd.f32 1.4214138, %v3274_v7  ;;  %9984 = vpow2.f32 %v3576_v13 }
 0x576   : > { %v12176_v33 = vmul.f32 %v3718_v2, %v2918_v43  ;;  %v3435_v6 = vadd.f32 0.2548296, %v3403_v48  ;;  %v3084_v38 = vmul.f32 0.3275911, %v12174_v29  ;;  %vm2987_vm11 = vcmp.ge.f32.partialorder %v12057_v28, 0.0 }
 0x577   : > { %v3689_v59 = vmul.f32 %v3657_v26, %v3017_v9  ;;  %v12184_v63 = vpop.eup %9982  ;;  %v3624_v21 = vmul.f32 %v9979_v61, %v3464_v18  ;;  %v3338_v17 = vmul.f32 %v12145_v62, %v3306_v11  ;;  %v3016_v16 = vsel %vm2984_vm10, 1.0, %v15669_v5 }
 0x578   : > { %v3467_v50 = vmul.f32 %v12124_v22, %v3435_v6  ;;  %v3213_v23 = vmul.f32 1.0614054, %v12184_v63  ;;  %v3116_v43 = vadd.f32 1.0, %v3084_v38  ;;  %v12196_v42 = vmul.f32 0.70710677, %v12181_v32 }
 0x579   : > { %v3721_v12 = vadd.f32 1.0, %v3689_v59  ;;  %v3656_v46 = vsub.f32 1.0, %v3624_v21  ;;  %v3370_v24 = vadd.f32 -0.28449672, %v3338_v17  ;;  %v3501_v45 = vsub.f32 0.0, %v12122_v55 }
 0x57a   : > { %v3627_v61 = vmul.f32 %v9981_v4, %v3467_v50  ;;  %v3245_v9 = vadd.f32 -1.4531521, %v3213_v23  ;;  %9986 = vrcp.f32 %v3116_v43  ;;  %v2921_v34 = vmul.f32 0.5, %v12014_v37 }
 0x57b   : > { %v2920_v53 = vmul.f32 0.5, %v12028_v51  ;;  %v3688_v41 = vmul.f32 %v3656_v46, %v3016_v16  ;;  %v3402_v22 = vmul.f32 %v12145_v62, %v3370_v24  ;;  %v3019_v3 = vsel %vm2987_vm11, 1.0, %v15669_v5 }
 0x57c   : > { %v3659_v13 = vsub.f32 1.0, %v3627_v61  ;;  %v3277_v2 = vmul.f32 %v12184_v63, %v3245_v9  ;;  %v12207_v4 = vand.u32 2147483647, %v12196_v42  ;;  %v12209_v15 = vmul.f32 %v3721_v12, %v2921_v34  ;;  %v15688_v9 = vld [vmem:[#allocation19_spill] sm:$0xff]  ;;  %v15689_v34 = vld [vmem:[#allocation20_spill] sm:$0xff] }
 0x57d   : > { %v3720_v7 = vadd.f32 1.0, %v3688_v41  ;;  %v3434_v26 = vadd.f32 0.2548296, %v3402_v22  ;;  %v12213_v37 = vadd.f32 %v11884_v54, %v11757_v14  ;;  %v3533_v18 = vmul.f32 %v3501_v45, %v12122_v55  ;;  %v2877_v14 = vld [vmem:[%s15581_s6 + $0x8] sm:$0xff] }
 0x57e   : > { %v3691_v51 = vmul.f32 %v3659_v13, %v3019_v3  ;;  %v3309_v48 = vadd.f32 1.4214138, %v3277_v2  ;;  %v3087_v28 = vmul.f32 0.3275911, %v12207_v4  ;;  %vm2986_vm13 = vcmp.ge.f32.partialorder %v12086_v0, 0.0  ;;  %3836 = vmatprep.mubr.f32.mxu1 %v2877_v14 }
 0x57f   : > { %v12217_v11 = vmul.f32 %v3720_v7, %v2920_v53  ;;  %v3466_v59 = vmul.f32 %v12145_v62, %v3434_v26  ;;  %v12221_v6 = vmul.f32 0.70710677, %v12213_v37  ;;  %v9985_v38 = vpop.eup %9984  ;;  %v3582_v50 = vmul.f32 1.442695, %v3533_v18 }
 0x580   : > { %v3341_v21 = vmul.f32 %v12184_v63, %v3309_v48  ;;  %v3119_v17 = vadd.f32 1.0, %v3087_v28  ;;  %v3723_v62 = vadd.f32 1.0, %v3691_v51  ;;  %v2923_v23 = vmul.f32 0.5, %v12031_v1 }
 0x581   : > { %v3626_v55 = vmul.f32 %v9985_v38, %v3466_v59  ;;  %v12231_v16 = vand.u32 2147483647, %v12221_v6  ;;  %v3018_v61 = vsel %vm2986_vm13, 1.0, %v15669_v5  ;;  %v3500_v0 = vsub.f32 0.0, %v12174_v29 }
 0x582   : > { %9988 = vrcp.f32 %v3119_v17  ;;  %v3373_v12 = vadd.f32 -0.28449672, %v3341_v21  ;;  %v12241_v45 = vadd.f32 %v11886_v39, %v15688_v9  ;;  %v12245_v53 = vadd.f32 %v11892_v49, %v15689_v34 }
 0x583   : > { %v3658_v43 = vsub.f32 1.0, %v3626_v55  ;;  %v3086_v46 = vmul.f32 0.3275911, %v12231_v16  ;;  %v2922_v1 = vmul.f32 0.5, %v12077_v35  ;;  %v12249_v13 = vmul.f32 %v3723_v62, %v2923_v23  ;;  %v15690_v23 = vld [vmem:[#allocation21_spill] sm:$0xff] }
 0x584   : > { %v12235_v24 = vpop.eup %9986  ;;  %vm2989_vm14 = vcmp.ge.f32.partialorder %v12115_v58, 0.0  ;;  %9990 = vpow2.f32 %v3582_v50  ;;  %v12253_v2 = vmul.f32 0.70710677, %v12241_v45  ;;  %v3405_v7 = vmul.f32 %v12184_v63, %v3373_v12 }
 0x585   : > { %v3690_v41 = vmul.f32 %v3658_v43, %v3018_v61  ;;  %v3212_v22 = vmul.f32 1.0614054, %v12235_v24  ;;  %v3118_v3 = vadd.f32 1.0, %v3086_v46  ;;  %v3532_v49 = vmul.f32 %v3500_v0, %v12174_v29 }
 0x586   : > { %v3503_v35 = vsub.f32 0.0, %v12207_v4  ;;  %v3057_v51 = vand.u32 2147483647, %v12253_v2  ;;  %v12260_v48 = vmul.f32 0.70710677, %v12245_v53  ;;  %v12265_v58 = vmul.f32 0.5, %v12105_v44 }
 0x587   : > { %v3722_v39 = vadd.f32 1.0, %v3690_v41  ;;  %v3244_v26 = vadd.f32 -1.4531521, %v3212_v22  ;;  %9992 = vrcp.f32 %v3118_v3  ;;  %v12268_v28 = vsel %vm2989_vm14, 1.0, %v15669_v5 }
 0x588   : > { %v12272_v38 = vmul.f32 0.5, %v12149_v52  ;;  %vm2988_vm15 = vcmp.ge.f32.partialorder %v12165_v20, 0.0  ;;  %vm2991_vm0 = vcmp.ge.f32.partialorder %v12196_v42, 0.0  ;;  %v3089_v29 = vmul.f32 0.3275911, %v3057_v51 }
 0x589   : > { %v12262_v18 = vmul.f32 %v3722_v39, %v2922_v1  ;;  %v3276_v59 = vmul.f32 %v12235_v24, %v3244_v26  ;;  %v3437_v17 = vadd.f32 0.2548296, %v3405_v7  ;;  %v12279_v44 = vand.u32 2147483647, %v12260_v48  ;;  %v15691_v26 = vld [vmem:[#allocation22_spill] sm:$0xff] }
 0x58a   : > { %v3580_v62 = vmul.f32 1.442695, %v3532_v49  ;;  %v3535_v50 = vmul.f32 %v3503_v35, %v12207_v4  ;;  %v3121_v52 = vadd.f32 1.0, %v3089_v29  ;;  %v12286_v20 = vadd.f32 %v11906_v57, %v15690_v23 }
 0x58b   : > { %v3308_v14 = vadd.f32 1.4214138, %v3276_v59  ;;  %v12289_v43 = vsel %vm2988_vm15, 1.0, %v15669_v5  ;;  %v3088_v61 = vmul.f32 0.3275911, %v12279_v44  ;;  %v12295_v0 = vmul.f32 0.5, %v12181_v32 }
 0x58c   : > { %v12281_v55 = vpop.eup %9988  ;;  %v12300_v4 = vsel %vm2991_vm0, 1.0, %v15669_v5  ;;  %v3502_v57 = vsub.f32 0.0, %v12231_v16  ;;  %9994 = vrcp.f32 %v3121_v52  ;;  %v3469_v9 = vmul.f32 %v12184_v63, %v3437_v17 }
 0x58d   : > { %v3340_v12 = vmul.f32 %v12235_v24, %v3308_v14  ;;  %v3215_v46 = vmul.f32 1.0614054, %v12281_v55  ;;  %v3120_v41 = vadd.f32 1.0, %v3088_v61  ;;  %9996 = vpow2.f32 %v3580_v62 }
 0x58e   : > { %v9991_v22 = vpop.eup %9990  ;;  %v3586_v3 = vmul.f32 1.442695, %v3535_v50  ;;  %vm2990_vm1 = vcmp.ge.f32.partialorder %v12221_v6, 0.0  ;;  %v12306_v32 = vmul.f32 0.70710677, %v12286_v20  ;;  %v12314_v63 = vadd.f32 %v11911_v40, %v15691_v26 }
 0x58f   : > { %v3372_v34 = vadd.f32 -0.28449672, %v3340_v12  ;;  %v3247_v1 = vadd.f32 -1.4531521, %v3215_v46  ;;  %9998 = vrcp.f32 %v3120_v41  ;;  %v12317_v49 = vmul.f32 0.5, %v12213_v37 }
 0x590   : > { %v3534_v6 = vmul.f32 %v3502_v57, %v12231_v16  ;;  %v12322_v59 = vand.u32 2147483647, %v12306_v32  ;;  %v3629_v29 = vmul.f32 %v9991_v22, %v3469_v9  ;;  %v12325_v14 = vsel %vm2990_vm1, 1.0, %v15669_v5 }
 0x591   : > { %v12308_v39 = vpop.eup %9992  ;;  %v3404_v42 = vmul.f32 %v12235_v24, %v3372_v34  ;;  %v3279_v7 = vmul.f32 %v12281_v55, %v3247_v1  ;;  %v3505_v62 = vsub.f32 0.0, %v3057_v51  ;;  %10000 = vpow2.f32 %v3586_v3  ;;  %v15692_v3 = vld [vmem:[#allocation23_spill] sm:$0xff] }
 0x592   : > { %v3214_v35 = vmul.f32 1.0614054, %v12308_v39  ;;  %v3091_v40 = vmul.f32 0.3275911, %v12322_v59  ;;  %v12330_v23 = vmul.f32 0.5, %v12241_v45  ;;  %vm2993_vm2 = vcmp.ge.f32.partialorder %v12253_v2, 0.0 }
 0x593   : > { %v3311_v17 = vadd.f32 1.4214138, %v3279_v7  ;;  %v3436_v50 = vadd.f32 0.2548296, %v3404_v42  ;;  %v12333_v16 = vmul.f32 0.70710677, %v12314_v63  ;;  %v3537_v34 = vmul.f32 %v3505_v62, %v3057_v51 }
 0x594   : > { %v3246_v52 = vadd.f32 -1.4531521, %v3214_v35  ;;  %v3584_v46 = vmul.f32 1.442695, %v3534_v6  ;;  %v3123_v61 = vadd.f32 1.0, %v3091_v40  ;;  %v3661_v57 = vsub.f32 1.0, %v3629_v29 }
 0x595   : > { %v3343_v37 = vmul.f32 %v12281_v55, %v3311_v17  ;;  %v3058_v1 = vand.u32 2147483647, %v12333_v16  ;;  %v3468_v22 = vmul.f32 %v12235_v24, %v3436_v50  ;;  %v12343_v42 = vadd.f32 %v11917_v56, %v15692_v3 }
 0x596   : > { %v3278_v12 = vmul.f32 %v12308_v39, %v3246_v52  ;;  %v12338_v41 = vpop.eup %9994  ;;  %10002 = vrcp.f32 %v3123_v61  ;;  %v12347_v26 = vmul.f32 0.5, %v12245_v53  ;;  %v3504_v35 = vsub.f32 0.0, %v12279_v44 }
 0x597   : > { %v3375_v9 = vadd.f32 -0.28449672, %v3343_v37  ;;  %v3217_v7 = vmul.f32 1.0614054, %v12338_v41  ;;  %v3090_v51 = vmul.f32 0.3275911, %v3058_v1  ;;  %v9997_v6 = vpop.eup %9996  ;;  %10004 = vpow2.f32 %v3584_v46 }
 0x598   : > { %v3310_v45 = vadd.f32 1.4214138, %v3278_v12  ;;  %v12354_v24 = vsel %vm2993_vm2, 1.0, %v15669_v5  ;;  %vm2992_vm3 = vcmp.ge.f32.partialorder %v12260_v48, 0.0  ;;  %v3693_v17 = vmul.f32 %v3661_v57, %v12268_v28 }
 0x599   : > { %v3407_v29 = vmul.f32 %v12281_v55, %v3375_v9  ;;  %v12357_v56 = vpop.eup %9998  ;;  %v3249_v62 = vadd.f32 -1.4531521, %v3217_v7  ;;  %v3122_v50 = vadd.f32 1.0, %v3090_v51  ;;  %v3628_v52 = vmul.f32 %v9997_v6, %v3468_v22  ;;  %v15693_v7 = vld [vmem:[#allocation24_spill] sm:$0xff] }
 0x59a   : > { %v3342_v53 = vmul.f32 %v12308_v39, %v3310_v45  ;;  %v3590_v40 = vmul.f32 1.442695, %v3537_v34  ;;  %v3216_v37 = vmul.f32 1.0614054, %v12357_v56  ;;  %v12363_v12 = vmul.f32 0.70710677, %v12343_v42 }
 0x59b   : > { %v3281_v2 = vmul.f32 %v12338_v41, %v3249_v62  ;;  %v12367_v46 = vsel %vm2992_vm3, 1.0, %v15669_v5  ;;  %v3536_v48 = vmul.f32 %v3504_v35, %v12279_v44  ;;  %10006 = vrcp.f32 %v3122_v50  ;;  %v10001_v34 = vpop.eup %10000  ;;  %v15694_v51 = vld [vmem:[#allocation28_spill] sm:$0xff] }
 0x59c   : > { %v3439_v28 = vadd.f32 0.2548296, %v3407_v29  ;;  %v3248_v61 = vadd.f32 -1.4531521, %v3216_v37  ;;  %v12371_v57 = vmul.f32 0.5, %v12286_v20  ;;  %v3507_v9 = vsub.f32 0.0, %v12322_v59 }
 0x59d   : > { %v3725_v22 = vadd.f32 1.0, %v3693_v17  ;;  %v3374_v45 = vadd.f32 -0.28449672, %v3342_v53  ;;  %v3313_v3 = vadd.f32 1.4214138, %v3281_v2  ;;  %v12376_v6 = vadd.f32 %v15694_v51, %v15693_v7 }
 0x59e   : > { %v3660_v62 = vsub.f32 1.0, %v3628_v52  ;;  %10008 = vpow2.f32 %v3590_v40  ;;  %v3280_v44 = vmul.f32 %v12357_v56, %v3248_v61  ;;  %v12380_v35 = vand.u32 2147483647, %v12363_v12 }
 0x59f   : > { %v3345_v20 = vmul.f32 %v12338_v41, %v3313_v3  ;;  %v3588_v29 = vmul.f32 1.442695, %v3536_v48  ;;  %vm2995_vm4 = vcmp.ge.f32.partialorder %v12306_v32, 0.0  ;;  %v3506_v50 = vsub.f32 0.0, %v3058_v1 }
 0x5a0   : > { %v12384_v17 = vpop.eup %10002  ;;  %v3471_v53 = vmul.f32 %v12281_v55, %v3439_v28  ;;  %v3312_v37 = vadd.f32 1.4214138, %v3280_v44  ;;  %v3539_v2 = vmul.f32 %v3507_v9, %v12322_v59  ;;  %v3093_v52 = vmul.f32 0.3275911, %v12380_v35 }
 0x5a1   : > { %v3406_v40 = vmul.f32 %v12308_v39, %v3374_v45  ;;  %v3377_v61 = vadd.f32 -0.28449672, %v3345_v20  ;;  %v3219_v7 = vmul.f32 1.0614054, %v12384_v17  ;;  %v12392_v3 = vmul.f32 0.70710677, %v12376_v6  ;;  %v10005_v48 = vpop.eup %10004 }
 0x5a2   : > { %v12395_v51 = vmul.f32 %v3725_v22, %v12265_v58  ;;  %v3692_v21 = vmul.f32 %v3660_v62, %v12289_v43  ;;  %v3344_v55 = vmul.f32 %v12357_v56, %v3312_v37  ;;  %v3125_v28 = vadd.f32 1.0, %v3093_v52 }
 0x5a3   : > { %v12402_v59 = vsel %vm2995_vm4, 1.0, %v15669_v5  ;;  %v3251_v9 = vadd.f32 -1.4531521, %v3219_v7  ;;  %vm2994_vm5 = vcmp.ge.f32.partialorder %v12333_v16, 0.0  ;;  %v3538_v45 = vmul.f32 %v3506_v50, %v3058_v1 }
 0x5a4   : > { %v3631_v44 = vmul.f32 %v10001_v34, %v3471_v53  ;;  %v3594_v20 = vmul.f32 1.442695, %v3539_v2  ;;  %v12406_v54 = vmul.f32 0.5, %v12314_v63  ;;  %10010 = vrcp.f32 %v3125_v28 }
 0x5a5   : > { %v12408_v58 = vpop.eup %10006  ;;  %v3438_v43 = vadd.f32 0.2548296, %v3406_v40  ;;  %v3409_v22 = vmul.f32 %v12338_v41, %v3377_v61  ;;  %v3283_v62 = vmul.f32 %v12384_v17, %v3251_v9  ;;  %v3060_v32 = vand.u32 2147483647, %v12392_v3  ;;  %v15695_v61 = vld [vmem:[#allocation25_spill] sm:$0xff] }
 0x5a6   : > { %v3724_v37 = vadd.f32 1.0, %v3692_v21  ;;  %v3376_v52 = vadd.f32 -0.28449672, %v3344_v55  ;;  %v12414_v16 = vsel %vm2994_vm5, 1.0, %v15669_v5  ;;  %v3218_v1 = vmul.f32 1.0614054, %v12408_v58 }
 0x5a7   : > { %10012 = vpow2.f32 %v3588_v29  ;;  %v3315_v63 = vadd.f32 1.4214138, %v3283_v62  ;;  %v3592_v34 = vmul.f32 1.442695, %v3538_v45  ;;  %v3092_v50 = vmul.f32 0.3275911, %v3060_v32 }
 0x5a8   : > { %v10009_v53 = vpop.eup %10008  ;;  %v3663_v2 = vsub.f32 1.0, %v3631_v44  ;;  %v3250_v40 = vadd.f32 -1.4531521, %v3218_v1  ;;  %vm2997_vm6 = vcmp.ge.f32.partialorder %v12363_v12, 0.0  ;;  %v12420_v7 = vadd.f32 %v11938_v31, %v15695_v61 }
 0x5a9   : > { %v3470_v21 = vmul.f32 %v12308_v39, %v3438_v43  ;;  %v3441_v55 = vadd.f32 0.2548296, %v3409_v22  ;;  %v3347_v28 = vmul.f32 %v12384_v17, %v3315_v63  ;;  %v3124_v9 = vadd.f32 1.0, %v3092_v50 }
 0x5aa   : > { %v3408_v29 = vmul.f32 %v12357_v56, %v3376_v52  ;;  %10014 = vpow2.f32 %v3594_v20  ;;  %v3282_v45 = vmul.f32 %v12408_v58, %v3250_v40  ;;  %v3509_v44 = vsub.f32 0.0, %v12380_v35 }
 0x5ab   : > { %v12428_v62 = vmul.f32 %v3724_v37, %v12272_v38  ;;  %v3379_v1 = vadd.f32 -0.28449672, %v3347_v28  ;;  %v12431_v31 = vmul.f32 0.5, %v12343_v42  ;;  %10016 = vrcp.f32 %v3124_v9  ;;  %v15696_v9 = vld [vmem:[#allocation29_spill] sm:$0xff] }
 0x5ac   : > { %v3314_v39 = vadd.f32 1.4214138, %v3282_v45  ;;  %10018 = vpow2.f32 %v3592_v34  ;;  %v12436_v43 = vsel %vm2997_vm6, 1.0, %v15669_v5  ;;  %v12439_v20 = vmul.f32 0.70710677, %v12420_v7 }
 0x5ad   : > { %v3695_v22 = vmul.f32 %v3663_v2, %v12300_v4  ;;  %v3630_v52 = vmul.f32 %v10005_v48, %v3470_v21  ;;  %v3473_v38 = vmul.f32 %v12338_v41, %v3441_v55  ;;  %v3411_v37 = vmul.f32 %v12384_v17, %v3379_v1 }
 0x5ae   : > { %v12444_v42 = vpop.eup %10010  ;;  %v3440_v63 = vadd.f32 0.2548296, %v3408_v29  ;;  %v3346_v34 = vmul.f32 %v12408_v58, %v3314_v39  ;;  %v3541_v50 = vmul.f32 %v3509_v44, %v12380_v35  ;;  %v3063_v12 = vand.u32 2147483647, %v12439_v20 }
 0x5af   : > { %v3443_v40 = vadd.f32 0.2548296, %v3411_v37  ;;  %v3221_v61 = vmul.f32 1.0614054, %v12444_v42  ;;  %v3508_v28 = vsub.f32 0.0, %v3060_v32  ;;  %v12452_v4 = vadd.f32 %v11949_v30, %v15696_v9 }
 0x5b0   : > { %v3378_v41 = vadd.f32 -0.28449672, %v3346_v34  ;;  %v12455_v48 = vmul.f32 0.5, %v12376_v6  ;;  %vm2996_vm7 = vcmp.ge.f32.partialorder %v12392_v3, 0.0  ;;  %v3095_v2 = vmul.f32 0.3275911, %v3063_v12 }
 0x5b1   : > { %v10013_v21 = vpop.eup %10012  ;;  %v3727_v55 = vadd.f32 1.0, %v3695_v22  ;;  %v3662_v35 = vsub.f32 1.0, %v3630_v52  ;;  %v3633_v29 = vmul.f32 %v10009_v53, %v3473_v38  ;;  %v3253_v45 = vadd.f32 -1.4531521, %v3221_v61 }
 0x5b2   : > { %v3472_v44 = vmul.f32 %v12357_v56, %v3440_v63  ;;  %v3410_v1 = vmul.f32 %v12408_v58, %v3378_v41  ;;  %v3598_v39 = vmul.f32 1.442695, %v3541_v50  ;;  %v3127_v37 = vadd.f32 1.0, %v3095_v2 }
 0x5b3   : > { %v3475_v30 = vmul.f32 %v12384_v17, %v3443_v40  ;;  %v3285_v34 = vmul.f32 %v12444_v42, %v3253_v45  ;;  %v3540_v6 = vmul.f32 %v3508_v28, %v3060_v32  ;;  %v12463_v9 = vmul.f32 0.70710677, %v12452_v4 }
 0x5b4   : > { %v10015_v25 = vpop.eup %10014  ;;  %v3442_v36 = vadd.f32 0.2548296, %v3410_v1  ;;  %v12468_v53 = vsel %vm2996_vm7, 1.0, %v15669_v5  ;;  %10020 = vrcp.f32 %v3127_v37  ;;  %v12472_v56 = vadd.f32 %v11961_v19, %v11940_v60  ;;  %v15697_v1 = vld [vmem:[#allocation32_spill] sm:$0xff] }
 0x5b5   : > { %v12474_v22 = vpop.eup %10016  ;;  %v3694_v17 = vmul.f32 %v3662_v35, %v12325_v14  ;;  %v3665_v32 = vsub.f32 1.0, %v3633_v29  ;;  %v3317_v52 = vadd.f32 1.4214138, %v3285_v34  ;;  %v3062_v38 = vand.u32 2147483647, %v12463_v9 }
 0x5b6   : > { %v10019_v63 = vpop.eup %10018  ;;  %v3632_v50 = vmul.f32 %v10013_v21, %v3472_v44  ;;  %v3474_v40 = vmul.f32 %v12408_v58, %v3442_v36  ;;  %10022 = vpow2.f32 %v3598_v39  ;;  %v3220_v3 = vmul.f32 1.0614054, %v12474_v22 }
 0x5b7   : > { %v3635_v61 = vmul.f32 %v10015_v25, %v3475_v30  ;;  %v3349_v28 = vmul.f32 %v12444_v42, %v3317_v52  ;;  %v3596_v60 = vmul.f32 1.442695, %v3540_v6  ;;  %v3094_v19 = vmul.f32 0.3275911, %v3062_v38 }
 0x5b8   : > { %v12482_v41 = vmul.f32 %v3727_v55, %v12295_v0  ;;  %v3252_v14 = vadd.f32 -1.4531521, %v3220_v3  ;;  %v3511_v2 = vsub.f32 0.0, %v3063_v12  ;;  %v12485_v35 = vmul.f32 0.70710677, %v12472_v56 }
 0x5b9   : > { %v3697_v21 = vmul.f32 %v3665_v32, %v12354_v24  ;;  %v3634_v29 = vmul.f32 %v10019_v63, %v3474_v40  ;;  %v3381_v36 = vadd.f32 -0.28449672, %v3349_v28  ;;  %v3126_v58 = vadd.f32 1.0, %v3094_v19  ;;  %v15698_v19 = vld [vmem:[#allocation37_spill] sm:$0xff] }
 0x5ba   : > { %v3664_v45 = vsub.f32 1.0, %v3632_v50  ;;  %v3284_v25 = vmul.f32 %v12474_v22, %v3252_v14  ;;  %v12490_v44 = vand.u32 2147483647, %v12485_v35  ;;  %v12494_v0 = vadd.f32 %v15697_v1, %v11996_v47  ;;  %v15699_v14 = vld [vmem:[#allocation34_spill] sm:$0xff] }
 0x5bb   : > { %v3726_v55 = vadd.f32 1.0, %v3694_v17  ;;  %v3667_v39 = vsub.f32 1.0, %v3635_v61  ;;  %v3413_v37 = vmul.f32 %v12444_v42, %v3381_v36  ;;  %10024 = vrcp.f32 %v3126_v58 }
 0x5bc   : > { %v3316_v30 = vadd.f32 1.4214138, %v3284_v25  ;;  %v3543_v24 = vmul.f32 %v3511_v2, %v3063_v12  ;;  %v3510_v34 = vsub.f32 0.0, %v3062_v38  ;;  %v3097_v6 = vmul.f32 0.3275911, %v12490_v44 }
 0x5bd   : > { %v3729_v32 = vadd.f32 1.0, %v3697_v21  ;;  %v3666_v52 = vsub.f32 1.0, %v3634_v29  ;;  %v3445_v63 = vadd.f32 0.2548296, %v3413_v37  ;;  %10026 = vpow2.f32 %v3596_v60 }
 0x5be   : > { %v12498_v50 = vpop.eup %10020  ;;  %v3696_v40 = vmul.f32 %v3664_v45, %v12367_v46  ;;  %v3348_v47 = vmul.f32 %v12474_v22, %v3316_v30  ;;  %v3129_v17 = vadd.f32 1.0, %v3097_v6  ;;  %v12503_v3 = vmul.f32 0.70710677, %v12494_v0 }
 0x5bf   : > { %v3699_v61 = vmul.f32 %v3667_v39, %v12402_v59  ;;  %v3477_v12 = vmul.f32 %v12444_v42, %v3445_v63  ;;  %v3223_v28 = vmul.f32 1.0614054, %v12498_v50  ;;  %v12510_v2 = vadd.f32 %v15699_v14, %v15698_v19 }
 0x5c0   : > { %v10023_v60 = vpop.eup %10022  ;;  %v3380_v21 = vadd.f32 -0.28449672, %v3348_v47  ;;  %v3602_v29 = vmul.f32 1.442695, %v3543_v24  ;;  %v3542_v46 = vmul.f32 %v3510_v34, %v3062_v38  ;;  %10028 = vrcp.f32 %v3129_v17 }
 0x5c1   : > { %v12513_v36 = vmul.f32 %v3726_v55, %v12317_v49  ;;  %v3698_v58 = vmul.f32 %v3666_v52, %v12414_v16  ;;  %v3637_v45 = vmul.f32 %v10023_v60, %v3477_v12  ;;  %v3255_v59 = vadd.f32 -1.4531521, %v3223_v28 }
 0x5c2   : > { %v12517_v42 = vmul.f32 %v3729_v32, %v12330_v23  ;;  %v3412_v25 = vmul.f32 %v12474_v22, %v3380_v21  ;;  %v3064_v1 = vand.u32 2147483647, %v12503_v3  ;;  %v12522_v39 = vmul.f32 0.70710677, %v12510_v2 }
 0x5c3   : > { %v3728_v37 = vadd.f32 1.0, %v3696_v40  ;;  %v3731_v38 = vadd.f32 1.0, %v3699_v61  ;;  %v3669_v30 = vsub.f32 1.0, %v3637_v45  ;;  %v3287_v49 = vmul.f32 %v12498_v50, %v3255_v59 }
 0x5c4   : > { %v3444_v55 = vadd.f32 0.2548296, %v3412_v25  ;;  %10030 = vpow2.f32 %v3602_v29  ;;  %v3600_v16 = vmul.f32 1.442695, %v3542_v46  ;;  %v3096_v24 = vmul.f32 0.3275911, %v3064_v1 }
 0x5c5   : > { %v12525_v34 = vpop.eup %10024  ;;  %v3730_v23 = vadd.f32 1.0, %v3698_v58  ;;  %v3319_v6 = vadd.f32 1.4214138, %v3287_v49  ;;  %v3513_v32 = vsub.f32 0.0, %v12490_v44  ;;  %v12529_v52 = vand.u32 2147483647, %v12522_v39 }
 0x5c6   : > { %v3701_v63 = vmul.f32 %v3669_v30, %v12436_v43  ;;  %v3476_v40 = vmul.f32 %v12474_v22, %v3444_v55  ;;  %v3222_v47 = vmul.f32 1.0614054, %v12525_v34  ;;  %v3128_v17 = vadd.f32 1.0, %v3096_v24  ;;  %v15700_v29 = vld [vmem:[#allocation40_spill] sm:$0xff] }
 0x5c7   : > { %v10027_v61 = vpop.eup %10026  ;;  %v3760_v12 = vmul.f32 %v3728_v37, %v12347_v26  ;;  %v12536_v28 = vmul.f32 %v3731_v38, %v12371_v57  ;;  %v3351_v19 = vmul.f32 %v12498_v50, %v3319_v6  ;;  %v3099_v14 = vmul.f32 0.3275911, %v12529_v52  ;;  %v15701_v43 = vld [vmem:[#allocation36_spill] sm:$0xff] }
 0x5c8   : > { %v3636_v60 = vmul.f32 %v10027_v61, %v3476_v40  ;;  %v3254_v21 = vadd.f32 -1.4531521, %v3222_v47  ;;  %10032 = vrcp.f32 %v3128_v17  ;;  %v12542_v46 = vadd.f32 %v15701_v43, %v15700_v29  ;;  %v15702_v61 = vld [vmem:[#allocation26_spill] sm:$0xff] }
 0x5c9   : > { %v3383_v22 = vadd.f32 -0.28449672, %v3351_v19  ;;  %10034 = vpow2.f32 %v3600_v16  ;;  %v3545_v58 = vmul.f32 %v3513_v32, %v12490_v44  ;;  %v3131_v45 = vadd.f32 1.0, %v3099_v14  ;;  %v15703_v19 = vld [vmem:[#allocation27_spill] sm:$0xff] }
 0x5ca   : > { %v12545_v26 = vpop.eup %10028  ;;  %v12548_v57 = vmul.f32 %v3730_v23, %v12406_v54  ;;  %v3733_v59 = vadd.f32 1.0, %v3701_v63  ;;  %v3668_v25 = vsub.f32 1.0, %v3636_v60  ;;  %v3286_v37 = vmul.f32 %v12525_v34, %v3254_v21 }
 0x5cb   : > { %v3415_v38 = vmul.f32 %v12498_v50, %v3383_v22  ;;  %v3225_v30 = vmul.f32 1.0614054, %v12545_v26  ;;  %v3512_v49 = vsub.f32 0.0, %v3064_v1  ;;  %10036 = vrcp.f32 %v3131_v45 }
 0x5cc   : > { %v3700_v55 = vmul.f32 %v3668_v25, %v12468_v53  ;;  %v3318_v16 = vadd.f32 1.4214138, %v3286_v37  ;;  %v12555_v44 = vmul.f32 0.70710677, %v12542_v46  ;;  %v9669_v54 = vpack.c.bf16 %v12395_v51, %v12428_v62  ;;  %v15705_v37 = vld [vmem:[#allocation30_spill] sm:$0xff] }
 0x5cd   : > { %v3447_v24 = vadd.f32 0.2548296, %v3415_v38  ;;  %v3257_v23 = vadd.f32 -1.4531521, %v3225_v30  ;;  %v3606_v6 = vmul.f32 1.442695, %v3545_v58  ;;  %v9673_v32 = vpack.c.bf16 %v12482_v41, %v12513_v36 }
 0x5ce   : > { %v10031_v63 = vpop.eup %10030  ;;  %v12562_v40 = vmul.f32 %v3733_v59, %v12431_v31  ;;  %v3732_v47 = vadd.f32 1.0, %v3700_v55  ;;  %v3350_v53 = vmul.f32 %v12525_v34, %v3318_v16  ;;  %v12566_v17 = vand.u32 2147483647, %v12555_v44  ;;  %9670 = vmatprep.subr.bf16.mxu1 %v9669_v54  ;;  %v15706_v38 = vld [vmem:[#allocation31_spill] sm:$0xff] }
 0x5cf   : > { %vm2999_vm8 = vcmp.ge.f32.partialorder %v12439_v20, 0.0  ;;  %v3479_v51 = vmul.f32 %v12498_v50, %v3447_v24  ;;  %v3289_v62 = vmul.f32 %v12545_v26, %v3257_v23  ;;  %v15704_v41 = vpack.c.bf16 %v15702_v61, %v15703_v19 }
 0x5d0   : > { %v9677_v31 = vpack.c.bf16 %v12517_v42, %v3760_v12  ;;  %v3764_v36 = vmul.f32 %v3732_v47, %v12455_v48  ;;  %v3382_v14 = vadd.f32 -0.28449672, %v3350_v53  ;;  %v3544_v60 = vmul.f32 %v3512_v49, %v3064_v1  ;;  %v15709_v47 = vld [vmem:[#allocation35_spill] sm:$0xff] }
 0x5d1   : > { %9672 = vmatpush3.bf16.msra.mxu1 %v15704_v41  ;;  %v3098_v21 = vmul.f32 0.3275911, %v12566_v17  ;;  %v3639_v29 = vmul.f32 %v10031_v63, %v3479_v51  ;;  %v3321_v43 = vadd.f32 1.4214138, %v3289_v62  ;;  %v3515_v22 = vsub.f32 0.0, %v12529_v52 }
 0x5d2   : > { %9674 = vmatprep.subr.bf16.mxu1 %v9673_v32  ;;  %v9681_v50 = vpack.c.bf16 %v12536_v28, %v12548_v57  ;;  %v12580_v58 = vpop.eup %10032  ;;  %v3414_v45 = vmul.f32 %v12525_v34, %v3382_v14  ;;  %10038 = vpow2.f32 %v3606_v6  ;;  %v9685_v48 = vpack.c.bf16 %v12562_v40, %v3764_v36  ;;  %v15708_v40 = vld [vmem:[#allocation33_spill] sm:$0xff] }
 0x5d3   : > { %v3130_v42 = vadd.f32 1.0, %v3098_v21  ;;  %v10035_v12 = vpop.eup %10034  ;;  %v3671_v1 = vsub.f32 1.0, %v3639_v29  ;;  %v3353_v59 = vmul.f32 %v12545_v26, %v3321_v43  ;;  %v3224_v25 = vmul.f32 1.0614054, %v12580_v58  ;;  %v15712_v29 = vld [vmem:[#allocation39_spill] sm:$0xff] }
 0x5d4   : > { %v15707_v30 = vpack.c.bf16 %v15705_v37, %v15706_v38  ;;  %v3031_v28 = vsel %vm2999_vm8, 1.0, %v15669_v5  ;;  %v3446_v57 = vadd.f32 0.2548296, %v3414_v45  ;;  %v3604_v54 = vmul.f32 1.442695, %v3544_v60 }
 0x5d5   : > { %10040 = vrcp.f32 %v3130_v42  ;;  %v12592_v49 = vpop.eup %10036  ;;  %v3385_v55 = vadd.f32 -0.28449672, %v3353_v59  ;;  %v3256_v16 = vadd.f32 -1.4531521, %v3224_v25  ;;  %v3547_v24 = vmul.f32 %v3515_v22, %v12529_v52 }
 0x5d6   : > { %9676 = vmatpush3.bf16.msra.mxu1 %v15707_v30  ;;  %v3703_v23 = vmul.f32 %v3671_v1, %v3031_v28  ;;  %v3478_v6 = vmul.f32 %v12525_v34, %v3446_v57  ;;  %v3227_v32 = vmul.f32 1.0614054, %v12592_v49  ;;  %v15710_v53 = vpack.c.bf16 %v15708_v40, %v15709_v47 }
 0x5d7   : > { %9678 = vmatprep.subr.bf16.mxu1 %v9677_v31  ;;  %v3417_v63 = vmul.f32 %v12545_v26, %v3385_v55  ;;  %v3288_v20 = vmul.f32 %v12580_v58, %v3256_v16  ;;  %vm2998_vm9 = vcmp.ge.f32.partialorder %v12463_v9, 0.0  ;;  %10042 = vpow2.f32 %v3604_v54  ;;  %v15711_v9 = vld [vmem:[#allocation38_spill] sm:$0xff] }
 0x5d8   : > { %v3638_v51 = vmul.f32 %v10035_v12, %v3478_v6  ;;  %v3259_v62 = vadd.f32 -1.4531521, %v3227_v32  ;;  %v3610_v19 = vmul.f32 1.442695, %v3547_v24  ;;  %v3735_v34 = vadd.f32 1.0, %v3703_v23 }
 0x5d9   : > { %v3449_v61 = vadd.f32 0.2548296, %v3417_v63  ;;  %v3320_v52 = vadd.f32 1.4214138, %v3288_v20  ;;  %v3514_v36 = vsub.f32 0.0, %v12566_v17  ;;  %v3030_v14 = vsel %vm2998_vm9, 1.0, %v15669_v5 }
 0x5da   : > { %9680 = vmatpush3.bf16.msra.mxu1 %v15710_v53  ;;  %v3670_v41 = vsub.f32 1.0, %v3638_v51  ;;  %v3291_v31 = vmul.f32 %v12592_v49, %v3259_v62  ;;  %v15713_v43 = vpack.c.bf16 %v15711_v9, %v15712_v29  ;;  %v2934_v12 = vmul.f32 0.5, %v12452_v4 }
 0x5db   : > { %9682 = vmatprep.subr.bf16.mxu1 %v9681_v50  ;;  %v3481_v60 = vmul.f32 %v12545_v26, %v3449_v61  ;;  %v3352_v21 = vmul.f32 %v12580_v58, %v3320_v52  ;;  %v2935_v50 = vmul.f32 0.5, %v12420_v7  ;;  %10044 = vpow2.f32 %v3610_v19 }
 0x5dc   : > { %v10039_v22 = vpop.eup %10038  ;;  %v3702_v45 = vmul.f32 %v3670_v41, %v3030_v14  ;;  %v3323_v42 = vadd.f32 1.4214138, %v3291_v31  ;;  %v3546_v30 = vmul.f32 %v3514_v36, %v12566_v17  ;;  %vm3001_vm10 = vcmp.ge.f32.partialorder %v12485_v35, 0.0 }
 0x5dd   : > { %v3641_v1 = vmul.f32 %v10039_v22, %v3481_v60  ;;  %v3384_v59 = vadd.f32 -0.28449672, %v3352_v21  ;;  %v3767_v37 = vmul.f32 %v3735_v34, %v2935_v50  ;;  %v3033_v24 = vsel %vm3001_vm10, 1.0, %v15669_v5 }
 0x5de   : > { %9684 = vmatpush3.bf16.msra.mxu1 %v15713_v43  ;;  %v3734_v26 = vadd.f32 1.0, %v3702_v45  ;;  %v3355_v38 = vmul.f32 %v12592_v49, %v3323_v42  ;;  %v3608_v6 = vmul.f32 1.442695, %v3546_v30  ;;  %vm3000_vm11 = vcmp.ge.f32.partialorder %v12503_v3, 0.0  ;;  %v2885_v30 = vld [vmem:[%s15581_s6 + $0x48] sm:$0xff] }
 0x5df   : > { %9686 = vmatprep.subr.bf16.mxu1 %v9685_v48  ;;  %v10041_v25 = vpop.eup %10040  ;;  %v3673_v28 = vsub.f32 1.0, %v3641_v1  ;;  %v3416_v7 = vmul.f32 %v12580_v58, %v3384_v59  ;;  %v15714_v48 = vpack.c.bf16 %v12134_v8, %v12142_v10  ;;  %v15715_v47 = vpack.c.bf16 %v12168_v27, %v12176_v33 }
 0x5e0   : > { %v3226_v57 = vmul.f32 1.0614054, %v10041_v25  ;;  %v3766_v4 = vmul.f32 %v3734_v26, %v2934_v12  ;;  %v3387_v55 = vadd.f32 -0.28449672, %v3355_v38  ;;  %10046 = vpow2.f32 %v3608_v6  ;;  %v2882_v38 = vld [vmem:[%s15581_s6 + $0x30] sm:$0xff] }
 0x5e1   : > { %v3448_v16 = vadd.f32 0.2548296, %v3416_v7  ;;  %v10043_v32 = vpop.eup %10042  ;;  %v3705_v35 = vmul.f32 %v3673_v28, %v3033_v24  ;;  %v2937_v34 = vmul.f32 0.5, %v12472_v56  ;;  %v2936_v31 = vmul.f32 0.5, %v12494_v0  ;;  %v2884_v28 = vld [vmem:[%s15581_s6 + $0x40] sm:$0xff]  ;;  %v2887_v7 = vld [vmem:[%s15581_s6 + $0x58] sm:$0xff] }
 0x5e2   : > { %9688 = vmatpush3.bf16.msra.mxu1 %v15714_v48  ;;  %v3258_v54 = vadd.f32 -1.4531521, %v3226_v57  ;;  %v3419_v23 = vmul.f32 %v12592_v49, %v3387_v55  ;;  %v9689_v17 = vpack.c.bf16 %v3767_v37, %v3766_v4  ;;  %vm3003_vm13 = vcmp.ge.f32.partialorder %v12522_v39, 0.0  ;;  %v2886_v57 = vld [vmem:[%s15581_s6 + $0x50] sm:$0xff]  ;;  %v2889_v48 = vld [vmem:[%s15581_s6 + $0x68] sm:$0xff]  ;;  %v2888_v4 = vld [vmem:[%s15581_s6 + $0x60] sm:$0xff] }
 0x5e3   : > { %v3480_v63 = vmul.f32 %v12580_v58, %v3448_v16  ;;  %v3737_v62 = vadd.f32 1.0, %v3705_v35  ;;  %v3032_v58 = vsel %vm3000_vm11, 1.0, %v15669_v5  ;;  %v3035_v21 = vsel %vm3003_vm13, 1.0, %v15669_v5  ;;  %v2891_v55 = vld [vmem:[%s15581_s6 + $0x78] sm:$0xff]  ;;  %v2890_v16 = vld [vmem:[%s15581_s6 + $0x70] sm:$0xff]  ;;  %v2892_v24 = vld [vmem:[%s15581_s6 + $0x80] sm:$0xff] }
 0x5e4   : > { %v3290_v20 = vmul.f32 %v10041_v25, %v3258_v54  ;;  %v3451_v40 = vadd.f32 0.2548296, %v3419_v23  ;;  %9690 = vmatprep.subr.bf16.mxu1 %v9689_v17  ;;  %vm3002_vm14 = vcmp.ge.f32.partialorder %v12555_v44, 0.0  ;;  %v15716_v0 = vpack.c.bf16 %v12209_v15, %v12217_v11  ;;  %v2876_v15 = vld [vmem:[%s15581_s6] sm:$0xff]  ;;  %v2879_v11 = vld [vmem:[%s15581_s6 + $0x18] sm:$0xff]  ;;  %v2893_v54 = vld [vmem:[%s15581_s6 + $0x88] sm:$0xff] }
 0x5e5   : > { %v3640_v8 = vmul.f32 %v10043_v32, %v3480_v63  ;;  %v10045_v51 = vpop.eup %10044  ;;  %v3769_v27 = vmul.f32 %v3737_v62, %v2937_v34  ;;  %v3034_v45 = vsel %vm3002_vm14, 1.0, %v15669_v5  ;;  %v2939_v42 = vmul.f32 0.5, %v12510_v2  ;;  %v2878_v2 = vld [vmem:[%s15581_s6 + $0x10] sm:$0xff]  ;;  %v2895_v23 = vld [vmem:[%s15581_s6 + $0x98] sm:$0xff]  ;;  %v2897_v17 = vld [vmem:[%s15581_s6 + $0xa8] sm:$0xff] }
 0x5e6   : > { %v3322_v10 = vadd.f32 1.4214138, %v3290_v20  ;;  %9692 = vmatpush3.bf16.msra.mxu1 %v15715_v47  ;;  %v3483_v53 = vmul.f32 %v12592_v49, %v3451_v40  ;;  %v2938_v59 = vmul.f32 0.5, %v12542_v46  ;;  %v15717_v44 = vpack.c.bf16 %v12249_v13, %v12262_v18  ;;  %v2881_v46 = vld [vmem:[%s15581_s6 + $0x28] sm:$0xff]  ;;  %v2880_v13 = vld [vmem:[%s15581_s6 + $0x20] sm:$0xff]  ;;  %v2883_v18 = vld [vmem:[%s15581_s6 + $0x38] sm:$0xff] }
 0x5e7   : > { %v3672_v61 = vsub.f32 1.0, %v3640_v8  ;;  %v2894_v6 = vld [vmem:[%s15581_s6 + $0x90] sm:$0xff]  ;;  %v2896_v32 = vld [vmem:[%s15581_s6 + $0xa0] sm:$0xff]  ;;  %v2899_v35 = vld [vmem:[%s15581_s6 + $0xb8] sm:$0xff]  ;;  %vm4937_vm3 = vcmask 523264  }
 0x5e8   : > { %v3354_v52 = vmul.f32 %v10041_v25, %v3322_v10  ;;  %v3643_v19 = vmul.f32 %v10045_v51, %v3483_v53  ;;  %v2898_v63 = vld [vmem:[%s15581_s6 + $0xb0] sm:$0xff]  ;;  %v2901_v20 = vld [vmem:[%s15581_s6 + $0xc8] sm:$0xff]  ;;  %v2900_v40 = vld [vmem:[%s15581_s6 + $0xc0] sm:$0xff] }
 0x5e9   : > { %v3704_v41 = vmul.f32 %v3672_v61, %v3032_v58  ;;  %v2903_v8 = vld [vmem:[%s15581_s6 + $0xd8] sm:$0xff]  ;;  %v2902_v10 = vld [vmem:[%s15581_s6 + $0xd0] sm:$0xff]  ;;  %v2905_v47 = vld [vmem:[%s15581_s6 + $0xe8] sm:$0xff] }
 0x5ea   : > { %v3386_v3 = vadd.f32 -0.28449672, %v3354_v52  ;;  %v3675_v36 = vsub.f32 1.0, %v3643_v19  ;;  %v10047_v22 = vpop.eup %10046  ;;  %v2904_v53 = vld [vmem:[%s15581_s6 + $0xe0] sm:$0xff]  ;;  %v2907_v51 = vld [vmem:[%s15581_s6 + $0xf8] sm:$0xff]  ;;  %v2906_v62 = vld [vmem:[%s15581_s6 + $0xf0] sm:$0xff] }
 0x5eb   : > { %v3736_v33 = vadd.f32 1.0, %v3704_v41  ;;  %v15718_v19 = vld [vmem:[#allocation3_spill] sm:$0xff] }
 0x5ec   : > { %v3418_v49 = vmul.f32 %v10041_v25, %v3386_v3  ;;  %v3707_v9 = vmul.f32 %v3675_v36, %v3035_v21  ;;  %v3952_v3 = vpop.permute.xlu0 %3951  ;;  %v15719_v36 = vld [vmem:[#allocation4_spill] sm:$0xff]  ;;  %v3957_v21 = vpop.permute.xlu1 %3956 }
 0x5ed   : > { %v3768_v14 = vmul.f32 %v3736_v33, %v2936_v31 }
 0x5ee   : > { %v3450_v60 = vadd.f32 0.2548296, %v3418_v49  ;;  %v3739_v39 = vadd.f32 1.0, %v3707_v9 }
 0x5ef   : > { %v9693_v43 = vpack.c.bf16 %v3769_v27, %v3768_v14 }
 0x5f0   : > { %v3482_v29 = vmul.f32 %v10041_v25, %v3450_v60  ;;  %v3771_v1 = vmul.f32 %v3739_v39, %v2939_v42 }
 0x5f1   : > { %9694 = vmatprep.subr.bf16.mxu1 %v9693_v43 }
 0x5f2   : > { %v3642_v56 = vmul.f32 %v10047_v22, %v3482_v29  ;;  %9696 = vmatpush3.bf16.msra.mxu1 %v15716_v0  ;;  %v15720_v22 = vld [vmem:[#allocation5_spill] sm:$0xff] }
 0x5f4   : > { %v3674_v50 = vsub.f32 1.0, %v3642_v56 }
 0x5f6   : > { %v3706_v12 = vmul.f32 %v3674_v50, %v3034_v45  ;;  %v3962_v50 = vpop.permute.xlu0 %3961 }
 0x5f8   : > { %v3738_v25 = vadd.f32 1.0, %v3706_v12 }
 0x5fa   : > { %v3770_v37 = vmul.f32 %v3738_v25, %v2938_v59 }
 0x5fc   : > { %v9697_v26 = vpack.c.bf16 %v3771_v1, %v3770_v37  ;;  %v15721_v1 = vld [vmem:[#allocation6_spill] sm:$0xff] }
 0x5fe   : > { %9698 = vmatprep.subr.bf16.mxu1 %v9697_v26  ;;  %v3967_v26 = vpop.permute.xlu1 %3966 }
 0x5ff   : > { %9700 = vmatpush3.bf16.msra.mxu1 %v15717_v44 }
 0x602   : > { %3837 = vmatmul.mubr.f32.vlgmr.msra.gmra.mrb[60].mxu1 %v2876_v15 }
 0x603   : > { %3841 = vmatprep.mubr.f32.mxu1 %v2879_v11 }
 0x606   : > { %3842 = vmatmul.mubr.f32.gmra.mrb[62].mxu1 %v2878_v2  ;;  %v15722_v2 = vld [vmem:[#allocation7_spill] sm:$0xff] }
 0x607   : > { %3846 = vmatprep.mubr.f32.mxu1 %v2881_v46 }
 0x60a   : > { %3847 = vmatmul.mubr.f32.gmra.mrb[64].mxu1 %v2880_v13 }
 0x60b   : > { %3851 = vmatprep.mubr.f32.mxu1 %v2883_v18 }
 0x60e   : > { %3852 = vmatmul.mubr.f32.gmra.mrb[66].mxu1 %v2882_v38  ;;  %v3972_v38 = vpop.permute.xlu0 %3971 }
 0x60f   : > { %3856 = vmatprep.mubr.f32.mxu1 %v2885_v30 }
 0x612   : > { %3857 = vmatmul.mubr.f32.gmra.mrb[68].mxu1 %v2884_v28 }
 0x613   : > { %3861 = vmatprep.mubr.f32.mxu1 %v2887_v7 }
 0x616   : > { %3862 = vmatmul.mubr.f32.gmra.mrb[70].mxu1 %v2886_v57  ;;  %v15723_v57 = vld [vmem:[#allocation9_spill] sm:$0xff] }
 0x617   : > { %3866 = vmatprep.mubr.f32.mxu1 %v2889_v48 }
 0x61a   : > { %3867 = vmatmul.mubr.f32.gmra.mrb[72].mxu1 %v2888_v4 }
 0x61b   : > { %3871 = vmatprep.mubr.f32.mxu1 %v2891_v55 }
 0x61e   : > { %3872 = vmatmul.mubr.f32.gmra.mrb[74].mxu1 %v2890_v16  ;;  %v3977_v16 = vpop.permute.xlu1 %3976 }
 0x61f   : > { %3876 = vmatprep.mubr.f32.mxu1 %v2893_v54 }
 0x622   : > { %3877 = vmatmul.mubr.f32.gmra.mrb[76].mxu1 %v2892_v24 }
 0x623   : > { %3881 = vmatprep.mubr.f32.mxu1 %v2895_v23 }
 0x626   : > { %3882 = vmatmul.mubr.f32.gmra.mrb[78].mxu1 %v2894_v6  ;;  %v15724_v6 = vld [vmem:[#allocation8_spill] sm:$0xff] }
 0x627   : > { %3886 = vmatprep.mubr.f32.mxu1 %v2897_v17 }
 0x62a   : > { %3887 = vmatmul.mubr.f32.gmra.mrb[80].mxu1 %v2896_v32 }
 0x62b   : > { %3891 = vmatprep.mubr.f32.mxu1 %v2899_v35 }
 0x62e   : > { %3892 = vmatmul.mubr.f32.gmra.mrb[82].mxu1 %v2898_v63  ;;  %v3982_v63 = vpop.permute.xlu0 %3981 }
 0x62f   : > { %3896 = vmatprep.mubr.f32.mxu1 %v2901_v20 }
 0x632   : > { %3897 = vmatmul.mubr.f32.gmra.mrb[84].mxu1 %v2900_v40 }
 0x633   : > { %3901 = vmatprep.mubr.f32.mxu1 %v2903_v8 }
 0x636   : > { %3902 = vmatmul.mubr.f32.gmra.mrb[86].mxu1 %v2902_v10  ;;  %v15725_v10 = vld [vmem:[#allocation11_spill] sm:$0xff] }
 0x637   : > { %3906 = vmatprep.mubr.f32.mxu1 %v2905_v47 }
 0x63a   : > { %3907 = vmatmul.mubr.f32.gmra.mrb[88].mxu1 %v2904_v53 }
 0x63b   : > { %3911 = vmatprep.mubr.f32.mxu1 %v2907_v51 }
 0x63e   : > { %3912 = vmatmul.mubr.f32.gmra.mrb[90].mxu1 %v2906_v62  ;;  %v3987_v62 = vpop.permute.xlu1 %3986 }
 0x6d5   : > { %v8934_v61 = vpop.f32.mrb[60].mxu1 }
 0x6d6   : > { %v8935_v52 = vpop.f32.mrb[61].mxu1 }
 0x6d7   : > { %v8936_v58 = vadd.f32 %v8935_v52, %v8934_v61 }
 0x6d9   : > { %v3917_v34 = vadd.f32 %v8936_v58, %v15718_v19  ;;  %v8937_v41 = vpop.f32.mrb[62].mxu1  ;;  %v15726_v19 = vld [vmem:[#allocation10_spill] sm:$0xff] }
 0x6da   : > { %v8938_v31 = vpop.f32.mrb[63].mxu1 }
 0x6db   : > { %v12737_v27 = vadd.f32 %v3952_v3, %v3917_v34  ;;  %v8939_v33 = vadd.f32 %v8938_v31, %v8937_v41  ;;  %v3992_v31 = vpop.permute.xlu0 %3991 }
 0x6dd   : > { %v3918_v49 = vadd.f32 %v8939_v33, %v15719_v36  ;;  %v8940_v14 = vpop.f32.mrb[64].mxu1  ;;  %v4047_v60 = vsel %vm2177_vm12, %v12737_v27, 0.0 }
 0x6de   : > { %v8941_v9 = vpop.f32.mrb[65].mxu1  ;;  %4048 = vadd.xlane.f32.xlu0 %v4047_v60 }
 0x6df   : > { %v12742_v29 = vadd.f32 %v3957_v21, %v3918_v49  ;;  %v8942_v43 = vadd.f32 %v8941_v9, %v8940_v14  ;;  %v15727_v14 = vld [vmem:[#allocation13_spill] sm:$0xff] }
 0x6e1   : > { %v3919_v56 = vadd.f32 %v8942_v43, %v15720_v22  ;;  %v8943_v0 = vpop.f32.mrb[66].mxu1  ;;  %v4050_v39 = vsel %vm2177_vm12, %v12742_v29, 0.0  ;;  %v3997_v43 = vpop.permute.xlu1 %3996 }
 0x6e2   : > { %v8944_v45 = vpop.f32.mrb[67].mxu1  ;;  %4051 = vadd.xlane.f32.xlu1 %v4050_v39  ;;  %v15728_v39 = vld [vmem:[#allocation12_spill] sm:$0xff] }
 0x6e3   : > { %v12747_v42 = vadd.f32 %v3962_v50, %v3919_v56  ;;  %v8945_v12 = vadd.f32 %v8944_v45, %v8943_v0 }
 0x6e5   : > { %v3920_v59 = vadd.f32 %v8945_v12, %v15721_v1  ;;  %v8946_v25 = vpop.f32.mrb[68].mxu1  ;;  %v4053_v37 = vsel %vm2177_vm12, %v12747_v42, 0.0  ;;  %v4002_v1 = vpop.permute.xlu0 %4001 }
 0x6e6   : > { %v8947_v44 = vpop.f32.mrb[69].mxu1  ;;  %4054 = vadd.xlane.f32.xlu0 %v4053_v37 }
 0x6e7   : > { %v12752_v15 = vadd.f32 %v3967_v26, %v3920_v59  ;;  %v8948_v11 = vadd.f32 %v8947_v44, %v8946_v25  ;;  %v15729_v26 = vld [vmem:[#allocation14_spill] sm:$0xff] }
 0x6e9   : > { %v3921_v46 = vadd.f32 %v8948_v11, %v15722_v2  ;;  %v8949_v13 = vpop.f32.mrb[70].mxu1  ;;  %v4056_v18 = vsel %vm2177_vm12, %v12752_v15, 0.0 }
 0x6ea   : > { %v8950_v30 = vpop.f32.mrb[71].mxu1  ;;  %4057 = vadd.xlane.f32.xlu0 %v4056_v18 }
 0x6eb   : > { %v12757_v28 = vadd.f32 %v3972_v38, %v3921_v46  ;;  %v8951_v7 = vadd.f32 %v8950_v30, %v8949_v13  ;;  %v4007_v46 = vpop.permute.xlu1 %4006  ;;  %v15730_v30 = vld [vmem:[#allocation15_spill] sm:$0xff] }
 0x6ed   : > { %v3922_v48 = vadd.f32 %v8951_v7, %v15723_v57  ;;  %v8952_v4 = vpop.f32.mrb[72].mxu1  ;;  %v4059_v55 = vsel %vm2177_vm12, %v12757_v28, 0.0 }
 0x6ee   : > { %v8953_v54 = vpop.f32.mrb[73].mxu1  ;;  %4060 = vadd.xlane.f32.xlu1 %v4059_v55 }
 0x6ef   : > { %v12762_v24 = vadd.f32 %v3977_v16, %v3922_v48  ;;  %v8954_v23 = vadd.f32 %v8953_v54, %v8952_v4  ;;  %v4012_v4 = vpop.permute.xlu0 %4011 }
 0x6f1   : > { %v3923_v17 = vadd.f32 %v8954_v23, %v15724_v6  ;;  %v8955_v32 = vpop.f32.mrb[74].mxu1  ;;  %v4062_v35 = vsel %vm2177_vm12, %v12762_v24, 0.0  ;;  %v15732_v23 = vld [vmem:[#allocation16_spill] sm:$0xff] }
 0x6f2   : > { %v8956_v20 = vpop.f32.mrb[75].mxu1  ;;  %4063 = vadd.xlane.f32.xlu0 %v4062_v35  ;;  %v4017_v35 = vpop.permute.xlu1 %4016 }
 0x6f3   : > { %v12767_v40 = vadd.f32 %v3982_v63, %v3923_v17  ;;  %v8957_v8 = vadd.f32 %v8956_v20, %v8955_v32 }
 0x6f5   : > { %v3924_v47 = vadd.f32 %v8957_v8, %v15725_v10  ;;  %v8958_v53 = vpop.f32.mrb[76].mxu1  ;;  %v4065_v51 = vsel %vm2177_vm12, %v12767_v40, 0.0  ;;  %v15733_v10 = vld [vmem:[#allocation17_spill] sm:$0xff] }
 0x6f6   : > { %v8959_v61 = vpop.f32.mrb[77].mxu1  ;;  %4066 = vadd.xlane.f32.xlu1 %v4065_v51 }
 0x6f7   : > { %v12772_v52 = vadd.f32 %v3987_v62, %v3924_v47  ;;  %v8960_v58 = vadd.f32 %v8959_v61, %v8958_v53  ;;  %v4022_v62 = vpop.permute.xlu0 %4021 }
 0x6f9   : > { %v3925_v34 = vadd.f32 %v8960_v58, %v15726_v19  ;;  %v8961_v41 = vpop.f32.mrb[78].mxu1  ;;  %v4068_v3 = vsel %vm2177_vm12, %v12772_v52, 0.0 }
 0x6fa   : > { %v8962_v33 = vpop.f32.mrb[79].mxu1  ;;  %4069 = vadd.xlane.f32.xlu0 %v4068_v3 }
 0x6fb   : > { %v12777_v36 = vadd.f32 %v3992_v31, %v3925_v34  ;;  %v8963_v49 = vadd.f32 %v8962_v33, %v8961_v41  ;;  %v15735_v34 = vld [vmem:[#allocation18_spill] sm:$0xff]  ;;  %v4027_v31 = vpop.permute.xlu1 %4026 }
 0x6fd   : > { %v3926_v60 = vadd.f32 %v8963_v49, %v15727_v14  ;;  %v8964_v21 = vpop.f32.mrb[80].mxu1  ;;  %v4071_v9 = vsel %vm2177_vm12, %v12777_v36, 0.0 }
 0x6fe   : > { %v8965_v22 = vpop.f32.mrb[81].mxu1  ;;  %4072 = vadd.xlane.f32.xlu1 %v4071_v9 }
 0x6ff   : > { %v12782_v56 = vadd.f32 %v3997_v43, %v3926_v60  ;;  %v8966_v0 = vadd.f32 %v8965_v22, %v8964_v21 }
 0x701   : > { %v3927_v50 = vadd.f32 %v8966_v0, %v15728_v39  ;;  %v8967_v45 = vpop.f32.mrb[82].mxu1  ;;  %v4074_v12 = vsel %vm2177_vm12, %v12782_v56, 0.0 }
 0x702   : > { %v8968_v59 = vpop.f32.mrb[83].mxu1  ;;  %4075 = vadd.xlane.f32.xlu0 %v4074_v12 }
 0x703   : > { %v12787_v25 = vadd.f32 %v4002_v1, %v3927_v50  ;;  %v8969_v37 = vadd.f32 %v8968_v59, %v8967_v45 }
 0x705   : > { %v3928_v44 = vadd.f32 %v8969_v37, %v15729_v26  ;;  %v8970_v11 = vpop.f32.mrb[84].mxu1  ;;  %v4077_v2 = vsel %vm2177_vm12, %v12787_v25, 0.0 }
 0x706   : > { %v8971_v13 = vpop.f32.mrb[85].mxu1  ;;  %4078 = vadd.xlane.f32.xlu1 %v4077_v2 }
 0x707   : > { %v12792_v18 = vadd.f32 %v4007_v46, %v3928_v44  ;;  %v8972_v38 = vadd.f32 %v8971_v13, %v8970_v11 }
 0x709   : > { %v3929_v7 = vadd.f32 %v8972_v38, %v15730_v30  ;;  %v8973_v57 = vpop.f32.mrb[86].mxu1  ;;  %v4080_v48 = vsel %vm2177_vm12, %v12792_v18, 0.0 }
 0x70a   : > { %v8974_v55 = vpop.f32.mrb[87].mxu1  ;;  %4081 = vadd.xlane.f32.xlu0 %v4080_v48 }
 0x70b   : > { %v12797_v16 = vadd.f32 %v4012_v4, %v3929_v7  ;;  %v8975_v54 = vadd.f32 %v8974_v55, %v8973_v57 }
 0x70d   : > { %15731 = vst [vmem:[#allocation19_spill] sm:$0xff] %v12797_v16  ;;  %v3930_v6 = vadd.f32 %v8975_v54, %v15732_v23  ;;  %v8976_v17 = vpop.f32.mrb[88].mxu1  ;;  %v4083_v32 = vsel %vm2177_vm12, %v12797_v16, 0.0 }
 0x70e   : > { %v8977_v63 = vpop.f32.mrb[89].mxu1  ;;  %4084 = vadd.xlane.f32.xlu1 %v4083_v32 }
 0x70f   : > { %v12802_v20 = vadd.f32 %v4017_v35, %v3930_v6  ;;  %v8978_v8 = vadd.f32 %v8977_v63, %v8976_v17 }
 0x711   : > { %v3931_v47 = vadd.f32 %v8978_v8, %v15733_v10  ;;  %v8979_v53 = vpop.f32.mrb[90].mxu1  ;;  %v4086_v51 = vsel %vm2177_vm12, %v12802_v20, 0.0 }
 0x712   : > { %v8980_v61 = vpop.f32.mrb[91].mxu1  ;;  %4087 = vadd.xlane.f32.xlu0 %v4086_v51 }
 0x713   : > { %v12807_v58 = vadd.f32 %v4022_v62, %v3931_v47  ;;  %v8981_v19 = vadd.f32 %v8980_v61, %v8979_v53 }
 0x715   : > { %15734 = vst [vmem:[#allocation20_spill] sm:$0xff] %v12807_v58  ;;  %v3932_v41 = vadd.f32 %v8981_v19, %v15735_v34  ;;  %v4089_v3 = vsel %vm2177_vm12, %v12807_v58, 0.0 }
 0x716   : > { %4090 = vadd.xlane.f32.xlu1 %v4089_v3  ;;  %v4295_v3 = vld [vmem:[%s15583_s8] sm:$0xff] }
 0x717   : > { %v12812_v33 = vadd.f32 %v4027_v31, %v3932_v41  ;;  %v4296_v31 = vld [vmem:[%s15583_s8 + $0x8] sm:$0xff] }
 0x719   : > { %15736 = vst [vmem:[#allocation21_spill] sm:$0xff] %v12812_v33  ;;  %v4092_v49 = vsel %vm2177_vm12, %v12812_v33, 0.0 }
 0x71a   : > { %4093 = vadd.xlane.f32.xlu0 %v4092_v49 }
 0x76b   : > { %v4049_v14 = vpop.xlane.xlu0 %4048 }
 0x76c   : > { %v4095_v60 = vmul.f32 0.03125, %v4049_v14 }
 0x76e   : > { %v12817_v21 = vsub.f32 %v12737_v27, %v4095_v60  ;;  %v9701_v60 = vpack.c.bf16 %v4296_v31, %v4295_v3 }
 0x76f   : > { %v4052_v9 = vpop.xlane.xlu1 %4051 }
 0x770   : > { %v4096_v43 = vmul.f32 0.03125, %v4052_v9  ;;  %v4127_v22 = vmul.f32 %v12817_v21, %v12817_v21  ;;  %9702 = vmatprep.subr.bf16.mxu1 %v9701_v60 }
 0x771   : > { %9704 = vmatpush3.bf16.msra.mxu1 %v9701_v60 }
 0x772   : > { %v12822_v0 = vsub.f32 %v12742_v29, %v4096_v43  ;;  %v4143_v39 = vsel %vm2177_vm12, %v4127_v22, 0.0 }
 0x773   : > { %4144 = vadd.xlane.f32.xlu1 %v4143_v39  ;;  %v4055_v50 = vpop.xlane.xlu0 %4054  ;;  %v4297_v39 = vld [vmem:[%s15583_s8 + $0x10] sm:$0xff] }
 0x774   : > { %v4097_v45 = vmul.f32 0.03125, %v4055_v50  ;;  %v4128_v12 = vmul.f32 %v12822_v0, %v12822_v0  ;;  %v4298_v50 = vld [vmem:[%s15583_s8 + $0x18] sm:$0xff] }
 0x776   : > { %v12828_v1 = vsub.f32 %v12747_v42, %v4097_v45  ;;  %v4146_v59 = vsel %vm2177_vm12, %v4128_v12, 0.0 }
 0x777   : > { %4147 = vadd.xlane.f32.xlu0 %v4146_v59  ;;  %v4058_v37 = vpop.xlane.xlu0 %4057  ;;  %v9705_v59 = vpack.c.bf16 %v4298_v50, %v4297_v39 }
 0x778   : > { %v4098_v26 = vmul.f32 0.03125, %v4058_v37  ;;  %v4129_v44 = vmul.f32 %v12828_v1, %v12828_v1 }
 0x779   : > { %9706 = vmatprep.subr.bf16.mxu1 %v9705_v59 }
 0x77a   : > { %v12834_v11 = vsub.f32 %v12752_v15, %v4098_v26  ;;  %v4149_v2 = vsel %vm2177_vm12, %v4129_v44, 0.0  ;;  %9708 = vmatpush3.bf16.msra.mxu1 %v9705_v59 }
 0x77b   : > { %v4061_v46 = vpop.xlane.xlu1 %4060  ;;  %4150 = vadd.xlane.f32.xlu1 %v4149_v2 }
 0x77c   : > { %v4099_v13 = vmul.f32 0.03125, %v4061_v46  ;;  %v4130_v38 = vmul.f32 %v12834_v11, %v12834_v11 }
 0x77e   : > { %v12840_v30 = vsub.f32 %v12757_v28, %v4099_v13  ;;  %v4152_v7 = vsel %vm2177_vm12, %v4130_v38, 0.0 }
 0x77f   : > { %4153 = vadd.xlane.f32.xlu0 %v4152_v7  ;;  %v4064_v57 = vpop.xlane.xlu0 %4063 }
 0x780   : > { %v4100_v48 = vmul.f32 0.03125, %v4064_v57  ;;  %v4131_v4 = vmul.f32 %v12840_v30, %v12840_v30 }
 0x782   : > { %v12846_v55 = vsub.f32 %v12762_v24, %v4100_v48  ;;  %v4155_v54 = vsel %vm2177_vm12, %v4131_v4, 0.0 }
 0x783   : > { %v4067_v23 = vpop.xlane.xlu1 %4066  ;;  %4156 = vadd.xlane.f32.xlu1 %v4155_v54 }
 0x784   : > { %v4101_v6 = vmul.f32 0.03125, %v4067_v23  ;;  %v4132_v17 = vmul.f32 %v12846_v55, %v12846_v55 }
 0x786   : > { %v12852_v32 = vsub.f32 %v12767_v40, %v4101_v6  ;;  %v4158_v35 = vsel %vm2177_vm12, %v4132_v17, 0.0 }
 0x787   : > { %4159 = vadd.xlane.f32.xlu0 %v4158_v35  ;;  %v4070_v63 = vpop.xlane.xlu0 %4069 }
 0x788   : > { %v4102_v8 = vmul.f32 0.03125, %v4070_v63  ;;  %v4133_v10 = vmul.f32 %v12852_v32, %v12852_v32 }
 0x78a   : > { %v12858_v47 = vsub.f32 %v12772_v52, %v4102_v8  ;;  %v4161_v53 = vsel %vm2177_vm12, %v4133_v10, 0.0 }
 0x78b   : > { %v4073_v51 = vpop.xlane.xlu1 %4072  ;;  %4162 = vadd.xlane.f32.xlu1 %v4161_v53 }
 0x78c   : > { %v4103_v62 = vmul.f32 0.03125, %v4073_v51  ;;  %v4134_v61 = vmul.f32 %v12858_v47, %v12858_v47 }
 0x78e   : > { %v12864_v19 = vsub.f32 %v12777_v36, %v4103_v62  ;;  %v4164_v34 = vsel %vm2177_vm12, %v4134_v61, 0.0 }
 0x78f   : > { %4165 = vadd.xlane.f32.xlu0 %v4164_v34  ;;  %v4076_v41 = vpop.xlane.xlu0 %4075 }
 0x790   : > { %v4104_v49 = vmul.f32 0.03125, %v4076_v41  ;;  %v4135_v14 = vmul.f32 %v12864_v19, %v12864_v19 }
 0x792   : > { %v12876_v9 = vsub.f32 %v12782_v56, %v4104_v49  ;;  %v4167_v43 = vsel %vm2177_vm12, %v4135_v14, 0.0 }
 0x793   : > { %v4079_v22 = vpop.xlane.xlu1 %4078  ;;  %4168 = vadd.xlane.f32.xlu1 %v4167_v43 }
 0x794   : > { %v4105_v45 = vmul.f32 0.03125, %v4079_v22  ;;  %v4136_v12 = vmul.f32 %v12876_v9, %v12876_v9 }
 0x796   : > { %v12888_v37 = vsub.f32 %v12787_v25, %v4105_v45  ;;  %v4170_v26 = vsel %vm2177_vm12, %v4136_v12, 0.0 }
 0x797   : > { %4171 = vadd.xlane.f32.xlu0 %v4170_v26  ;;  %v4082_v44 = vpop.xlane.xlu0 %4081 }
 0x798   : > { %v4106_v2 = vmul.f32 0.03125, %v4082_v44  ;;  %v4137_v46 = vmul.f32 %v12888_v37, %v12888_v37 }
 0x79a   : > { %v12894_v13 = vsub.f32 %v12792_v18, %v4106_v2  ;;  %v4173_v38 = vsel %vm2177_vm12, %v4137_v46, 0.0 }
 0x79b   : > { %v4085_v7 = vpop.xlane.xlu1 %4084  ;;  %4174 = vadd.xlane.f32.xlu1 %v4173_v38  ;;  %v12927_v38 = vld [vmem:[%s15586_s11 + $0x4] ss:$0 sm:$0xff] }
 0x79c   : > { %v4107_v57 = vmul.f32 0.03125, %v4085_v7  ;;  %v4138_v48 = vmul.f32 %v12894_v13, %v12894_v13 }
 0x79e   : > { %v12900_v4 = vsub.f32 %v12797_v16, %v4107_v57  ;;  %v4176_v54 = vsel %vm2177_vm12, %v4138_v48, 0.0 }
 0x79f   : > { %4177 = vadd.xlane.f32.xlu0 %v4176_v54  ;;  %v4088_v23 = vpop.xlane.xlu0 %4087 }
 0x7a0   : > { %v4108_v6 = vmul.f32 0.03125, %v4088_v23  ;;  %v4139_v17 = vmul.f32 %v12900_v4, %v12900_v4  ;;  %v12933_v23 = vld [vmem:[%s15586_s11 + $0x5] ss:$0 sm:$0xff] }
 0x7a2   : > { %v12906_v35 = vsub.f32 %v12802_v20, %v4108_v6  ;;  %v4179_v63 = vsel %vm2177_vm12, %v4139_v17, 0.0 }
 0x7a3   : > { %v4091_v8 = vpop.xlane.xlu1 %4090  ;;  %4180 = vadd.xlane.f32.xlu1 %v4179_v63 }
 0x7a4   : > { %v4109_v10 = vmul.f32 0.03125, %v4091_v8  ;;  %v4140_v53 = vmul.f32 %v12906_v35, %v12906_v35 }
 0x7a6   : > { %v12912_v51 = vsub.f32 %v12807_v58, %v4109_v10  ;;  %v4182_v62 = vsel %vm2177_vm12, %v4140_v53, 0.0 }
 0x7a7   : > { %4183 = vadd.xlane.f32.xlu0 %v4182_v62  ;;  %v4094_v61 = vpop.xlane.xlu0 %4093 }
 0x7a8   : > { %v4110_v34 = vmul.f32 0.03125, %v4094_v61  ;;  %v4141_v41 = vmul.f32 %v12912_v51, %v12912_v51 }
 0x7aa   : > { %v12918_v3 = vsub.f32 %v12812_v33, %v4110_v34  ;;  %v4185_v31 = vsel %vm2177_vm12, %v4141_v41, 0.0 }
 0x7ab   : > { %4186 = vadd.xlane.f32.xlu1 %v4185_v31 }
 0x7ac   : > { %v4142_v49 = vmul.f32 %v12918_v3, %v12918_v3 }
 0x7ae   : > { %v4188_v14 = vsel %vm2177_vm12, %v4142_v49, 0.0 }
 0x7af   : > { %4189 = vadd.xlane.f32.xlu0 %v4188_v14 }
 0x800   : > { %v4145_v60 = vpop.xlane.xlu1 %4144 }
 0x801   : > { %v4191_v43 = vmul.f32 0.03125, %v4145_v60 }
 0x803   : > { %v4207_v22 = vadd.f32 1e-05, %v4191_v43 }
 0x804   : > { %v4148_v39 = vpop.xlane.xlu0 %4147 }
 0x805   : > { %10048 = vrsqrt.f32 %v4207_v22  ;;  %v4192_v50 = vmul.f32 0.03125, %v4148_v39 }
 0x807   : > { %v4208_v45 = vadd.f32 1e-05, %v4192_v50 }
 0x808   : > { %v4151_v12 = vpop.xlane.xlu1 %4150 }
 0x809   : > { %10050 = vrsqrt.f32 %v4208_v45  ;;  %v4193_v59 = vmul.f32 0.03125, %v4151_v12 }
 0x80b   : > { %v4209_v26 = vadd.f32 1e-05, %v4193_v59 }
 0x80c   : > { %v4154_v44 = vpop.xlane.xlu0 %4153 }
 0x80d   : > { %10052 = vrsqrt.f32 %v4209_v26  ;;  %v4194_v2 = vmul.f32 0.03125, %v4154_v44 }
 0x80f   : > { %v10049_v46 = vpop.eup %10048  ;;  %v4210_v7 = vadd.f32 1e-05, %v4194_v2 }
 0x810   : > { %v4157_v57 = vpop.xlane.xlu1 %4156  ;;  %v4239_v48 = vmul.f32 %v10049_v46, %v12817_v21 }
 0x811   : > { %10054 = vrsqrt.f32 %v4210_v7  ;;  %v4195_v54 = vmul.f32 0.03125, %v4157_v57 }
 0x812   : > { %v4259_v6 = vmul.f32 %v12927_v38, %v4239_v48 }
 0x813   : > { %v10051_v17 = vpop.eup %10050  ;;  %v4211_v63 = vadd.f32 1e-05, %v4195_v54 }
 0x814   : > { %v4240_v8 = vmul.f32 %v10051_v17, %v12822_v0  ;;  %v4160_v10 = vpop.xlane.xlu0 %4159  ;;  %v4279_v53 = vadd.f32 %v12933_v23, %v4259_v6 }
 0x815   : > { %10056 = vrsqrt.f32 %v4211_v63  ;;  %v4196_v62 = vmul.f32 0.03125, %v4160_v10 }
 0x816   : > { %v4260_v21 = vmul.f32 %v12927_v38, %v4240_v8  ;;  %9336 = vmatprep.mubr.msk.f32.mxu1 %vm2177_vm12, %v4279_v53 }
 0x817   : > { %v10053_v61 = vpop.eup %10052  ;;  %v4212_v34 = vadd.f32 1e-05, %v4196_v62 }
 0x818   : > { %v4163_v41 = vpop.xlane.xlu1 %4162  ;;  %v4280_v31 = vadd.f32 %v12933_v23, %v4260_v21  ;;  %v4241_v49 = vmul.f32 %v10053_v61, %v12828_v1 }
 0x819   : > { %10058 = vrsqrt.f32 %v4212_v34  ;;  %v4197_v14 = vmul.f32 0.03125, %v4163_v41 }
 0x81a   : > { %9337 = vmatmul.mubr.msk.f32.vlgmr.msra.gmra.mrb[92].mxu1 %vm2177_vm12, %v4280_v31  ;;  %v4261_v0 = vmul.f32 %v12927_v38, %v4241_v49 }
 0x81b   : > { %v10055_v60 = vpop.eup %10054  ;;  %v4213_v43 = vadd.f32 1e-05, %v4197_v14 }
 0x81c   : > { %v4166_v22 = vpop.xlane.xlu0 %4165  ;;  %v4281_v39 = vadd.f32 %v12933_v23, %v4261_v0  ;;  %v4242_v50 = vmul.f32 %v10055_v60, %v12834_v11 }
 0x81d   : > { %10060 = vrsqrt.f32 %v4213_v43  ;;  %v4198_v45 = vmul.f32 0.03125, %v4166_v22 }
 0x81e   : > { %9339 = vmatprep.mubr.msk.f32.mxu1 %vm2177_vm12, %v4281_v39  ;;  %v4262_v12 = vmul.f32 %v12927_v38, %v4242_v50 }
 0x81f   : > { %v10057_v1 = vpop.eup %10056  ;;  %v4214_v59 = vadd.f32 1e-05, %v4198_v45 }
 0x820   : > { %v4169_v26 = vpop.xlane.xlu1 %4168  ;;  %v4282_v44 = vadd.f32 %v12933_v23, %v4262_v12  ;;  %v4243_v2 = vmul.f32 %v10057_v1, %v12840_v30 }
 0x821   : > { %10062 = vrsqrt.f32 %v4214_v59  ;;  %v4199_v46 = vmul.f32 0.03125, %v4169_v26 }
 0x822   : > { %9340 = vmatmul.mubr.msk.f32.gmra.mrb[94].mxu1 %vm2177_vm12, %v4282_v44  ;;  %v4263_v7 = vmul.f32 %v12927_v38, %v4243_v2 }
 0x823   : > { %v10059_v11 = vpop.eup %10058  ;;  %v4215_v57 = vadd.f32 1e-05, %v4199_v46 }
 0x824   : > { %v4172_v48 = vpop.xlane.xlu0 %4171  ;;  %v4283_v54 = vadd.f32 %v12933_v23, %v4263_v7  ;;  %v4244_v6 = vmul.f32 %v10059_v11, %v12846_v55 }
 0x825   : > { %10064 = vrsqrt.f32 %v4215_v57  ;;  %v4200_v17 = vmul.f32 0.03125, %v4172_v48 }
 0x826   : > { %9342 = vmatprep.mubr.msk.f32.mxu1 %vm2177_vm12, %v4283_v54  ;;  %v4264_v63 = vmul.f32 %v12927_v38, %v4244_v6 }
 0x827   : > { %v10061_v30 = vpop.eup %10060  ;;  %v4216_v8 = vadd.f32 1e-05, %v4200_v17 }
 0x828   : > { %v4175_v10 = vpop.xlane.xlu1 %4174  ;;  %v4284_v53 = vadd.f32 %v12933_v23, %v4264_v63  ;;  %v4245_v62 = vmul.f32 %v10061_v30, %v12852_v32 }
 0x829   : > { %10066 = vrsqrt.f32 %v4216_v8  ;;  %v4201_v21 = vmul.f32 0.03125, %v4175_v10 }
 0x82a   : > { %9343 = vmatmul.mubr.msk.f32.gmra.mrb[96].mxu1 %vm2177_vm12, %v4284_v53  ;;  %v4265_v61 = vmul.f32 %v12927_v38, %v4245_v62 }
 0x82b   : > { %v10063_v55 = vpop.eup %10062  ;;  %v4217_v34 = vadd.f32 1e-05, %v4201_v21 }
 0x82c   : > { %v4178_v41 = vpop.xlane.xlu0 %4177  ;;  %v4285_v31 = vadd.f32 %v12933_v23, %v4265_v61  ;;  %v4246_v49 = vmul.f32 %v10063_v55, %v12858_v47 }
 0x82d   : > { %10068 = vrsqrt.f32 %v4217_v34  ;;  %v4202_v14 = vmul.f32 0.03125, %v4178_v41 }
 0x82e   : > { %9345 = vmatprep.mubr.msk.f32.mxu1 %vm2177_vm12, %v4285_v31  ;;  %v4266_v0 = vmul.f32 %v12927_v38, %v4246_v49 }
 0x82f   : > { %v10065_v32 = vpop.eup %10064  ;;  %v4218_v60 = vadd.f32 1e-05, %v4202_v14 }
 0x830   : > { %v4181_v43 = vpop.xlane.xlu1 %4180  ;;  %v4286_v22 = vadd.f32 %v12933_v23, %v4266_v0  ;;  %v4247_v39 = vmul.f32 %v10065_v32, %v12864_v19 }
 0x831   : > { %10070 = vrsqrt.f32 %v4218_v60  ;;  %v4203_v50 = vmul.f32 0.03125, %v4181_v43 }
 0x832   : > { %9346 = vmatmul.mubr.msk.f32.gmra.mrb[98].mxu1 %vm2177_vm12, %v4286_v22  ;;  %v4267_v45 = vmul.f32 %v12927_v38, %v4247_v39  ;;  %v4930_v22 = vld [vmem:[%s15585_s10 + $0x8] sm:$0xff] }
 0x833   : > { %v10067_v47 = vpop.eup %10066  ;;  %v4219_v12 = vadd.f32 1e-05, %v4203_v50  ;;  %v4933_v50 = vld [vmem:[%s15585_s10 + $0x20] sm:$0xff] }
 0x834   : > { %v4184_v1 = vpop.xlane.xlu0 %4183  ;;  %v4287_v59 = vadd.f32 %v12933_v23, %v4267_v45  ;;  %v4248_v26 = vmul.f32 %v10067_v47, %v12876_v9  ;;  %v4934_v45 = vld [vmem:[%s15585_s10 + $0x28] sm:$0xff] }
 0x835   : > { %10072 = vrsqrt.f32 %v4219_v12  ;;  %v4204_v44 = vmul.f32 0.03125, %v4184_v1  ;;  %v9717_v47 = vpack.c.bf16 %v4934_v45, %v4933_v50  ;;  %v4935_v12 = vld [vmem:[%s15585_s10 + $0x30] sm:$0xff]  ;;  %v4936_v1 = vld [vmem:[%s15585_s10 + $0x38] sm:$0xff] }
 0x836   : > { %9348 = vmatprep.mubr.msk.f32.mxu1 %vm2177_vm12, %v4287_v59  ;;  %v4268_v2 = vmul.f32 %v12927_v38, %v4248_v26  ;;  %v9721_v59 = vpack.c.bf16 %v4936_v1, %v4935_v12  ;;  %v13025_v26 = vld [vmem:[%s15584_s9] ss:$0 sm:$0xff] }
 0x837   : > { %v10069_v19 = vpop.eup %10068  ;;  %v4220_v46 = vadd.f32 1e-05, %v4204_v44 }
 0x838   : > { %v4187_v7 = vpop.xlane.xlu1 %4186  ;;  %v4288_v11 = vadd.f32 %v12933_v23, %v4268_v2  ;;  %v4249_v57 = vmul.f32 %v10069_v19, %v12888_v37 }
 0x839   : > { %10074 = vrsqrt.f32 %v4220_v46  ;;  %v4205_v48 = vmul.f32 0.03125, %v4187_v7 }
 0x83a   : > { %9349 = vmatmul.mubr.msk.f32.gmra.mrb[100].mxu1 %vm2177_vm12, %v4288_v11  ;;  %v4269_v54 = vmul.f32 %v12927_v38, %v4249_v57 }
 0x83b   : > { %v10071_v9 = vpop.eup %10070  ;;  %v4221_v6 = vadd.f32 1e-05, %v4205_v48 }
 0x83c   : > { %v4190_v17 = vpop.xlane.xlu0 %4189  ;;  %v4289_v63 = vadd.f32 %v12933_v23, %v4269_v54  ;;  %v4250_v30 = vmul.f32 %v10071_v9, %v12894_v13 }
 0x83d   : > { %10076 = vrsqrt.f32 %v4221_v6  ;;  %v4206_v8 = vmul.f32 0.03125, %v4190_v17 }
 0x83e   : > { %9351 = vmatprep.mubr.msk.f32.mxu1 %vm2177_vm12, %v4289_v63  ;;  %v4270_v10 = vmul.f32 %v12927_v38, %v4250_v30 }
 0x83f   : > { %v10073_v37 = vpop.eup %10072  ;;  %v4222_v53 = vadd.f32 1e-05, %v4206_v8 }
 0x840   : > { %v4290_v62 = vadd.f32 %v12933_v23, %v4270_v10  ;;  %v4251_v21 = vmul.f32 %v10073_v37, %v12900_v4 }
 0x841   : > { %10078 = vrsqrt.f32 %v4222_v53 }
 0x842   : > { %9352 = vmatmul.mubr.msk.f32.gmra.mrb[102].mxu1 %vm2177_vm12, %v4290_v62  ;;  %v4271_v61 = vmul.f32 %v12927_v38, %v4251_v21 }
 0x843   : > { %v10075_v55 = vpop.eup %10074 }
 0x844   : > { %v4291_v13 = vadd.f32 %v12933_v23, %v4271_v61  ;;  %v4252_v34 = vmul.f32 %v10075_v55, %v12906_v35 }
 0x846   : > { %9354 = vmatprep.mubr.msk.f32.mxu1 %vm2177_vm12, %v4291_v13  ;;  %v4272_v41 = vmul.f32 %v12927_v38, %v4252_v34 }
 0x847   : > { %v10077_v31 = vpop.eup %10076 }
 0x848   : > { %v4292_v49 = vadd.f32 %v12933_v23, %v4272_v41  ;;  %v4253_v14 = vmul.f32 %v10077_v31, %v12912_v51  ;;  %v4929_v51 = vld [vmem:[%s15585_s10] sm:$0xff] }
 0x849   : > { %v9709_v39 = vpack.c.bf16 %v4930_v22, %v4929_v51 }
 0x84a   : > { %9355 = vmatmul.mubr.msk.f32.gmra.mrb[104].mxu1 %vm2177_vm12, %v4292_v49  ;;  %v4273_v4 = vmul.f32 %v12927_v38, %v4253_v14 }
 0x84b   : > { %v10079_v0 = vpop.eup %10078  ;;  %9710 = vmatprep.subr.bf16.mxu1 %v9709_v39 }
 0x84c   : > { %v4293_v32 = vadd.f32 %v12933_v23, %v4273_v4  ;;  %v4254_v60 = vmul.f32 %v10079_v0, %v12918_v3  ;;  %9712 = vmatpush3.bf16.msra.mxu1 %v9709_v39  ;;  %v4931_v3 = vld [vmem:[%s15585_s10 + $0x10] sm:$0xff] }
 0x84e   : > { %9357 = vmatprep.mubr.msk.f32.mxu1 %vm2177_vm12, %v4293_v32  ;;  %v4274_v35 = vmul.f32 %v12927_v38, %v4254_v60  ;;  %v4932_v38 = vld [vmem:[%s15585_s10 + $0x18] sm:$0xff] }
 0x850   : > { %v4294_v43 = vadd.f32 %v12933_v23, %v4274_v35  ;;  %v9713_v23 = vpack.c.bf16 %v4932_v38, %v4931_v3 }
 0x852   : > { %9358 = vmatmul.mubr.msk.f32.gmra.mrb[106].mxu1 %vm2177_vm12, %v4294_v43  ;;  %9714 = vmatprep.subr.bf16.mxu1 %v9713_v23 }
 0x853   : > { %9716 = vmatpush3.bf16.msra.mxu1 %v9713_v23 }
 0x854   : > { %9718 = vmatprep.subr.bf16.mxu1 %v9717_v47 }
 0x857   : > { %9720 = vmatpush3.bf16.msra.mxu1 %v9717_v47 }
 0x858   : > { %9722 = vmatprep.subr.bf16.mxu1 %v9721_v59 }
 0x85b   : > { %9724 = vmatpush3.bf16.msra.mxu1 %v9721_v59 }
 0x8ed   : > { %v9338_v44 = vpop.f32.mrb[92].mxu1 }
 0x8ee   : > { %v4424_v2 = vadd.f32 %v9338_v44, %v13025_v26  ;;  %v4418_v19 = vpop.f32.mrb[93].mxu1 }
 0x8ef   : > { %v4419_v46 = vadd.f32 %v13025_v26, %v4418_v19 }
 0x8f0   : > { %v4514_v7 = vmul.f32 0.70710677, %v4424_v2  ;;  %v13043_v43 = vmul.f32 0.5, %v4424_v2 }
 0x8f1   : > { %v4513_v11 = vmul.f32 0.70710677, %v4419_v46  ;;  %v13053_v38 = vmul.f32 0.5, %v4419_v46 }
 0x8f2   : > { %v4562_v57 = vand.u32 2147483647, %v4514_v7  ;;  %vm4530_vm15 = vcmp.ge.f32.partialorder %v4514_v7, 0.0 }
 0x8f3   : > { %v4561_v48 = vand.u32 2147483647, %v4513_v11  ;;  %vm4529_vm0 = vcmp.ge.f32.partialorder %v4513_v11, 0.0  ;;  %v13051_v3 = vsel %vm4530_vm15, 1.0, %v15669_v5 }
 0x8f4   : > { %v4578_v54 = vmul.f32 0.3275911, %v4562_v57  ;;  %v4786_v21 = vsub.f32 0.0, %v4562_v57  ;;  %v13061_v1 = vsel %vm4529_vm0, 1.0, %v15669_v5 }
 0x8f5   : > { %v4577_v9 = vmul.f32 0.3275911, %v4561_v48  ;;  %v9341_v6 = vpop.f32.mrb[94].mxu1  ;;  %v4785_v55 = vsub.f32 0.0, %v4561_v48 }
 0x8f6   : > { %v4594_v17 = vadd.f32 1.0, %v4578_v54  ;;  %v4434_v63 = vadd.f32 %v9341_v6, %v13025_v26  ;;  %v4428_v30 = vpop.f32.mrb[95].mxu1  ;;  %v4802_v4 = vmul.f32 %v4786_v21, %v4562_v57 }
 0x8f7   : > { %v4593_v8 = vadd.f32 1.0, %v4577_v9  ;;  %v4429_v10 = vadd.f32 %v13025_v26, %v4428_v30  ;;  %v4801_v60 = vmul.f32 %v4785_v55, %v4561_v48 }
 0x8f8   : > { %10080 = vrcp.f32 %v4594_v17  ;;  %v4516_v37 = vmul.f32 0.70710677, %v4434_v63  ;;  %v4819_v12 = vmul.f32 1.442695, %v4802_v4  ;;  %v13063_v59 = vmul.f32 0.5, %v4434_v63 }
 0x8f9   : > { %10082 = vrcp.f32 %v4593_v8  ;;  %v13031_v53 = vmul.f32 0.70710677, %v4429_v10  ;;  %v4817_v2 = vmul.f32 1.442695, %v4801_v60 }
 0x8fa   : > { %v4564_v62 = vand.u32 2147483647, %v4516_v37  ;;  %vm4532_vm1 = vcmp.ge.f32.partialorder %v4516_v37, 0.0 }
 0x8fb   : > { %v4563_v61 = vand.u32 2147483647, %v13031_v53  ;;  %vm4531_vm2 = vcmp.ge.f32.partialorder %v13031_v53, 0.0 }
 0x8fc   : > { %v4580_v13 = vmul.f32 0.3275911, %v4564_v62  ;;  %v4788_v51 = vsub.f32 0.0, %v4564_v62 }
 0x8fd   : > { %v4579_v34 = vmul.f32 0.3275911, %v4563_v61  ;;  %v9344_v41 = vpop.f32.mrb[96].mxu1  ;;  %v4787_v23 = vsub.f32 0.0, %v4563_v61 }
 0x8fe   : > { %v4596_v31 = vadd.f32 1.0, %v4580_v13  ;;  %v13035_v49 = vadd.f32 %v9344_v41, %v13025_v26  ;;  %v4438_v14 = vpop.f32.mrb[97].mxu1  ;;  %v4804_v7 = vmul.f32 %v4788_v51, %v4564_v62  ;;  %v13075_v62 = vmul.f32 0.5, %v4429_v10 }
 0x8ff   : > { %v4595_v0 = vadd.f32 1.0, %v4579_v34  ;;  %v13038_v32 = vadd.f32 %v13025_v26, %v4438_v14  ;;  %v4803_v9 = vmul.f32 %v4787_v23, %v4563_v61  ;;  %v13082_v13 = vsel %vm4532_vm1, 1.0, %v15669_v5 }
 0x900   : > { %10084 = vrcp.f32 %v4596_v31  ;;  %v13041_v35 = vmul.f32 0.70710677, %v13035_v49  ;;  %v4823_v4 = vmul.f32 1.442695, %v4804_v7 }
 0x901   : > { %10086 = vrcp.f32 %v4595_v0  ;;  %v13046_v22 = vmul.f32 0.70710677, %v13038_v32  ;;  %v4821_v10 = vmul.f32 1.442695, %v4803_v9 }
 0x902   : > { %v13048_v39 = vpop.eup %10080  ;;  %v4566_v50 = vand.u32 2147483647, %v13041_v35  ;;  %10088 = vpow2.f32 %v4819_v12  ;;  %vm4534_vm4 = vcmp.ge.f32.partialorder %v13041_v35, 0.0 }
 0x903   : > { %v13056_v45 = vpop.eup %10082  ;;  %v4642_v47 = vmul.f32 1.0614054, %v13048_v39  ;;  %v13067_v57 = vand.u32 2147483647, %v13046_v22  ;;  %vm4533_vm5 = vcmp.ge.f32.partialorder %v13046_v22, 0.0 }
 0x904   : > { %v4641_v44 = vmul.f32 1.0614054, %v13056_v45  ;;  %v4582_v19 = vmul.f32 0.3275911, %v4566_v50  ;;  %v4790_v30 = vsub.f32 0.0, %v4566_v50  ;;  %v4549_v35 = vsel %vm4533_vm5, 1.0, %v15669_v5 }
 0x905   : > { %v4658_v46 = vadd.f32 -1.4531521, %v4642_v47  ;;  %v9347_v48 = vpop.f32.mrb[98].mxu1  ;;  %v4581_v8 = vmul.f32 0.3275911, %v13067_v57 }
 0x906   : > { %v4657_v54 = vadd.f32 -1.4531521, %v4641_v44  ;;  %v4598_v6 = vadd.f32 1.0, %v4582_v19  ;;  %v13070_v11 = vadd.f32 %v9347_v48, %v13025_v26  ;;  %v4448_v17 = vpop.f32.mrb[99].mxu1  ;;  %v4806_v23 = vmul.f32 %v4790_v30, %v4566_v50 }
 0x907   : > { %v4674_v63 = vmul.f32 %v13048_v39, %v4658_v46  ;;  %v13078_v55 = vadd.f32 %v13025_v26, %v4448_v17  ;;  %v4597_v34 = vadd.f32 1.0, %v4581_v8  ;;  %v4789_v17 = vsub.f32 0.0, %v13067_v57 }
 0x908   : > { %v4673_v21 = vmul.f32 %v13056_v45, %v4657_v54  ;;  %10090 = vrcp.f32 %v4598_v6  ;;  %v13085_v41 = vmul.f32 0.70710677, %v13070_v11  ;;  %v4827_v6 = vmul.f32 1.442695, %v4806_v23 }
 0x909   : > { %v4690_v61 = vadd.f32 1.4214138, %v4674_v63  ;;  %10092 = vpow2.f32 %v4817_v2  ;;  %v13097_v44 = vmul.f32 0.70710677, %v13078_v55 }
 0x90a   : > { %v13087_v31 = vpop.eup %10084  ;;  %v4689_v14 = vadd.f32 1.4214138, %v4673_v21  ;;  %10094 = vrcp.f32 %v4597_v34  ;;  %v4568_v12 = vand.u32 2147483647, %v13085_v41  ;;  %vm4536_vm6 = vcmp.ge.f32.partialorder %v13085_v41, 0.0 }
 0x90b   : > { %v13089_v0 = vpop.eup %10086  ;;  %v4706_v60 = vmul.f32 %v13048_v39, %v4690_v61  ;;  %v4644_v51 = vmul.f32 1.0614054, %v13087_v31  ;;  %10096 = vpow2.f32 %v4823_v4  ;;  %vm4535_vm7 = vcmp.ge.f32.partialorder %v13097_v44, 0.0 }
 0x90c   : > { %v4705_v37 = vmul.f32 %v13056_v45, %v4689_v14  ;;  %v4643_v47 = vmul.f32 1.0614054, %v13089_v0  ;;  %v4584_v54 = vmul.f32 0.3275911, %v4568_v12  ;;  %v4792_v61 = vsub.f32 0.0, %v4568_v12  ;;  %v10089_v34 = vpop.eup %10088 }
 0x90d   : > { %v4722_v2 = vadd.f32 -0.28449672, %v4706_v60  ;;  %v4660_v19 = vadd.f32 -1.4531521, %v4644_v51  ;;  %v9350_v46 = vpop.f32.mrb[100].mxu1  ;;  %10098 = vpow2.f32 %v4821_v10  ;;  %v4805_v10 = vmul.f32 %v4789_v17, %v13067_v57 }
 0x90e   : > { %v4721_v7 = vadd.f32 -0.28449672, %v4705_v37  ;;  %v4659_v48 = vadd.f32 -1.4531521, %v4643_v47  ;;  %v13103_v63 = vpop.f32.mrb[101].mxu1  ;;  %v4600_v21 = vadd.f32 1.0, %v4584_v54 }
 0x90f   : > { %v4738_v50 = vmul.f32 %v13048_v39, %v4722_v2  ;;  %v4676_v9 = vmul.f32 %v13087_v31, %v4660_v19  ;;  %v13108_v60 = vand.u32 2147483647, %v13097_v44  ;;  %v13115_v37 = vsel %vm4531_vm2, 1.0, %v15669_v5 }
 0x910   : > { %v4737_v30 = vmul.f32 %v13056_v45, %v4721_v7  ;;  %v4675_v8 = vmul.f32 %v13089_v0, %v4659_v48  ;;  %10100 = vrcp.f32 %v4600_v21 }
 0x911   : > { %v4754_v14 = vadd.f32 0.2548296, %v4738_v50  ;;  %v4692_v4 = vadd.f32 1.4214138, %v4676_v9  ;;  %10102 = vpow2.f32 %v4827_v6  ;;  %v4583_v53 = vmul.f32 0.3275911, %v13108_v60 }
 0x912   : > { %v13110_v51 = vpop.eup %10090  ;;  %v4753_v23 = vadd.f32 0.2548296, %v4737_v30  ;;  %v4691_v47 = vadd.f32 1.4214138, %v4675_v8 }
 0x913   : > { %v4770_v2 = vmul.f32 %v13048_v39, %v4754_v14  ;;  %v4708_v19 = vmul.f32 %v13087_v31, %v4692_v4  ;;  %v4646_v7 = vmul.f32 1.0614054, %v13110_v51  ;;  %v10093_v48 = vpop.eup %10092  ;;  %v4808_v39 = vmul.f32 %v4792_v61, %v4568_v12 }
 0x914   : > { %v4769_v54 = vmul.f32 %v13056_v45, %v4753_v23  ;;  %v4707_v50 = vmul.f32 %v13089_v0, %v4691_v47  ;;  %v13124_v9 = vpop.eup %10094  ;;  %v4599_v17 = vadd.f32 1.0, %v4583_v53 }
 0x915   : > { %v4850_v30 = vmul.f32 %v10089_v34, %v4770_v2  ;;  %v4724_v8 = vadd.f32 -0.28449672, %v4708_v19  ;;  %v4662_v21 = vadd.f32 -1.4531521, %v4646_v7  ;;  %v13126_v14 = vpop.f32.mrb[102].mxu1  ;;  %v13134_v34 = vadd.f32 %v9350_v46, %v13025_v26  ;;  %v10097_v2 = vpop.eup %10096 }
 0x916   : > { %v4849_v4 = vmul.f32 %v10093_v48, %v4769_v54  ;;  %v4723_v58 = vadd.f32 -0.28449672, %v4707_v50  ;;  %v4645_v57 = vmul.f32 1.0614054, %v13124_v9  ;;  %v13129_v45 = vpop.f32.mrb[103].mxu1  ;;  %10104 = vrcp.f32 %v4599_v17 }
 0x917   : > { %v4866_v23 = vsub.f32 1.0, %v4850_v30  ;;  %v4740_v6 = vmul.f32 %v13087_v31, %v4724_v8  ;;  %v4678_v47 = vmul.f32 %v13110_v51, %v4662_v21  ;;  %v4825_v50 = vmul.f32 1.442695, %v4805_v10  ;;  %v10099_v33 = vpop.eup %10098 }
 0x918   : > { %v4865_v12 = vsub.f32 1.0, %v4849_v4  ;;  %v4739_v61 = vmul.f32 %v13089_v0, %v4723_v58  ;;  %v4661_v19 = vadd.f32 -1.4531521, %v4645_v57  ;;  %v4831_v21 = vmul.f32 1.442695, %v4808_v39 }
 0x919   : > { %v4882_v7 = vmul.f32 %v4866_v23, %v13051_v3  ;;  %v4756_v48 = vadd.f32 0.2548296, %v4740_v6  ;;  %v4694_v54 = vadd.f32 1.4214138, %v4678_v47  ;;  %v13143_v58 = vmul.f32 0.70710677, %v13134_v34 }
 0x91a   : > { %v4881_v53 = vmul.f32 %v4865_v12, %v13061_v1  ;;  %v4755_v30 = vadd.f32 0.2548296, %v4739_v61  ;;  %v4677_v8 = vmul.f32 %v13124_v9, %v4661_v19  ;;  %v13145_v57 = vpop.eup %10100  ;;  %v4791_v1 = vsub.f32 0.0, %v13108_v60 }
 0x91b   : > { %v4898_v46 = vadd.f32 1.0, %v4882_v7  ;;  %v4772_v16 = vmul.f32 %v13087_v31, %v4756_v48  ;;  %v4710_v4 = vmul.f32 %v13110_v51, %v4694_v54  ;;  %10106 = vpow2.f32 %v4825_v50  ;;  %v10103_v31 = vpop.eup %10102 }
 0x91c   : > { %v4897_v3 = vadd.f32 1.0, %v4881_v53  ;;  %v4771_v10 = vmul.f32 %v13089_v0, %v4755_v30  ;;  %v4693_v17 = vadd.f32 1.4214138, %v4677_v8  ;;  %v4648_v39 = vmul.f32 1.0614054, %v13145_v57 }
 0x91d   : > { %v4852_v23 = vmul.f32 %v10097_v2, %v4772_v16  ;;  %v4726_v6 = vadd.f32 -0.28449672, %v4710_v4  ;;  %v13150_v47 = vpop.f32.mrb[104].mxu1  ;;  %v4914_v12 = vmul.f32 %v4898_v46, %v13043_v43  ;;  %v13159_v2 = vand.u32 2147483647, %v13143_v58 }
 0x91e   : > { %v4913_v61 = vmul.f32 %v4897_v3, %v13053_v38  ;;  %v4851_v19 = vmul.f32 %v10099_v33, %v4771_v10  ;;  %v4709_v7 = vmul.f32 %v13124_v9, %v4693_v17  ;;  %v13155_v48 = vpop.f32.mrb[105].mxu1  ;;  %v4664_v16 = vadd.f32 -1.4531521, %v4648_v39 }
 0x91f   : > { %v4868_v0 = vsub.f32 1.0, %v4852_v23  ;;  %v4742_v54 = vmul.f32 %v13110_v51, %v4726_v6  ;;  %v4807_v43 = vmul.f32 %v4791_v1, %v13108_v60  ;;  %v4586_v8 = vmul.f32 0.3275911, %v13159_v2 }
 0x920   : > { %v4867_v50 = vsub.f32 1.0, %v4851_v19  ;;  %v4725_v53 = vadd.f32 -0.28449672, %v4709_v7  ;;  %9376 = vmatprep.mubr.msk.f32.mxu1 %vm4937_vm3, %v4913_v61  ;;  %v4680_v30 = vmul.f32 %v13145_v57, %v4664_v16  ;;  %v13168_v46 = vpop.eup %10104  ;;  %10108 = vpow2.f32 %v4831_v21 }
 0x921   : > { %v4884_v33 = vmul.f32 %v4868_v0, %v13082_v13  ;;  %v4758_v38 = vadd.f32 0.2548296, %v4742_v54  ;;  %9377 = vmatmul.mubr.msk.f32.vlgmr.msra.gmra.mrb[108].mxu1 %vm4937_vm3, %v4914_v12  ;;  %v13174_v60 = vadd.f32 %v13025_v26, %v13103_v63  ;;  %v4647_v1 = vmul.f32 1.0614054, %v13168_v46 }
 0x922   : > { %v4883_v4 = vmul.f32 %v4867_v50, %v13115_v37  ;;  %v4741_v3 = vmul.f32 %v13124_v9, %v4725_v53  ;;  %v4696_v17 = vadd.f32 1.4214138, %v4680_v30  ;;  %v4602_v39 = vadd.f32 1.0, %v4586_v8 }
 0x923   : > { %v4900_v10 = vadd.f32 1.0, %v4884_v33  ;;  %v4774_v13 = vmul.f32 %v13110_v51, %v4758_v38  ;;  %v13180_v12 = vadd.f32 %v13126_v14, %v13025_v26  ;;  %v4663_v61 = vadd.f32 -1.4531521, %v4647_v1 }
 0x924   : > { %v4899_v23 = vadd.f32 1.0, %v4883_v4  ;;  %v4757_v6 = vadd.f32 0.2548296, %v4741_v3  ;;  %v4712_v21 = vmul.f32 %v13145_v57, %v4696_v17  ;;  %v4829_v19 = vmul.f32 1.442695, %v4807_v43 }
 0x925   : > { %v4854_v37 = vmul.f32 %v10103_v31, %v4774_v13  ;;  %v13183_v63 = vpop.f32.mrb[106].mxu1  ;;  %v4916_v7 = vmul.f32 %v4900_v10, %v13063_v59  ;;  %10110 = vrcp.f32 %v4602_v39  ;;  %v10107_v16 = vpop.eup %10106  ;;  %v4679_v31 = vmul.f32 %v13168_v46, %v4663_v61 }
 0x926   : > { %v4915_v51 = vmul.f32 %v4899_v23, %v13075_v62  ;;  %v4773_v0 = vmul.f32 %v13124_v9, %v4757_v6  ;;  %v13188_v54 = vpop.f32.mrb[107].mxu1  ;;  %v4728_v14 = vadd.f32 -0.28449672, %v4712_v21  ;;  %v13192_v53 = vmul.f32 0.70710677, %v13174_v60 }
 0x927   : > { %v4870_v50 = vsub.f32 1.0, %v4854_v37  ;;  %v4550_v43 = vsel %vm4534_vm4, 1.0, %v15669_v5  ;;  %v13199_v62 = vmul.f32 0.70710677, %v13180_v12  ;;  %v4695_v38 = vadd.f32 1.4214138, %v4679_v31 }
 0x928   : > { %v4853_v59 = vmul.f32 %v10107_v16, %v4773_v0  ;;  %9379 = vmatprep.mubr.msk.f32.mxu1 %vm4937_vm3, %v4915_v51  ;;  %v4744_v33 = vmul.f32 %v13145_v57, %v4728_v14  ;;  %10112 = vpow2.f32 %v4829_v19  ;;  %v4569_v8 = vand.u32 2147483647, %v13192_v53 }
 0x929   : > { %v4886_v9 = vmul.f32 %v4870_v50, %v4550_v43  ;;  %9380 = vmatmul.mubr.msk.f32.gmra.mrb[110].mxu1 %vm4937_vm3, %v4916_v7  ;;  %v4711_v22 = vmul.f32 %v13168_v46, %v4695_v38  ;;  %v13208_v17 = vand.u32 2147483647, %v13199_v62  ;;  %v4501_v23 = vmul.f32 0.5, %v13038_v32 }
 0x92a   : > { %v4869_v30 = vsub.f32 1.0, %v4853_v59  ;;  %v4760_v4 = vadd.f32 0.2548296, %v4744_v33  ;;  %v10109_v3 = vpop.eup %10108  ;;  %v4585_v13 = vmul.f32 0.3275911, %v4569_v8  ;;  %v13215_v19 = vadd.f32 %v13025_v26, %v13129_v45 }
 0x92b   : > { %v4902_v1 = vadd.f32 1.0, %v4886_v9  ;;  %v4727_v39 = vadd.f32 -0.28449672, %v4711_v22  ;;  %v4588_v61 = vmul.f32 0.3275911, %v13208_v17  ;;  %v4502_v7 = vmul.f32 0.5, %v13035_v49 }
 0x92c   : > { %v4885_v10 = vmul.f32 %v4869_v30, %v4549_v35  ;;  %v4776_v6 = vmul.f32 %v13145_v57, %v4760_v4  ;;  %v4601_v21 = vadd.f32 1.0, %v4585_v13  ;;  %v4794_v16 = vsub.f32 0.0, %v13159_v2 }
 0x92d   : > { %v4743_v0 = vmul.f32 %v13168_v46, %v4727_v39  ;;  %v4604_v57 = vadd.f32 1.0, %v4588_v61  ;;  %v4918_v14 = vmul.f32 %v4902_v1, %v4502_v7  ;;  %v13225_v59 = vmul.f32 0.70710677, %v13215_v19 }
 0x92e   : > { %v4901_v37 = vadd.f32 1.0, %v4885_v10  ;;  %v4856_v51 = vmul.f32 %v10109_v3, %v4776_v6  ;;  %10114 = vrcp.f32 %v4601_v21  ;;  %v13229_v49 = vadd.f32 %v13150_v47, %v13025_v26 }
 0x92f   : > { %v13220_v50 = vpop.eup %10110  ;;  %v4759_v31 = vadd.f32 0.2548296, %v4743_v0  ;;  %v4810_v38 = vmul.f32 %v4794_v16, %v13159_v2  ;;  %10116 = vrcp.f32 %v4604_v57  ;;  %v4793_v41 = vsub.f32 0.0, %v4569_v8 }
 0x930   : > { %v4917_v32 = vmul.f32 %v4901_v37, %v4501_v23  ;;  %v4650_v43 = vmul.f32 1.0614054, %v13220_v50  ;;  %v4872_v45 = vsub.f32 1.0, %v4856_v51  ;;  %v4571_v35 = vand.u32 2147483647, %v13225_v59 }
 0x931   : > { %v4775_v9 = vmul.f32 %v13168_v46, %v4759_v31  ;;  %v4552_v4 = vsel %vm4536_vm6, 1.0, %v15669_v5  ;;  %v13241_v46 = vadd.f32 %v13025_v26, %v13155_v48  ;;  %v13244_v10 = vmul.f32 0.70710677, %v13229_v49 }
 0x932   : > { %9382 = vmatprep.mubr.msk.f32.mxu1 %vm4937_vm3, %v4917_v32  ;;  %v4666_v33 = vadd.f32 -1.4531521, %v4650_v43  ;;  %v10113_v30 = vpop.eup %10112  ;;  %v4888_v3 = vmul.f32 %v4872_v45, %v4552_v4  ;;  %v4587_v2 = vmul.f32 0.3275911, %v4571_v35  ;;  %v4551_v13 = vsel %vm4535_vm7, 1.0, %v15669_v5 }
 0x933   : > { %9383 = vmatmul.mubr.msk.f32.gmra.mrb[112].mxu1 %vm4937_vm3, %v4918_v14  ;;  %v4855_v47 = vmul.f32 %v10113_v30, %v4775_v9  ;;  %v4835_v23 = vmul.f32 1.442695, %v4810_v38  ;;  %v4809_v6 = vmul.f32 %v4793_v41, %v4569_v8  ;;  %v4796_v39 = vsub.f32 0.0, %v13208_v17 }
 0x934   : > { %v4682_v22 = vmul.f32 %v13220_v50, %v4666_v33  ;;  %v4603_v37 = vadd.f32 1.0, %v4587_v2  ;;  %v4574_v21 = vand.u32 2147483647, %v13244_v10  ;;  %v13251_v7 = vmul.f32 0.70710677, %v13241_v46 }
 0x935   : > { %v4871_v44 = vsub.f32 1.0, %v4855_v47  ;;  %v4904_v0 = vadd.f32 1.0, %v4888_v3  ;;  %v4503_v16 = vmul.f32 0.5, %v13078_v55  ;;  %v4504_v31 = vmul.f32 0.5, %v13070_v11 }
 0x936   : > { %v4698_v1 = vadd.f32 1.4214138, %v4682_v22  ;;  %10118 = vrcp.f32 %v4603_v37  ;;  %v4590_v32 = vmul.f32 0.3275911, %v4574_v21  ;;  %v4833_v43 = vmul.f32 1.442695, %v4809_v6 }
 0x937   : > { %v4887_v61 = vmul.f32 %v4871_v44, %v4551_v13  ;;  %10120 = vpow2.f32 %v4835_v23  ;;  %v4812_v45 = vmul.f32 %v4796_v39, %v13208_v17  ;;  %v13263_v55 = vand.u32 2147483647, %v13251_v7 }
 0x938   : > { %v4714_v48 = vmul.f32 %v13220_v50, %v4698_v1  ;;  %v13253_v51 = vpop.eup %10114  ;;  %v4606_v9 = vadd.f32 1.0, %v4590_v32  ;;  %v4920_v4 = vmul.f32 %v4904_v0, %v4504_v31  ;;  %v13268_v11 = vadd.f32 %v13183_v63, %v13025_v26 }
 0x939   : > { %v4903_v57 = vadd.f32 1.0, %v4887_v61  ;;  %v4649_v14 = vmul.f32 1.0614054, %v13253_v51  ;;  %v13259_v33 = vpop.eup %10116  ;;  %v4795_v3 = vsub.f32 0.0, %v4571_v35  ;;  %v4589_v2 = vmul.f32 0.3275911, %v13263_v55 }
 0x93a   : > { %v4730_v8 = vadd.f32 -0.28449672, %v4714_v48  ;;  %v4652_v47 = vmul.f32 1.0614054, %v13259_v33  ;;  %10122 = vrcp.f32 %v4606_v9  ;;  %v4798_v44 = vsub.f32 0.0, %v4574_v21 }
 0x93b   : > { %v4919_v38 = vmul.f32 %v4903_v57, %v4503_v16  ;;  %v4665_v41 = vadd.f32 -1.4531521, %v4649_v14  ;;  %v13274_v1 = vmul.f32 0.70710677, %v13268_v11  ;;  %v4839_v6 = vmul.f32 1.442695, %v4812_v45 }
 0x93c   : > { %v4746_v30 = vmul.f32 %v13220_v50, %v4730_v8  ;;  %v4668_v13 = vadd.f32 -1.4531521, %v4652_v47  ;;  %v4605_v39 = vadd.f32 1.0, %v4589_v2  ;;  %10124 = vpow2.f32 %v4833_v43 }
 0x93d   : > { %v4681_v17 = vmul.f32 %v13253_v51, %v4665_v41  ;;  %9385 = vmatprep.mubr.msk.f32.mxu1 %vm4937_vm3, %v4919_v38  ;;  %v13280_v61 = vand.u32 2147483647, %v13274_v1  ;;  %v4811_v0 = vmul.f32 %v4795_v3, %v4571_v35  ;;  %v13285_v16 = vadd.f32 %v13025_v26, %v13188_v54 }
 0x93e   : > { %v4762_v22 = vadd.f32 0.2548296, %v4746_v30  ;;  %9386 = vmatmul.mubr.msk.f32.gmra.mrb[114].mxu1 %vm4937_vm3, %v4920_v4  ;;  %v4684_v37 = vmul.f32 %v13259_v33, %v4668_v13  ;;  %10126 = vrcp.f32 %v4605_v39  ;;  %v4814_v8 = vmul.f32 %v4798_v44, %v4574_v21 }
 0x93f   : > { %v4697_v23 = vadd.f32 1.4214138, %v4681_v17  ;;  %10128 = vpow2.f32 %v4839_v6  ;;  %vm4538_vm8 = vcmp.ge.f32.partialorder %v13143_v58, 0.0  ;;  %v4837_v38 = vmul.f32 1.442695, %v4811_v0 }
 0x940   : > { %v4778_v63 = vmul.f32 %v13220_v50, %v4762_v22  ;;  %v13287_v32 = vpop.eup %10118  ;;  %v4700_v57 = vadd.f32 1.4214138, %v4684_v37  ;;  %v4592_v50 = vmul.f32 0.3275911, %v13280_v61  ;;  %v13295_v30 = vmul.f32 0.70710677, %v13285_v16 }
 0x941   : > { %v4713_v48 = vmul.f32 %v13253_v51, %v4697_v23  ;;  %v10121_v14 = vpop.eup %10120  ;;  %v4651_v43 = vmul.f32 1.0614054, %v13287_v32  ;;  %vm4537_vm9 = vcmp.ge.f32.partialorder %v13192_v53, 0.0  ;;  %v4843_v4 = vmul.f32 1.442695, %v4814_v8 }
 0x942   : > { %v4858_v45 = vmul.f32 %v10121_v14, %v4778_v63  ;;  %v4716_v35 = vmul.f32 %v13259_v33, %v4700_v57  ;;  %v4608_v9 = vadd.f32 1.0, %v4592_v50  ;;  %v4797_v3 = vsub.f32 0.0, %v13263_v55 }
 0x943   : > { %v4729_v31 = vadd.f32 -0.28449672, %v4713_v48  ;;  %v4667_v54 = vadd.f32 -1.4531521, %v4651_v43  ;;  %v4554_v2 = vsel %vm4538_vm8, 1.0, %v15669_v5  ;;  %v4553_v48 = vsel %vm4537_vm9, 1.0, %v15669_v5 }
 0x944   : > { %v13297_v21 = vpop.eup %10122  ;;  %v4732_v41 = vadd.f32 -0.28449672, %v4716_v35  ;;  %10130 = vrcp.f32 %v4608_v9  ;;  %v4874_v13 = vsub.f32 1.0, %v4858_v45  ;;  %v13308_v23 = vand.u32 2147483647, %v13295_v30 }
 0x945   : > { %v4745_v26 = vmul.f32 %v13253_v51, %v4729_v31  ;;  %v4683_v22 = vmul.f32 %v13287_v32, %v4667_v54  ;;  %v4654_v17 = vmul.f32 1.0614054, %v13297_v21  ;;  %10132 = vpow2.f32 %v4837_v38 }
 0x946   : > { %v4748_v44 = vmul.f32 %v13259_v33, %v4732_v41  ;;  %v10125_v37 = vpop.eup %10124  ;;  %10134 = vpow2.f32 %v4843_v4  ;;  %v4591_v58 = vmul.f32 0.3275911, %v13308_v23  ;;  %v4890_v31 = vmul.f32 %v4874_v13, %v4554_v2 }
 0x947   : > { %v4761_v47 = vadd.f32 0.2548296, %v4745_v26  ;;  %v4699_v39 = vadd.f32 1.4214138, %v4683_v22  ;;  %v4670_v63 = vadd.f32 -1.4531521, %v4654_v17 }
 0x948   : > { %v4764_v0 = vadd.f32 0.2548296, %v4748_v44  ;;  %v13315_v57 = vpop.eup %10126  ;;  %v4607_v53 = vadd.f32 1.0, %v4591_v58  ;;  %v4800_v38 = vsub.f32 0.0, %v13280_v61  ;;  %vm4540_vm10 = vcmp.ge.f32.partialorder %v13199_v62, 0.0 }
 0x949   : > { %v4777_v6 = vmul.f32 %v13253_v51, %v4761_v47  ;;  %v4715_v50 = vmul.f32 %v13287_v32, %v4699_v39  ;;  %v4686_v14 = vmul.f32 %v13297_v21, %v4670_v63  ;;  %v4813_v51 = vmul.f32 %v4797_v3, %v13263_v55  ;;  %v10129_v35 = vpop.eup %10128 }
 0x94a   : > { %v4780_v43 = vmul.f32 %v13259_v33, %v4764_v0  ;;  %v4653_v45 = vmul.f32 1.0614054, %v13315_v57  ;;  %10136 = vrcp.f32 %v4607_v53  ;;  %v4506_v3 = vmul.f32 0.5, %v13134_v34 }
 0x94b   : > { %v4857_v8 = vmul.f32 %v10125_v37, %v4777_v6  ;;  %v4731_v26 = vadd.f32 -0.28449672, %v4715_v50  ;;  %v4702_v54 = vadd.f32 1.4214138, %v4686_v14  ;;  %v4841_v33 = vmul.f32 1.442695, %v4813_v51 }
 0x94c   : > { %v4860_v41 = vmul.f32 %v10129_v35, %v4780_v43  ;;  %v4669_v4 = vadd.f32 -1.4531521, %v4653_v45  ;;  %v4906_v2 = vadd.f32 1.0, %v4890_v31  ;;  %v4505_v13 = vmul.f32 0.5, %v13174_v60 }
 0x94d   : > { %v4873_v9 = vsub.f32 1.0, %v4857_v8  ;;  %v4747_v55 = vmul.f32 %v13287_v32, %v4731_v26  ;;  %v4718_v22 = vmul.f32 %v13297_v21, %v4702_v54  ;;  %v4816_v37 = vmul.f32 %v4800_v38, %v13280_v61 }
 0x94e   : > { %v13326_v17 = vpop.eup %10130  ;;  %v4685_v44 = vmul.f32 %v13315_v57, %v4669_v4  ;;  %v4876_v0 = vsub.f32 1.0, %v4860_v41  ;;  %10138 = vpow2.f32 %v4841_v33  ;;  %v4922_v31 = vmul.f32 %v4906_v2, %v4506_v3 }
 0x94f   : > { %v4889_v47 = vmul.f32 %v4873_v9, %v4553_v48  ;;  %v4763_v39 = vadd.f32 0.2548296, %v4747_v55  ;;  %v4734_v63 = vadd.f32 -0.28449672, %v4718_v22  ;;  %v4556_v48 = vsel %vm4540_vm10, 1.0, %v15669_v5  ;;  %v10133_v50 = vpop.eup %10132 }
 0x950   : > { %v4701_v58 = vadd.f32 1.4214138, %v4685_v44  ;;  %v4656_v8 = vmul.f32 1.0614054, %v13326_v17  ;;  %v10135_v51 = vpop.eup %10134  ;;  %v4799_v45 = vsub.f32 0.0, %v13308_v23  ;;  %vm4539_vm11 = vcmp.ge.f32.partialorder %v13225_v59, 0.0 }
 0x951   : > { %v4905_v6 = vadd.f32 1.0, %v4889_v47  ;;  %v4779_v14 = vmul.f32 %v13287_v32, %v4763_v39  ;;  %v4750_v60 = vmul.f32 %v13297_v21, %v4734_v63  ;;  %v4847_v35 = vmul.f32 1.442695, %v4816_v37 }
 0x952   : > { %v4717_v43 = vmul.f32 %v13315_v57, %v4701_v58  ;;  %v4672_v61 = vadd.f32 -1.4531521, %v4656_v8  ;;  %v4892_v9 = vmul.f32 %v4876_v0, %v4556_v48  ;;  %v4555_v4 = vsel %vm4539_vm11, 1.0, %v15669_v5 }
 0x953   : > { %v4921_v34 = vmul.f32 %v4905_v6, %v4505_v13  ;;  %v4859_v62 = vmul.f32 %v10133_v50, %v4779_v14  ;;  %v4766_v53 = vadd.f32 0.2548296, %v4750_v60  ;;  %v4815_v55 = vmul.f32 %v4799_v45, %v13308_v23 }
 0x954   : > { %v4733_v26 = vadd.f32 -0.28449672, %v4717_v43  ;;  %v4688_v32 = vmul.f32 %v13326_v17, %v4672_v61  ;;  %v10137_v41 = vpop.eup %10136  ;;  %10140 = vpow2.f32 %v4847_v35  ;;  %v4908_v2 = vadd.f32 1.0, %v4892_v9 }
 0x955   : > { %9388 = vmatprep.mubr.msk.f32.mxu1 %vm4937_vm3, %v4921_v34  ;;  %v4875_v54 = vsub.f32 1.0, %v4859_v62  ;;  %v4782_v38 = vmul.f32 %v13297_v21, %v4766_v53  ;;  %v4655_v3 = vmul.f32 1.0614054, %v10137_v41  ;;  %vm4542_vm13 = vcmp.ge.f32.partialorder %v13244_v10, 0.0 }
 0x956   : > { %9389 = vmatmul.mubr.msk.f32.gmra.mrb[116].mxu1 %vm4937_vm3, %v4922_v31  ;;  %v4749_v47 = vmul.f32 %v13315_v57, %v4733_v26  ;;  %v4704_v59 = vadd.f32 1.4214138, %v4688_v32  ;;  %v4507_v21 = vmul.f32 0.5, %v13215_v19  ;;  %v4508_v37 = vmul.f32 0.5, %v13180_v12 }
 0x957   : > { %v4891_v22 = vmul.f32 %v4875_v54, %v4555_v4  ;;  %v4862_v33 = vmul.f32 %v10135_v51, %v4782_v38  ;;  %v4671_v63 = vadd.f32 -1.4531521, %v4655_v3  ;;  %v4845_v0 = vmul.f32 1.442695, %v4815_v55 }
 0x958   : > { %v4765_v13 = vadd.f32 0.2548296, %v4749_v47  ;;  %v4720_v44 = vmul.f32 %v13326_v17, %v4704_v59  ;;  %v10139_v58 = vpop.eup %10138  ;;  %v4558_v50 = vsel %vm4542_vm13, 1.0, %v15669_v5  ;;  %v4924_v10 = vmul.f32 %v4908_v2, %v4508_v37 }
 0x959   : > { %v4907_v6 = vadd.f32 1.0, %v4891_v22  ;;  %v4878_v39 = vsub.f32 1.0, %v4862_v33  ;;  %v4687_v34 = vmul.f32 %v10137_v41, %v4671_v63  ;;  %vm4541_vm14 = vcmp.ge.f32.partialorder %v13251_v7, 0.0 }
 0x95a   : > { %v4781_v48 = vmul.f32 %v13315_v57, %v4765_v13  ;;  %v4736_v23 = vadd.f32 -0.28449672, %v4720_v44  ;;  %10142 = vpow2.f32 %v4845_v0  ;;  %v4557_v57 = vsel %vm4541_vm14, 1.0, %v15669_v5 }
 0x95b   : > { %v4923_v8 = vmul.f32 %v4907_v6, %v4507_v21  ;;  %v4894_v60 = vmul.f32 %v4878_v39, %v4558_v50  ;;  %v4703_v51 = vadd.f32 1.4214138, %v4687_v34  ;;  %v4509_v35 = vmul.f32 0.5, %v13241_v46 }
 0x95c   : > { %v4861_v14 = vmul.f32 %v10139_v58, %v4781_v48  ;;  %v4752_v19 = vmul.f32 %v13326_v17, %v4736_v23  ;;  %v4510_v32 = vmul.f32 0.5, %v13229_v49  ;;  %vm4544_vm15 = vcmp.ge.f32.partialorder %v13274_v1, 0.0 }
 0x95d   : > { %9391 = vmatprep.mubr.msk.f32.mxu1 %vm4937_vm3, %v4923_v8  ;;  %v4719_v43 = vmul.f32 %v10137_v41, %v4703_v51  ;;  %v4910_v7 = vadd.f32 1.0, %v4894_v60  ;;  %v4560_v22 = vsel %vm4544_vm15, 1.0, %v15669_v5  ;;  %vm4543_vm0 = vcmp.ge.f32.partialorder %v13295_v30, 0.0  ;;  %v13375_v30 = vld [vmem:[%s15586_s11 + $0x6] ss:$0 sm:$0xff] }
 0x95e   : > { %v4877_v12 = vsub.f32 1.0, %v4861_v14  ;;  %v4768_v31 = vadd.f32 0.2548296, %v4752_v19  ;;  %9392 = vmatmul.mubr.msk.f32.gmra.mrb[118].mxu1 %vm4937_vm3, %v4924_v10  ;;  %v10141_v62 = vpop.eup %10140  ;;  %v4559_v3 = vsel %vm4543_vm0, 1.0, %v15669_v5  ;;  %v4511_v1 = vmul.f32 0.5, %v13285_v16 }
 0x95f   : > { %v4735_v53 = vadd.f32 -0.28449672, %v4719_v43  ;;  %v4926_v4 = vmul.f32 %v4910_v7, %v4510_v32  ;;  %v4512_v21 = vmul.f32 0.5, %v13268_v11 }
 0x960   : > { %v4893_v61 = vmul.f32 %v4877_v12, %v4557_v57  ;;  %v4784_v45 = vmul.f32 %v13326_v17, %v4768_v31 }
 0x961   : > { %v4751_v54 = vmul.f32 %v10137_v41, %v4735_v53 }
 0x962   : > { %v4909_v9 = vadd.f32 1.0, %v4893_v61  ;;  %v4864_v26 = vmul.f32 %v10141_v62, %v4784_v45 }
 0x963   : > { %v4767_v47 = vadd.f32 0.2548296, %v4751_v54 }
 0x964   : > { %v4925_v38 = vmul.f32 %v4909_v9, %v4509_v35  ;;  %v4880_v59 = vsub.f32 1.0, %v4864_v26  ;;  %v10143_v17 = vpop.eup %10142 }
 0x965   : > { %v4783_v55 = vmul.f32 %v10137_v41, %v4767_v47 }
 0x966   : > { %9394 = vmatprep.mubr.msk.f32.mxu1 %vm4937_vm3, %v4925_v38  ;;  %v4896_v33 = vmul.f32 %v4880_v59, %v4560_v22 }
 0x967   : > { %9395 = vmatmul.mubr.msk.f32.gmra.mrb[120].mxu1 %vm4937_vm3, %v4926_v4  ;;  %v4863_v46 = vmul.f32 %v10143_v17, %v4783_v55 }
 0x968   : > { %v4912_v13 = vadd.f32 1.0, %v4896_v33 }
 0x969   : > { %v4879_v49 = vsub.f32 1.0, %v4863_v46 }
 0x96a   : > { %v4928_v6 = vmul.f32 %v4912_v13, %v4512_v21  ;;  %v15752_v21 = vld [vmem:[#allocation21_spill] sm:$0xff] }
 0x96b   : > { %v4895_v2 = vmul.f32 %v4879_v49, %v4559_v3  ;;  %v15749_v49 = vld [vmem:[#allocation19_spill] sm:$0xff] }
 0x96d   : > { %v4911_v44 = vadd.f32 1.0, %v4895_v2 }
 0x96f   : > { %v4927_v41 = vmul.f32 %v4911_v44, %v4511_v1 }
 0x971   : > { %9397 = vmatprep.mubr.msk.f32.mxu1 %vm4937_vm3, %v4927_v41 }
 0x972   : > { %9398 = vmatmul.mubr.msk.f32.gmra.mrb[122].mxu1 %vm4937_vm3, %v4928_v6  ;;  %v15753_v6 = vld [vmem:[#allocation20_spill] sm:$0xff] }
 0x9f4   : > { %v9378_v39 = vpop.f32.mrb[108].mxu1 }
 0x9f5   : > { %v5132_v63 = vadd.f32 %v9378_v39, %v12742_v29  ;;  %v5052_v37 = vpop.f32.mrb[109].mxu1 }
 0x9f6   : > { %v5131_v16 = vadd.f32 %v5052_v37, %v12737_v27 }
 0x9f7   : > { %v13380_v48 = vadd.f32 %v13375_v30, %v5132_v63 }
 0x9f8   : > { %v13383_v11 = vadd.f32 %v13375_v30, %v5131_v16 }
 0x9f9   : > { %15737 = vst [vmem:[#allocation22_spill] sm:$0xff] %v13380_v48  ;;  %v5173_v23 = vsel %vm2177_vm12, %v13380_v48, 0.0 }
 0x9fa   : > { %15738 = vst [vmem:[#allocation23_spill] sm:$0xff] %v13383_v11  ;;  %5174 = vadd.xlane.f32.xlu0 %v5173_v23  ;;  %v5170_v0 = vsel %vm2177_vm12, %v13383_v11, 0.0 }
 0x9fb   : > { %5171 = vadd.xlane.f32.xlu1 %v5170_v0 }
 0x9fc   : > { %v9381_v58 = vpop.f32.mrb[110].mxu1 }
 0x9fd   : > { %v5134_v29 = vadd.f32 %v9381_v58, %v12752_v15  ;;  %v5062_v8 = vpop.f32.mrb[111].mxu1 }
 0x9fe   : > { %v5133_v27 = vadd.f32 %v5062_v8, %v12747_v42 }
 0x9ff   : > { %v13392_v50 = vadd.f32 %v13375_v30, %v5134_v29 }
 0xa00   : > { %v13395_v34 = vadd.f32 %v13375_v30, %v5133_v27 }
 0xa01   : > { %15739 = vst [vmem:[#allocation24_spill] sm:$0xff] %v13392_v50  ;;  %v5179_v10 = vsel %vm2177_vm12, %v13392_v50, 0.0 }
 0xa02   : > { %15740 = vst [vmem:[#allocation28_spill] sm:$0xff] %v13395_v34  ;;  %5180 = vadd.xlane.f32.xlu0 %v5179_v10  ;;  %v5176_v14 = vsel %vm2177_vm12, %v13395_v34, 0.0 }
 0xa03   : > { %5177 = vadd.xlane.f32.xlu1 %v5176_v14 }
 0xa06   : > { %v9384_v19 = vpop.f32.mrb[112].mxu1 }
 0xa07   : > { %v5136_v15 = vadd.f32 %v9384_v19, %v12762_v24  ;;  %v5072_v60 = vpop.f32.mrb[113].mxu1 }
 0xa08   : > { %v5135_v42 = vadd.f32 %v5072_v60, %v12757_v28 }
 0xa09   : > { %v13404_v51 = vadd.f32 %v13375_v30, %v5136_v15 }
 0xa0a   : > { %v13407_v12 = vadd.f32 %v13375_v30, %v5135_v42 }
 0xa0b   : > { %15741 = vst [vmem:[#allocation25_spill] sm:$0xff] %v13404_v51  ;;  %v5185_v31 = vsel %vm2177_vm12, %v13404_v51, 0.0 }
 0xa0c   : > { %15742 = vst [vmem:[#allocation29_spill] sm:$0xff] %v13407_v12  ;;  %5186 = vadd.xlane.f32.xlu0 %v5185_v31  ;;  %v5182_v57 = vsel %vm2177_vm12, %v13407_v12, 0.0 }
 0xa0d   : > { %5183 = vadd.xlane.f32.xlu1 %v5182_v57 }
 0xa11   : > { %v9387_v43 = vpop.f32.mrb[114].mxu1 }
 0xa12   : > { %v5138_v24 = vadd.f32 %v9387_v43, %v12772_v52  ;;  %v5082_v61 = vpop.f32.mrb[115].mxu1 }
 0xa13   : > { %v5137_v28 = vadd.f32 %v5082_v61, %v12767_v40 }
 0xa14   : > { %v13416_v45 = vadd.f32 %v13375_v30, %v5138_v24 }
 0xa15   : > { %v13419_v62 = vadd.f32 %v13375_v30, %v5137_v28 }
 0xa16   : > { %15743 = vst [vmem:[#allocation32_spill] sm:$0xff] %v13416_v45  ;;  %v5191_v7 = vsel %vm2177_vm12, %v13416_v45, 0.0 }
 0xa17   : > { %15744 = vst [vmem:[#allocation37_spill] sm:$0xff] %v13419_v62  ;;  %5192 = vadd.xlane.f32.xlu0 %v5191_v7  ;;  %v5188_v53 = vsel %vm2177_vm12, %v13419_v62, 0.0 }
 0xa18   : > { %5189 = vadd.xlane.f32.xlu1 %v5188_v53 }
 0xa29   : > { %v9390_v35 = vpop.f32.mrb[116].mxu1 }
 0xa2a   : > { %v5140_v52 = vadd.f32 %v9390_v35, %v12782_v56  ;;  %v5092_v9 = vpop.f32.mrb[117].mxu1 }
 0xa2b   : > { %v5139_v40 = vadd.f32 %v5092_v9, %v12777_v36 }
 0xa2c   : > { %v13428_v26 = vadd.f32 %v13375_v30, %v5140_v52 }
 0xa2d   : > { %v13431_v32 = vadd.f32 %v13375_v30, %v5139_v40 }
 0xa2e   : > { %15745 = vst [vmem:[#allocation34_spill] sm:$0xff] %v13428_v26  ;;  %v5197_v54 = vsel %vm2177_vm12, %v13428_v26, 0.0 }
 0xa2f   : > { %15746 = vst [vmem:[#allocation40_spill] sm:$0xff] %v13431_v32  ;;  %5198 = vadd.xlane.f32.xlu0 %v5197_v54  ;;  %v5194_v38 = vsel %vm2177_vm12, %v13431_v32, 0.0 }
 0xa30   : > { %5195 = vadd.xlane.f32.xlu1 %v5194_v38 }
 0xa31   : > { %v9393_v4 = vpop.f32.mrb[118].mxu1 }
 0xa32   : > { %v5142_v56 = vadd.f32 %v9393_v4, %v12792_v18  ;;  %v5102_v47 = vpop.f32.mrb[119].mxu1 }
 0xa33   : > { %v5141_v36 = vadd.f32 %v5102_v47, %v12787_v25 }
 0xa34   : > { %v13440_v59 = vadd.f32 %v13375_v30, %v5142_v56 }
 0xa35   : > { %v13443_v55 = vadd.f32 %v13375_v30, %v5141_v36 }
 0xa36   : > { %15747 = vst [vmem:[#allocation36_spill] sm:$0xff] %v13440_v59  ;;  %v5203_v17 = vsel %vm2177_vm12, %v13440_v59, 0.0 }
 0xa37   : > { %15748 = vst [vmem:[#allocation26_spill] sm:$0xff] %v13443_v55  ;;  %5204 = vadd.xlane.f32.xlu0 %v5203_v17  ;;  %v5200_v22 = vsel %vm2177_vm12, %v13443_v55, 0.0 }
 0xa38   : > { %5201 = vadd.xlane.f32.xlu1 %v5200_v22 }
 0xa3a   : > { %v9396_v46 = vpop.f32.mrb[120].mxu1 }
 0xa3b   : > { %v5144_v18 = vadd.f32 %v9396_v46, %v12802_v20  ;;  %v5112_v33 = vpop.f32.mrb[121].mxu1 }
 0xa3c   : > { %v5143_v25 = vadd.f32 %v5112_v33, %v15749_v49 }
 0xa3d   : > { %v13452_v3 = vadd.f32 %v13375_v30, %v5144_v18 }
 0xa3e   : > { %v13455_v2 = vadd.f32 %v13375_v30, %v5143_v25 }
 0xa3f   : > { %15750 = vst [vmem:[#allocation27_spill] sm:$0xff] %v13452_v3  ;;  %v5209_v13 = vsel %vm2177_vm12, %v13452_v3, 0.0 }
 0xa40   : > { %15751 = vst [vmem:[#allocation30_spill] sm:$0xff] %v13455_v2  ;;  %5210 = vadd.xlane.f32.xlu0 %v5209_v13  ;;  %v5206_v1 = vsel %vm2177_vm12, %v13455_v2, 0.0 }
 0xa41   : > { %5207 = vadd.xlane.f32.xlu1 %v5206_v1 }
 0xa45   : > { %v9399_v44 = vpop.f32.mrb[122].mxu1 }
 0xa46   : > { %v5146_v20 = vadd.f32 %v9399_v44, %v15752_v21  ;;  %v5122_v41 = vpop.f32.mrb[123].mxu1 }
 0xa47   : > { %v5145_v39 = vadd.f32 %v5122_v41, %v15753_v6 }
 0xa48   : > { %v13464_v63 = vadd.f32 %v13375_v30, %v5146_v20 }
 0xa49   : > { %v13467_v37 = vadd.f32 %v13375_v30, %v5145_v39 }
 0xa4a   : > { %15754 = vst [vmem:[#allocation31_spill] sm:$0xff] %v13464_v63  ;;  %v5215_v16 = vsel %vm2177_vm12, %v13464_v63, 0.0 }
 0xa4b   : > { %15755 = vst [vmem:[#allocation33_spill] sm:$0xff] %v13467_v37  ;;  %5216 = vadd.xlane.f32.xlu0 %v5215_v16  ;;  %v5212_v23 = vsel %vm2177_vm12, %v13467_v37, 0.0 }
 0xa4c   : > { %5213 = vadd.xlane.f32.xlu1 %v5212_v23 }
 0xa87   : > { %v5175_v0 = vpop.xlane.xlu0 %5174 }
 0xa88   : > { %v5219_v58 = vmul.f32 0.03125, %v5175_v0  ;;  %v5172_v29 = vpop.xlane.xlu1 %5171 }
 0xa89   : > { %v5218_v8 = vmul.f32 0.03125, %v5172_v29 }
 0xa8a   : > { %v13474_v27 = vsub.f32 %v13380_v48, %v5219_v58 }
 0xa8b   : > { %v13477_v10 = vsub.f32 %v13383_v11, %v5218_v8 }
 0xa8c   : > { %v5251_v30 = vmul.f32 %v13474_v27, %v13474_v27 }
 0xa8d   : > { %v5250_v14 = vmul.f32 %v13477_v10, %v13477_v10 }
 0xa8e   : > { %v5269_v19 = vsel %vm2177_vm12, %v5251_v30, 0.0 }
 0xa8f   : > { %v5181_v15 = vpop.xlane.xlu0 %5180  ;;  %5270 = vadd.xlane.f32.xlu0 %v5269_v19  ;;  %v5266_v60 = vsel %vm2177_vm12, %v5250_v14, 0.0 }
 0xa90   : > { %v5221_v42 = vmul.f32 0.03125, %v5181_v15  ;;  %v5178_v31 = vpop.xlane.xlu1 %5177  ;;  %5267 = vadd.xlane.f32.xlu1 %v5266_v60 }
 0xa91   : > { %v5220_v57 = vmul.f32 0.03125, %v5178_v31 }
 0xa92   : > { %v13486_v43 = vsub.f32 %v13392_v50, %v5221_v42 }
 0xa93   : > { %v13489_v24 = vsub.f32 %v13395_v34, %v5220_v57 }
 0xa94   : > { %v5253_v61 = vmul.f32 %v13486_v43, %v13486_v43 }
 0xa95   : > { %v5252_v28 = vmul.f32 %v13489_v24, %v13489_v24 }
 0xa96   : > { %v5275_v7 = vsel %vm2177_vm12, %v5253_v61, 0.0 }
 0xa97   : > { %5276 = vadd.xlane.f32.xlu0 %v5275_v7  ;;  %v5272_v53 = vsel %vm2177_vm12, %v5252_v28, 0.0 }
 0xa98   : > { %5273 = vadd.xlane.f32.xlu1 %v5272_v53 }
 0xa99   : > { %v5187_v35 = vpop.xlane.xlu0 %5186 }
 0xa9a   : > { %v5223_v52 = vmul.f32 0.03125, %v5187_v35  ;;  %v5184_v9 = vpop.xlane.xlu1 %5183 }
 0xa9b   : > { %v5222_v40 = vmul.f32 0.03125, %v5184_v9 }
 0xa9c   : > { %v13498_v54 = vsub.f32 %v13404_v51, %v5223_v52 }
 0xa9d   : > { %v13501_v38 = vsub.f32 %v13407_v12, %v5222_v40 }
 0xa9e   : > { %v5255_v4 = vmul.f32 %v13498_v54, %v13498_v54 }
 0xa9f   : > { %v5254_v56 = vmul.f32 %v13501_v38, %v13501_v38 }
 0xaa0   : > { %v5281_v47 = vsel %vm2177_vm12, %v5255_v4, 0.0 }
 0xaa1   : > { %5282 = vadd.xlane.f32.xlu0 %v5281_v47  ;;  %v5278_v36 = vsel %vm2177_vm12, %v5254_v56, 0.0 }
 0xaa2   : > { %5279 = vadd.xlane.f32.xlu1 %v5278_v36 }
 0xaa4   : > { %v5193_v17 = vpop.xlane.xlu0 %5192 }
 0xaa5   : > { %v5225_v22 = vmul.f32 0.03125, %v5193_v17  ;;  %v5190_v46 = vpop.xlane.xlu1 %5189 }
 0xaa6   : > { %v5224_v18 = vmul.f32 0.03125, %v5190_v46 }
 0xaa7   : > { %v13510_v33 = vsub.f32 %v13416_v45, %v5225_v22 }
 0xaa8   : > { %v13513_v49 = vsub.f32 %v13419_v62, %v5224_v18 }
 0xaa9   : > { %v5257_v25 = vmul.f32 %v13510_v33, %v13510_v33 }
 0xaaa   : > { %v5256_v13 = vmul.f32 %v13513_v49, %v13513_v49 }
 0xaab   : > { %v5287_v1 = vsel %vm2177_vm12, %v5257_v25, 0.0 }
 0xaac   : > { %5288 = vadd.xlane.f32.xlu0 %v5287_v1  ;;  %v5284_v44 = vsel %vm2177_vm12, %v5256_v13, 0.0 }
 0xaad   : > { %5285 = vadd.xlane.f32.xlu1 %v5284_v44 }
 0xabc   : > { %v5199_v21 = vpop.xlane.xlu0 %5198 }
 0xabd   : > { %v5227_v20 = vmul.f32 0.03125, %v5199_v21  ;;  %v5196_v41 = vpop.xlane.xlu1 %5195 }
 0xabe   : > { %v5226_v6 = vmul.f32 0.03125, %v5196_v41  ;;  %v8718_v41 = vld [vmem:[%s15580_s5 + $0x188] sm:$0xff] }
 0xabf   : > { %v13522_v39 = vsub.f32 %v13428_v26, %v5227_v20  ;;  %v8717_v20 = vld [vmem:[%s15580_s5 + $0x180] sm:$0xff] }
 0xac0   : > { %v13525_v16 = vsub.f32 %v13431_v32, %v5226_v6  ;;  %v8701_v6 = vld [vmem:[%s15580_s5 + $0x100] sm:$0xff] }
 0xac1   : > { %v5259_v23 = vmul.f32 %v13522_v39, %v13522_v39 }
 0xac2   : > { %v5258_v0 = vmul.f32 %v13525_v16, %v13525_v16 }
 0xac3   : > { %v5293_v58 = vsel %vm2177_vm12, %v5259_v23, 0.0  ;;  %v8719_v23 = vld [vmem:[%s15580_s5 + $0x190] sm:$0xff] }
 0xac4   : > { %5294 = vadd.xlane.f32.xlu0 %v5293_v58  ;;  %v5290_v29 = vsel %vm2177_vm12, %v5258_v0, 0.0  ;;  %v5205_v8 = vpop.xlane.xlu0 %5204  ;;  %v8702_v0 = vld [vmem:[%s15580_s5 + $0x108] sm:$0xff]  ;;  %v8703_v58 = vld [vmem:[%s15580_s5 + $0x110] sm:$0xff] }
 0xac5   : > { %5291 = vadd.xlane.f32.xlu1 %v5290_v29  ;;  %v5229_v30 = vmul.f32 0.03125, %v5205_v8  ;;  %v5202_v14 = vpop.xlane.xlu1 %5201  ;;  %v8720_v29 = vld [vmem:[%s15580_s5 + $0x198] sm:$0xff]  ;;  %v8721_v8 = vld [vmem:[%s15580_s5 + $0x1a0] sm:$0xff] }
 0xac6   : > { %v5228_v19 = vmul.f32 0.03125, %v5202_v14  ;;  %v8705_v14 = vld [vmem:[%s15580_s5 + $0x120] sm:$0xff] }
 0xac7   : > { %v13534_v15 = vsub.f32 %v13440_v59, %v5229_v30  ;;  %v8704_v30 = vld [vmem:[%s15580_s5 + $0x118] sm:$0xff] }
 0xac8   : > { %v13537_v60 = vsub.f32 %v13443_v55, %v5228_v19  ;;  %v8722_v19 = vld [vmem:[%s15580_s5 + $0x1a8] sm:$0xff] }
 0xac9   : > { %v5261_v42 = vmul.f32 %v13534_v15, %v13534_v15 }
 0xaca   : > { %v5260_v31 = vmul.f32 %v13537_v60, %v13537_v60 }
 0xacb   : > { %v5299_v57 = vsel %vm2177_vm12, %v5261_v42, 0.0  ;;  %v8723_v42 = vld [vmem:[%s15580_s5 + $0x1b0] sm:$0xff] }
 0xacc   : > { %5300 = vadd.xlane.f32.xlu0 %v5299_v57  ;;  %v5296_v61 = vsel %vm2177_vm12, %v5260_v31, 0.0  ;;  %v8706_v31 = vld [vmem:[%s15580_s5 + $0x128] sm:$0xff]  ;;  %v8669_v57 = vld [vmem:[%s15579_s4 + $0x100] sm:$0xff] }
 0xacd   : > { %v5211_v28 = vpop.xlane.xlu0 %5210  ;;  %5297 = vadd.xlane.f32.xlu1 %v5296_v61  ;;  %9432 = vmatprep.mubr.f32.mxu1 %v8669_v57  ;;  %v8707_v61 = vld [vmem:[%s15580_s5 + $0x130] sm:$0xff] }
 0xace   : > { %v5231_v7 = vmul.f32 0.03125, %v5211_v28  ;;  %v5208_v53 = vpop.xlane.xlu1 %5207  ;;  %v8724_v28 = vld [vmem:[%s15580_s5 + $0x1b8] sm:$0xff]  ;;  %v8731_v57 = vld [vmem:[%s15580_s5 + $0x1f0] sm:$0xff] }
 0xacf   : > { %v5230_v35 = vmul.f32 0.03125, %v5208_v53  ;;  %v8708_v53 = vld [vmem:[%s15580_s5 + $0x138] sm:$0xff] }
 0xad0   : > { %v13546_v52 = vsub.f32 %v13452_v3, %v5231_v7  ;;  %v8725_v7 = vld [vmem:[%s15580_s5 + $0x1c0] sm:$0xff] }
 0xad1   : > { %v13549_v9 = vsub.f32 %v13455_v2, %v5230_v35  ;;  %v8709_v35 = vld [vmem:[%s15580_s5 + $0x140] sm:$0xff] }
 0xad2   : > { %v5263_v40 = vmul.f32 %v13546_v52, %v13546_v52 }
 0xad3   : > { %v5262_v4 = vmul.f32 %v13549_v9, %v13549_v9 }
 0xad4   : > { %v5305_v56 = vsel %vm2177_vm12, %v5263_v40, 0.0  ;;  %v8726_v40 = vld [vmem:[%s15580_s5 + $0x1c8] sm:$0xff] }
 0xad5   : > { %5306 = vadd.xlane.f32.xlu0 %v5305_v56  ;;  %v5302_v47 = vsel %vm2177_vm12, %v5262_v4, 0.0  ;;  %v8727_v56 = vld [vmem:[%s15580_s5 + $0x1d0] sm:$0xff] }
 0xad6   : > { %5303 = vadd.xlane.f32.xlu1 %v5302_v47  ;;  %v8710_v47 = vld [vmem:[%s15580_s5 + $0x148] sm:$0xff] }
 0xad8   : > { %v5217_v36 = vpop.xlane.xlu0 %5216 }
 0xad9   : > { %v5233_v17 = vmul.f32 0.03125, %v5217_v36  ;;  %v5214_v22 = vpop.xlane.xlu1 %5213 }
 0xada   : > { %v5232_v46 = vmul.f32 0.03125, %v5214_v22 }
 0xadb   : > { %v13558_v18 = vsub.f32 %v13464_v63, %v5233_v17 }
 0xadc   : > { %v13561_v25 = vsub.f32 %v13467_v37, %v5232_v46 }
 0xadd   : > { %v5265_v13 = vmul.f32 %v13558_v18, %v13558_v18 }
 0xade   : > { %v5264_v1 = vmul.f32 %v13561_v25, %v13561_v25 }
 0xadf   : > { %v5311_v44 = vsel %vm2177_vm12, %v5265_v13, 0.0 }
 0xae0   : > { %5312 = vadd.xlane.f32.xlu0 %v5311_v44  ;;  %v5308_v21 = vsel %vm2177_vm12, %v5264_v1, 0.0  ;;  %v8711_v1 = vld [vmem:[%s15580_s5 + $0x150] sm:$0xff]  ;;  %v8728_v44 = vld [vmem:[%s15580_s5 + $0x1d8] sm:$0xff] }
 0xae1   : > { %5309 = vadd.xlane.f32.xlu1 %v5308_v21 }
 0xaf2   : > { %5566 = vperm.xlu1 %9887, %v8717_v20   ;;  %v8729_v20 = vld [vmem:[%s15580_s5 + $0x1e0] sm:$0xff] }
 0xaf6   : > { %5571 = vperm.xlu0 %9886, %v8718_v41   ;;  %5486 = vperm.xlu1 %9887, %v8701_v6   ;;  %v8712_v41 = vld [vmem:[%s15580_s5 + $0x158] sm:$0xff] }
 0xafa   : > { %5576 = vperm.xlu0 %9886, %v8719_v23   ;;  %5491 = vperm.xlu1 %9887, %v8702_v0  }
 0xafe   : > { %5496 = vperm.xlu0 %9886, %v8703_v58   ;;  %5581 = vperm.xlu1 %9887, %v8720_v29  }
 0xb02   : > { %5586 = vperm.xlu0 %9886, %v8721_v8   ;;  %5501 = vperm.xlu1 %9887, %v8704_v30   ;;  %v8713_v8 = vld [vmem:[%s15580_s5 + $0x160] sm:$0xff]  ;;  %v8730_v30 = vld [vmem:[%s15580_s5 + $0x1e8] sm:$0xff] }
 0xb06   : > { %5506 = vperm.xlu0 %9886, %v8705_v14   ;;  %5591 = vperm.xlu1 %9887, %v8722_v19   ;;  %v13656_v19 = vld [vmem:[%s15586_s11 + $0x7] ss:$0 sm:$0xff] }
 0xb0a   : > { %5596 = vperm.xlu0 %9886, %v8723_v42   ;;  %5511 = vperm.xlu1 %9887, %v8706_v31  }
 0xb0e   : > { %5516 = vperm.xlu0 %9886, %v8707_v61   ;;  %5601 = vperm.xlu1 %9887, %v8724_v28   ;;  %v8714_v61 = vld [vmem:[%s15580_s5 + $0x168] sm:$0xff] }
 0xb0f   : > { %v13668_v28 = vld [vmem:[%s15586_s11 + $0x8] ss:$0 sm:$0xff] }
 0xb12   : > { %5606 = vperm.xlu0 %9886, %v8725_v7   ;;  %5521 = vperm.xlu1 %9887, %v8708_v53  }
 0xb16   : > { %5526 = vperm.xlu0 %9886, %v8709_v35   ;;  %5611 = vperm.xlu1 %9887, %v8726_v40  }
 0xb1a   : > { %5616 = vperm.xlu0 %9886, %v8727_v56   ;;  %5531 = vperm.xlu1 %9887, %v8710_v47  }
 0xb1c   : > { %v5271_v4 = vpop.xlane.xlu0 %5270 }
 0xb1d   : > { %v5315_v36 = vmul.f32 0.03125, %v5271_v4  ;;  %v5268_v17 = vpop.xlane.xlu1 %5267 }
 0xb1e   : > { %v5314_v22 = vmul.f32 0.03125, %v5268_v17  ;;  %5536 = vperm.xlu0 %9886, %v8711_v1   ;;  %5621 = vperm.xlu1 %9887, %v8728_v44  }
 0xb1f   : > { %v5331_v46 = vadd.f32 1e-05, %v5315_v36  ;;  %v8715_v36 = vld [vmem:[%s15580_s5 + $0x170] sm:$0xff] }
 0xb20   : > { %v5330_v13 = vadd.f32 1e-05, %v5314_v22 }
 0xb21   : > { %10144 = vrsqrt.f32 %v5331_v46 }
 0xb22   : > { %10146 = vrsqrt.f32 %v5330_v13  ;;  %5626 = vperm.xlu0 %9886, %v8729_v20   ;;  %5541 = vperm.xlu1 %9887, %v8712_v41   ;;  %v8765_v20 = vld [vmem:[%s15582_s7 + $0x80] sm:$0xff]  ;;  %v8716_v41 = vld [vmem:[%s15580_s5 + $0x178] sm:$0xff] }
 0xb24   : > { %v5277_v21 = vpop.xlane.xlu0 %5276 }
 0xb25   : > { %v5317_v6 = vmul.f32 0.03125, %v5277_v21  ;;  %v5274_v23 = vpop.xlane.xlu1 %5273 }
 0xb26   : > { %v5316_v0 = vmul.f32 0.03125, %v5274_v23  ;;  %5546 = vperm.xlu0 %9886, %v8713_v8   ;;  %5631 = vperm.xlu1 %9887, %v8730_v30  }
 0xb27   : > { %v5333_v58 = vadd.f32 1e-05, %v5317_v6 }
 0xb28   : > { %v5332_v29 = vadd.f32 1e-05, %v5316_v0 }
 0xb29   : > { %10148 = vrsqrt.f32 %v5333_v58  ;;  %v8767_v58 = vld [vmem:[%s15582_s7 + $0x90] sm:$0xff] }
 0xb2a   : > { %10150 = vrsqrt.f32 %v5332_v29  ;;  %5636 = vperm.xlu0 %9886, %v8731_v57   ;;  %5551 = vperm.xlu1 %9887, %v8714_v61   ;;  %v8766_v29 = vld [vmem:[%s15582_s7 + $0x88] sm:$0xff]  ;;  %v8769_v57 = vld [vmem:[%s15582_s7 + $0xa0] sm:$0xff]  ;;  %v8768_v61 = vld [vmem:[%s15582_s7 + $0x98] sm:$0xff] }
 0xb2b   : > { %v10145_v14 = vpop.eup %10144 }
 0xb2c   : > { %v10147_v42 = vpop.eup %10146  ;;  %v5363_v31 = vmul.f32 %v10145_v14, %v13474_v27 }
 0xb2d   : > { %v5362_v7 = vmul.f32 %v10147_v42, %v13477_v10  ;;  %v8732_v10 = vld [vmem:[%s15580_s5 + $0x1f8] sm:$0xff] }
 0xb2e   : > { %v5283_v53 = vpop.xlane.xlu0 %5282  ;;  %v5383_v35 = vmul.f32 %v13656_v19, %v5363_v31  ;;  %5556 = vperm.xlu0 %9886, %v8715_v36   ;;  %5641 = vperm.xlu1 %9887, %v8732_v10   ;;  %v8770_v36 = vld [vmem:[%s15582_s7 + $0xa8] sm:$0xff] }
 0xb2f   : > { %v5319_v40 = vmul.f32 0.03125, %v5283_v53  ;;  %v5280_v27 = vpop.xlane.xlu1 %5279  ;;  %v5382_v4 = vmul.f32 %v13656_v19, %v5362_v7 }
 0xb30   : > { %v5318_v56 = vmul.f32 0.03125, %v5280_v27  ;;  %v5403_v47 = vadd.f32 %v13668_v28, %v5383_v35 }
 0xb31   : > { %v5335_v17 = vadd.f32 1e-05, %v5319_v40  ;;  %v5402_v22 = vadd.f32 %v13668_v28, %v5382_v4 }
 0xb32   : > { %v5334_v46 = vadd.f32 1e-05, %v5318_v56  ;;  %6946 = vperm.xlu0 %9886, %v8765_v20   ;;  %5561 = vperm.xlu1 %9887, %v8716_v41  }
 0xb33   : > { %v10149_v13 = vpop.eup %10148  ;;  %10152 = vrsqrt.f32 %v5335_v17  ;;  %v9725_v1 = vpack.c.bf16 %v5403_v47, %v5402_v22  ;;  %v8771_v47 = vld [vmem:[%s15582_s7 + $0xb0] sm:$0xff]  ;;  %v8773_v17 = vld [vmem:[%s15582_s7 + $0xc0] sm:$0xff]  ;;  %v8772_v22 = vld [vmem:[%s15582_s7 + $0xb8] sm:$0xff] }
 0xb34   : > { %v10151_v44 = vpop.eup %10150  ;;  %10154 = vrsqrt.f32 %v5334_v46  ;;  %v5365_v21 = vmul.f32 %v10149_v13, %v13486_v43  ;;  %v8775_v13 = vld [vmem:[%s15582_s7 + $0xd0] sm:$0xff] }
 0xb35   : > { %9726 = vmatprep.subr.bf16.mxu1 %v9725_v1  ;;  %v5364_v6 = vmul.f32 %v10151_v44, %v13489_v24 }
 0xb36   : > { %9728 = vmatpush3.bf16.msra.mxu1 %v9725_v1  ;;  %v5385_v23 = vmul.f32 %v13656_v19, %v5365_v21  ;;  %6956 = vperm.xlu0 %9886, %v8767_v58   ;;  %v8774_v1 = vld [vmem:[%s15582_s7 + $0xc8] sm:$0xff] }
 0xb37   : > { %v5384_v0 = vmul.f32 %v13656_v19, %v5364_v6  ;;  %6951 = vperm.xlu1 %9887, %v8766_v29   ;;  %v8777_v6 = vld [vmem:[%s15582_s7 + $0xe0] sm:$0xff]  ;;  %v8778_v29 = vld [vmem:[%s15582_s7 + $0xe8] sm:$0xff] }
 0xb38   : > { %v5405_v43 = vadd.f32 %v13668_v28, %v5385_v23  ;;  %v8776_v23 = vld [vmem:[%s15582_s7 + $0xd8] sm:$0xff] }
 0xb39   : > { %v5404_v8 = vadd.f32 %v13668_v28, %v5384_v0  ;;  %v5289_v24 = vpop.xlane.xlu0 %5288 }
 0xb3a   : > { %v5321_v14 = vmul.f32 0.03125, %v5289_v24  ;;  %v5286_v42 = vpop.xlane.xlu1 %5285  ;;  %6966 = vperm.xlu0 %9886, %v8769_v57  }
 0xb3b   : > { %v9729_v30 = vpack.c.bf16 %v5405_v43, %v5404_v8  ;;  %v5320_v7 = vmul.f32 0.03125, %v5286_v42  ;;  %6961 = vperm.xlu1 %9887, %v8768_v61   ;;  %v8780_v42 = vld [vmem:[%s15582_s7 + $0xf8] sm:$0xff] }
 0xb3c   : > { %v5337_v35 = vadd.f32 1e-05, %v5321_v14 }
 0xb3d   : > { %v10153_v31 = vpop.eup %10152  ;;  %9730 = vmatprep.subr.bf16.mxu1 %v9729_v30  ;;  %v5336_v27 = vadd.f32 1e-05, %v5320_v7 }
 0xb3e   : > { %v10155_v53 = vpop.eup %10154  ;;  %9732 = vmatpush3.bf16.msra.mxu1 %v9729_v30  ;;  %v5367_v40 = vmul.f32 %v10153_v31, %v13498_v54  ;;  %10156 = vrsqrt.f32 %v5337_v35  ;;  %6976 = vperm.xlu0 %9886, %v8771_v47  }
 0xb3f   : > { %v5366_v4 = vmul.f32 %v10155_v53, %v13501_v38  ;;  %10158 = vrsqrt.f32 %v5336_v27  ;;  %6971 = vperm.xlu1 %9887, %v8770_v36  }
 0xb40   : > { %v5387_v56 = vmul.f32 %v13656_v19, %v5367_v40 }
 0xb41   : > { %v5386_v10 = vmul.f32 %v13656_v19, %v5366_v4 }
 0xb42   : > { %v5407_v54 = vadd.f32 %v13668_v28, %v5387_v56  ;;  %6986 = vperm.xlu0 %9886, %v8773_v17  }
 0xb43   : > { %v5406_v38 = vadd.f32 %v13668_v28, %v5386_v10  ;;  %6981 = vperm.xlu1 %9887, %v8772_v22  }
 0xb45   : > { %v9733_v46 = vpack.c.bf16 %v5407_v54, %v5406_v38 }
 0xb46   : > { %6996 = vperm.xlu0 %9886, %v8775_v13  }
 0xb47   : > { %9734 = vmatprep.subr.bf16.mxu1 %v9733_v46  ;;  %6991 = vperm.xlu1 %9887, %v8774_v1  }
 0xb48   : > { %9736 = vmatpush3.bf16.msra.mxu1 %v9733_v46  ;;  %v10157_v44 = vpop.eup %10156 }
 0xb49   : > { %v10159_v21 = vpop.eup %10158  ;;  %v5369_v20 = vmul.f32 %v10157_v44, %v13510_v33 }
 0xb4a   : > { %v5368_v41 = vmul.f32 %v10159_v21, %v13513_v49  ;;  %7006 = vperm.xlu0 %9886, %v8777_v6   ;;  %v8779_v49 = vld [vmem:[%s15582_s7 + $0xf0] sm:$0xff] }
 0xb4b   : > { %v5389_v0 = vmul.f32 %v13656_v19, %v5369_v20  ;;  %7001 = vperm.xlu1 %9887, %v8776_v23  }
 0xb4c   : > { %v5388_v43 = vmul.f32 %v13656_v19, %v5368_v41 }
 0xb4d   : > { %v5409_v58 = vadd.f32 %v13668_v28, %v5389_v0 }
 0xb4e   : > { %v5408_v33 = vadd.f32 %v13668_v28, %v5388_v43  ;;  %7016 = vperm.xlu0 %9886, %v8779_v49  }
 0xb4f   : > { %7011 = vperm.xlu1 %9887, %v8778_v29  }
 0xb50   : > { %v9737_v8 = vpack.c.bf16 %v5409_v58, %v5408_v33 }
 0xb51   : > { %v5295_v24 = vpop.xlane.xlu0 %5294 }
 0xb52   : > { %v5323_v30 = vmul.f32 0.03125, %v5295_v24  ;;  %v5292_v14 = vpop.xlane.xlu1 %5291  ;;  %9738 = vmatprep.subr.bf16.mxu1 %v9737_v8 }
 0xb53   : > { %v5322_v31 = vmul.f32 0.03125, %v5292_v14  ;;  %9740 = vmatpush3.bf16.msra.mxu1 %v9737_v8  ;;  %7021 = vperm.xlu1 %9887, %v8780_v42  }
 0xb54   : > { %v5339_v57 = vadd.f32 1e-05, %v5323_v30 }
 0xb55   : > { %v5338_v61 = vadd.f32 1e-05, %v5322_v31 }
 0xb56   : > { %10160 = vrsqrt.f32 %v5339_v57 }
 0xb57   : > { %10162 = vrsqrt.f32 %v5338_v61 }
 0xb59   : > { %v5301_v7 = vpop.xlane.xlu0 %5300 }
 0xb5a   : > { %v5325_v53 = vmul.f32 0.03125, %v5301_v7  ;;  %v5298_v35 = vpop.xlane.xlu1 %5297 }
 0xb5b   : > { %v5324_v40 = vmul.f32 0.03125, %v5298_v35 }
 0xb5c   : > { %v5341_v27 = vadd.f32 1e-05, %v5325_v53 }
 0xb5d   : > { %v5340_v4 = vadd.f32 1e-05, %v5324_v40 }
 0xb5e   : > { %10164 = vrsqrt.f32 %v5341_v27 }
 0xb5f   : > { %10166 = vrsqrt.f32 %v5340_v4 }
 0xb60   : > { %v10161_v56 = vpop.eup %10160 }
 0xb61   : > { %v10163_v47 = vpop.eup %10162  ;;  %v5371_v36 = vmul.f32 %v10161_v56, %v13522_v39 }
 0xb62   : > { %v5370_v10 = vmul.f32 %v10163_v47, %v13525_v16  ;;  %v5307_v38 = vpop.xlane.xlu0 %5306 }
 0xb63   : > { %v5391_v54 = vmul.f32 %v13656_v19, %v5371_v36  ;;  %v5327_v22 = vmul.f32 0.03125, %v5307_v38  ;;  %v5304_v46 = vpop.xlane.xlu1 %5303  ;;  %v8670_v38 = vld [vmem:[%s15579_s4 + $0x108] sm:$0xff] }
 0xb64   : > { %v5390_v17 = vmul.f32 %v13656_v19, %v5370_v10  ;;  %v5326_v1 = vmul.f32 0.03125, %v5304_v46  ;;  %v8677_v46 = vld [vmem:[%s15579_s4 + $0x140] sm:$0xff] }
 0xb65   : > { %v5411_v13 = vadd.f32 %v13668_v28, %v5391_v54  ;;  %v5343_v21 = vadd.f32 1e-05, %v5327_v22  ;;  %v8676_v22 = vld [vmem:[%s15579_s4 + $0x138] sm:$0xff] }
 0xb66   : > { %v5410_v44 = vadd.f32 %v13668_v28, %v5390_v17  ;;  %v5342_v20 = vadd.f32 1e-05, %v5326_v1  ;;  %v8675_v17 = vld [vmem:[%s15579_s4 + $0x130] sm:$0xff] }
 0xb67   : > { %10168 = vrsqrt.f32 %v5343_v21  ;;  %v8679_v1 = vld [vmem:[%s15579_s4 + $0x150] sm:$0xff]  ;;  %v8681_v21 = vld [vmem:[%s15579_s4 + $0x160] sm:$0xff] }
 0xb68   : > { %v9741_v41 = vpack.c.bf16 %v5411_v13, %v5410_v44  ;;  %v10165_v6 = vpop.eup %10164  ;;  %10170 = vrsqrt.f32 %v5342_v20  ;;  %v8678_v13 = vld [vmem:[%s15579_s4 + $0x148] sm:$0xff]  ;;  %v8680_v44 = vld [vmem:[%s15579_s4 + $0x158] sm:$0xff] }
 0xb69   : > { %v10167_v39 = vpop.eup %10166  ;;  %v5373_v16 = vmul.f32 %v10165_v6, %v13534_v15  ;;  %v8682_v20 = vld [vmem:[%s15579_s4 + $0x168] sm:$0xff]  ;;  %v8684_v6 = vld [vmem:[%s15579_s4 + $0x178] sm:$0xff] }
 0xb6a   : > { %9742 = vmatprep.subr.bf16.mxu1 %v9741_v41  ;;  %v5372_v23 = vmul.f32 %v10167_v39, %v13537_v60  ;;  %v8685_v39 = vld [vmem:[%s15579_s4 + $0x180] sm:$0xff] }
 0xb6b   : > { %9744 = vmatpush3.bf16.msra.mxu1 %v9741_v41  ;;  %v5393_v0 = vmul.f32 %v13656_v19, %v5373_v16  ;;  %v8683_v41 = vld [vmem:[%s15579_s4 + $0x170] sm:$0xff]  ;;  %v8686_v16 = vld [vmem:[%s15579_s4 + $0x188] sm:$0xff] }
 0xb6c   : > { %v5392_v43 = vmul.f32 %v13656_v19, %v5372_v23  ;;  %v8687_v23 = vld [vmem:[%s15579_s4 + $0x190] sm:$0xff] }
 0xb6d   : > { %v5413_v58 = vadd.f32 %v13668_v28, %v5393_v0  ;;  %v5313_v49 = vpop.xlane.xlu0 %5312  ;;  %v8688_v0 = vld [vmem:[%s15579_s4 + $0x198] sm:$0xff] }
 0xb6e   : > { %v5412_v33 = vadd.f32 %v13668_v28, %v5392_v43  ;;  %v5329_v29 = vmul.f32 0.03125, %v5313_v49  ;;  %v5310_v8 = vpop.xlane.xlu1 %5309  ;;  %v8689_v43 = vld [vmem:[%s15579_s4 + $0x1a0] sm:$0xff]  ;;  %v8692_v49 = vld [vmem:[%s15579_s4 + $0x1b8] sm:$0xff] }
 0xb6f   : > { %v5328_v14 = vmul.f32 0.03125, %v5310_v8  ;;  %v8694_v8 = vld [vmem:[%s15579_s4 + $0x1c8] sm:$0xff] }
 0xb70   : > { %v9745_v24 = vpack.c.bf16 %v5413_v58, %v5412_v33  ;;  %v5345_v31 = vadd.f32 1e-05, %v5329_v29  ;;  %v8690_v58 = vld [vmem:[%s15579_s4 + $0x1a8] sm:$0xff]  ;;  %v8691_v33 = vld [vmem:[%s15579_s4 + $0x1b0] sm:$0xff]  ;;  %v8693_v29 = vld [vmem:[%s15579_s4 + $0x1c0] sm:$0xff] }
 0xb71   : > { %v10169_v30 = vpop.eup %10168  ;;  %v5344_v60 = vadd.f32 1e-05, %v5328_v14  ;;  %v8697_v14 = vld [vmem:[%s15579_s4 + $0x1e0] sm:$0xff] }
 0xb72   : > { %v10171_v42 = vpop.eup %10170  ;;  %9746 = vmatprep.subr.bf16.mxu1 %v9745_v24  ;;  %v5375_v15 = vmul.f32 %v10169_v30, %v13546_v52  ;;  %10172 = vrsqrt.f32 %v5345_v31  ;;  %v8696_v30 = vld [vmem:[%s15579_s4 + $0x1d8] sm:$0xff]  ;;  %v8699_v31 = vld [vmem:[%s15579_s4 + $0x1f0] sm:$0xff] }
 0xb73   : > { %9748 = vmatpush3.bf16.msra.mxu1 %v9745_v24  ;;  %v5374_v57 = vmul.f32 %v10171_v42, %v13549_v9  ;;  %10174 = vrsqrt.f32 %v5344_v60  ;;  %v8695_v24 = vld [vmem:[%s15579_s4 + $0x1d0] sm:$0xff]  ;;  %v8698_v42 = vld [vmem:[%s15579_s4 + $0x1e8] sm:$0xff]  ;;  %v13867_v60 = vpop.permute.xlu1 %5566 }
 0xb74   : > { %v5395_v61 = vmul.f32 %v13656_v19, %v5375_v15  ;;  %v8700_v15 = vld [vmem:[%s15579_s4 + $0x1f8] sm:$0xff] }
 0xb75   : > { %v5394_v7 = vmul.f32 %v13656_v19, %v5374_v57 }
 0xb76   : > { %v5415_v53 = vadd.f32 %v13668_v28, %v5395_v61 }
 0xb77   : > { %v5414_v35 = vadd.f32 %v13668_v28, %v5394_v7  ;;  %v5487_v57 = vpop.permute.xlu1 %5486  ;;  %v13869_v7 = vpop.permute.xlu0 %5571 }
 0xb79   : > { %v9749_v40 = vpack.c.bf16 %v5415_v53, %v5414_v35 }
 0xb7b   : > { %9750 = vmatprep.subr.bf16.mxu1 %v9749_v40  ;;  %v5492_v61 = vpop.permute.xlu1 %5491  ;;  %v13873_v35 = vpop.permute.xlu0 %5576 }
 0xb7c   : > { %9752 = vmatpush3.bf16.msra.mxu1 %v9749_v40  ;;  %v10173_v27 = vpop.eup %10172 }
 0xb7d   : > { %v10175_v4 = vpop.eup %10174  ;;  %v5377_v52 = vmul.f32 %v10173_v27, %v13558_v18  ;;  %v8671_v18 = vld [vmem:[%s15579_s4 + $0x110] sm:$0xff] }
 0xb7e   : > { %v5376_v56 = vmul.f32 %v10175_v4, %v13561_v25  ;;  %v8672_v25 = vld [vmem:[%s15579_s4 + $0x118] sm:$0xff] }
 0xb7f   : > { %v5397_v9 = vmul.f32 %v13656_v19, %v5377_v52  ;;  %v13871_v53 = vpop.permute.xlu1 %5581  ;;  %v5497_v27 = vpop.permute.xlu0 %5496 }
 0xb80   : > { %v5396_v47 = vmul.f32 %v13656_v19, %v5376_v56  ;;  %v8673_v19 = vld [vmem:[%s15579_s4 + $0x120] sm:$0xff] }
 0xb81   : > { %v5417_v36 = vadd.f32 %v13668_v28, %v5397_v9 }
 0xb82   : > { %v5416_v10 = vadd.f32 %v13668_v28, %v5396_v47  ;;  %v8674_v28 = vld [vmem:[%s15579_s4 + $0x128] sm:$0xff] }
 0xb83   : > { %v5502_v40 = vpop.permute.xlu1 %5501 }
 0xb84   : > { %v9753_v54 = vpack.c.bf16 %v5417_v36, %v5416_v10  ;;  %v13877_v36 = vpop.permute.xlu0 %5586 }
 0xb85   : > { %15757 = vst [vmem:[#allocation38_spill] sm:$0xff] %v13877_v36 }
 0xb86   : > { %9754 = vmatprep.subr.bf16.mxu1 %v9753_v54 }
 0xb87   : > { %9756 = vmatpush3.bf16.msra.mxu1 %v9753_v54  ;;  %v13875_v52 = vpop.permute.xlu1 %5591 }
 0xb88   : > { %15756 = vst [vmem:[#allocation35_spill] sm:$0xff] %v13875_v52 }
 0xb8a   : > { %9433 = vmatmul.mubr.f32.vlgmr.msra.gmra.mrb[124].mxu1 %v8670_v38 }
 0xb8b   : > { %9435 = vmatprep.mubr.f32.mxu1 %v8671_v18 }
 0xb8e   : > { %9436 = vmatmul.mubr.f32.gmra.mrb[126].mxu1 %v8672_v25 }
 0xb8f   : > { %9438 = vmatprep.mubr.f32.mxu1 %v8673_v19 }
 0xb92   : > { %9439 = vmatmul.mubr.f32.gmra.mrb[128].mxu1 %v8674_v28 }
 0xb93   : > { %9441 = vmatprep.mubr.f32.mxu1 %v8675_v17 }
 0xb96   : > { %9442 = vmatmul.mubr.f32.gmra.mrb[130].mxu1 %v8676_v22  ;;  %v5512_v22 = vpop.permute.xlu1 %5511 }
 0xb97   : > { %9444 = vmatprep.mubr.f32.mxu1 %v8677_v46 }
 0xb9a   : > { %9445 = vmatmul.mubr.f32.gmra.mrb[132].mxu1 %v8678_v13 }
 0xb9b   : > { %9447 = vmatprep.mubr.f32.mxu1 %v8679_v1 }
 0xb9e   : > { %9448 = vmatmul.mubr.f32.gmra.mrb[134].mxu1 %v8680_v44  ;;  %v5507_v44 = vpop.permute.xlu0 %5506 }
 0xb9f   : > { %9450 = vmatprep.mubr.f32.mxu1 %v8681_v21 }
 0xba2   : > { %9451 = vmatmul.mubr.f32.gmra.mrb[136].mxu1 %v8682_v20 }
 0xba3   : > { %9453 = vmatprep.mubr.f32.mxu1 %v8683_v41 }
 0xba6   : > { %9454 = vmatmul.mubr.f32.gmra.mrb[138].mxu1 %v8684_v6 }
 0xba7   : > { %9456 = vmatprep.mubr.f32.mxu1 %v8685_v39 }
 0xbaa   : > { %9457 = vmatmul.mubr.f32.gmra.mrb[140].mxu1 %v8686_v16 }
 0xbab   : > { %9459 = vmatprep.mubr.f32.mxu1 %v8687_v23 }
 0xbae   : > { %9460 = vmatmul.mubr.f32.gmra.mrb[142].mxu1 %v8688_v0 }
 0xbaf   : > { %9462 = vmatprep.mubr.f32.mxu1 %v8689_v43 }
 0xbb2   : > { %9463 = vmatmul.mubr.f32.gmra.mrb[144].mxu1 %v8690_v58  ;;  %v13884_v58 = vpop.permute.xlu1 %5601 }
 0xbb3   : > { %9465 = vmatprep.mubr.f32.mxu1 %v8691_v33  ;;  %15758 = vst [vmem:[#allocation39_spill] sm:$0xff] %v13884_v58 }
 0xbb6   : > { %9466 = vmatmul.mubr.f32.gmra.mrb[146].mxu1 %v8692_v49 }
 0xbb7   : > { %9468 = vmatprep.mubr.f32.mxu1 %v8693_v29 }
 0xbba   : > { %9469 = vmatmul.mubr.f32.gmra.mrb[148].mxu1 %v8694_v8 }
 0xbbb   : > { %9471 = vmatprep.mubr.f32.mxu1 %v8695_v24 }
 0xbbe   : > { %9472 = vmatmul.mubr.f32.gmra.mrb[150].mxu1 %v8696_v30 }
 0xbbf   : > { %9474 = vmatprep.mubr.f32.mxu1 %v8697_v14 }
 0xbc2   : > { %9475 = vmatmul.mubr.f32.gmra.mrb[152].mxu1 %v8698_v42 }
 0xbc3   : > { %9477 = vmatprep.mubr.f32.mxu1 %v8699_v31  ;;  %v13895_v31 = vpop.permute.xlu0 %5596 }
 0xbc4   : > { %15759 = vst [vmem:[#allocation3_spill] sm:$0xff] %v13895_v31 }
 0xbc6   : > { %9478 = vmatmul.mubr.f32.gmra.mrb[154].mxu1 %v8700_v15 }
 0xc5d   : > { %v9434_v4 = vpop.f32.mrb[124].mxu1 }
 0xc5e   : > { %v5716_v56 = vadd.f32 %v9434_v4, %v5492_v61  ;;  %v5710_v9 = vpop.f32.mrb[125].mxu1 }
 0xc5f   : > { %v5711_v47 = vadd.f32 %v5710_v9, %v5487_v57 }
 0xc60   : > { %v5935_v10 = vmul.f32 0.70710677, %v5716_v56  ;;  %v13886_v33 = vmul.f32 0.5, %v5716_v56 }
 0xc61   : > { %v5934_v54 = vmul.f32 0.70710677, %v5711_v47  ;;  %v9437_v38 = vpop.f32.mrb[126].mxu1  ;;  %v13891_v30 = vmul.f32 0.5, %v5711_v47 }
 0xc62   : > { %v6031_v18 = vand.u32 2147483647, %v5935_v10  ;;  %v5726_v25 = vadd.f32 %v9437_v38, %v5502_v40  ;;  %v5720_v19 = vpop.f32.mrb[127].mxu1  ;;  %vm5967_vm1 = vcmp.ge.f32.partialorder %v5935_v10, 0.0 }
 0xc63   : > { %v6030_v28 = vand.u32 2147483647, %v5934_v54  ;;  %v5721_v17 = vadd.f32 %v5720_v19, %v5497_v27  ;;  %vm5966_vm2 = vcmp.ge.f32.partialorder %v5934_v54, 0.0  ;;  %v13906_v9 = vsel %vm5967_vm1, 1.0, %v15669_v5 }
 0xc64   : > { %v6063_v46 = vmul.f32 0.3275911, %v6031_v18  ;;  %v13879_v1 = vmul.f32 0.70710677, %v5726_v25  ;;  %v6479_v23 = vsub.f32 0.0, %v6031_v18  ;;  %v13912_v19 = vsel %vm5966_vm2, 1.0, %v15669_v5 }
 0xc65   : > { %v6062_v13 = vmul.f32 0.3275911, %v6030_v28  ;;  %v13881_v20 = vmul.f32 0.70710677, %v5721_v17  ;;  %v9440_v41 = vpop.f32.mrb[128].mxu1  ;;  %v6478_v49 = vsub.f32 0.0, %v6030_v28 }
 0xc66   : > { %v6095_v21 = vadd.f32 1.0, %v6063_v46  ;;  %v6033_v39 = vand.u32 2147483647, %v13879_v1  ;;  %v5730_v16 = vpop.f32.mrb[129].mxu1  ;;  %v13889_v8 = vadd.f32 %v9440_v41, %v5512_v22  ;;  %v6511_v40 = vmul.f32 %v6479_v23, %v6031_v18 }
 0xc67   : > { %v6094_v6 = vadd.f32 1.0, %v6062_v13  ;;  %v6032_v29 = vand.u32 2147483647, %v13881_v20  ;;  %v13893_v42 = vadd.f32 %v5730_v16, %v5507_v44  ;;  %v6510_v47 = vmul.f32 %v6478_v49, %v6030_v28  ;;  %v5522_v13 = vpop.permute.xlu1 %5521 }
 0xc68   : > { %10176 = vrcp.f32 %v6095_v21  ;;  %v6065_v0 = vmul.f32 0.3275911, %v6033_v39  ;;  %v6481_v15 = vsub.f32 0.0, %v6033_v39  ;;  %v13898_v61 = vmul.f32 0.70710677, %v13889_v8 }
 0xc69   : > { %10178 = vrcp.f32 %v6094_v6  ;;  %v9443_v43 = vpop.f32.mrb[130].mxu1  ;;  %v6064_v57 = vmul.f32 0.3275911, %v6032_v29  ;;  %v6480_v27 = vsub.f32 0.0, %v6032_v29  ;;  %v13901_v4 = vmul.f32 0.70710677, %v13893_v42 }
 0xc6a   : > { %v5740_v24 = vpop.f32.mrb[131].mxu1  ;;  %v6097_v14 = vadd.f32 1.0, %v6065_v0  ;;  %v6035_v54 = vand.u32 2147483647, %v13898_v61  ;;  %v13914_v18 = vmul.f32 0.5, %v5726_v25  ;;  %v13916_v22 = vmul.f32 0.5, %v5721_v17  ;;  %v5517_v25 = vpop.permute.xlu0 %5516 }
 0xc6b   : > { %v6096_v10 = vadd.f32 1.0, %v6064_v57  ;;  %v6034_v46 = vand.u32 2147483647, %v13901_v4  ;;  %v6513_v44 = vmul.f32 %v6481_v15, %v6033_v39  ;;  %v6544_v28 = vmul.f32 1.442695, %v6511_v40 }
 0xc6c   : > { %10180 = vrcp.f32 %v6097_v14  ;;  %v6067_v21 = vmul.f32 0.3275911, %v6035_v54  ;;  %v6483_v41 = vsub.f32 0.0, %v6035_v54  ;;  %v6512_v6 = vmul.f32 %v6480_v27, %v6032_v29 }
 0xc6d   : > { %v13903_v56 = vpop.f32.mrb[132].mxu1  ;;  %10182 = vrcp.f32 %v6096_v10  ;;  %v6066_v16 = vmul.f32 0.3275911, %v6034_v46  ;;  %v13919_v23 = vadd.f32 %v9443_v43, %v5522_v13  ;;  %v6542_v14 = vmul.f32 1.442695, %v6510_v47 }
 0xc6e   : > { %v13909_v38 = vpop.f32.mrb[133].mxu1  ;;  %vm5969_vm4 = vcmp.ge.f32.partialorder %v13879_v1, 0.0  ;;  %v6099_v17 = vadd.f32 1.0, %v6067_v21  ;;  %v6482_v57 = vsub.f32 0.0, %v6034_v46  ;;  %v6515_v29 = vmul.f32 %v6483_v41, %v6035_v54  ;;  %v13992_v52 = vpop.permute.xlu0 %5606 }
 0xc6f   : > { %v6098_v40 = vadd.f32 1.0, %v6066_v16  ;;  %v13931_v43 = vadd.f32 %v5740_v24, %v5517_v25  ;;  %v6548_v10 = vmul.f32 1.442695, %v6513_v44  ;;  %v13935_v47 = vmul.f32 0.70710677, %v13919_v23  ;;  %v13948_v16 = vpop.permute.xlu1 %5611  ;;  %15761 = vst [vmem:[#allocation5_spill] sm:$0xff] %v13992_v52 }
 0xc70   : > { %10184 = vrcp.f32 %v6099_v17  ;;  %v13938_v13 = vsel %vm5969_vm4, 1.0, %v15669_v5  ;;  %v6546_v21 = vmul.f32 1.442695, %v6512_v6  ;;  %vm5968_vm5 = vcmp.ge.f32.partialorder %v13881_v20, 0.0  ;;  %15760 = vst [vmem:[#allocation4_spill] sm:$0xff] %v13948_v16 }
 0xc71   : > { %v13921_v0 = vpop.f32.mrb[134].mxu1  ;;  %10186 = vrcp.f32 %v6098_v40  ;;  %v6037_v24 = vand.u32 2147483647, %v13935_v47  ;;  %v6552_v17 = vmul.f32 1.442695, %v6515_v29  ;;  %v13957_v2 = vsel %vm5968_vm5, 1.0, %v15669_v5 }
 0xc72   : > { %v13923_v49 = vpop.eup %10176  ;;  %v13926_v63 = vpop.f32.mrb[135].mxu1  ;;  %10188 = vpow2.f32 %v6544_v28  ;;  %v13952_v6 = vmul.f32 0.70710677, %v13931_v43  ;;  %vm5971_vm6 = vcmp.ge.f32.partialorder %v13898_v61, 0.0  ;;  %vm5970_vm7 = vcmp.ge.f32.partialorder %v13901_v4, 0.0 }
 0xc73   : > { %v13928_v39 = vpop.eup %10178  ;;  %v6191_v15 = vmul.f32 1.0614054, %v13923_v49  ;;  %v6069_v20 = vmul.f32 0.3275911, %v6037_v24  ;;  %10190 = vpow2.f32 %v6542_v14  ;;  %v5532_v50 = vpop.permute.xlu1 %5531  ;;  %vm5973_vm8 = vcmp.ge.f32.partialorder %v13935_v47, 0.0 }
 0xc74   : > { %v6190_v27 = vmul.f32 1.0614054, %v13928_v39  ;;  %v6036_v59 = vand.u32 2147483647, %v13952_v6  ;;  %v6005_v47 = vsel %vm5973_vm8, 1.0, %v15669_v5  ;;  %vm5972_vm9 = vcmp.ge.f32.partialorder %v13952_v6, 0.0 }
 0xc75   : > { %v6223_v1 = vadd.f32 -1.4531521, %v6191_v15  ;;  %v13940_v37 = vpop.f32.mrb[136].mxu1  ;;  %v6514_v15 = vmul.f32 %v6482_v57, %v6034_v46 }
 0xc76   : > { %v6222_v54 = vadd.f32 -1.4531521, %v6190_v27  ;;  %v13944_v41 = vpop.f32.mrb[137].mxu1  ;;  %v13946_v44 = vpop.eup %10180  ;;  %v6485_v27 = vsub.f32 0.0, %v6037_v24  ;;  %v6068_v45 = vmul.f32 0.3275911, %v6036_v59 }
 0xc77   : > { %v6255_v25 = vmul.f32 %v13923_v49, %v6223_v1  ;;  %v6193_v40 = vmul.f32 1.0614054, %v13946_v44  ;;  %v13962_v29 = vpop.eup %10182  ;;  %v6101_v1 = vadd.f32 1.0, %v6069_v20  ;;  %v6550_v14 = vmul.f32 1.442695, %v6514_v15 }
 0xc78   : > { %v6254_v28 = vmul.f32 %v13928_v39, %v6222_v54  ;;  %v6517_v26 = vmul.f32 %v6485_v27, %v6037_v24  ;;  %v6484_v20 = vsub.f32 0.0, %v6036_v59 }
 0xc79   : > { %v6287_v3 = vadd.f32 1.4214138, %v6255_v25  ;;  %v13960_v55 = vpop.f32.mrb[138].mxu1  ;;  %v6225_v57 = vadd.f32 -1.4531521, %v6193_v40  ;;  %10192 = vrcp.f32 %v6101_v1  ;;  %v6100_v40 = vadd.f32 1.0, %v6068_v45 }
 0xc7a   : > { %v6286_v46 = vadd.f32 1.4214138, %v6254_v28  ;;  %v13964_v54 = vpop.f32.mrb[139].mxu1  ;;  %v6192_v25 = vmul.f32 1.0614054, %v13962_v29  ;;  %v13970_v24 = vpop.eup %10184  ;;  %10194 = vpow2.f32 %v6548_v10 }
 0xc7b   : > { %v6319_v32 = vmul.f32 %v13923_v49, %v6287_v3  ;;  %v6257_v51 = vmul.f32 %v13946_v44, %v6225_v57  ;;  %v6556_v12 = vmul.f32 1.442695, %v6517_v26  ;;  %v13973_v3 = vadd.f32 %v13903_v56, %v5532_v50 }
 0xc7c   : > { %v6318_v62 = vmul.f32 %v13928_v39, %v6286_v46  ;;  %v6224_v28 = vadd.f32 -1.4531521, %v6192_v25  ;;  %v13977_v46 = vpop.eup %10186  ;;  %10196 = vrcp.f32 %v6100_v40  ;;  %v6516_v56 = vmul.f32 %v6484_v20, %v6036_v59 }
 0xc7d   : > { %v6351_v34 = vadd.f32 -0.28449672, %v6319_v32  ;;  %v6289_v48 = vadd.f32 1.4214138, %v6257_v51  ;;  %v13975_v15 = vpop.f32.mrb[140].mxu1  ;;  %v10189_v1 = vpop.eup %10188  ;;  %10198 = vpow2.f32 %v6546_v21 }
 0xc7e   : > { %v6350_v27 = vadd.f32 -0.28449672, %v6318_v62  ;;  %v6256_v26 = vmul.f32 %v13962_v29, %v6224_v28  ;;  %v6195_v32 = vmul.f32 1.0614054, %v13970_v24  ;;  %v13982_v45 = vpop.f32.mrb[141].mxu1  ;;  %10200 = vpow2.f32 %v6552_v17  ;;  %v10191_v31 = vpop.eup %10190 }
 0xc7f   : > { %v6383_v57 = vmul.f32 %v13923_v49, %v6351_v34  ;;  %v6321_v62 = vmul.f32 %v13946_v44, %v6289_v48  ;;  %v6194_v50 = vmul.f32 1.0614054, %v13977_v46  ;;  %v6554_v36 = vmul.f32 1.442695, %v6516_v56 }
 0xc80   : > { %v6382_v51 = vmul.f32 %v13928_v39, %v6350_v27  ;;  %v6288_v25 = vadd.f32 1.4214138, %v6256_v26  ;;  %v6227_v11 = vadd.f32 -1.4531521, %v6195_v32  ;;  %v13998_v17 = vmul.f32 0.70710677, %v13973_v3 }
 0xc81   : > { %v6415_v10 = vadd.f32 0.2548296, %v6383_v57  ;;  %v6353_v16 = vadd.f32 -0.28449672, %v6321_v62  ;;  %v6226_v28 = vadd.f32 -1.4531521, %v6194_v50  ;;  %10202 = vpow2.f32 %v6550_v14  ;;  %v14006_v62 = vpop.permute.xlu1 %5621 }
 0xc82   : > { %v6414_v34 = vadd.f32 0.2548296, %v6382_v51  ;;  %v6320_v58 = vmul.f32 %v13962_v29, %v6288_v25  ;;  %v6259_v27 = vmul.f32 %v13970_v24, %v6227_v11  ;;  %v13990_v48 = vpop.f32.mrb[142].mxu1  ;;  %15762 = vst [vmem:[#allocation6_spill] sm:$0xff] %v14006_v62  ;;  %10204 = vpow2.f32 %v6556_v12 }
 0xc83   : > { %v6447_v40 = vmul.f32 %v13923_v49, %v6415_v10  ;;  %v6385_v21 = vmul.f32 %v13946_v44, %v6353_v16  ;;  %v6258_v20 = vmul.f32 %v13977_v46, %v6226_v28  ;;  %v14000_v57 = vpop.f32.mrb[143].mxu1  ;;  %v14004_v51 = vpop.eup %10192  ;;  %10206 = vpow2.f32 %v6554_v36 }
 0xc84   : > { %v6446_v59 = vmul.f32 %v13928_v39, %v6414_v34  ;;  %v6352_v26 = vadd.f32 -0.28449672, %v6320_v58  ;;  %v6291_v32 = vadd.f32 1.4214138, %v6259_v27  ;;  %v6197_v58 = vmul.f32 1.0614054, %v14004_v51  ;;  %v10195_v14 = vpop.eup %10194 }
 0xc85   : > { %v6607_v49 = vmul.f32 %v10189_v1, %v6447_v40  ;;  %v14002_v11 = vpop.f32.mrb[144].mxu1  ;;  %v6417_v50 = vadd.f32 0.2548296, %v6385_v21  ;;  %v6290_v16 = vadd.f32 1.4214138, %v6258_v20  ;;  %v5527_v20 = vpop.permute.xlu0 %5526  ;;  %vm5975_vm10 = vcmp.ge.f32.partialorder %v13998_v17, 0.0 }
 0xc86   : > { %v6606_v39 = vmul.f32 %v10191_v31, %v6446_v59  ;;  %v14008_v56 = vpop.f32.mrb[145].mxu1  ;;  %v6384_v25 = vmul.f32 %v13962_v29, %v6352_v26  ;;  %v6323_v1 = vmul.f32 %v13970_v24, %v6291_v32  ;;  %v14015_v31 = vpop.eup %10196  ;;  %v6229_v21 = vadd.f32 -1.4531521, %v6197_v58 }
 0xc87   : > { %v6639_v10 = vsub.f32 1.0, %v6607_v49  ;;  %v6449_v28 = vmul.f32 %v13946_v44, %v6417_v50  ;;  %v6322_v40 = vmul.f32 %v13977_v46, %v6290_v16  ;;  %v6196_v44 = vmul.f32 1.0614054, %v14015_v31  ;;  %v10199_v36 = vpop.eup %10198  ;;  %v5542_v58 = vpop.permute.xlu1 %5541 }
 0xc88   : > { %v6638_v34 = vsub.f32 1.0, %v6606_v39  ;;  %v6416_v27 = vadd.f32 0.2548296, %v6384_v25  ;;  %v6355_v59 = vadd.f32 -0.28449672, %v6323_v1  ;;  %v10201_v1 = vpop.eup %10200  ;;  %v14084_v4 = vadd.f32 %v13921_v0, %v5542_v58 }
 0xc89   : > { %v6671_v12 = vmul.f32 %v6639_v10, %v13906_v9  ;;  %v6609_v26 = vmul.f32 %v10195_v14, %v6449_v28  ;;  %v6354_v32 = vadd.f32 -0.28449672, %v6322_v40  ;;  %v14022_v39 = vpop.f32.mrb[146].mxu1  ;;  %v6261_v10 = vmul.f32 %v14004_v51, %v6229_v21 }
 0xc8a   : > { %v6670_v49 = vmul.f32 %v6638_v34, %v13912_v19  ;;  %v6448_v9 = vmul.f32 %v13962_v29, %v6416_v27  ;;  %v6387_v16 = vmul.f32 %v13970_v24, %v6355_v59  ;;  %v14027_v25 = vpop.f32.mrb[147].mxu1  ;;  %v6228_v34 = vadd.f32 -1.4531521, %v6196_v44 }
 0xc8b   : > { %v6703_v50 = vadd.f32 1.0, %v6671_v12  ;;  %v6641_v19 = vsub.f32 1.0, %v6609_v26  ;;  %v6386_v14 = vmul.f32 %v13977_v46, %v6354_v32  ;;  %v6293_v52 = vadd.f32 1.4214138, %v6261_v10  ;;  %v10203_v32 = vpop.eup %10202 }
 0xc8c   : > { %v6702_v62 = vadd.f32 1.0, %v6670_v49  ;;  %v6608_v40 = vmul.f32 %v10199_v36, %v6448_v9  ;;  %v6419_v12 = vadd.f32 0.2548296, %v6387_v16  ;;  %v6260_v49 = vmul.f32 %v14015_v31, %v6228_v34  ;;  %v10205_v9 = vpop.eup %10204  ;;  %v14047_v16 = vpop.permute.xlu0 %5616 }
 0xc8d   : > { %v14031_v28 = vmul.f32 %v6703_v50, %v13886_v33  ;;  %v14033_v29 = vpop.f32.mrb[148].mxu1  ;;  %v6673_v59 = vmul.f32 %v6641_v19, %v13938_v13  ;;  %v6418_v21 = vadd.f32 0.2548296, %v6386_v14  ;;  %v6325_v36 = vmul.f32 %v14004_v51, %v6293_v52  ;;  %15766 = vst [vmem:[#allocation11_spill] sm:$0xff] %v14047_v16 }
 0xc8e   : > { %v14036_v27 = vmul.f32 %v6702_v62, %v13891_v30  ;;  %v14040_v26 = vpop.f32.mrb[149].mxu1  ;;  %v6640_v44 = vsub.f32 1.0, %v6608_v40  ;;  %v6451_v33 = vmul.f32 %v13970_v24, %v6419_v12  ;;  %v14045_v50 = vand.u32 2147483647, %v13998_v17  ;;  %v10207_v40 = vpop.eup %10206 }
 0xc8f   : > { %15763 = vst [vmem:[#allocation7_spill] sm:$0xff] %v14031_v28  ;;  %15765 = vst [vmem:[#allocation8_spill] sm:$0xff] %v14040_v26  ;;  %v6705_v13 = vadd.f32 1.0, %v6673_v59  ;;  %v6450_v62 = vmul.f32 %v13977_v46, %v6418_v21  ;;  %v6292_v10 = vadd.f32 1.4214138, %v6260_v49  ;;  %v14056_v12 = vpop.permute.xlu1 %5631  ;;  %v14063_v46 = vadd.f32 %v13909_v38, %v5527_v20 }
 0xc90   : > { %15764 = vst [vmem:[#allocation9_spill] sm:$0xff] %v14036_v27  ;;  %v6672_v19 = vmul.f32 %v6640_v44, %v13957_v2  ;;  %v6611_v14 = vmul.f32 %v10201_v1, %v6451_v33  ;;  %v6357_v34 = vadd.f32 -0.28449672, %v6325_v36  ;;  %v6071_v24 = vmul.f32 0.3275911, %v14045_v50 }
 0xc91   : > { %v14054_v52 = vpop.f32.mrb[150].mxu1  ;;  %v14059_v16 = vmul.f32 %v6705_v13, %v13914_v18  ;;  %v6610_v26 = vmul.f32 %v10203_v32, %v6450_v62  ;;  %v6324_v59 = vmul.f32 %v14015_v31, %v6292_v10  ;;  %v6003_v33 = vsel %vm5971_vm6, 1.0, %v15669_v5  ;;  %v5537_v10 = vpop.permute.xlu0 %5536 }
 0xc92   : > { %v14065_v21 = vpop.f32.mrb[151].mxu1  ;;  %v6704_v2 = vadd.f32 1.0, %v6672_v19  ;;  %v6643_v1 = vsub.f32 1.0, %v6611_v14  ;;  %v6389_v49 = vmul.f32 %v14004_v51, %v6357_v34  ;;  %v6103_v44 = vadd.f32 1.0, %v6071_v24 }
 0xc93   : > { %15767 = vst [vmem:[#allocation10_spill] sm:$0xff] %v14059_v16  ;;  %v6002_v18 = vsel %vm5970_vm7, 1.0, %v15669_v5  ;;  %v6642_v32 = vsub.f32 1.0, %v6610_v26  ;;  %v6356_v36 = vadd.f32 -0.28449672, %v6324_v59  ;;  %v5907_v34 = vmul.f32 0.5, %v13889_v8 }
 0xc94   : > { %v14075_v38 = vmul.f32 %v6704_v2, %v13916_v22  ;;  %v6675_v20 = vmul.f32 %v6643_v1, %v6003_v33  ;;  %v6421_v13 = vadd.f32 0.2548296, %v6389_v49  ;;  %10208 = vrcp.f32 %v6103_v44  ;;  %v5552_v2 = vpop.permute.xlu1 %5551 }
 0xc95   : > { %v14077_v62 = vpop.f32.mrb[152].mxu1  ;;  %v6674_v19 = vmul.f32 %v6642_v32, %v6002_v18  ;;  %v6388_v14 = vmul.f32 %v14015_v31, %v6356_v36  ;;  %v14081_v61 = vmul.f32 0.70710677, %v14063_v46  ;;  %v5906_v1 = vmul.f32 0.5, %v13893_v42 }
 0xc96   : > { %15768 = vst [vmem:[#allocation13_spill] sm:$0xff] %v14075_v38  ;;  %v14086_v26 = vpop.f32.mrb[153].mxu1  ;;  %v6707_v24 = vadd.f32 1.0, %v6675_v20  ;;  %v6453_v59 = vmul.f32 %v14004_v51, %v6421_v13  ;;  %v6487_v58 = vsub.f32 0.0, %v14045_v50  ;;  %v14104_v36 = vmul.f32 0.70710677, %v14084_v4 }
 0xc97   : > { %15769 = vst [vmem:[#allocation12_spill] sm:$0xff] %v14086_v26  ;;  %v6706_v49 = vadd.f32 1.0, %v6674_v19  ;;  %v6420_v44 = vadd.f32 0.2548296, %v6388_v14  ;;  %v6038_v18 = vand.u32 2147483647, %v14081_v61  ;;  %v14112_v19 = vpop.permute.xlu0 %5626 }
 0xc98   : > { %v14094_v33 = vmul.f32 %v6707_v24, %v5907_v34  ;;  %v6613_v0 = vmul.f32 %v10205_v9, %v6453_v59  ;;  %v14110_v9 = vadd.f32 %v13926_v63, %v5537_v10  ;;  %v6041_v34 = vand.u32 2147483647, %v14104_v36 }
 0xc99   : > { %v14098_v32 = vpop.f32.mrb[154].mxu1  ;;  %v14100_v8 = vmul.f32 %v6706_v49, %v5906_v1  ;;  %v6452_v51 = vmul.f32 %v14015_v31, %v6420_v44  ;;  %v6070_v13 = vmul.f32 0.3275911, %v6038_v18  ;;  %v6519_v59 = vmul.f32 %v6487_v58, %v14045_v50  ;;  %v14119_v49 = vpop.permute.xlu1 %5641 }
 0xc9a   : > { %15770 = vst [vmem:[#allocation14_spill] sm:$0xff] %v14094_v33  ;;  %15771 = vst [vmem:[#allocation15_spill] sm:$0xff] %v14098_v32  ;;  %v14106_v42 = vpop.f32.mrb[155].mxu1  ;;  %v6645_v20 = vsub.f32 1.0, %v6613_v0  ;;  %v5909_v44 = vmul.f32 0.5, %v13919_v23  ;;  %v6004_v14 = vsel %vm5972_vm9, 1.0, %v15669_v5  ;;  %v14130_v58 = vadd.f32 %v13940_v37, %v5552_v2 }
 0xc9b   : > { %15772 = vst [vmem:[#allocation16_spill] sm:$0xff] %v14100_v8  ;;  %15773 = vst [vmem:[#allocation17_spill] sm:$0xff] %v14106_v42  ;;  %v6612_v31 = vmul.f32 %v10207_v40, %v6452_v51  ;;  %v6102_v1 = vadd.f32 1.0, %v6070_v13  ;;  %v6073_v10 = vmul.f32 0.3275911, %v6041_v34  ;;  %v5908_v23 = vmul.f32 0.5, %v13931_v43  ;;  %v5547_v13 = vpop.permute.xlu0 %5546 }
 0xc9c   : > { %v6677_v24 = vmul.f32 %v6645_v20, %v6005_v47  ;;  %15774 = vst [vmem:[#allocation18_spill] sm:$0xff] %v14119_v49  ;;  %v14126_v6 = vmul.f32 0.70710677, %v14110_v9  ;;  %v6560_v47 = vmul.f32 1.442695, %v6519_v59  ;;  %v6486_v2 = vsub.f32 0.0, %v6038_v18 }
 0xc9d   : > { %v6644_v63 = vsub.f32 1.0, %v6612_v31  ;;  %10210 = vrcp.f32 %v6102_v1  ;;  %v6105_v50 = vadd.f32 1.0, %v6073_v10  ;;  %v14141_v43 = vmul.f32 0.70710677, %v14130_v58 }
 0xc9e   : > { %v14122_v0 = vpop.eup %10208  ;;  %v6709_v22 = vadd.f32 1.0, %v6677_v24  ;;  %v6040_v20 = vand.u32 2147483647, %v14126_v6  ;;  %v6489_v59 = vsub.f32 0.0, %v6041_v34  ;;  %vm5974_vm11 = vcmp.ge.f32.partialorder %v14081_v61, 0.0 }
 0xc9f   : > { %v6676_v40 = vmul.f32 %v6644_v63, %v6004_v14  ;;  %v6199_v51 = vmul.f32 1.0614054, %v14122_v0  ;;  %10212 = vrcp.f32 %v6105_v50  ;;  %v5562_v63 = vpop.permute.xlu1 %5561  ;;  %v6043_v50 = vand.u32 2147483647, %v14141_v43 }
 0xca0   : > { %v14134_v31 = vmul.f32 %v6709_v22, %v5909_v44  ;;  %v6072_v14 = vmul.f32 0.3275911, %v6040_v20  ;;  %v14144_v22 = vadd.f32 %v13944_v41, %v5547_v13  ;;  %v14147_v44 = vadd.f32 %v13960_v55, %v5562_v63 }
 0xca1   : > { %v6708_v24 = vadd.f32 1.0, %v6676_v40  ;;  %v6231_v1 = vadd.f32 -1.4531521, %v6199_v51  ;;  %10214 = vpow2.f32 %v6560_v47  ;;  %v6518_v13 = vmul.f32 %v6486_v2, %v6038_v18 }
 0xca2   : > { %15775 = vst [vmem:[#allocation19_spill] sm:$0xff] %v14134_v31  ;;  %v6104_v10 = vadd.f32 1.0, %v6072_v14  ;;  %v6075_v55 = vmul.f32 0.3275911, %v6043_v50  ;;  %v14167_v47 = vsel %vm5975_vm10, 1.0, %v15669_v5  ;;  %v6521_v63 = vmul.f32 %v6489_v59, %v6041_v34 }
 0xca3   : > { %v14137_v30 = vmul.f32 %v6708_v24, %v5908_v23  ;;  %v6263_v37 = vmul.f32 %v14122_v0, %v6231_v1  ;;  %v14153_v23 = vmul.f32 0.5, %v13973_v3  ;;  %v14156_v24 = vpop.permute.xlu0 %5636  ;;  %v14160_v1 = vmul.f32 0.70710677, %v14144_v22 }
 0xca4   : > { %10216 = vrcp.f32 %v6104_v10  ;;  %15777 = vst [vmem:[#allocation20_spill] sm:$0xff] %v14156_v24  ;;  %v14170_v3 = vmul.f32 0.5, %v14063_v46  ;;  %v6488_v2 = vsub.f32 0.0, %v6040_v20  ;;  %v14179_v40 = vsel %vm5974_vm11, 1.0, %v15669_v5 }
 0xca5   : > { %15776 = vst [vmem:[#allocation21_spill] sm:$0xff] %v14137_v30  ;;  %v6295_v51 = vadd.f32 1.4214138, %v6263_v37  ;;  %v14173_v37 = vmul.f32 0.70710677, %v14147_v44  ;;  %v14182_v17 = vmul.f32 0.5, %v14084_v4 }
 0xca6   : > { %v6042_v46 = vand.u32 2147483647, %v14160_v1  ;;  %v6558_v31 = vmul.f32 1.442695, %v6518_v13  ;;  %vm5977_vm13 = vcmp.ge.f32.partialorder %v14104_v36, 0.0  ;;  %v6520_v27 = vmul.f32 %v6488_v2, %v6040_v20 }
 0xca7   : > { %v6327_v41 = vmul.f32 %v14122_v0, %v6295_v51  ;;  %v14162_v14 = vpop.eup %10210  ;;  %v6107_v51 = vadd.f32 1.0, %v6075_v55  ;;  %v6045_v34 = vand.u32 2147483647, %v14173_v37  ;;  %v6491_v55 = vsub.f32 0.0, %v6043_v50  ;;  %v5557_v33 = vpop.permute.xlu0 %5556 }
 0xca8   : > { %v6198_v18 = vmul.f32 1.0614054, %v14162_v14  ;;  %v6074_v8 = vmul.f32 0.3275911, %v6042_v46  ;;  %v6564_v16 = vmul.f32 1.442695, %v6521_v63 }
 0xca9   : > { %v6359_v10 = vadd.f32 -0.28449672, %v6327_v41  ;;  %v14186_v59 = vpop.eup %10212  ;;  %10218 = vrcp.f32 %v6107_v51  ;;  %v6077_v24 = vmul.f32 0.3275911, %v6045_v34  ;;  %v6490_v32 = vsub.f32 0.0, %v6042_v46 }
 0xcaa   : > { %v6230_v30 = vadd.f32 -1.4531521, %v6198_v18  ;;  %v6201_v61 = vmul.f32 1.0614054, %v14186_v59  ;;  %v6106_v42 = vadd.f32 1.0, %v6074_v8  ;;  %10220 = vpow2.f32 %v6558_v31 }
 0xcab   : > { %v6391_v41 = vmul.f32 %v14122_v0, %v6359_v10  ;;  %v14193_v10 = vadd.f32 %v13964_v54, %v5557_v33  ;;  %v10215_v13 = vpop.eup %10214  ;;  %v6523_v26 = vmul.f32 %v6491_v55, %v6043_v50  ;;  %v6493_v54 = vsub.f32 0.0, %v6045_v34 }
 0xcac   : > { %v6262_v38 = vmul.f32 %v14162_v14, %v6230_v30  ;;  %v6233_v28 = vadd.f32 -1.4531521, %v6201_v61  ;;  %10222 = vrcp.f32 %v6106_v42  ;;  %v6109_v30 = vadd.f32 1.0, %v6077_v24 }
 0xcad   : > { %v6423_v4 = vadd.f32 0.2548296, %v6391_v41  ;;  %10224 = vpow2.f32 %v6564_v16  ;;  %v6562_v2 = vmul.f32 1.442695, %v6520_v27  ;;  %v6522_v61 = vmul.f32 %v6490_v32, %v6042_v46 }
 0xcae   : > { %v6294_v51 = vadd.f32 1.4214138, %v6262_v38  ;;  %v14196_v49 = vpop.eup %10216  ;;  %v6265_v41 = vmul.f32 %v14186_v59, %v6233_v28  ;;  %v14202_v38 = vmul.f32 0.70710677, %v14193_v10  ;;  %10226 = vrcp.f32 %v6109_v30 }
 0xcaf   : > { %v6455_v18 = vmul.f32 %v14122_v0, %v6423_v4  ;;  %v6200_v63 = vmul.f32 1.0614054, %v14196_v49  ;;  %v14207_v42 = vsel %vm5977_vm13, 1.0, %v15669_v5  ;;  %v6568_v4 = vmul.f32 1.442695, %v6523_v26 }
 0xcb0   : > { %v6326_v8 = vmul.f32 %v14162_v14, %v6294_v51  ;;  %v6297_v33 = vadd.f32 1.4214138, %v6265_v41  ;;  %v14211_v24 = vand.u32 2147483647, %v14202_v38  ;;  %v6525_v32 = vmul.f32 %v6493_v54, %v6045_v34 }
 0xcb1   : > { %v6615_v20 = vmul.f32 %v10215_v13, %v6455_v18  ;;  %v6232_v31 = vadd.f32 -1.4531521, %v6200_v63  ;;  %v14221_v18 = vadd.f32 %v13975_v15, %v13869_v7  ;;  %10228 = vpow2.f32 %v6562_v2 }
 0xcb2   : > { %v6358_v0 = vadd.f32 -0.28449672, %v6326_v8  ;;  %v6329_v50 = vmul.f32 %v14186_v59, %v6297_v33  ;;  %v6076_v36 = vmul.f32 0.3275911, %v14211_v24  ;;  %v6566_v30 = vmul.f32 1.442695, %v6522_v61 }
 0xcb3   : > { %v6647_v28 = vsub.f32 1.0, %v6615_v20  ;;  %v14213_v16 = vpop.eup %10218  ;;  %v6264_v55 = vmul.f32 %v14196_v49, %v6232_v31  ;;  %10230 = vpow2.f32 %v6568_v4  ;;  %v14231_v2 = vmul.f32 0.70710677, %v14221_v18 }
 0xcb4   : > { %v6390_v27 = vmul.f32 %v14162_v14, %v6358_v0  ;;  %v6361_v46 = vadd.f32 -0.28449672, %v6329_v50  ;;  %v6203_v13 = vmul.f32 1.0614054, %v14213_v16  ;;  %v6108_v26 = vadd.f32 1.0, %v6076_v36  ;;  %v10221_v34 = vpop.eup %10220 }
 0xcb5   : > { %v6296_v41 = vadd.f32 1.4214138, %v6264_v55  ;;  %v6679_v20 = vmul.f32 %v6647_v28, %v14167_v47  ;;  %v6572_v0 = vmul.f32 1.442695, %v6525_v32  ;;  %vm5976_vm14 = vcmp.ge.f32.partialorder %v14126_v6, 0.0 }
 0xcb6   : > { %v6422_v51 = vadd.f32 0.2548296, %v6390_v27  ;;  %v6393_v8 = vmul.f32 %v14186_v59, %v6361_v46  ;;  %v6235_v63 = vadd.f32 -1.4531521, %v6203_v13  ;;  %v14227_v31 = vpop.eup %10222  ;;  %10232 = vrcp.f32 %v6108_v26 }
 0xcb7   : > { %v6328_v33 = vmul.f32 %v14196_v49, %v6296_v41  ;;  %v6202_v28 = vmul.f32 1.0614054, %v14227_v31  ;;  %10234 = vpow2.f32 %v6566_v30  ;;  %v6711_v50 = vadd.f32 1.0, %v6679_v20 }
 0xcb8   : > { %v6454_v54 = vmul.f32 %v14162_v14, %v6422_v51  ;;  %v6425_v7 = vadd.f32 0.2548296, %v6393_v8  ;;  %v6267_v15 = vmul.f32 %v14213_v16, %v6235_v63  ;;  %v10225_v14 = vpop.eup %10224  ;;  %vm5979_vm15 = vcmp.ge.f32.partialorder %v14141_v43, 0.0 }
 0xcb9   : > { %v6360_v61 = vadd.f32 -0.28449672, %v6328_v33  ;;  %v14238_v4 = vand.u32 2147483647, %v14231_v2  ;;  %v14240_v32 = vpop.eup %10226  ;;  %v6234_v36 = vadd.f32 -1.4531521, %v6202_v28  ;;  %10236 = vpow2.f32 %v6572_v0 }
 0xcba   : > { %v6614_v47 = vmul.f32 %v10221_v34, %v6454_v54  ;;  %v6457_v27 = vmul.f32 %v14186_v59, %v6425_v7  ;;  %v6299_v55 = vadd.f32 1.4214138, %v6267_v15  ;;  %v6205_v30 = vmul.f32 1.0614054, %v14240_v32 }
 0xcbb   : > { %v6392_v13 = vmul.f32 %v14196_v49, %v6360_v61  ;;  %v6492_v59 = vsub.f32 0.0, %v14211_v24  ;;  %v6266_v63 = vmul.f32 %v14227_v31, %v6234_v36  ;;  %v6079_v26 = vmul.f32 0.3275911, %v14238_v4  ;;  %v10229_v7 = vpop.eup %10228 }
 0xcbc   : > { %v6646_v46 = vsub.f32 1.0, %v6614_v47  ;;  %v6617_v51 = vmul.f32 %v10225_v14, %v6457_v27  ;;  %v6331_v41 = vmul.f32 %v14213_v16, %v6299_v55  ;;  %v14250_v34 = vmul.f32 %v6711_v50, %v14153_v23 }
 0xcbd   : > { %v6424_v8 = vadd.f32 0.2548296, %v6392_v13  ;;  %v6237_v0 = vadd.f32 -1.4531521, %v6205_v30  ;;  %v6298_v61 = vadd.f32 1.4214138, %v6266_v63  ;;  %v6524_v55 = vmul.f32 %v6492_v59, %v14211_v24 }
 0xcbe   : > { %v6678_v20 = vmul.f32 %v6646_v46, %v14179_v40  ;;  %v6649_v54 = vsub.f32 1.0, %v6617_v51  ;;  %v6363_v33 = vadd.f32 -0.28449672, %v6331_v41  ;;  %v6111_v28 = vadd.f32 1.0, %v6079_v26  ;;  %v10231_v46 = vpop.eup %10230 }
 0xcbf   : > { %v6456_v47 = vmul.f32 %v14196_v49, %v6424_v8  ;;  %v6269_v27 = vmul.f32 %v14240_v32, %v6237_v0  ;;  %v6330_v13 = vmul.f32 %v14227_v31, %v6298_v61  ;;  %v5912_v8 = vmul.f32 0.5, %v14110_v9 }
 0xcc0   : > { %v6710_v15 = vadd.f32 1.0, %v6678_v20  ;;  %v6681_v14 = vmul.f32 %v6649_v54, %v14207_v42  ;;  %v6395_v40 = vmul.f32 %v14213_v16, %v6363_v33  ;;  %10238 = vrcp.f32 %v6111_v28  ;;  %v14261_v36 = vpop.eup %10232 }
 0xcc1   : > { %v6616_v50 = vmul.f32 %v10229_v7, %v6456_v47  ;;  %v6301_v41 = vadd.f32 1.4214138, %v6269_v27  ;;  %v14265_v42 = vadd.f32 %v13982_v45, %v13867_v60  ;;  %v10235_v30 = vpop.eup %10234  ;;  %v6204_v20 = vmul.f32 1.0614054, %v14261_v36 }
 0xcc2   : > { %v14258_v23 = vmul.f32 %v6710_v15, %v14170_v3  ;;  %v6713_v49 = vadd.f32 1.0, %v6681_v14  ;;  %v6427_v51 = vadd.f32 0.2548296, %v6395_v40  ;;  %v6362_v3 = vadd.f32 -0.28449672, %v6330_v13 }
 0xcc3   : > { %v6648_v59 = vsub.f32 1.0, %v6616_v50  ;;  %v6008_v63 = vsel %vm5976_vm14, 1.0, %v15669_v5  ;;  %v6333_v54 = vmul.f32 %v14240_v32, %v6301_v41  ;;  %v10237_v60 = vpop.eup %10236  ;;  %v6011_v33 = vsel %vm5979_vm15, 1.0, %v15669_v5 }
 0xcc4   : > { %v6459_v26 = vmul.f32 %v14213_v16, %v6427_v51  ;;  %v6394_v0 = vmul.f32 %v14227_v31, %v6362_v3  ;;  %v6236_v7 = vadd.f32 -1.4531521, %v6204_v20  ;;  %v6570_v9 = vmul.f32 1.442695, %v6524_v55 }
 0xcc5   : > { %v6680_v45 = vmul.f32 %v6648_v59, %v6008_v63  ;;  %v6365_v47 = vadd.f32 -0.28449672, %v6333_v54  ;;  %v14281_v61 = vmul.f32 0.70710677, %v14265_v42  ;;  %v14284_v6 = vmul.f32 %v6713_v49, %v14182_v17 }
 0xcc6   : > { %v6619_v15 = vmul.f32 %v10231_v46, %v6459_v26  ;;  %v6426_v28 = vadd.f32 0.2548296, %v6394_v0  ;;  %v6268_v14 = vmul.f32 %v14261_v36, %v6236_v7  ;;  %vm5978_vm0 = vcmp.ge.f32.partialorder %v14160_v1, 0.0 }
 0xcc7   : > { %v6712_v16 = vadd.f32 1.0, %v6680_v45  ;;  %v6397_v43 = vmul.f32 %v14240_v32, %v6365_v47  ;;  %v14290_v27 = vand.u32 2147483647, %v14281_v61  ;;  %v14297_v17 = vadd.f32 %v13990_v48, %v13871_v53 }
 0xcc8   : > { %v6651_v40 = vsub.f32 1.0, %v6619_v15  ;;  %v6458_v55 = vmul.f32 %v14227_v31, %v6426_v28  ;;  %v6300_v50 = vadd.f32 1.4214138, %v6268_v14  ;;  %10240 = vpow2.f32 %v6570_v9 }
 0xcc9   : > { %v14292_v46 = vmul.f32 %v6712_v16, %v5912_v8  ;;  %v6429_v49 = vadd.f32 0.2548296, %v6397_v43  ;;  %v6078_v51 = vmul.f32 0.3275911, %v14290_v27  ;;  %vm5981_vm1 = vcmp.ge.f32.partialorder %v14173_v37, 0.0 }
 0xcca   : > { %v6683_v13 = vmul.f32 %v6651_v40, %v6011_v33  ;;  %v14300_v41 = vpop.eup %10238  ;;  %v6618_v3 = vmul.f32 %v10235_v30, %v6458_v55  ;;  %v6332_v31 = vmul.f32 %v14261_v36, %v6300_v50  ;;  %v6010_v53 = vsel %vm5978_vm0, 1.0, %v15669_v5 }
 0xccb   : > { %v6461_v48 = vmul.f32 %v14240_v32, %v6429_v49  ;;  %v6207_v20 = vmul.f32 1.0614054, %v14300_v41  ;;  %v6110_v8 = vadd.f32 1.0, %v6078_v51  ;;  %v14312_v45 = vmul.f32 0.70710677, %v14297_v17 }
 0xccc   : > { %v6715_v63 = vadd.f32 1.0, %v6683_v13  ;;  %v6650_v26 = vsub.f32 1.0, %v6618_v3  ;;  %v6364_v54 = vadd.f32 -0.28449672, %v6332_v31  ;;  %v6495_v0 = vsub.f32 0.0, %v14238_v4 }
 0xccd   : > { %v6621_v30 = vmul.f32 %v10237_v60, %v6461_v48  ;;  %v6239_v33 = vadd.f32 -1.4531521, %v6207_v20  ;;  %10242 = vrcp.f32 %v6110_v8  ;;  %v5915_v7 = vmul.f32 0.5, %v14130_v58 }
 0xcce   : > { %v5914_v1 = vmul.f32 0.5, %v14144_v22  ;;  %v6682_v15 = vmul.f32 %v6650_v26, %v6010_v53  ;;  %v6396_v32 = vmul.f32 %v14261_v36, %v6364_v54  ;;  %v6013_v47 = vsel %vm5981_vm1, 1.0, %v15669_v5 }
 0xccf   : > { %v6653_v9 = vsub.f32 1.0, %v6621_v30  ;;  %v6271_v16 = vmul.f32 %v14300_v41, %v6239_v33  ;;  %v14323_v60 = vand.u32 2147483647, %v14312_v45  ;;  %v14325_v28 = vmul.f32 %v6715_v63, %v5915_v7  ;;  %v15778_v33 = vld [vmem:[#allocation35_spill] sm:$0xff]  ;;  %v15779_v7 = vld [vmem:[#allocation38_spill] sm:$0xff] }
 0xcd0   : > { %v6714_v14 = vadd.f32 1.0, %v6682_v15  ;;  %v6428_v40 = vadd.f32 0.2548296, %v6396_v32  ;;  %v14329_v58 = vadd.f32 %v14000_v57, %v13873_v35  ;;  %v6527_v55 = vmul.f32 %v6495_v0, %v14238_v4  ;;  %v8734_v35 = vld [vmem:[%s15581_s6 + $0x108] sm:$0xff] }
 0xcd1   : > { %v6685_v22 = vmul.f32 %v6653_v9, %v6013_v47  ;;  %v6303_v43 = vadd.f32 1.4214138, %v6271_v16  ;;  %v6081_v37 = vmul.f32 0.3275911, %v14323_v60  ;;  %vm5980_vm2 = vcmp.ge.f32.partialorder %v14202_v38, 0.0  ;;  %6830 = vmatprep.mubr.f32.mxu1 %v8734_v35 }
 0xcd2   : > { %v14333_v50 = vmul.f32 %v6714_v14, %v5914_v1  ;;  %v6460_v13 = vmul.f32 %v14261_v36, %v6428_v40  ;;  %v14337_v49 = vmul.f32 0.70710677, %v14329_v58  ;;  %v10241_v51 = vpop.eup %10240  ;;  %v6576_v48 = vmul.f32 1.442695, %v6527_v55 }
 0xcd3   : > { %v6335_v3 = vmul.f32 %v14300_v41, %v6303_v43  ;;  %v6113_v31 = vadd.f32 1.0, %v6081_v37  ;;  %v6717_v36 = vadd.f32 1.0, %v6685_v22  ;;  %v5917_v20 = vmul.f32 0.5, %v14147_v44 }
 0xcd4   : > { %v6620_v4 = vmul.f32 %v10241_v51, %v6460_v13  ;;  %v14347_v53 = vand.u32 2147483647, %v14337_v49  ;;  %v6012_v30 = vsel %vm5980_vm2, 1.0, %v15669_v5  ;;  %v6494_v38 = vsub.f32 0.0, %v14290_v27 }
 0xcd5   : > { %10244 = vrcp.f32 %v6113_v31  ;;  %v6367_v63 = vadd.f32 -0.28449672, %v6335_v3  ;;  %v14357_v0 = vadd.f32 %v14002_v11, %v15778_v33  ;;  %v14361_v1 = vadd.f32 %v14008_v56, %v15779_v7 }
 0xcd6   : > { %v6652_v8 = vsub.f32 1.0, %v6620_v4  ;;  %v6080_v26 = vmul.f32 0.3275911, %v14347_v53  ;;  %v5916_v44 = vmul.f32 0.5, %v14193_v10  ;;  %v14365_v9 = vmul.f32 %v6717_v36, %v5917_v20  ;;  %v15780_v20 = vld [vmem:[#allocation39_spill] sm:$0xff] }
 0xcd7   : > { %v14351_v54 = vpop.eup %10242  ;;  %vm5983_vm4 = vcmp.ge.f32.partialorder %v14231_v2, 0.0  ;;  %10246 = vpow2.f32 %v6576_v48  ;;  %v14369_v16 = vmul.f32 0.70710677, %v14357_v0  ;;  %v6399_v14 = vmul.f32 %v14300_v41, %v6367_v63 }
 0xcd8   : > { %v6684_v15 = vmul.f32 %v6652_v8, %v6012_v30  ;;  %v6206_v32 = vmul.f32 1.0614054, %v14351_v54  ;;  %v6112_v47 = vadd.f32 1.0, %v6080_v26  ;;  %v6526_v56 = vmul.f32 %v6494_v38, %v14290_v27 }
 0xcd9   : > { %v6497_v10 = vsub.f32 0.0, %v14323_v60  ;;  %v6051_v22 = vand.u32 2147483647, %v14369_v16  ;;  %v14376_v43 = vmul.f32 0.70710677, %v14361_v1  ;;  %v14381_v2 = vmul.f32 0.5, %v14221_v18 }
 0xcda   : > { %v6716_v11 = vadd.f32 1.0, %v6684_v15  ;;  %v6238_v40 = vadd.f32 -1.4531521, %v6206_v32  ;;  %10248 = vrcp.f32 %v6112_v47  ;;  %v14384_v37 = vsel %vm5983_vm4, 1.0, %v15669_v5 }
 0xcdb   : > { %v14388_v51 = vmul.f32 0.5, %v14265_v42  ;;  %vm5982_vm5 = vcmp.ge.f32.partialorder %v14281_v61, 0.0  ;;  %vm5985_vm6 = vcmp.ge.f32.partialorder %v14312_v45, 0.0  ;;  %v6083_v27 = vmul.f32 0.3275911, %v6051_v22 }
 0xcdc   : > { %v14378_v55 = vmul.f32 %v6716_v11, %v5916_v44  ;;  %v6270_v13 = vmul.f32 %v14351_v54, %v6238_v40  ;;  %v6431_v31 = vadd.f32 0.2548296, %v6399_v14  ;;  %v14395_v18 = vand.u32 2147483647, %v14376_v43  ;;  %v15781_v40 = vld [vmem:[#allocation3_spill] sm:$0xff] }
 0xcdd   : > { %v6574_v36 = vmul.f32 1.442695, %v6526_v56  ;;  %v6529_v48 = vmul.f32 %v6497_v10, %v14323_v60  ;;  %v6115_v42 = vadd.f32 1.0, %v6083_v27  ;;  %v14402_v61 = vadd.f32 %v14022_v39, %v15780_v20 }
 0xcde   : > { %v6302_v35 = vadd.f32 1.4214138, %v6270_v13  ;;  %v14405_v8 = vsel %vm5982_vm5, 1.0, %v15669_v5  ;;  %v6082_v30 = vmul.f32 0.3275911, %v14395_v18  ;;  %v14411_v38 = vmul.f32 0.5, %v14297_v17 }
 0xcdf   : > { %v14397_v4 = vpop.eup %10244  ;;  %v14416_v60 = vsel %vm5985_vm6, 1.0, %v15669_v5  ;;  %v6496_v39 = vsub.f32 0.0, %v14347_v53  ;;  %10250 = vrcp.f32 %v6115_v42  ;;  %v6463_v33 = vmul.f32 %v14300_v41, %v6431_v31 }
 0xce0   : > { %v6334_v63 = vmul.f32 %v14351_v54, %v6302_v35  ;;  %v6209_v26 = vmul.f32 1.0614054, %v14397_v4  ;;  %v6114_v15 = vadd.f32 1.0, %v6082_v30  ;;  %10252 = vpow2.f32 %v6574_v36 }
 0xce1   : > { %v10247_v32 = vpop.eup %10246  ;;  %v6580_v47 = vmul.f32 1.442695, %v6529_v48  ;;  %vm5984_vm7 = vcmp.ge.f32.partialorder %v14337_v49, 0.0  ;;  %v14422_v17 = vmul.f32 0.70710677, %v14402_v61  ;;  %v14430_v41 = vadd.f32 %v14027_v25, %v15781_v40 }
 0xce2   : > { %v6366_v7 = vadd.f32 -0.28449672, %v6334_v63  ;;  %v6241_v44 = vadd.f32 -1.4531521, %v6209_v26  ;;  %10254 = vrcp.f32 %v6114_v15  ;;  %v14433_v56 = vmul.f32 0.5, %v14329_v58 }
 0xce3   : > { %v6528_v49 = vmul.f32 %v6496_v39, %v14347_v53  ;;  %v14438_v13 = vand.u32 2147483647, %v14422_v17  ;;  %v6623_v27 = vmul.f32 %v10247_v32, %v6463_v33  ;;  %v14441_v35 = vsel %vm5984_vm7, 1.0, %v15669_v5 }
 0xce4   : > { %v14424_v11 = vpop.eup %10248  ;;  %v6398_v45 = vmul.f32 %v14351_v54, %v6366_v7  ;;  %v6273_v14 = vmul.f32 %v14397_v4, %v6241_v44  ;;  %v6499_v36 = vsub.f32 0.0, %v6051_v22  ;;  %10256 = vpow2.f32 %v6580_v47  ;;  %v15782_v47 = vld [vmem:[#allocation4_spill] sm:$0xff] }
 0xce5   : > { %v6208_v10 = vmul.f32 1.0614054, %v14424_v11  ;;  %v6085_v25 = vmul.f32 0.3275911, %v14438_v13  ;;  %v14446_v20 = vmul.f32 0.5, %v14357_v0  ;;  %vm5987_vm8 = vcmp.ge.f32.partialorder %v14369_v16, 0.0 }
 0xce6   : > { %v6305_v31 = vadd.f32 1.4214138, %v6273_v14  ;;  %v6430_v48 = vadd.f32 0.2548296, %v6398_v45  ;;  %v14449_v53 = vmul.f32 0.70710677, %v14430_v41  ;;  %v6531_v7 = vmul.f32 %v6499_v36, %v6051_v22 }
 0xce7   : > { %v6240_v42 = vadd.f32 -1.4531521, %v6208_v10  ;;  %v6578_v26 = vmul.f32 1.442695, %v6528_v49  ;;  %v6117_v30 = vadd.f32 1.0, %v6085_v25  ;;  %v6655_v39 = vsub.f32 1.0, %v6623_v27 }
 0xce8   : > { %v6337_v58 = vmul.f32 %v14397_v4, %v6305_v31  ;;  %v6052_v44 = vand.u32 2147483647, %v14449_v53  ;;  %v6462_v32 = vmul.f32 %v14351_v54, %v6430_v48  ;;  %v14459_v45 = vadd.f32 %v14033_v29, %v15782_v47 }
 0xce9   : > { %v6272_v63 = vmul.f32 %v14424_v11, %v6240_v42  ;;  %v14454_v15 = vpop.eup %10250  ;;  %10258 = vrcp.f32 %v6117_v30  ;;  %v14463_v40 = vmul.f32 0.5, %v14361_v1  ;;  %v6498_v10 = vsub.f32 0.0, %v14395_v18 }
 0xcea   : > { %v6369_v33 = vadd.f32 -0.28449672, %v6337_v58  ;;  %v6211_v14 = vmul.f32 1.0614054, %v14454_v15  ;;  %v6084_v22 = vmul.f32 0.3275911, %v6052_v44  ;;  %v10253_v49 = vpop.eup %10252  ;;  %10260 = vpow2.f32 %v6578_v26 }
 0xceb   : > { %v6304_v0 = vadd.f32 1.4214138, %v6272_v63  ;;  %v14470_v54 = vsel %vm5987_vm8, 1.0, %v15669_v5  ;;  %vm5986_vm9 = vcmp.ge.f32.partialorder %v14376_v43, 0.0  ;;  %v6687_v31 = vmul.f32 %v6655_v39, %v14384_v37 }
 0xcec   : > { %v6401_v27 = vmul.f32 %v14397_v4, %v6369_v33  ;;  %v14473_v29 = vpop.eup %10254  ;;  %v6243_v36 = vadd.f32 -1.4531521, %v6211_v14  ;;  %v6116_v48 = vadd.f32 1.0, %v6084_v22  ;;  %v6622_v42 = vmul.f32 %v10253_v49, %v6462_v32  ;;  %v15783_v14 = vld [vmem:[#allocation5_spill] sm:$0xff]  ;;  %v15784_v22 = vld [vmem:[#allocation8_spill] sm:$0xff] }
 0xced   : > { %v6336_v1 = vmul.f32 %v14424_v11, %v6304_v0  ;;  %v6584_v25 = vmul.f32 1.442695, %v6531_v7  ;;  %v6210_v58 = vmul.f32 1.0614054, %v14473_v29  ;;  %v14479_v63 = vmul.f32 0.70710677, %v14459_v45 }
 0xcee   : > { %v6275_v16 = vmul.f32 %v14454_v15, %v6243_v36  ;;  %v14483_v26 = vsel %vm5986_vm9, 1.0, %v15669_v5  ;;  %v6530_v43 = vmul.f32 %v6498_v10, %v14395_v18  ;;  %10262 = vrcp.f32 %v6116_v48  ;;  %v10257_v7 = vpop.eup %10256 }
 0xcef   : > { %v6433_v37 = vadd.f32 0.2548296, %v6401_v27  ;;  %v6242_v30 = vadd.f32 -1.4531521, %v6210_v58  ;;  %v14487_v39 = vmul.f32 0.5, %v14402_v61  ;;  %v6501_v33 = vsub.f32 0.0, %v14438_v13 }
 0xcf0   : > { %v6719_v32 = vadd.f32 1.0, %v6687_v31  ;;  %v6368_v0 = vadd.f32 -0.28449672, %v6336_v1  ;;  %v6307_v47 = vadd.f32 1.4214138, %v6275_v16  ;;  %v14492_v49 = vadd.f32 %v15784_v22, %v15783_v14 }
 0xcf1   : > { %v6654_v36 = vsub.f32 1.0, %v6622_v42  ;;  %10264 = vpow2.f32 %v6584_v25  ;;  %v6274_v18 = vmul.f32 %v14473_v29, %v6242_v30  ;;  %v14496_v10 = vand.u32 2147483647, %v14479_v63 }
 0xcf2   : > { %v6339_v61 = vmul.f32 %v14454_v15, %v6307_v47  ;;  %v6582_v27 = vmul.f32 1.442695, %v6530_v43  ;;  %vm5989_vm10 = vcmp.ge.f32.partialorder %v14422_v17, 0.0  ;;  %v6500_v48 = vsub.f32 0.0, %v6052_v44 }
 0xcf3   : > { %v14500_v31 = vpop.eup %10258  ;;  %v6465_v1 = vmul.f32 %v14397_v4, %v6433_v37  ;;  %v6306_v58 = vadd.f32 1.4214138, %v6274_v18  ;;  %v6533_v16 = vmul.f32 %v6501_v33, %v14438_v13  ;;  %v6087_v42 = vmul.f32 0.3275911, %v14496_v10 }
 0xcf4   : > { %v6400_v25 = vmul.f32 %v14424_v11, %v6368_v0  ;;  %v6371_v30 = vadd.f32 -0.28449672, %v6339_v61  ;;  %v6213_v14 = vmul.f32 1.0614054, %v14500_v31  ;;  %v14508_v47 = vmul.f32 0.70710677, %v14492_v49  ;;  %v10261_v43 = vpop.eup %10260 }
 0xcf5   : > { %v14511_v22 = vmul.f32 %v6719_v32, %v14381_v2  ;;  %v6686_v3 = vmul.f32 %v6654_v36, %v14405_v8  ;;  %v6338_v4 = vmul.f32 %v14473_v29, %v6306_v58  ;;  %v6119_v37 = vadd.f32 1.0, %v6087_v42 }
 0xcf6   : > { %v14518_v13 = vsel %vm5989_vm10, 1.0, %v15669_v5  ;;  %v6245_v33 = vadd.f32 -1.4531521, %v6213_v14  ;;  %vm5988_vm11 = vcmp.ge.f32.partialorder %v14449_v53, 0.0  ;;  %v6532_v0 = vmul.f32 %v6500_v48, %v6052_v44 }
 0xcf7   : > { %v6625_v18 = vmul.f32 %v10257_v7, %v6465_v1  ;;  %v6588_v61 = vmul.f32 1.442695, %v6533_v16  ;;  %v14522_v57 = vmul.f32 0.5, %v14430_v41  ;;  %10266 = vrcp.f32 %v6119_v37 }
 0xcf8   : > { %v14524_v2 = vpop.eup %10262  ;;  %v6432_v8 = vadd.f32 0.2548296, %v6400_v25  ;;  %v6403_v32 = vmul.f32 %v14454_v15, %v6371_v30  ;;  %v6277_v36 = vmul.f32 %v14500_v31, %v6245_v33  ;;  %v6054_v17 = vand.u32 2147483647, %v14508_v47  ;;  %v15785_v30 = vld [vmem:[#allocation6_spill] sm:$0xff] }
 0xcf9   : > { %v6718_v58 = vadd.f32 1.0, %v6686_v3  ;;  %v6370_v42 = vadd.f32 -0.28449672, %v6338_v4  ;;  %v14530_v53 = vsel %vm5988_vm11, 1.0, %v15669_v5  ;;  %v6212_v44 = vmul.f32 1.0614054, %v14524_v2 }
 0xcfa   : > { %10268 = vpow2.f32 %v6582_v27  ;;  %v6309_v41 = vadd.f32 1.4214138, %v6277_v36  ;;  %v6586_v7 = vmul.f32 1.442695, %v6532_v0  ;;  %v6086_v48 = vmul.f32 0.3275911, %v6054_v17 }
 0xcfb   : > { %v10265_v1 = vpop.eup %10264  ;;  %v6657_v16 = vsub.f32 1.0, %v6625_v18  ;;  %v6244_v25 = vadd.f32 -1.4531521, %v6212_v44  ;;  %vm5991_vm13 = vcmp.ge.f32.partialorder %v14479_v63, 0.0  ;;  %v14536_v14 = vadd.f32 %v14054_v52, %v15785_v30 }
 0xcfc   : > { %v6464_v3 = vmul.f32 %v14424_v11, %v6432_v8  ;;  %v6435_v4 = vadd.f32 0.2548296, %v6403_v32  ;;  %v6341_v37 = vmul.f32 %v14500_v31, %v6309_v41  ;;  %v6118_v33 = vadd.f32 1.0, %v6086_v48 }
 0xcfd   : > { %v6402_v27 = vmul.f32 %v14473_v29, %v6370_v42  ;;  %10270 = vpow2.f32 %v6588_v61  ;;  %v6276_v0 = vmul.f32 %v14524_v2, %v6244_v25  ;;  %v6503_v18 = vsub.f32 0.0, %v14496_v10 }
 0xcfe   : > { %v14544_v36 = vmul.f32 %v6718_v58, %v14388_v51  ;;  %v6373_v44 = vadd.f32 -0.28449672, %v6341_v37  ;;  %v14547_v52 = vmul.f32 0.5, %v14459_v45  ;;  %10272 = vrcp.f32 %v6118_v33  ;;  %v15786_v33 = vld [vmem:[#allocation11_spill] sm:$0xff] }
 0xcff   : > { %v6308_v11 = vadd.f32 1.4214138, %v6276_v0  ;;  %10274 = vpow2.f32 %v6586_v7  ;;  %v14552_v8 = vsel %vm5991_vm13, 1.0, %v15669_v5  ;;  %v14555_v61 = vmul.f32 0.70710677, %v14536_v14 }
 0xd00   : > { %v6689_v32 = vmul.f32 %v6657_v16, %v14416_v60  ;;  %v6624_v42 = vmul.f32 %v10261_v43, %v6464_v3  ;;  %v6467_v51 = vmul.f32 %v14454_v15, %v6435_v4  ;;  %v6405_v58 = vmul.f32 %v14500_v31, %v6373_v44 }
 0xd01   : > { %v14560_v45 = vpop.eup %10266  ;;  %v6434_v41 = vadd.f32 0.2548296, %v6402_v27  ;;  %v6340_v7 = vmul.f32 %v14524_v2, %v6308_v11  ;;  %v6535_v48 = vmul.f32 %v6503_v18, %v14496_v10  ;;  %v6057_v63 = vand.u32 2147483647, %v14555_v61 }
 0xd02   : > { %v6437_v25 = vadd.f32 0.2548296, %v6405_v58  ;;  %v6215_v30 = vmul.f32 1.0614054, %v14560_v45  ;;  %v6502_v37 = vsub.f32 0.0, %v6054_v17  ;;  %v14568_v60 = vadd.f32 %v14065_v21, %v15786_v33 }
 0xd03   : > { %v6372_v15 = vadd.f32 -0.28449672, %v6340_v7  ;;  %v14571_v43 = vmul.f32 0.5, %v14492_v49  ;;  %vm5990_vm14 = vcmp.ge.f32.partialorder %v14508_v47, 0.0  ;;  %v6089_v16 = vmul.f32 0.3275911, %v6057_v63 }
 0xd04   : > { %v10269_v3 = vpop.eup %10268  ;;  %v6721_v4 = vadd.f32 1.0, %v6689_v32  ;;  %v6656_v10 = vsub.f32 1.0, %v6624_v42  ;;  %v6627_v27 = vmul.f32 %v10265_v1, %v6467_v51  ;;  %v6247_v0 = vadd.f32 -1.4531521, %v6215_v30 }
 0xd05   : > { %v6466_v18 = vmul.f32 %v14473_v29, %v6434_v41  ;;  %v6404_v44 = vmul.f32 %v14524_v2, %v6372_v15  ;;  %v6592_v11 = vmul.f32 1.442695, %v6535_v48  ;;  %v6121_v58 = vadd.f32 1.0, %v6089_v16 }
 0xd06   : > { %v6469_v21 = vmul.f32 %v14500_v31, %v6437_v25  ;;  %v6279_v7 = vmul.f32 %v14560_v45, %v6247_v0  ;;  %v6534_v49 = vmul.f32 %v6502_v37, %v6054_v17  ;;  %v14579_v33 = vmul.f32 0.70710677, %v14568_v60 }
 0xd07   : > { %v10271_v59 = vpop.eup %10270  ;;  %v6436_v24 = vadd.f32 0.2548296, %v6404_v44  ;;  %v14584_v1 = vsel %vm5990_vm14, 1.0, %v15669_v5  ;;  %10276 = vrcp.f32 %v6121_v58  ;;  %v14588_v29 = vadd.f32 %v14077_v62, %v14056_v12  ;;  %v15787_v44 = vld [vmem:[#allocation12_spill] sm:$0xff] }
 0xd08   : > { %v14590_v32 = vpop.eup %10272  ;;  %v6688_v31 = vmul.f32 %v6656_v10, %v14441_v35  ;;  %v6659_v17 = vsub.f32 1.0, %v6627_v27  ;;  %v6311_v42 = vadd.f32 1.4214138, %v6279_v7  ;;  %v6056_v51 = vand.u32 2147483647, %v14579_v33 }
 0xd09   : > { %v10275_v41 = vpop.eup %10274  ;;  %v6626_v48 = vmul.f32 %v10269_v3, %v6466_v18  ;;  %v6468_v25 = vmul.f32 %v14524_v2, %v6436_v24  ;;  %10278 = vpow2.f32 %v6592_v11  ;;  %v6214_v47 = vmul.f32 1.0614054, %v14590_v32 }
 0xd0a   : > { %v6629_v30 = vmul.f32 %v10271_v59, %v6469_v21  ;;  %v6343_v37 = vmul.f32 %v14560_v45, %v6311_v42  ;;  %v6590_v12 = vmul.f32 1.442695, %v6534_v49  ;;  %v6088_v62 = vmul.f32 0.3275911, %v6056_v51 }
 0xd0b   : > { %v14598_v15 = vmul.f32 %v6721_v4, %v14411_v38  ;;  %v6246_v35 = vadd.f32 -1.4531521, %v6214_v47  ;;  %v6505_v16 = vsub.f32 0.0, %v6057_v63  ;;  %v14601_v10 = vmul.f32 0.70710677, %v14588_v29 }
 0xd0c   : > { %v6691_v3 = vmul.f32 %v6659_v17, %v14470_v54  ;;  %v6628_v27 = vmul.f32 %v10275_v41, %v6468_v25  ;;  %v6375_v24 = vadd.f32 -0.28449672, %v6343_v37  ;;  %v6120_v2 = vadd.f32 1.0, %v6088_v62  ;;  %v15788_v62 = vld [vmem:[#allocation18_spill] sm:$0xff] }
 0xd0d   : > { %v6658_v0 = vsub.f32 1.0, %v6626_v48  ;;  %v6278_v59 = vmul.f32 %v14590_v32, %v6246_v35  ;;  %v14606_v18 = vand.u32 2147483647, %v14601_v10  ;;  %v14610_v38 = vadd.f32 %v15787_v44, %v14112_v19  ;;  %v15789_v35 = vld [vmem:[#allocation15_spill] sm:$0xff] }
 0xd0e   : > { %v6720_v4 = vadd.f32 1.0, %v6688_v31  ;;  %v6661_v11 = vsub.f32 1.0, %v6629_v30  ;;  %v6407_v58 = vmul.f32 %v14560_v45, %v6375_v24  ;;  %10280 = vrcp.f32 %v6120_v2 }
 0xd0f   : > { %v6310_v21 = vadd.f32 1.4214138, %v6278_v59  ;;  %v6537_v54 = vmul.f32 %v6505_v16, %v6057_v63  ;;  %v6504_v7 = vsub.f32 0.0, %v6056_v51  ;;  %v6091_v49 = vmul.f32 0.3275911, %v14606_v18 }
 0xd10   : > { %v6723_v17 = vadd.f32 1.0, %v6691_v3  ;;  %v6660_v42 = vsub.f32 1.0, %v6628_v27  ;;  %v6439_v41 = vadd.f32 0.2548296, %v6407_v58  ;;  %10282 = vpow2.f32 %v6590_v12 }
 0xd11   : > { %v14614_v48 = vpop.eup %10276  ;;  %v6690_v25 = vmul.f32 %v6658_v0, %v14483_v26  ;;  %v6342_v19 = vmul.f32 %v14590_v32, %v6310_v21  ;;  %v6123_v31 = vadd.f32 1.0, %v6091_v49  ;;  %v14619_v47 = vmul.f32 0.70710677, %v14610_v38 }
 0xd12   : > { %v6693_v30 = vmul.f32 %v6661_v11, %v14518_v13  ;;  %v6471_v63 = vmul.f32 %v14560_v45, %v6439_v41  ;;  %v6217_v37 = vmul.f32 1.0614054, %v14614_v48  ;;  %v14626_v16 = vadd.f32 %v15789_v35, %v15788_v62 }
 0xd13   : > { %v10279_v12 = vpop.eup %10278  ;;  %v6374_v3 = vadd.f32 -0.28449672, %v6342_v19  ;;  %v6596_v27 = vmul.f32 1.442695, %v6537_v54  ;;  %v6536_v26 = vmul.f32 %v6504_v7, %v6056_v51  ;;  %10284 = vrcp.f32 %v6123_v31 }
 0xd14   : > { %v14629_v24 = vmul.f32 %v6720_v4, %v14433_v56  ;;  %v6692_v2 = vmul.f32 %v6660_v42, %v14530_v53  ;;  %v6631_v0 = vmul.f32 %v10279_v12, %v6471_v63  ;;  %v6249_v13 = vadd.f32 -1.4531521, %v6217_v37 }
 0xd15   : > { %v14633_v45 = vmul.f32 %v6723_v17, %v14446_v20  ;;  %v6406_v59 = vmul.f32 %v14590_v32, %v6374_v3  ;;  %v6058_v44 = vand.u32 2147483647, %v14619_v47  ;;  %v14638_v11 = vmul.f32 0.70710677, %v14626_v16 }
 0xd16   : > { %v6722_v58 = vadd.f32 1.0, %v6690_v25  ;;  %v6725_v51 = vadd.f32 1.0, %v6693_v30  ;;  %v6663_v21 = vsub.f32 1.0, %v6631_v0  ;;  %v6281_v56 = vmul.f32 %v14614_v48, %v6249_v13 }
 0xd17   : > { %v6438_v4 = vadd.f32 0.2548296, %v6406_v59  ;;  %10286 = vpow2.f32 %v6596_v27  ;;  %v6594_v53 = vmul.f32 1.442695, %v6536_v26  ;;  %v6090_v54 = vmul.f32 0.3275911, %v6058_v44 }
 0xd18   : > { %v14641_v7 = vpop.eup %10280  ;;  %v6724_v20 = vadd.f32 1.0, %v6692_v2  ;;  %v6313_v49 = vadd.f32 1.4214138, %v6281_v56  ;;  %v6507_v17 = vsub.f32 0.0, %v14606_v18  ;;  %v14645_v42 = vand.u32 2147483647, %v14638_v11 }
 0xd19   : > { %v6695_v41 = vmul.f32 %v6663_v21, %v14552_v8  ;;  %v6470_v25 = vmul.f32 %v14590_v32, %v6438_v4  ;;  %v6216_v19 = vmul.f32 1.0614054, %v14641_v7  ;;  %v6122_v31 = vadd.f32 1.0, %v6090_v54  ;;  %v15790_v27 = vld [vmem:[#allocation20_spill] sm:$0xff]  ;;  %v15791_v8 = vld [vmem:[#allocation17_spill] sm:$0xff] }
 0xd1a   : > { %v10283_v30 = vpop.eup %10282  ;;  %v6754_v63 = vmul.f32 %v6722_v58, %v14463_v40  ;;  %v14652_v37 = vmul.f32 %v6725_v51, %v14487_v39  ;;  %v6345_v62 = vmul.f32 %v14614_v48, %v6313_v49  ;;  %v6093_v35 = vmul.f32 0.3275911, %v14645_v42 }
 0xd1b   : > { %v6630_v12 = vmul.f32 %v10283_v30, %v6470_v25  ;;  %v6248_v3 = vadd.f32 -1.4531521, %v6216_v19  ;;  %10288 = vrcp.f32 %v6122_v31  ;;  %v14658_v26 = vadd.f32 %v15791_v8, %v15790_v27  ;;  %v15792_v30 = vld [vmem:[#allocation7_spill] sm:$0xff] }
 0xd1c   : > { %v6377_v32 = vadd.f32 -0.28449672, %v6345_v62  ;;  %10290 = vpow2.f32 %v6594_v53  ;;  %v6539_v2 = vmul.f32 %v6507_v17, %v14606_v18  ;;  %v6125_v0 = vadd.f32 1.0, %v6093_v35  ;;  %v15793_v62 = vld [vmem:[#allocation9_spill] sm:$0xff] }
 0xd1d   : > { %v14661_v40 = vpop.eup %10284  ;;  %v14664_v39 = vmul.f32 %v6724_v20, %v14522_v57  ;;  %v6727_v13 = vadd.f32 1.0, %v6695_v41  ;;  %v6662_v59 = vsub.f32 1.0, %v6630_v12  ;;  %v6280_v58 = vmul.f32 %v14641_v7, %v6248_v3 }
 0xd1e   : > { %v6409_v51 = vmul.f32 %v14614_v48, %v6377_v32  ;;  %v6219_v21 = vmul.f32 1.0614054, %v14661_v40  ;;  %v6506_v56 = vsub.f32 0.0, %v6058_v44  ;;  %10292 = vrcp.f32 %v6125_v0 }
 0xd1f   : > { %v6694_v4 = vmul.f32 %v6662_v59, %v14584_v1  ;;  %v6312_v53 = vadd.f32 1.4214138, %v6280_v58  ;;  %v14671_v18 = vmul.f32 0.70710677, %v14658_v26  ;;  %v9757_v57 = vpack.c.bf16 %v14511_v22, %v14544_v36  ;;  %v15795_v58 = vld [vmem:[#allocation10_spill] sm:$0xff] }
 0xd20   : > { %v6441_v54 = vadd.f32 0.2548296, %v6409_v51  ;;  %v6251_v20 = vadd.f32 -1.4531521, %v6219_v21  ;;  %v6600_v49 = vmul.f32 1.442695, %v6539_v2  ;;  %v9761_v17 = vpack.c.bf16 %v14598_v15, %v14629_v24 }
 0xd21   : > { %v10287_v41 = vpop.eup %10286  ;;  %v14678_v25 = vmul.f32 %v6727_v13, %v14547_v52  ;;  %v6726_v19 = vadd.f32 1.0, %v6694_v4  ;;  %v6344_v1 = vmul.f32 %v14641_v7, %v6312_v53  ;;  %v14682_v31 = vand.u32 2147483647, %v14671_v18  ;;  %9758 = vmatprep.subr.bf16.mxu1 %v9757_v57  ;;  %v15796_v51 = vld [vmem:[#allocation13_spill] sm:$0xff] }
 0xd22   : > { %vm5993_vm15 = vcmp.ge.f32.partialorder %v14555_v61, 0.0  ;;  %v6473_v22 = vmul.f32 %v14614_v48, %v6441_v54  ;;  %v6283_v36 = vmul.f32 %v14661_v40, %v6251_v20  ;;  %v15794_v15 = vpack.c.bf16 %v15792_v30, %v15793_v62 }
 0xd23   : > { %v9765_v52 = vpack.c.bf16 %v14633_v45, %v6754_v63  ;;  %v6758_v24 = vmul.f32 %v6726_v19, %v14571_v43  ;;  %v6376_v35 = vadd.f32 -0.28449672, %v6344_v1  ;;  %v6538_v12 = vmul.f32 %v6506_v56, %v6058_v44  ;;  %v15799_v19 = vld [vmem:[#allocation16_spill] sm:$0xff] }
 0xd24   : > { %9760 = vmatpush3.bf16.msra.mxu1 %v15794_v15  ;;  %v6092_v3 = vmul.f32 0.3275911, %v14682_v31  ;;  %v6633_v27 = vmul.f32 %v10287_v41, %v6473_v22  ;;  %v6315_v8 = vadd.f32 1.4214138, %v6283_v36  ;;  %v6509_v32 = vsub.f32 0.0, %v14645_v42 }
 0xd25   : > { %9762 = vmatprep.subr.bf16.mxu1 %v9761_v17  ;;  %v9769_v48 = vpack.c.bf16 %v14652_v37, %v14664_v39  ;;  %v14696_v2 = vpop.eup %10288  ;;  %v6408_v0 = vmul.f32 %v14641_v7, %v6376_v35  ;;  %10294 = vpow2.f32 %v6600_v49  ;;  %v9773_v43 = vpack.c.bf16 %v14678_v25, %v6758_v24  ;;  %v15798_v25 = vld [vmem:[#allocation14_spill] sm:$0xff] }
 0xd26   : > { %v6124_v45 = vadd.f32 1.0, %v6092_v3  ;;  %v10291_v63 = vpop.eup %10290  ;;  %v6665_v44 = vsub.f32 1.0, %v6633_v27  ;;  %v6347_v13 = vmul.f32 %v14661_v40, %v6315_v8  ;;  %v6218_v59 = vmul.f32 1.0614054, %v14696_v2  ;;  %v15802_v27 = vld [vmem:[#allocation21_spill] sm:$0xff] }
 0xd27   : > { %v15797_v21 = vpack.c.bf16 %v15795_v58, %v15796_v51  ;;  %v6025_v37 = vsel %vm5993_vm15, 1.0, %v15669_v5  ;;  %v6440_v39 = vadd.f32 0.2548296, %v6408_v0  ;;  %v6598_v57 = vmul.f32 1.442695, %v6538_v12 }
 0xd28   : > { %10296 = vrcp.f32 %v6124_v45  ;;  %v14708_v56 = vpop.eup %10292  ;;  %v6379_v4 = vadd.f32 -0.28449672, %v6347_v13  ;;  %v6250_v53 = vadd.f32 -1.4531521, %v6218_v59  ;;  %v6541_v54 = vmul.f32 %v6509_v32, %v14645_v42 }
 0xd29   : > { %9764 = vmatpush3.bf16.msra.mxu1 %v15797_v21  ;;  %v6697_v20 = vmul.f32 %v6665_v44, %v6025_v37  ;;  %v6472_v49 = vmul.f32 %v14641_v7, %v6440_v39  ;;  %v6221_v17 = vmul.f32 1.0614054, %v14708_v56  ;;  %v15800_v1 = vpack.c.bf16 %v15798_v25, %v15799_v19 }
 0xd2a   : > { %9766 = vmatprep.subr.bf16.mxu1 %v9765_v52  ;;  %v6411_v41 = vmul.f32 %v14661_v40, %v6379_v4  ;;  %v6282_v61 = vmul.f32 %v14696_v2, %v6250_v53  ;;  %vm5992_vm0 = vcmp.ge.f32.partialorder %v14579_v33, 0.0  ;;  %10298 = vpow2.f32 %v6598_v57  ;;  %v15801_v33 = vld [vmem:[#allocation19_spill] sm:$0xff] }
 0xd2b   : > { %v6632_v22 = vmul.f32 %v10291_v63, %v6472_v49  ;;  %v6253_v36 = vadd.f32 -1.4531521, %v6221_v17  ;;  %v6604_v62 = vmul.f32 1.442695, %v6541_v54  ;;  %v6729_v7 = vadd.f32 1.0, %v6697_v20 }
 0xd2c   : > { %v6443_v30 = vadd.f32 0.2548296, %v6411_v41  ;;  %v6314_v42 = vadd.f32 1.4214138, %v6282_v61  ;;  %v6508_v24 = vsub.f32 0.0, %v14682_v31  ;;  %v6024_v35 = vsel %vm5992_vm0, 1.0, %v15669_v5 }
 0xd2d   : > { %9768 = vmatpush3.bf16.msra.mxu1 %v15800_v1  ;;  %v6664_v15 = vsub.f32 1.0, %v6632_v22  ;;  %v6285_v52 = vmul.f32 %v14708_v56, %v6253_v36  ;;  %v15803_v8 = vpack.c.bf16 %v15801_v33, %v15802_v27  ;;  %v5928_v63 = vmul.f32 0.5, %v14568_v60 }
 0xd2e   : > { %9770 = vmatprep.subr.bf16.mxu1 %v9769_v48  ;;  %v6475_v12 = vmul.f32 %v14661_v40, %v6443_v30  ;;  %v6346_v3 = vmul.f32 %v14696_v2, %v6314_v42  ;;  %v5929_v48 = vmul.f32 0.5, %v14536_v14  ;;  %10300 = vpow2.f32 %v6604_v62 }
 0xd2f   : > { %v10295_v32 = vpop.eup %10294  ;;  %v6696_v0 = vmul.f32 %v6664_v15, %v6024_v35  ;;  %v6317_v45 = vadd.f32 1.4214138, %v6285_v52  ;;  %v6540_v21 = vmul.f32 %v6508_v24, %v14682_v31  ;;  %vm5995_vm1 = vcmp.ge.f32.partialorder %v14601_v10, 0.0 }
 0xd30   : > { %v6635_v44 = vmul.f32 %v10295_v32, %v6475_v12  ;;  %v6378_v13 = vadd.f32 -0.28449672, %v6346_v3  ;;  %v6761_v58 = vmul.f32 %v6729_v7, %v5929_v48  ;;  %v6027_v54 = vsel %vm5995_vm1, 1.0, %v15669_v5 }
 0xd31   : > { %9772 = vmatpush3.bf16.msra.mxu1 %v15803_v8  ;;  %v6728_v40 = vadd.f32 1.0, %v6696_v0  ;;  %v6349_v51 = vmul.f32 %v14708_v56, %v6317_v45  ;;  %v6602_v49 = vmul.f32 1.442695, %v6540_v21  ;;  %vm5994_vm2 = vcmp.ge.f32.partialorder %v14619_v47, 0.0  ;;  %v8742_v21 = vld [vmem:[%s15581_s6 + $0x148] sm:$0xff] }
 0xd32   : > { %9774 = vmatprep.subr.bf16.mxu1 %v9773_v43  ;;  %v10297_v59 = vpop.eup %10296  ;;  %v6667_v37 = vsub.f32 1.0, %v6635_v44  ;;  %v6410_v14 = vmul.f32 %v14696_v2, %v6378_v13  ;;  %v15804_v43 = vpack.c.bf16 %v14250_v34, %v14258_v23  ;;  %v15805_v19 = vpack.c.bf16 %v14284_v6, %v14292_v46 }
 0xd33   : > { %v6220_v39 = vmul.f32 1.0614054, %v10297_v59  ;;  %v6760_v60 = vmul.f32 %v6728_v40, %v5928_v63  ;;  %v6381_v4 = vadd.f32 -0.28449672, %v6349_v51  ;;  %10302 = vpow2.f32 %v6602_v49  ;;  %v8739_v51 = vld [vmem:[%s15581_s6 + $0x130] sm:$0xff] }
 0xd34   : > { %v6442_v53 = vadd.f32 0.2548296, %v6410_v14  ;;  %v10299_v17 = vpop.eup %10298  ;;  %v6699_v10 = vmul.f32 %v6667_v37, %v6027_v54  ;;  %v5931_v7 = vmul.f32 0.5, %v14588_v29  ;;  %v5930_v52 = vmul.f32 0.5, %v14610_v38  ;;  %v8741_v37 = vld [vmem:[%s15581_s6 + $0x140] sm:$0xff]  ;;  %v8744_v14 = vld [vmem:[%s15581_s6 + $0x158] sm:$0xff] }
 0xd35   : > { %9776 = vmatpush3.bf16.msra.mxu1 %v15804_v43  ;;  %v6252_v57 = vadd.f32 -1.4531521, %v6220_v39  ;;  %v6413_v20 = vmul.f32 %v14708_v56, %v6381_v4  ;;  %v9777_v31 = vpack.c.bf16 %v6761_v58, %v6760_v60  ;;  %vm5997_vm4 = vcmp.ge.f32.partialorder %v14638_v11, 0.0  ;;  %v8743_v39 = vld [vmem:[%s15581_s6 + $0x150] sm:$0xff]  ;;  %v8746_v43 = vld [vmem:[%s15581_s6 + $0x168] sm:$0xff]  ;;  %v8745_v60 = vld [vmem:[%s15581_s6 + $0x160] sm:$0xff] }
 0xd36   : > { %v6474_v41 = vmul.f32 %v14696_v2, %v6442_v53  ;;  %v6731_v36 = vadd.f32 1.0, %v6699_v10  ;;  %v6026_v2 = vsel %vm5994_vm2, 1.0, %v15669_v5  ;;  %v6029_v3 = vsel %vm5997_vm4, 1.0, %v15669_v5  ;;  %v8748_v4 = vld [vmem:[%s15581_s6 + $0x178] sm:$0xff]  ;;  %v8747_v53 = vld [vmem:[%s15581_s6 + $0x170] sm:$0xff]  ;;  %v8749_v54 = vld [vmem:[%s15581_s6 + $0x180] sm:$0xff] }
 0xd37   : > { %v6284_v61 = vmul.f32 %v10297_v59, %v6252_v57  ;;  %v6445_v25 = vadd.f32 0.2548296, %v6413_v20  ;;  %9778 = vmatprep.subr.bf16.mxu1 %v9777_v31  ;;  %vm5996_vm5 = vcmp.ge.f32.partialorder %v14671_v18, 0.0  ;;  %v15806_v38 = vpack.c.bf16 %v14325_v28, %v14333_v50  ;;  %v8733_v28 = vld [vmem:[%s15581_s6 + $0x100] sm:$0xff]  ;;  %v8736_v50 = vld [vmem:[%s15581_s6 + $0x118] sm:$0xff]  ;;  %v8750_v57 = vld [vmem:[%s15581_s6 + $0x188] sm:$0xff] }
 0xd38   : > { %v6634_v34 = vmul.f32 %v10299_v17, %v6474_v41  ;;  %v10301_v22 = vpop.eup %10300  ;;  %v6763_v6 = vmul.f32 %v6731_v36, %v5931_v7  ;;  %v6028_v0 = vsel %vm5996_vm5, 1.0, %v15669_v5  ;;  %v5933_v45 = vmul.f32 0.5, %v14626_v16  ;;  %v8735_v16 = vld [vmem:[%s15581_s6 + $0x110] sm:$0xff]  ;;  %v8752_v20 = vld [vmem:[%s15581_s6 + $0x198] sm:$0xff]  ;;  %v8754_v31 = vld [vmem:[%s15581_s6 + $0x1a8] sm:$0xff] }
 0xd39   : > { %v6316_v23 = vadd.f32 1.4214138, %v6284_v61  ;;  %9780 = vmatpush3.bf16.msra.mxu1 %v15805_v19  ;;  %v6477_v1 = vmul.f32 %v14708_v56, %v6445_v25  ;;  %v5932_v13 = vmul.f32 0.5, %v14658_v26  ;;  %v15807_v18 = vpack.c.bf16 %v14365_v9, %v14378_v55  ;;  %v8738_v26 = vld [vmem:[%s15581_s6 + $0x128] sm:$0xff]  ;;  %v8737_v9 = vld [vmem:[%s15581_s6 + $0x120] sm:$0xff]  ;;  %v8740_v55 = vld [vmem:[%s15581_s6 + $0x138] sm:$0xff] }
 0xd3a   : > { %v6666_v30 = vsub.f32 1.0, %v6634_v34  ;;  %v8751_v49 = vld [vmem:[%s15581_s6 + $0x190] sm:$0xff]  ;;  %v8753_v17 = vld [vmem:[%s15581_s6 + $0x1a0] sm:$0xff]  ;;  %v8756_v10 = vld [vmem:[%s15581_s6 + $0x1b8] sm:$0xff] }
 0xd3b   : > { %v6348_v42 = vmul.f32 %v10297_v59, %v6316_v23  ;;  %v6637_v62 = vmul.f32 %v10301_v22, %v6477_v1  ;;  %v8755_v41 = vld [vmem:[%s15581_s6 + $0x1b0] sm:$0xff]  ;;  %v8758_v61 = vld [vmem:[%s15581_s6 + $0x1c8] sm:$0xff]  ;;  %v8757_v25 = vld [vmem:[%s15581_s6 + $0x1c0] sm:$0xff] }
 0xd3c   : > { %v6698_v15 = vmul.f32 %v6666_v30, %v6026_v2  ;;  %v8760_v34 = vld [vmem:[%s15581_s6 + $0x1d8] sm:$0xff]  ;;  %v8759_v23 = vld [vmem:[%s15581_s6 + $0x1d0] sm:$0xff]  ;;  %v8762_v19 = vld [vmem:[%s15581_s6 + $0x1e8] sm:$0xff] }
 0xd3d   : > { %v6380_v47 = vadd.f32 -0.28449672, %v6348_v42  ;;  %v6669_v24 = vsub.f32 1.0, %v6637_v62  ;;  %v10303_v32 = vpop.eup %10302  ;;  %v8761_v1 = vld [vmem:[%s15581_s6 + $0x1e0] sm:$0xff]  ;;  %v8764_v22 = vld [vmem:[%s15581_s6 + $0x1f8] sm:$0xff]  ;;  %v8763_v36 = vld [vmem:[%s15581_s6 + $0x1f0] sm:$0xff] }
 0xd3e   : > { %v6730_v46 = vadd.f32 1.0, %v6698_v15  ;;  %v15808_v62 = vld [vmem:[#allocation23_spill] sm:$0xff] }
 0xd3f   : > { %v6412_v56 = vmul.f32 %v10297_v59, %v6380_v47  ;;  %v6701_v33 = vmul.f32 %v6669_v24, %v6029_v3  ;;  %v6947_v47 = vpop.permute.xlu0 %6946  ;;  %v15809_v24 = vld [vmem:[#allocation22_spill] sm:$0xff]  ;;  %v6952_v3 = vpop.permute.xlu1 %6951 }
 0xd40   : > { %v6762_v35 = vmul.f32 %v6730_v46, %v5930_v52 }
 0xd41   : > { %v6444_v12 = vadd.f32 0.2548296, %v6412_v56  ;;  %v6733_v11 = vadd.f32 1.0, %v6701_v33 }
 0xd42   : > { %v9781_v8 = vpack.c.bf16 %v6763_v6, %v6762_v35 }
 0xd43   : > { %v6476_v27 = vmul.f32 %v10297_v59, %v6444_v12  ;;  %v6765_v44 = vmul.f32 %v6733_v11, %v5933_v45 }
 0xd44   : > { %9782 = vmatprep.subr.bf16.mxu1 %v9781_v8 }
 0xd45   : > { %v6636_v29 = vmul.f32 %v10303_v32, %v6476_v27  ;;  %9784 = vmatpush3.bf16.msra.mxu1 %v15806_v38  ;;  %v15810_v32 = vld [vmem:[#allocation28_spill] sm:$0xff] }
 0xd47   : > { %v6668_v48 = vsub.f32 1.0, %v6636_v29 }
 0xd49   : > { %v6700_v63 = vmul.f32 %v6668_v48, %v6028_v0  ;;  %v6957_v48 = vpop.permute.xlu0 %6956 }
 0xd4b   : > { %v6732_v59 = vadd.f32 1.0, %v6700_v63 }
 0xd4d   : > { %v6764_v58 = vmul.f32 %v6732_v59, %v5932_v13 }
 0xd4f   : > { %v9785_v40 = vpack.c.bf16 %v6765_v44, %v6764_v58  ;;  %v15811_v44 = vld [vmem:[#allocation24_spill] sm:$0xff] }
 0xd51   : > { %9786 = vmatprep.subr.bf16.mxu1 %v9785_v40  ;;  %v6962_v40 = vpop.permute.xlu1 %6961 }
 0xd52   : > { %9788 = vmatpush3.bf16.msra.mxu1 %v15807_v18 }
 0xd55   : > { %6831 = vmatmul.mubr.f32.vlgmr.msra.gmra.mrb[156].mxu1 %v8733_v28 }
 0xd56   : > { %6835 = vmatprep.mubr.f32.mxu1 %v8736_v50 }
 0xd59   : > { %6836 = vmatmul.mubr.f32.gmra.mrb[158].mxu1 %v8735_v16  ;;  %v15812_v16 = vld [vmem:[#allocation29_spill] sm:$0xff] }
 0xd5a   : > { %6840 = vmatprep.mubr.f32.mxu1 %v8738_v26 }
 0xd5d   : > { %6841 = vmatmul.mubr.f32.gmra.mrb[160].mxu1 %v8737_v9 }
 0xd5e   : > { %6845 = vmatprep.mubr.f32.mxu1 %v8740_v55 }
 0xd61   : > { %6846 = vmatmul.mubr.f32.gmra.mrb[162].mxu1 %v8739_v51  ;;  %v6967_v51 = vpop.permute.xlu0 %6966 }
 0xd62   : > { %6850 = vmatprep.mubr.f32.mxu1 %v8742_v21 }
 0xd65   : > { %6851 = vmatmul.mubr.f32.gmra.mrb[164].mxu1 %v8741_v37 }
 0xd66   : > { %6855 = vmatprep.mubr.f32.mxu1 %v8744_v14 }
 0xd69   : > { %6856 = vmatmul.mubr.f32.gmra.mrb[166].mxu1 %v8743_v39  ;;  %v15813_v39 = vld [vmem:[#allocation25_spill] sm:$0xff] }
 0xd6a   : > { %6860 = vmatprep.mubr.f32.mxu1 %v8746_v43 }
 0xd6d   : > { %6861 = vmatmul.mubr.f32.gmra.mrb[168].mxu1 %v8745_v60 }
 0xd6e   : > { %6865 = vmatprep.mubr.f32.mxu1 %v8748_v4 }
 0xd71   : > { %6866 = vmatmul.mubr.f32.gmra.mrb[170].mxu1 %v8747_v53  ;;  %v6972_v53 = vpop.permute.xlu1 %6971 }
 0xd72   : > { %6870 = vmatprep.mubr.f32.mxu1 %v8750_v57 }
 0xd75   : > { %6871 = vmatmul.mubr.f32.gmra.mrb[172].mxu1 %v8749_v54 }
 0xd76   : > { %6875 = vmatprep.mubr.f32.mxu1 %v8752_v20 }
 0xd79   : > { %6876 = vmatmul.mubr.f32.gmra.mrb[174].mxu1 %v8751_v49  ;;  %v15814_v49 = vld [vmem:[#allocation37_spill] sm:$0xff] }
 0xd7a   : > { %6880 = vmatprep.mubr.f32.mxu1 %v8754_v31 }
 0xd7d   : > { %6881 = vmatmul.mubr.f32.gmra.mrb[176].mxu1 %v8753_v17 }
 0xd7e   : > { %6885 = vmatprep.mubr.f32.mxu1 %v8756_v10 }
 0xd81   : > { %6886 = vmatmul.mubr.f32.gmra.mrb[178].mxu1 %v8755_v41  ;;  %v6977_v41 = vpop.permute.xlu0 %6976 }
 0xd82   : > { %6890 = vmatprep.mubr.f32.mxu1 %v8758_v61 }
 0xd85   : > { %6891 = vmatmul.mubr.f32.gmra.mrb[180].mxu1 %v8757_v25 }
 0xd86   : > { %6895 = vmatprep.mubr.f32.mxu1 %v8760_v34 }
 0xd89   : > { %6896 = vmatmul.mubr.f32.gmra.mrb[182].mxu1 %v8759_v23  ;;  %v15815_v23 = vld [vmem:[#allocation32_spill] sm:$0xff] }
 0xd8a   : > { %6900 = vmatprep.mubr.f32.mxu1 %v8762_v19 }
 0xd8d   : > { %6901 = vmatmul.mubr.f32.gmra.mrb[184].mxu1 %v8761_v1 }
 0xd8e   : > { %6905 = vmatprep.mubr.f32.mxu1 %v8764_v22 }
 0xd91   : > { %6906 = vmatmul.mubr.f32.gmra.mrb[186].mxu1 %v8763_v36  ;;  %v6982_v36 = vpop.permute.xlu1 %6981 }
 0xe28   : > { %v9106_v30 = vpop.f32.mrb[156].mxu1 }
 0xe29   : > { %v9107_v42 = vpop.f32.mrb[157].mxu1 }
 0xe2a   : > { %v9108_v2 = vadd.f32 %v9107_v42, %v9106_v30 }
 0xe2c   : > { %v6911_v7 = vadd.f32 %v9108_v2, %v15808_v62  ;;  %v9109_v15 = vpop.f32.mrb[158].mxu1  ;;  %v15816_v62 = vld [vmem:[#allocation40_spill] sm:$0xff] }
 0xe2d   : > { %v9110_v52 = vpop.f32.mrb[159].mxu1 }
 0xe2e   : > { %v14853_v6 = vadd.f32 %v6947_v47, %v6911_v7  ;;  %v9111_v46 = vadd.f32 %v9110_v52, %v9109_v15  ;;  %v6987_v52 = vpop.permute.xlu0 %6986 }
 0xe30   : > { %v6912_v56 = vadd.f32 %v9111_v46, %v15809_v24  ;;  %v9112_v35 = vpop.f32.mrb[160].mxu1  ;;  %v7042_v12 = vsel %vm2177_vm12, %v14853_v6, 0.0 }
 0xe31   : > { %v9113_v33 = vpop.f32.mrb[161].mxu1  ;;  %7043 = vadd.xlane.f32.xlu0 %v7042_v12 }
 0xe32   : > { %v14858_v27 = vadd.f32 %v6952_v3, %v6912_v56  ;;  %v9114_v8 = vadd.f32 %v9113_v33, %v9112_v35  ;;  %v15817_v35 = vld [vmem:[#allocation34_spill] sm:$0xff] }
 0xe34   : > { %v6913_v29 = vadd.f32 %v9114_v8, %v15810_v32  ;;  %v9115_v38 = vpop.f32.mrb[162].mxu1  ;;  %v7045_v11 = vsel %vm2177_vm12, %v14858_v27, 0.0  ;;  %v6992_v8 = vpop.permute.xlu1 %6991 }
 0xe35   : > { %v9116_v0 = vpop.f32.mrb[163].mxu1  ;;  %7046 = vadd.xlane.f32.xlu1 %v7045_v11  ;;  %v15818_v11 = vld [vmem:[#allocation26_spill] sm:$0xff] }
 0xe36   : > { %v14863_v45 = vadd.f32 %v6957_v48, %v6913_v29  ;;  %v9117_v63 = vadd.f32 %v9116_v0, %v9115_v38 }
 0xe38   : > { %v6914_v13 = vadd.f32 %v9117_v63, %v15811_v44  ;;  %v9118_v59 = vpop.f32.mrb[164].mxu1  ;;  %v7048_v58 = vsel %vm2177_vm12, %v14863_v45, 0.0  ;;  %v6997_v44 = vpop.permute.xlu0 %6996 }
 0xe39   : > { %v9119_v18 = vpop.f32.mrb[165].mxu1  ;;  %7049 = vadd.xlane.f32.xlu0 %v7048_v58 }
 0xe3a   : > { %v14868_v28 = vadd.f32 %v6962_v40, %v6914_v13  ;;  %v9120_v50 = vadd.f32 %v9119_v18, %v9118_v59  ;;  %v15819_v40 = vld [vmem:[#allocation36_spill] sm:$0xff] }
 0xe3c   : > { %v6915_v26 = vadd.f32 %v9120_v50, %v15812_v16  ;;  %v9121_v9 = vpop.f32.mrb[166].mxu1  ;;  %v7051_v55 = vsel %vm2177_vm12, %v14868_v28, 0.0 }
 0xe3d   : > { %v9122_v21 = vpop.f32.mrb[167].mxu1  ;;  %7052 = vadd.xlane.f32.xlu0 %v7051_v55 }
 0xe3e   : > { %v14873_v37 = vadd.f32 %v6967_v51, %v6915_v26  ;;  %v9123_v14 = vadd.f32 %v9122_v21, %v9121_v9  ;;  %v7002_v26 = vpop.permute.xlu1 %7001  ;;  %v15820_v21 = vld [vmem:[#allocation30_spill] sm:$0xff] }
 0xe40   : > { %v6916_v43 = vadd.f32 %v9123_v14, %v15813_v39  ;;  %v9124_v60 = vpop.f32.mrb[168].mxu1  ;;  %v7054_v4 = vsel %vm2177_vm12, %v14873_v37, 0.0 }
 0xe41   : > { %v9125_v57 = vpop.f32.mrb[169].mxu1  ;;  %7055 = vadd.xlane.f32.xlu1 %v7054_v4 }
 0xe42   : > { %v14878_v54 = vadd.f32 %v6972_v53, %v6916_v43  ;;  %v9126_v20 = vadd.f32 %v9125_v57, %v9124_v60  ;;  %v7007_v60 = vpop.permute.xlu0 %7006 }
 0xe44   : > { %v6917_v31 = vadd.f32 %v9126_v20, %v15814_v49  ;;  %v9127_v17 = vpop.f32.mrb[170].mxu1  ;;  %v7057_v10 = vsel %vm2177_vm12, %v14878_v54, 0.0  ;;  %v15822_v20 = vld [vmem:[#allocation27_spill] sm:$0xff] }
 0xe45   : > { %v9128_v61 = vpop.f32.mrb[171].mxu1  ;;  %7058 = vadd.xlane.f32.xlu0 %v7057_v10  ;;  %v7012_v10 = vpop.permute.xlu1 %7011 }
 0xe46   : > { %v14883_v25 = vadd.f32 %v6977_v41, %v6917_v31  ;;  %v9129_v34 = vadd.f32 %v9128_v61, %v9127_v17 }
 0xe48   : > { %v6918_v19 = vadd.f32 %v9129_v34, %v15815_v23  ;;  %v9130_v1 = vpop.f32.mrb[172].mxu1  ;;  %v7060_v22 = vsel %vm2177_vm12, %v14883_v25, 0.0  ;;  %v15823_v23 = vld [vmem:[#allocation33_spill] sm:$0xff] }
 0xe49   : > { %v9131_v30 = vpop.f32.mrb[173].mxu1  ;;  %7061 = vadd.xlane.f32.xlu1 %v7060_v22 }
 0xe4a   : > { %v14888_v42 = vadd.f32 %v6982_v36, %v6918_v19  ;;  %v9132_v2 = vadd.f32 %v9131_v30, %v9130_v1  ;;  %v7017_v36 = vpop.permute.xlu0 %7016 }
 0xe4c   : > { %v6919_v7 = vadd.f32 %v9132_v2, %v15816_v62  ;;  %v9133_v15 = vpop.f32.mrb[174].mxu1  ;;  %v7063_v47 = vsel %vm2177_vm12, %v14888_v42, 0.0 }
 0xe4d   : > { %v9134_v46 = vpop.f32.mrb[175].mxu1  ;;  %7064 = vadd.xlane.f32.xlu0 %v7063_v47 }
 0xe4e   : > { %v14893_v24 = vadd.f32 %v6987_v52, %v6919_v7  ;;  %v9135_v56 = vadd.f32 %v9134_v46, %v9133_v15  ;;  %v15825_v7 = vld [vmem:[#allocation31_spill] sm:$0xff]  ;;  %v7022_v52 = vpop.permute.xlu1 %7021 }
 0xe50   : > { %v6920_v12 = vadd.f32 %v9135_v56, %v15817_v35  ;;  %v9136_v3 = vpop.f32.mrb[176].mxu1  ;;  %v7066_v33 = vsel %vm2177_vm12, %v14893_v24, 0.0 }
 0xe51   : > { %v9137_v32 = vpop.f32.mrb[177].mxu1  ;;  %7067 = vadd.xlane.f32.xlu1 %v7066_v33 }
 0xe52   : > { %v14898_v29 = vadd.f32 %v6992_v8, %v6920_v12  ;;  %v9138_v38 = vadd.f32 %v9137_v32, %v9136_v3 }
 0xe54   : > { %v6921_v48 = vadd.f32 %v9138_v38, %v15818_v11  ;;  %v9139_v0 = vpop.f32.mrb[178].mxu1  ;;  %v7069_v63 = vsel %vm2177_vm12, %v14898_v29, 0.0 }
 0xe55   : > { %v9140_v13 = vpop.f32.mrb[179].mxu1  ;;  %7070 = vadd.xlane.f32.xlu0 %v7069_v63 }
 0xe56   : > { %v14903_v59 = vadd.f32 %v6997_v44, %v6921_v48  ;;  %v9141_v58 = vadd.f32 %v9140_v13, %v9139_v0 }
 0xe58   : > { %v6922_v18 = vadd.f32 %v9141_v58, %v15819_v40  ;;  %v9142_v50 = vpop.f32.mrb[180].mxu1  ;;  %v7072_v16 = vsel %vm2177_vm12, %v14903_v59, 0.0 }
 0xe59   : > { %v9143_v9 = vpop.f32.mrb[181].mxu1  ;;  %7073 = vadd.xlane.f32.xlu1 %v7072_v16 }
 0xe5a   : > { %v14908_v55 = vadd.f32 %v7002_v26, %v6922_v18  ;;  %v9144_v51 = vadd.f32 %v9143_v9, %v9142_v50 }
 0xe5c   : > { %v6923_v14 = vadd.f32 %v9144_v51, %v15820_v21  ;;  %v9145_v39 = vpop.f32.mrb[182].mxu1  ;;  %v7075_v43 = vsel %vm2177_vm12, %v14908_v55, 0.0 }
 0xe5d   : > { %v9146_v4 = vpop.f32.mrb[183].mxu1  ;;  %7076 = vadd.xlane.f32.xlu0 %v7075_v43 }
 0xe5e   : > { %v14913_v53 = vadd.f32 %v7007_v60, %v6923_v14  ;;  %v9147_v57 = vadd.f32 %v9146_v4, %v9145_v39 }
 0xe60   : > { %15821 = vst [vmem:[#allocation35_spill] sm:$0xff] %v14913_v53  ;;  %v6924_v49 = vadd.f32 %v9147_v57, %v15822_v20  ;;  %v9148_v31 = vpop.f32.mrb[184].mxu1  ;;  %v7078_v17 = vsel %vm2177_vm12, %v14913_v53, 0.0 }
 0xe61   : > { %v9149_v41 = vpop.f32.mrb[185].mxu1  ;;  %7079 = vadd.xlane.f32.xlu1 %v7078_v17 }
 0xe62   : > { %v14918_v61 = vadd.f32 %v7012_v10, %v6924_v49  ;;  %v9150_v34 = vadd.f32 %v9149_v41, %v9148_v31 }
 0xe64   : > { %v6925_v19 = vadd.f32 %v9150_v34, %v15823_v23  ;;  %v9151_v1 = vpop.f32.mrb[186].mxu1  ;;  %v7081_v22 = vsel %vm2177_vm12, %v14918_v61, 0.0 }
 0xe65   : > { %v9152_v30 = vpop.f32.mrb[187].mxu1  ;;  %7082 = vadd.xlane.f32.xlu0 %v7081_v22 }
 0xe66   : > { %v14923_v2 = vadd.f32 %v7017_v36, %v6925_v19  ;;  %v9153_v62 = vadd.f32 %v9152_v30, %v9151_v1 }
 0xe68   : > { %15824 = vst [vmem:[#allocation38_spill] sm:$0xff] %v14923_v2  ;;  %v6926_v15 = vadd.f32 %v9153_v62, %v15825_v7  ;;  %v7084_v47 = vsel %vm2177_vm12, %v14923_v2, 0.0 }
 0xe69   : > { %7085 = vadd.xlane.f32.xlu1 %v7084_v47  ;;  %v8783_v47 = vld [vmem:[%s15583_s8 + $0x20] sm:$0xff] }
 0xe6a   : > { %v14928_v46 = vadd.f32 %v7022_v52, %v6926_v15  ;;  %v8784_v52 = vld [vmem:[%s15583_s8 + $0x28] sm:$0xff] }
 0xe6c   : > { %15826 = vst [vmem:[#allocation39_spill] sm:$0xff] %v14928_v46  ;;  %v7087_v56 = vsel %vm2177_vm12, %v14928_v46, 0.0 }
 0xe6d   : > { %7088 = vadd.xlane.f32.xlu0 %v7087_v56 }
 0xebe   : > { %v7044_v35 = vpop.xlane.xlu0 %7043 }
 0xebf   : > { %v7090_v12 = vmul.f32 0.03125, %v7044_v35 }
 0xec1   : > { %v14933_v3 = vsub.f32 %v14853_v6, %v7090_v12  ;;  %v9789_v12 = vpack.c.bf16 %v8784_v52, %v8783_v47 }
 0xec2   : > { %v7047_v33 = vpop.xlane.xlu1 %7046 }
 0xec3   : > { %v7091_v8 = vmul.f32 0.03125, %v7047_v33  ;;  %v7122_v32 = vmul.f32 %v14933_v3, %v14933_v3  ;;  %9790 = vmatprep.subr.bf16.mxu1 %v9789_v12 }
 0xec4   : > { %9792 = vmatpush3.bf16.msra.mxu1 %v9789_v12 }
 0xec5   : > { %v14938_v38 = vsub.f32 %v14858_v27, %v7091_v8  ;;  %v7138_v11 = vsel %vm2177_vm12, %v7122_v32, 0.0 }
 0xec6   : > { %v7050_v48 = vpop.xlane.xlu0 %7049  ;;  %7139 = vadd.xlane.f32.xlu1 %v7138_v11  ;;  %v8785_v11 = vld [vmem:[%s15583_s8 + $0x30] sm:$0xff] }
 0xec7   : > { %v7092_v0 = vmul.f32 0.03125, %v7050_v48  ;;  %v7123_v63 = vmul.f32 %v14938_v38, %v14938_v38  ;;  %v8786_v48 = vld [vmem:[%s15583_s8 + $0x38] sm:$0xff] }
 0xec9   : > { %v14944_v44 = vsub.f32 %v14863_v45, %v7092_v0  ;;  %v7141_v13 = vsel %vm2177_vm12, %v7123_v63, 0.0 }
 0xeca   : > { %v7053_v58 = vpop.xlane.xlu0 %7052  ;;  %7142 = vadd.xlane.f32.xlu0 %v7141_v13  ;;  %v9793_v13 = vpack.c.bf16 %v8786_v48, %v8785_v11 }
 0xecb   : > { %v7093_v40 = vmul.f32 0.03125, %v7053_v58  ;;  %v7124_v18 = vmul.f32 %v14944_v44, %v14944_v44 }
 0xecc   : > { %9794 = vmatprep.subr.bf16.mxu1 %v9793_v13 }
 0xecd   : > { %v14950_v50 = vsub.f32 %v14868_v28, %v7093_v40  ;;  %v7144_v16 = vsel %vm2177_vm12, %v7124_v18, 0.0  ;;  %9796 = vmatpush3.bf16.msra.mxu1 %v9793_v13 }
 0xece   : > { %7145 = vadd.xlane.f32.xlu1 %v7144_v16  ;;  %v7056_v26 = vpop.xlane.xlu1 %7055 }
 0xecf   : > { %v7094_v9 = vmul.f32 0.03125, %v7056_v26  ;;  %v7125_v51 = vmul.f32 %v14950_v50, %v14950_v50 }
 0xed1   : > { %v14956_v21 = vsub.f32 %v14873_v37, %v7094_v9  ;;  %v7147_v14 = vsel %vm2177_vm12, %v7125_v51, 0.0 }
 0xed2   : > { %v7059_v39 = vpop.xlane.xlu0 %7058  ;;  %7148 = vadd.xlane.f32.xlu0 %v7147_v14 }
 0xed3   : > { %v7095_v43 = vmul.f32 0.03125, %v7059_v39  ;;  %v7126_v60 = vmul.f32 %v14956_v21, %v14956_v21 }
 0xed5   : > { %v14962_v4 = vsub.f32 %v14878_v54, %v7095_v43  ;;  %v7150_v57 = vsel %vm2177_vm12, %v7126_v60, 0.0 }
 0xed6   : > { %7151 = vadd.xlane.f32.xlu1 %v7150_v57  ;;  %v7062_v20 = vpop.xlane.xlu1 %7061 }
 0xed7   : > { %v7096_v49 = vmul.f32 0.03125, %v7062_v20  ;;  %v7127_v31 = vmul.f32 %v14962_v4, %v14962_v4 }
 0xed9   : > { %v14968_v17 = vsub.f32 %v14883_v25, %v7096_v49  ;;  %v7153_v10 = vsel %vm2177_vm12, %v7127_v31, 0.0 }
 0xeda   : > { %v7065_v41 = vpop.xlane.xlu0 %7064  ;;  %7154 = vadd.xlane.f32.xlu0 %v7153_v10 }
 0xedb   : > { %v7097_v34 = vmul.f32 0.03125, %v7065_v41  ;;  %v7128_v23 = vmul.f32 %v14968_v17, %v14968_v17 }
 0xedd   : > { %v14974_v19 = vsub.f32 %v14888_v42, %v7097_v34  ;;  %v7156_v1 = vsel %vm2177_vm12, %v7128_v23, 0.0 }
 0xede   : > { %7157 = vadd.xlane.f32.xlu1 %v7156_v1  ;;  %v7068_v22 = vpop.xlane.xlu1 %7067 }
 0xedf   : > { %v7098_v36 = vmul.f32 0.03125, %v7068_v22  ;;  %v7129_v30 = vmul.f32 %v14974_v19, %v14974_v19 }
 0xee1   : > { %v14980_v62 = vsub.f32 %v14893_v24, %v7098_v36  ;;  %v7159_v7 = vsel %vm2177_vm12, %v7129_v30, 0.0 }
 0xee2   : > { %v7071_v15 = vpop.xlane.xlu0 %7070  ;;  %7160 = vadd.xlane.f32.xlu0 %v7159_v7 }
 0xee3   : > { %v7099_v56 = vmul.f32 0.03125, %v7071_v15  ;;  %v7130_v35 = vmul.f32 %v14980_v62, %v14980_v62 }
 0xee5   : > { %v14992_v33 = vsub.f32 %v14898_v29, %v7099_v56  ;;  %v7162_v8 = vsel %vm2177_vm12, %v7130_v35, 0.0 }
 0xee6   : > { %7163 = vadd.xlane.f32.xlu1 %v7162_v8  ;;  %v7074_v32 = vpop.xlane.xlu1 %7073 }
 0xee7   : > { %v7100_v0 = vmul.f32 0.03125, %v7074_v32  ;;  %v7131_v63 = vmul.f32 %v14992_v33, %v14992_v33 }
 0xee9   : > { %v15004_v58 = vsub.f32 %v14903_v59, %v7100_v0  ;;  %v7165_v40 = vsel %vm2177_vm12, %v7131_v63, 0.0 }
 0xeea   : > { %v7077_v18 = vpop.xlane.xlu0 %7076  ;;  %7166 = vadd.xlane.f32.xlu0 %v7165_v40 }
 0xeeb   : > { %v7101_v16 = vmul.f32 0.03125, %v7077_v18  ;;  %v7132_v26 = vmul.f32 %v15004_v58, %v15004_v58 }
 0xeed   : > { %v15010_v9 = vsub.f32 %v14908_v55, %v7101_v16  ;;  %v7168_v51 = vsel %vm2177_vm12, %v7132_v26, 0.0 }
 0xeee   : > { %7169 = vadd.xlane.f32.xlu1 %v7168_v51  ;;  %v7080_v14 = vpop.xlane.xlu1 %7079  ;;  %v15043_v51 = vld [vmem:[%s15586_s11 + $0x9] ss:$0 sm:$0xff] }
 0xeef   : > { %v7102_v39 = vmul.f32 0.03125, %v7080_v14  ;;  %v7133_v43 = vmul.f32 %v15010_v9, %v15010_v9 }
 0xef1   : > { %v15016_v60 = vsub.f32 %v14913_v53, %v7102_v39  ;;  %v7171_v57 = vsel %vm2177_vm12, %v7133_v43, 0.0 }
 0xef2   : > { %v7083_v20 = vpop.xlane.xlu0 %7082  ;;  %7172 = vadd.xlane.f32.xlu0 %v7171_v57  ;;  %v15049_v57 = vld [vmem:[%s15586_s11 + $0xa] ss:$0 sm:$0xff] }
 0xef3   : > { %v7103_v49 = vmul.f32 0.03125, %v7083_v20  ;;  %v7134_v31 = vmul.f32 %v15016_v60, %v15016_v60 }
 0xef5   : > { %v15022_v10 = vsub.f32 %v14918_v61, %v7103_v49  ;;  %v7174_v41 = vsel %vm2177_vm12, %v7134_v31, 0.0 }
 0xef6   : > { %7175 = vadd.xlane.f32.xlu1 %v7174_v41  ;;  %v7086_v34 = vpop.xlane.xlu1 %7085 }
 0xef7   : > { %v7104_v23 = vmul.f32 0.03125, %v7086_v34  ;;  %v7135_v1 = vmul.f32 %v15022_v10, %v15022_v10 }
 0xef9   : > { %v15028_v22 = vsub.f32 %v14923_v2, %v7104_v23  ;;  %v7177_v36 = vsel %vm2177_vm12, %v7135_v1, 0.0 }
 0xefa   : > { %v7089_v30 = vpop.xlane.xlu0 %7088  ;;  %7178 = vadd.xlane.f32.xlu0 %v7177_v36 }
 0xefb   : > { %v7105_v7 = vmul.f32 0.03125, %v7089_v30  ;;  %v7136_v15 = vmul.f32 %v15028_v22, %v15028_v22 }
 0xefd   : > { %v15034_v47 = vsub.f32 %v14928_v46, %v7105_v7  ;;  %v7180_v52 = vsel %vm2177_vm12, %v7136_v15, 0.0 }
 0xefe   : > { %7181 = vadd.xlane.f32.xlu1 %v7180_v52 }
 0xeff   : > { %v7137_v56 = vmul.f32 %v15034_v47, %v15034_v47 }
 0xf01   : > { %v7183_v35 = vsel %vm2177_vm12, %v7137_v56, 0.0 }
 0xf02   : > { %7184 = vadd.xlane.f32.xlu0 %v7183_v35 }
 0xf53   : > { %v7140_v12 = vpop.xlane.xlu1 %7139 }
 0xf54   : > { %v7186_v8 = vmul.f32 0.03125, %v7140_v12 }
 0xf56   : > { %v7202_v32 = vadd.f32 1e-05, %v7186_v8 }
 0xf57   : > { %v7143_v11 = vpop.xlane.xlu0 %7142 }
 0xf58   : > { %10304 = vrsqrt.f32 %v7202_v32  ;;  %v7187_v48 = vmul.f32 0.03125, %v7143_v11 }
 0xf5a   : > { %v7203_v0 = vadd.f32 1e-05, %v7187_v48 }
 0xf5b   : > { %v7146_v63 = vpop.xlane.xlu1 %7145 }
 0xf5c   : > { %10306 = vrsqrt.f32 %v7203_v0  ;;  %v7188_v13 = vmul.f32 0.03125, %v7146_v63 }
 0xf5e   : > { %v7204_v40 = vadd.f32 1e-05, %v7188_v13 }
 0xf5f   : > { %v7149_v18 = vpop.xlane.xlu0 %7148 }
 0xf60   : > { %10308 = vrsqrt.f32 %v7204_v40  ;;  %v7189_v16 = vmul.f32 0.03125, %v7149_v18 }
 0xf62   : > { %v10305_v26 = vpop.eup %10304  ;;  %v7205_v14 = vadd.f32 1e-05, %v7189_v16 }
 0xf63   : > { %v7152_v39 = vpop.xlane.xlu1 %7151  ;;  %v7234_v43 = vmul.f32 %v10305_v26, %v14933_v3 }
 0xf64   : > { %10310 = vrsqrt.f32 %v7205_v14  ;;  %v7190_v20 = vmul.f32 0.03125, %v7152_v39 }
 0xf65   : > { %v7254_v49 = vmul.f32 %v15043_v51, %v7234_v43 }
 0xf66   : > { %v10307_v31 = vpop.eup %10306  ;;  %v7206_v41 = vadd.f32 1e-05, %v7190_v20 }
 0xf67   : > { %v7235_v34 = vmul.f32 %v10307_v31, %v14938_v38  ;;  %v7155_v23 = vpop.xlane.xlu0 %7154  ;;  %v7274_v1 = vadd.f32 %v15049_v57, %v7254_v49 }
 0xf68   : > { %10312 = vrsqrt.f32 %v7206_v41  ;;  %v7191_v36 = vmul.f32 0.03125, %v7155_v23 }
 0xf69   : > { %v7255_v3 = vmul.f32 %v15043_v51, %v7235_v34  ;;  %9488 = vmatprep.mubr.msk.f32.mxu1 %vm2177_vm12, %v7274_v1 }
 0xf6a   : > { %v10309_v30 = vpop.eup %10308  ;;  %v7207_v7 = vadd.f32 1e-05, %v7191_v36 }
 0xf6b   : > { %v7275_v15 = vadd.f32 %v15049_v57, %v7255_v3  ;;  %v7158_v52 = vpop.xlane.xlu1 %7157  ;;  %v7236_v56 = vmul.f32 %v10309_v30, %v14944_v44 }
 0xf6c   : > { %10314 = vrsqrt.f32 %v7207_v7  ;;  %v7192_v35 = vmul.f32 0.03125, %v7158_v52 }
 0xf6d   : > { %9489 = vmatmul.mubr.msk.f32.vlgmr.msra.gmra.mrb[188].mxu1 %vm2177_vm12, %v7275_v15  ;;  %v7256_v38 = vmul.f32 %v15043_v51, %v7236_v56 }
 0xf6e   : > { %v10311_v12 = vpop.eup %10310  ;;  %v7208_v8 = vadd.f32 1e-05, %v7192_v35 }
 0xf6f   : > { %v7161_v32 = vpop.xlane.xlu0 %7160  ;;  %v7276_v11 = vadd.f32 %v15049_v57, %v7256_v38  ;;  %v7237_v48 = vmul.f32 %v10311_v12, %v14950_v50 }
 0xf70   : > { %10316 = vrsqrt.f32 %v7208_v8  ;;  %v7193_v0 = vmul.f32 0.03125, %v7161_v32 }
 0xf71   : > { %9491 = vmatprep.mubr.msk.f32.mxu1 %vm2177_vm12, %v7276_v11  ;;  %v7257_v63 = vmul.f32 %v15043_v51, %v7237_v48 }
 0xf72   : > { %v10313_v44 = vpop.eup %10312  ;;  %v7209_v13 = vadd.f32 1e-05, %v7193_v0 }
 0xf73   : > { %v7164_v40 = vpop.xlane.xlu1 %7163  ;;  %v7277_v18 = vadd.f32 %v15049_v57, %v7257_v63  ;;  %v7238_v16 = vmul.f32 %v10313_v44, %v14956_v21 }
 0xf74   : > { %10318 = vrsqrt.f32 %v7209_v13  ;;  %v7194_v26 = vmul.f32 0.03125, %v7164_v40 }
 0xf75   : > { %9492 = vmatmul.mubr.msk.f32.gmra.mrb[190].mxu1 %vm2177_vm12, %v7277_v18  ;;  %v7258_v14 = vmul.f32 %v15043_v51, %v7238_v16 }
 0xf76   : > { %v10315_v50 = vpop.eup %10314  ;;  %v7210_v39 = vadd.f32 1e-05, %v7194_v26 }
 0xf77   : > { %v7167_v43 = vpop.xlane.xlu0 %7166  ;;  %v7278_v20 = vadd.f32 %v15049_v57, %v7258_v14  ;;  %v7239_v49 = vmul.f32 %v10315_v50, %v14962_v4 }
 0xf78   : > { %10320 = vrsqrt.f32 %v7210_v39  ;;  %v7195_v31 = vmul.f32 0.03125, %v7167_v43 }
 0xf79   : > { %9494 = vmatprep.mubr.msk.f32.mxu1 %vm2177_vm12, %v7278_v20  ;;  %v7259_v41 = vmul.f32 %v15043_v51, %v7239_v49 }
 0xf7a   : > { %v10317_v21 = vpop.eup %10316  ;;  %v7211_v34 = vadd.f32 1e-05, %v7195_v31 }
 0xf7b   : > { %v7170_v23 = vpop.xlane.xlu1 %7169  ;;  %v7279_v1 = vadd.f32 %v15049_v57, %v7259_v41  ;;  %v7240_v36 = vmul.f32 %v10317_v21, %v14968_v17 }
 0xf7c   : > { %10322 = vrsqrt.f32 %v7211_v34  ;;  %v7196_v3 = vmul.f32 0.03125, %v7170_v23 }
 0xf7d   : > { %9495 = vmatmul.mubr.msk.f32.gmra.mrb[192].mxu1 %vm2177_vm12, %v7279_v1  ;;  %v7260_v30 = vmul.f32 %v15043_v51, %v7240_v36 }
 0xf7e   : > { %v10319_v4 = vpop.eup %10318  ;;  %v7212_v7 = vadd.f32 1e-05, %v7196_v3 }
 0xf7f   : > { %v7173_v15 = vpop.xlane.xlu0 %7172  ;;  %v7280_v52 = vadd.f32 %v15049_v57, %v7260_v30  ;;  %v7241_v56 = vmul.f32 %v10319_v4, %v14974_v19 }
 0xf80   : > { %10324 = vrsqrt.f32 %v7212_v7  ;;  %v7197_v35 = vmul.f32 0.03125, %v7173_v15 }
 0xf81   : > { %9497 = vmatprep.mubr.msk.f32.mxu1 %vm2177_vm12, %v7280_v52  ;;  %v7261_v38 = vmul.f32 %v15043_v51, %v7241_v56 }
 0xf82   : > { %v10321_v17 = vpop.eup %10320  ;;  %v7213_v12 = vadd.f32 1e-05, %v7197_v35 }
 0xf83   : > { %v7176_v8 = vpop.xlane.xlu1 %7175  ;;  %v7281_v32 = vadd.f32 %v15049_v57, %v7261_v38  ;;  %v7242_v11 = vmul.f32 %v10321_v17, %v14980_v62 }
 0xf84   : > { %10326 = vrsqrt.f32 %v7213_v12  ;;  %v7198_v48 = vmul.f32 0.03125, %v7176_v8 }
 0xf85   : > { %9498 = vmatmul.mubr.msk.f32.gmra.mrb[194].mxu1 %vm2177_vm12, %v7281_v32  ;;  %v7262_v0 = vmul.f32 %v15043_v51, %v7242_v11  ;;  %v8805_v32 = vld [vmem:[%s15585_s10 + $0x48] sm:$0xff] }
 0xf86   : > { %v10323_v19 = vpop.eup %10322  ;;  %v7214_v63 = vadd.f32 1e-05, %v7198_v48  ;;  %v8808_v48 = vld [vmem:[%s15585_s10 + $0x60] sm:$0xff] }
 0xf87   : > { %v7179_v44 = vpop.xlane.xlu0 %7178  ;;  %v7282_v13 = vadd.f32 %v15049_v57, %v7262_v0  ;;  %v7243_v40 = vmul.f32 %v10323_v19, %v14992_v33  ;;  %v8809_v0 = vld [vmem:[%s15585_s10 + $0x68] sm:$0xff] }
 0xf88   : > { %10328 = vrsqrt.f32 %v7214_v63  ;;  %v7199_v18 = vmul.f32 0.03125, %v7179_v44  ;;  %v9805_v19 = vpack.c.bf16 %v8809_v0, %v8808_v48  ;;  %v8810_v63 = vld [vmem:[%s15585_s10 + $0x70] sm:$0xff]  ;;  %v8811_v44 = vld [vmem:[%s15585_s10 + $0x78] sm:$0xff] }
 0xf89   : > { %9500 = vmatprep.mubr.msk.f32.mxu1 %vm2177_vm12, %v7282_v13  ;;  %v7263_v16 = vmul.f32 %v15043_v51, %v7243_v40  ;;  %v9809_v13 = vpack.c.bf16 %v8811_v44, %v8810_v63  ;;  %v15141_v40 = vld [vmem:[%s15584_s9 + $0x1] ss:$0 sm:$0xff] }
 0xf8a   : > { %v10325_v62 = vpop.eup %10324  ;;  %v7215_v26 = vadd.f32 1e-05, %v7199_v18 }
 0xf8b   : > { %v7182_v14 = vpop.xlane.xlu1 %7181  ;;  %v7283_v50 = vadd.f32 %v15049_v57, %v7263_v16  ;;  %v7244_v39 = vmul.f32 %v10325_v62, %v15004_v58 }
 0xf8c   : > { %10330 = vrsqrt.f32 %v7215_v26  ;;  %v7200_v43 = vmul.f32 0.03125, %v7182_v14 }
 0xf8d   : > { %9501 = vmatmul.mubr.msk.f32.gmra.mrb[196].mxu1 %vm2177_vm12, %v7283_v50  ;;  %v7264_v20 = vmul.f32 %v15043_v51, %v7244_v39 }
 0xf8e   : > { %v10327_v33 = vpop.eup %10326  ;;  %v7216_v49 = vadd.f32 1e-05, %v7200_v43 }
 0xf8f   : > { %v7185_v31 = vpop.xlane.xlu0 %7184  ;;  %v7284_v41 = vadd.f32 %v15049_v57, %v7264_v20  ;;  %v7245_v21 = vmul.f32 %v10327_v33, %v15010_v9 }
 0xf90   : > { %10332 = vrsqrt.f32 %v7216_v49  ;;  %v7201_v34 = vmul.f32 0.03125, %v7185_v31 }
 0xf91   : > { %9503 = vmatprep.mubr.msk.f32.mxu1 %vm2177_vm12, %v7284_v41  ;;  %v7265_v23 = vmul.f32 %v15043_v51, %v7245_v21 }
 0xf92   : > { %v10329_v58 = vpop.eup %10328  ;;  %v7217_v1 = vadd.f32 1e-05, %v7201_v34 }
 0xf93   : > { %v7285_v36 = vadd.f32 %v15049_v57, %v7265_v23  ;;  %v7246_v3 = vmul.f32 %v10329_v58, %v15016_v60 }
 0xf94   : > { %10334 = vrsqrt.f32 %v7217_v1 }
 0xf95   : > { %9504 = vmatmul.mubr.msk.f32.gmra.mrb[198].mxu1 %vm2177_vm12, %v7285_v36  ;;  %v7266_v30 = vmul.f32 %v15043_v51, %v7246_v3 }
 0xf96   : > { %v10331_v4 = vpop.eup %10330 }
 0xf97   : > { %v7286_v9 = vadd.f32 %v15049_v57, %v7266_v30  ;;  %v7247_v7 = vmul.f32 %v10331_v4, %v15022_v10 }
 0xf99   : > { %9506 = vmatprep.mubr.msk.f32.mxu1 %vm2177_vm12, %v7286_v9  ;;  %v7267_v15 = vmul.f32 %v15043_v51, %v7247_v7 }
 0xf9a   : > { %v10333_v52 = vpop.eup %10332 }
 0xf9b   : > { %v7287_v56 = vadd.f32 %v15049_v57, %v7267_v15  ;;  %v7248_v35 = vmul.f32 %v10333_v52, %v15028_v22  ;;  %v8804_v22 = vld [vmem:[%s15585_s10 + $0x40] sm:$0xff] }
 0xf9c   : > { %v9797_v11 = vpack.c.bf16 %v8805_v32, %v8804_v22 }
 0xf9d   : > { %9507 = vmatmul.mubr.msk.f32.gmra.mrb[200].mxu1 %vm2177_vm12, %v7287_v56  ;;  %v7268_v60 = vmul.f32 %v15043_v51, %v7248_v35 }
 0xf9e   : > { %v10335_v38 = vpop.eup %10334  ;;  %9798 = vmatprep.subr.bf16.mxu1 %v9797_v11 }
 0xf9f   : > { %v7288_v17 = vadd.f32 %v15049_v57, %v7268_v60  ;;  %v7249_v12 = vmul.f32 %v10335_v38, %v15034_v47  ;;  %9800 = vmatpush3.bf16.msra.mxu1 %v9797_v11  ;;  %v8806_v47 = vld [vmem:[%s15585_s10 + $0x50] sm:$0xff] }
 0xfa1   : > { %9509 = vmatprep.mubr.msk.f32.mxu1 %vm2177_vm12, %v7288_v17  ;;  %v7269_v10 = vmul.f32 %v15043_v51, %v7249_v12  ;;  %v8807_v51 = vld [vmem:[%s15585_s10 + $0x58] sm:$0xff] }
 0xfa3   : > { %v7289_v8 = vadd.f32 %v15049_v57, %v7269_v10  ;;  %v9801_v57 = vpack.c.bf16 %v8807_v51, %v8806_v47 }
 0xfa5   : > { %9510 = vmatmul.mubr.msk.f32.gmra.mrb[202].mxu1 %vm2177_vm12, %v7289_v8  ;;  %9802 = vmatprep.subr.bf16.mxu1 %v9801_v57 }
 0xfa6   : > { %9804 = vmatpush3.bf16.msra.mxu1 %v9801_v57 }
 0xfa7   : > { %9806 = vmatprep.subr.bf16.mxu1 %v9805_v19 }
 0xfaa   : > { %9808 = vmatpush3.bf16.msra.mxu1 %v9805_v19 }
 0xfab   : > { %9810 = vmatprep.subr.bf16.mxu1 %v9809_v13 }
 0xfae   : > { %9812 = vmatpush3.bf16.msra.mxu1 %v9809_v13 }
0x1040   : > { %v9490_v18 = vpop.f32.mrb[188].mxu1 }
0x1041   : > { %v7420_v16 = vadd.f32 %v9490_v18, %v15141_v40  ;;  %v7414_v62 = vpop.f32.mrb[189].mxu1 }
0x1042   : > { %v7415_v26 = vadd.f32 %v15141_v40, %v7414_v62 }
0x1043   : > { %v7510_v14 = vmul.f32 0.70710677, %v7420_v16  ;;  %v15159_v8 = vmul.f32 0.5, %v7420_v16 }
0x1044   : > { %v7509_v50 = vmul.f32 0.70710677, %v7415_v26  ;;  %v15169_v51 = vmul.f32 0.5, %v7415_v26 }
0x1045   : > { %v7558_v39 = vand.u32 2147483647, %v7510_v14  ;;  %vm7526_vm6 = vcmp.ge.f32.partialorder %v7510_v14, 0.0 }
0x1046   : > { %v7557_v43 = vand.u32 2147483647, %v7509_v50  ;;  %vm7525_vm7 = vcmp.ge.f32.partialorder %v7509_v50, 0.0  ;;  %v15167_v47 = vsel %vm7526_vm6, 1.0, %v15669_v5 }
0x1047   : > { %v7574_v20 = vmul.f32 0.3275911, %v7558_v39  ;;  %v7782_v3 = vsub.f32 0.0, %v7558_v39  ;;  %v15177_v44 = vsel %vm7525_vm7, 1.0, %v15669_v5 }
0x1048   : > { %v7573_v33 = vmul.f32 0.3275911, %v7557_v43  ;;  %v9493_v49 = vpop.f32.mrb[190].mxu1  ;;  %v7781_v4 = vsub.f32 0.0, %v7557_v43 }
0x1049   : > { %v7590_v31 = vadd.f32 1.0, %v7574_v20  ;;  %v7430_v41 = vadd.f32 %v9493_v49, %v15141_v40  ;;  %v7424_v21 = vpop.f32.mrb[191].mxu1  ;;  %v7798_v60 = vmul.f32 %v7782_v3, %v7558_v39 }
0x104a   : > { %v7589_v34 = vadd.f32 1.0, %v7573_v33  ;;  %v7425_v23 = vadd.f32 %v15141_v40, %v7424_v21  ;;  %v7797_v12 = vmul.f32 %v7781_v4, %v7557_v43 }
0x104b   : > { %10336 = vrcp.f32 %v7590_v31  ;;  %v7512_v58 = vmul.f32 0.70710677, %v7430_v41  ;;  %v7815_v63 = vmul.f32 1.442695, %v7798_v60  ;;  %v15179_v13 = vmul.f32 0.5, %v7430_v41 }
0x104c   : > { %10338 = vrcp.f32 %v7589_v34  ;;  %v15147_v1 = vmul.f32 0.70710677, %v7425_v23  ;;  %v7813_v16 = vmul.f32 1.442695, %v7797_v12 }
0x104d   : > { %v7560_v36 = vand.u32 2147483647, %v7512_v58  ;;  %vm7528_vm8 = vcmp.ge.f32.partialorder %v7512_v58, 0.0 }
0x104e   : > { %v7559_v30 = vand.u32 2147483647, %v15147_v1  ;;  %vm7527_vm9 = vcmp.ge.f32.partialorder %v15147_v1, 0.0 }
0x104f   : > { %v7576_v9 = vmul.f32 0.3275911, %v7560_v36  ;;  %v7784_v22 = vsub.f32 0.0, %v7560_v36 }
0x1050   : > { %v7575_v7 = vmul.f32 0.3275911, %v7559_v30  ;;  %v9496_v15 = vpop.f32.mrb[192].mxu1  ;;  %v7783_v57 = vsub.f32 0.0, %v7559_v30 }
0x1051   : > { %v7592_v52 = vadd.f32 1.0, %v7576_v9  ;;  %v15151_v56 = vadd.f32 %v9496_v15, %v15141_v40  ;;  %v7434_v35 = vpop.f32.mrb[193].mxu1  ;;  %v7800_v14 = vmul.f32 %v7784_v22, %v7560_v36  ;;  %v15191_v36 = vmul.f32 0.5, %v7425_v23 }
0x1052   : > { %v7591_v38 = vadd.f32 1.0, %v7575_v7  ;;  %v15154_v17 = vadd.f32 %v15141_v40, %v7434_v35  ;;  %v7799_v33 = vmul.f32 %v7783_v57, %v7559_v30  ;;  %v15198_v9 = vsel %vm7528_vm8, 1.0, %v15669_v5 }
0x1053   : > { %10340 = vrcp.f32 %v7592_v52  ;;  %v15157_v10 = vmul.f32 0.70710677, %v15151_v56  ;;  %v7819_v60 = vmul.f32 1.442695, %v7800_v14 }
0x1054   : > { %10342 = vrcp.f32 %v7591_v38  ;;  %v15162_v32 = vmul.f32 0.70710677, %v15154_v17  ;;  %v7817_v23 = vmul.f32 1.442695, %v7799_v33 }
0x1055   : > { %v15164_v11 = vpop.eup %10336  ;;  %v7562_v48 = vand.u32 2147483647, %v15157_v10  ;;  %10344 = vpow2.f32 %v7815_v63  ;;  %vm7530_vm10 = vcmp.ge.f32.partialorder %v15157_v10, 0.0 }
0x1056   : > { %v15172_v0 = vpop.eup %10338  ;;  %v7638_v19 = vmul.f32 1.0614054, %v15164_v11  ;;  %v15183_v39 = vand.u32 2147483647, %v15162_v32  ;;  %vm7529_vm11 = vcmp.ge.f32.partialorder %v15162_v32, 0.0 }
0x1057   : > { %v7637_v18 = vmul.f32 1.0614054, %v15172_v0  ;;  %v7578_v62 = vmul.f32 0.3275911, %v7562_v48  ;;  %v7786_v21 = vsub.f32 0.0, %v7562_v48  ;;  %v7545_v10 = vsel %vm7529_vm11, 1.0, %v15669_v5 }
0x1058   : > { %v7654_v26 = vadd.f32 -1.4531521, %v7638_v19  ;;  %v9499_v43 = vpop.f32.mrb[194].mxu1  ;;  %v7577_v34 = vmul.f32 0.3275911, %v15183_v39 }
0x1059   : > { %v7653_v20 = vadd.f32 -1.4531521, %v7637_v18  ;;  %v7594_v49 = vadd.f32 1.0, %v7578_v62  ;;  %v15186_v50 = vadd.f32 %v9499_v43, %v15141_v40  ;;  %v7444_v31 = vpop.f32.mrb[195].mxu1  ;;  %v7802_v57 = vmul.f32 %v7786_v21, %v7562_v48 }
0x105a   : > { %v7670_v41 = vmul.f32 %v15164_v11, %v7654_v26  ;;  %v15194_v4 = vadd.f32 %v15141_v40, %v7444_v31  ;;  %v7593_v7 = vadd.f32 1.0, %v7577_v34  ;;  %v7785_v31 = vsub.f32 0.0, %v15183_v39 }
0x105b   : > { %v7669_v3 = vmul.f32 %v15172_v0, %v7653_v20  ;;  %10346 = vrcp.f32 %v7594_v49  ;;  %v15201_v15 = vmul.f32 0.70710677, %v15186_v50  ;;  %v7823_v49 = vmul.f32 1.442695, %v7802_v57 }
0x105c   : > { %v7686_v30 = vadd.f32 1.4214138, %v7670_v41  ;;  %10348 = vpow2.f32 %v7813_v16  ;;  %v15213_v18 = vmul.f32 0.70710677, %v15194_v4 }
0x105d   : > { %v15203_v52 = vpop.eup %10340  ;;  %v7685_v35 = vadd.f32 1.4214138, %v7669_v3  ;;  %10350 = vrcp.f32 %v7593_v7  ;;  %v7564_v63 = vand.u32 2147483647, %v15201_v15  ;;  %vm7532_vm13 = vcmp.ge.f32.partialorder %v15201_v15, 0.0 }
0x105e   : > { %v15205_v38 = vpop.eup %10342  ;;  %v7702_v12 = vmul.f32 %v15164_v11, %v7686_v30  ;;  %v7640_v22 = vmul.f32 1.0614054, %v15203_v52  ;;  %10352 = vpow2.f32 %v7819_v60  ;;  %vm7531_vm14 = vcmp.ge.f32.partialorder %v15213_v18, 0.0 }
0x105f   : > { %v7701_v58 = vmul.f32 %v15172_v0, %v7685_v35  ;;  %v7639_v19 = vmul.f32 1.0614054, %v15205_v38  ;;  %v7580_v20 = vmul.f32 0.3275911, %v7564_v63  ;;  %v7788_v30 = vsub.f32 0.0, %v7564_v63  ;;  %v10345_v7 = vpop.eup %10344 }
0x1060   : > { %v7718_v16 = vadd.f32 -0.28449672, %v7702_v12  ;;  %v7656_v62 = vadd.f32 -1.4531521, %v7640_v22  ;;  %v9502_v26 = vpop.f32.mrb[196].mxu1  ;;  %10354 = vpow2.f32 %v7817_v23  ;;  %v7801_v23 = vmul.f32 %v7785_v31, %v15183_v39 }
0x1061   : > { %v7717_v14 = vadd.f32 -0.28449672, %v7701_v58  ;;  %v7655_v43 = vadd.f32 -1.4531521, %v7639_v19  ;;  %v15219_v41 = vpop.f32.mrb[197].mxu1  ;;  %v7596_v3 = vadd.f32 1.0, %v7580_v20 }
0x1062   : > { %v7734_v48 = vmul.f32 %v15164_v11, %v7718_v16  ;;  %v7672_v33 = vmul.f32 %v15203_v52, %v7656_v62  ;;  %v15224_v12 = vand.u32 2147483647, %v15213_v18  ;;  %v15231_v58 = vsel %vm7527_vm9, 1.0, %v15669_v5 }
0x1063   : > { %v7733_v21 = vmul.f32 %v15172_v0, %v7717_v14  ;;  %v7671_v34 = vmul.f32 %v15205_v38, %v7655_v43  ;;  %10356 = vrcp.f32 %v7596_v3 }
0x1064   : > { %v7750_v35 = vadd.f32 0.2548296, %v7734_v48  ;;  %v7688_v60 = vadd.f32 1.4214138, %v7672_v33  ;;  %10358 = vpow2.f32 %v7823_v49  ;;  %v7579_v1 = vmul.f32 0.3275911, %v15224_v12 }
0x1065   : > { %v15226_v22 = vpop.eup %10346  ;;  %v7749_v57 = vadd.f32 0.2548296, %v7733_v21  ;;  %v7687_v19 = vadd.f32 1.4214138, %v7671_v34 }
0x1066   : > { %v7766_v16 = vmul.f32 %v15164_v11, %v7750_v35  ;;  %v7704_v62 = vmul.f32 %v15203_v52, %v7688_v60  ;;  %v7642_v14 = vmul.f32 1.0614054, %v15226_v22  ;;  %v10349_v43 = vpop.eup %10348  ;;  %v7804_v11 = vmul.f32 %v7788_v30, %v7564_v63 }
0x1067   : > { %v7765_v20 = vmul.f32 %v15172_v0, %v7749_v57  ;;  %v7703_v48 = vmul.f32 %v15205_v38, %v7687_v19  ;;  %v15240_v33 = vpop.eup %10350  ;;  %v7595_v31 = vadd.f32 1.0, %v7579_v1  ;;  %v15250_v19 = vadd.f32 %v9502_v26, %v15141_v40 }
0x1068   : > { %v7846_v21 = vmul.f32 %v10345_v7, %v7766_v16  ;;  %v7720_v34 = vadd.f32 -0.28449672, %v7704_v62  ;;  %v7658_v3 = vadd.f32 -1.4531521, %v7642_v14  ;;  %v15242_v35 = vpop.f32.mrb[198].mxu1  ;;  %v10353_v7 = vpop.eup %10352 }
0x1069   : > { %v7845_v60 = vmul.f32 %v10349_v43, %v7765_v20  ;;  %v7719_v2 = vadd.f32 -0.28449672, %v7703_v48  ;;  %v7641_v39 = vmul.f32 1.0614054, %v15240_v33  ;;  %v15245_v46 = vpop.f32.mrb[199].mxu1  ;;  %10360 = vrcp.f32 %v7595_v31 }
0x106a   : > { %v7862_v0 = vsub.f32 1.0, %v7846_v21  ;;  %v7736_v49 = vmul.f32 %v15203_v52, %v7720_v34  ;;  %v7674_v57 = vmul.f32 %v15226_v22, %v7658_v3  ;;  %v7821_v20 = vmul.f32 1.442695, %v7801_v23  ;;  %v10355_v3 = vpop.eup %10354 }
0x106b   : > { %v7861_v16 = vsub.f32 1.0, %v7845_v60  ;;  %v7735_v63 = vmul.f32 %v15205_v38, %v7719_v2  ;;  %v7657_v30 = vadd.f32 -1.4531521, %v7641_v39  ;;  %v7827_v34 = vmul.f32 1.442695, %v7804_v11 }
0x106c   : > { %v7878_v62 = vmul.f32 %v7862_v0, %v15167_v47  ;;  %v7752_v14 = vadd.f32 0.2548296, %v7736_v49  ;;  %v7690_v43 = vadd.f32 1.4214138, %v7674_v57  ;;  %v15259_v2 = vmul.f32 0.70710677, %v15250_v19 }
0x106d   : > { %v7877_v48 = vmul.f32 %v7861_v16, %v15177_v44  ;;  %v7751_v1 = vadd.f32 0.2548296, %v7735_v63  ;;  %v7673_v21 = vmul.f32 %v15240_v33, %v7657_v30  ;;  %v15261_v39 = vpop.eup %10356  ;;  %v7787_v44 = vsub.f32 0.0, %v15224_v12 }
0x106e   : > { %v7894_v26 = vadd.f32 1.0, %v7878_v62  ;;  %v7768_v53 = vmul.f32 %v15203_v52, %v7752_v14  ;;  %v7706_v60 = vmul.f32 %v15226_v22, %v7690_v43  ;;  %10362 = vpow2.f32 %v7821_v20  ;;  %v10359_v52 = vpop.eup %10358 }
0x106f   : > { %v7893_v47 = vadd.f32 1.0, %v7877_v48  ;;  %v7767_v23 = vmul.f32 %v15205_v38, %v7751_v1  ;;  %v7689_v31 = vadd.f32 1.4214138, %v7673_v21  ;;  %v7644_v11 = vmul.f32 1.0614054, %v15261_v39 }
0x1070   : > { %v7848_v0 = vmul.f32 %v10353_v7, %v7768_v53  ;;  %v7722_v49 = vadd.f32 -0.28449672, %v7706_v60  ;;  %v15266_v57 = vpop.f32.mrb[200].mxu1  ;;  %v7910_v16 = vmul.f32 %v7894_v26, %v15159_v8  ;;  %v15275_v7 = vand.u32 2147483647, %v15259_v2 }
0x1071   : > { %v7909_v63 = vmul.f32 %v7893_v47, %v15169_v51  ;;  %v7847_v30 = vmul.f32 %v10355_v3, %v7767_v23  ;;  %v7705_v62 = vmul.f32 %v15240_v33, %v7689_v31  ;;  %v15271_v14 = vpop.f32.mrb[201].mxu1  ;;  %v7660_v53 = vadd.f32 -1.4531521, %v7644_v11 }
0x1072   : > { %v7864_v38 = vsub.f32 1.0, %v7848_v0  ;;  %v7738_v43 = vmul.f32 %v15226_v22, %v7722_v49  ;;  %v7803_v8 = vmul.f32 %v7787_v44, %v15224_v12  ;;  %v7582_v3 = vmul.f32 0.3275911, %v15275_v7 }
0x1073   : > { %v7863_v20 = vsub.f32 1.0, %v7847_v30  ;;  %v7721_v48 = vadd.f32 -0.28449672, %v7705_v62  ;;  %9528 = vmatprep.mubr.msk.f32.mxu1 %vm4937_vm3, %v7909_v63  ;;  %v7676_v21 = vmul.f32 %v15261_v39, %v7660_v53  ;;  %v15284_v26 = vpop.eup %10360  ;;  %10364 = vpow2.f32 %v7827_v34 }
0x1074   : > { %v7880_v51 = vmul.f32 %v7864_v38, %v15198_v9  ;;  %v7754_v1 = vadd.f32 0.2548296, %v7738_v43  ;;  %9529 = vmatmul.mubr.msk.f32.vlgmr.msra.gmra.mrb[204].mxu1 %vm4937_vm3, %v7910_v16  ;;  %v15290_v12 = vadd.f32 %v15141_v40, %v15219_v41  ;;  %v7643_v44 = vmul.f32 1.0614054, %v15284_v26 }
0x1075   : > { %v7879_v60 = vmul.f32 %v7863_v20, %v15231_v58  ;;  %v7737_v47 = vmul.f32 %v15240_v33, %v7721_v48  ;;  %v7692_v31 = vadd.f32 1.4214138, %v7676_v21  ;;  %v7598_v11 = vadd.f32 1.0, %v7582_v3 }
0x1076   : > { %v7896_v23 = vadd.f32 1.0, %v7880_v51  ;;  %v7770_v9 = vmul.f32 %v15226_v22, %v7754_v1  ;;  %v15296_v16 = vadd.f32 %v15242_v35, %v15141_v40  ;;  %v7659_v63 = vadd.f32 -1.4531521, %v7643_v44 }
0x1077   : > { %v7895_v0 = vadd.f32 1.0, %v7879_v60  ;;  %v7753_v49 = vadd.f32 0.2548296, %v7737_v47  ;;  %v7708_v34 = vmul.f32 %v15261_v39, %v7692_v31  ;;  %v7825_v30 = vmul.f32 1.442695, %v7803_v8 }
0x1078   : > { %v7850_v58 = vmul.f32 %v10359_v52, %v7770_v9  ;;  %v15299_v41 = vpop.f32.mrb[202].mxu1  ;;  %v7912_v62 = vmul.f32 %v7896_v23, %v15179_v13  ;;  %10366 = vrcp.f32 %v7598_v11  ;;  %v10363_v53 = vpop.eup %10362  ;;  %v7675_v52 = vmul.f32 %v15284_v26, %v7659_v63 }
0x1079   : > { %v7911_v22 = vmul.f32 %v7895_v0, %v15191_v36  ;;  %v7769_v38 = vmul.f32 %v15240_v33, %v7753_v49  ;;  %v15304_v43 = vpop.f32.mrb[203].mxu1  ;;  %v7724_v35 = vadd.f32 -0.28449672, %v7708_v34  ;;  %v15308_v48 = vmul.f32 0.70710677, %v15290_v12 }
0x107a   : > { %v7866_v20 = vsub.f32 1.0, %v7850_v58  ;;  %v7546_v8 = vsel %vm7530_vm10, 1.0, %v15669_v5  ;;  %v15315_v36 = vmul.f32 0.70710677, %v15296_v16  ;;  %v7691_v1 = vadd.f32 1.4214138, %v7675_v52 }
0x107b   : > { %v7849_v13 = vmul.f32 %v10363_v53, %v7769_v38  ;;  %9531 = vmatprep.mubr.msk.f32.mxu1 %vm4937_vm3, %v7911_v22  ;;  %v7740_v51 = vmul.f32 %v15261_v39, %v7724_v35  ;;  %10368 = vpow2.f32 %v7825_v30  ;;  %v7565_v3 = vand.u32 2147483647, %v15308_v48 }
0x107c   : > { %v7882_v33 = vmul.f32 %v7866_v20, %v7546_v8  ;;  %9532 = vmatmul.mubr.msk.f32.gmra.mrb[206].mxu1 %vm4937_vm3, %v7912_v62  ;;  %v7707_v32 = vmul.f32 %v15284_v26, %v7691_v1  ;;  %v15324_v31 = vand.u32 2147483647, %v15315_v36  ;;  %v7497_v0 = vmul.f32 0.5, %v15154_v17 }
0x107d   : > { %v7865_v21 = vsub.f32 1.0, %v7849_v13  ;;  %v7756_v60 = vadd.f32 0.2548296, %v7740_v51  ;;  %v10365_v47 = vpop.eup %10364  ;;  %v7581_v9 = vmul.f32 0.3275911, %v7565_v3  ;;  %v15331_v30 = vadd.f32 %v15141_v40, %v15245_v46 }
0x107e   : > { %v7898_v44 = vadd.f32 1.0, %v7882_v33  ;;  %v7723_v11 = vadd.f32 -0.28449672, %v7707_v32  ;;  %v7584_v63 = vmul.f32 0.3275911, %v15324_v31  ;;  %v7498_v62 = vmul.f32 0.5, %v15151_v56 }
0x107f   : > { %v7881_v23 = vmul.f32 %v7865_v21, %v7545_v10  ;;  %v7772_v49 = vmul.f32 %v15261_v39, %v7756_v60  ;;  %v7597_v34 = vadd.f32 1.0, %v7581_v9  ;;  %v7790_v53 = vsub.f32 0.0, %v15275_v7 }
0x1080   : > { %v7739_v38 = vmul.f32 %v15284_v26, %v7723_v11  ;;  %v7600_v39 = vadd.f32 1.0, %v7584_v63  ;;  %v7914_v35 = vmul.f32 %v7898_v44, %v7498_v62  ;;  %v15341_v13 = vmul.f32 0.70710677, %v15331_v30 }
0x1081   : > { %v7897_v58 = vadd.f32 1.0, %v7881_v23  ;;  %v7852_v22 = vmul.f32 %v10365_v47, %v7772_v49  ;;  %10370 = vrcp.f32 %v7597_v34  ;;  %v15345_v56 = vadd.f32 %v15266_v57, %v15141_v40 }
0x1082   : > { %v15336_v20 = vpop.eup %10366  ;;  %v7755_v52 = vadd.f32 0.2548296, %v7739_v38  ;;  %v7806_v1 = vmul.f32 %v7790_v53, %v15275_v7  ;;  %10372 = vrcp.f32 %v7600_v39  ;;  %v7789_v15 = vsub.f32 0.0, %v7565_v3 }
0x1083   : > { %v7913_v17 = vmul.f32 %v7897_v58, %v7497_v0  ;;  %v7646_v8 = vmul.f32 1.0614054, %v15336_v20  ;;  %v7868_v46 = vsub.f32 1.0, %v7852_v22  ;;  %v7567_v10 = vand.u32 2147483647, %v15341_v13 }
0x1084   : > { %v7771_v33 = vmul.f32 %v15284_v26, %v7755_v52  ;;  %v7548_v60 = vsel %vm7532_vm13, 1.0, %v15669_v5  ;;  %v15357_v26 = vadd.f32 %v15141_v40, %v15271_v14  ;;  %v15360_v23 = vmul.f32 0.70710677, %v15345_v56 }
0x1085   : > { %9534 = vmatprep.mubr.msk.f32.mxu1 %vm4937_vm3, %v7913_v17  ;;  %v7662_v51 = vadd.f32 -1.4531521, %v7646_v8  ;;  %v10369_v21 = vpop.eup %10368  ;;  %v7884_v47 = vmul.f32 %v7868_v46, %v7548_v60  ;;  %v7583_v7 = vmul.f32 0.3275911, %v7567_v10  ;;  %v7547_v9 = vsel %vm7531_vm14, 1.0, %v15669_v5 }
0x1086   : > { %9535 = vmatmul.mubr.msk.f32.gmra.mrb[208].mxu1 %vm4937_vm3, %v7914_v35  ;;  %v7851_v57 = vmul.f32 %v10369_v21, %v7771_v33  ;;  %v7831_v0 = vmul.f32 1.442695, %v7806_v1  ;;  %v7805_v49 = vmul.f32 %v7789_v15, %v7565_v3  ;;  %v7792_v11 = vsub.f32 0.0, %v15324_v31 }
0x1087   : > { %v7678_v32 = vmul.f32 %v15336_v20, %v7662_v51  ;;  %v7599_v58 = vadd.f32 1.0, %v7583_v7  ;;  %v7570_v34 = vand.u32 2147483647, %v15360_v23  ;;  %v15367_v62 = vmul.f32 0.70710677, %v15357_v26 }
0x1088   : > { %v7867_v18 = vsub.f32 1.0, %v7851_v57  ;;  %v7900_v38 = vadd.f32 1.0, %v7884_v47  ;;  %v7499_v53 = vmul.f32 0.5, %v15194_v4  ;;  %v7500_v52 = vmul.f32 0.5, %v15186_v50 }
0x1089   : > { %v7694_v44 = vadd.f32 1.4214138, %v7678_v32  ;;  %10374 = vrcp.f32 %v7599_v58  ;;  %v7586_v17 = vmul.f32 0.3275911, %v7570_v34  ;;  %v7829_v8 = vmul.f32 1.442695, %v7805_v49 }
0x108a   : > { %v7883_v63 = vmul.f32 %v7867_v18, %v7547_v9  ;;  %10376 = vpow2.f32 %v7831_v0  ;;  %v7808_v46 = vmul.f32 %v7792_v11, %v15324_v31  ;;  %v15379_v4 = vand.u32 2147483647, %v15367_v62 }
0x108b   : > { %v7710_v14 = vmul.f32 %v15336_v20, %v7694_v44  ;;  %v15369_v22 = vpop.eup %10370  ;;  %v7602_v33 = vadd.f32 1.0, %v7586_v17  ;;  %v7916_v60 = vmul.f32 %v7900_v38, %v7500_v52  ;;  %v15384_v50 = vadd.f32 %v15299_v41, %v15141_v40 }
0x108c   : > { %v7899_v39 = vadd.f32 1.0, %v7883_v63  ;;  %v7645_v35 = vmul.f32 1.0614054, %v15369_v22  ;;  %v15375_v51 = vpop.eup %10372  ;;  %v7791_v47 = vsub.f32 0.0, %v7567_v10  ;;  %v7585_v7 = vmul.f32 0.3275911, %v15379_v4 }
0x108d   : > { %v7726_v3 = vadd.f32 -0.28449672, %v7710_v14  ;;  %v7648_v57 = vmul.f32 1.0614054, %v15375_v51  ;;  %10378 = vrcp.f32 %v7602_v33  ;;  %v7794_v18 = vsub.f32 0.0, %v7570_v34 }
0x108e   : > { %v7915_v1 = vmul.f32 %v7899_v39, %v7499_v53  ;;  %v7661_v15 = vadd.f32 -1.4531521, %v7645_v35  ;;  %v15390_v44 = vmul.f32 0.70710677, %v15384_v50  ;;  %v7835_v49 = vmul.f32 1.442695, %v7808_v46 }
0x108f   : > { %v7742_v21 = vmul.f32 %v15336_v20, %v7726_v3  ;;  %v7664_v9 = vadd.f32 -1.4531521, %v7648_v57  ;;  %v7601_v11 = vadd.f32 1.0, %v7585_v7  ;;  %10380 = vpow2.f32 %v7829_v8 }
0x1090   : > { %v7677_v31 = vmul.f32 %v15369_v22, %v7661_v15  ;;  %9537 = vmatprep.mubr.msk.f32.mxu1 %vm4937_vm3, %v7915_v1  ;;  %v15396_v63 = vand.u32 2147483647, %v15390_v44  ;;  %v7807_v38 = vmul.f32 %v7791_v47, %v7567_v10  ;;  %v15401_v53 = vadd.f32 %v15141_v40, %v15304_v43 }
0x1091   : > { %v7758_v32 = vadd.f32 0.2548296, %v7742_v21  ;;  %9538 = vmatmul.mubr.msk.f32.gmra.mrb[210].mxu1 %vm4937_vm3, %v7916_v60  ;;  %v7680_v58 = vmul.f32 %v15375_v51, %v7664_v9  ;;  %10382 = vrcp.f32 %v7601_v11  ;;  %v7810_v3 = vmul.f32 %v7794_v18, %v7570_v34 }
0x1092   : > { %v7693_v0 = vadd.f32 1.4214138, %v7677_v31  ;;  %10384 = vpow2.f32 %v7835_v49  ;;  %vm7534_vm15 = vcmp.ge.f32.partialorder %v15259_v2, 0.0  ;;  %v7833_v1 = vmul.f32 1.442695, %v7807_v38 }
0x1093   : > { %v7774_v41 = vmul.f32 %v15336_v20, %v7758_v32  ;;  %v15403_v17 = vpop.eup %10374  ;;  %v7696_v39 = vadd.f32 1.4214138, %v7680_v58  ;;  %v7588_v20 = vmul.f32 0.3275911, %v15396_v63  ;;  %v15411_v21 = vmul.f32 0.70710677, %v15401_v53 }
0x1094   : > { %v7709_v14 = vmul.f32 %v15369_v22, %v7693_v0  ;;  %v10377_v35 = vpop.eup %10376  ;;  %v7647_v8 = vmul.f32 1.0614054, %v15403_v17  ;;  %vm7533_vm0 = vcmp.ge.f32.partialorder %v15308_v48, 0.0  ;;  %v7839_v60 = vmul.f32 1.442695, %v7810_v3 }
0x1095   : > { %v7854_v46 = vmul.f32 %v10377_v35, %v7774_v41  ;;  %v7712_v10 = vmul.f32 %v15375_v51, %v7696_v39  ;;  %v7604_v33 = vadd.f32 1.0, %v7588_v20  ;;  %v7793_v47 = vsub.f32 0.0, %v15379_v4 }
0x1096   : > { %v7725_v52 = vadd.f32 -0.28449672, %v7709_v14  ;;  %v7663_v43 = vadd.f32 -1.4531521, %v7647_v8  ;;  %v7550_v7 = vsel %vm7534_vm15, 1.0, %v15669_v5  ;;  %v7549_v14 = vsel %vm7533_vm0, 1.0, %v15669_v5 }
0x1097   : > { %v15413_v34 = vpop.eup %10378  ;;  %v7728_v15 = vadd.f32 -0.28449672, %v7712_v10  ;;  %10386 = vrcp.f32 %v7604_v33  ;;  %v7870_v9 = vsub.f32 1.0, %v7854_v46  ;;  %v15424_v0 = vand.u32 2147483647, %v15411_v21 }
0x1098   : > { %v7741_v40 = vmul.f32 %v15369_v22, %v7725_v52  ;;  %v7679_v32 = vmul.f32 %v15403_v17, %v7663_v43  ;;  %v7650_v31 = vmul.f32 1.0614054, %v15413_v34  ;;  %10388 = vpow2.f32 %v7833_v1 }
0x1099   : > { %v7744_v18 = vmul.f32 %v15375_v51, %v7728_v15  ;;  %v10381_v58 = vpop.eup %10380  ;;  %10390 = vpow2.f32 %v7839_v60  ;;  %v7587_v2 = vmul.f32 0.3275911, %v15424_v0  ;;  %v7886_v52 = vmul.f32 %v7870_v9, %v7550_v7 }
0x109a   : > { %v7757_v57 = vadd.f32 0.2548296, %v7741_v40  ;;  %v7695_v11 = vadd.f32 1.4214138, %v7679_v32  ;;  %v7666_v41 = vadd.f32 -1.4531521, %v7650_v31 }
0x109b   : > { %v7760_v38 = vadd.f32 0.2548296, %v7744_v18  ;;  %v15431_v39 = vpop.eup %10382  ;;  %v7603_v48 = vadd.f32 1.0, %v7587_v2  ;;  %v7796_v1 = vsub.f32 0.0, %v15396_v63  ;;  %vm7536_vm1 = vcmp.ge.f32.partialorder %v15315_v36, 0.0 }
0x109c   : > { %v7773_v49 = vmul.f32 %v15369_v22, %v7757_v57  ;;  %v7711_v20 = vmul.f32 %v15403_v17, %v7695_v11  ;;  %v7682_v35 = vmul.f32 %v15413_v34, %v7666_v41  ;;  %v7809_v22 = vmul.f32 %v7793_v47, %v15379_v4  ;;  %v10385_v10 = vpop.eup %10384 }
0x109d   : > { %v7776_v8 = vmul.f32 %v15375_v51, %v7760_v38  ;;  %v7649_v46 = vmul.f32 1.0614054, %v15431_v39  ;;  %10392 = vrcp.f32 %v7603_v48  ;;  %v7502_v47 = vmul.f32 0.5, %v15250_v19 }
0x109e   : > { %v7853_v3 = vmul.f32 %v10381_v58, %v7773_v49  ;;  %v7727_v40 = vadd.f32 -0.28449672, %v7711_v20  ;;  %v7698_v43 = vadd.f32 1.4214138, %v7682_v35  ;;  %v7837_v51 = vmul.f32 1.442695, %v7809_v22 }
0x109f   : > { %v7856_v15 = vmul.f32 %v10385_v10, %v7776_v8  ;;  %v7665_v60 = vadd.f32 -1.4531521, %v7649_v46  ;;  %v7902_v7 = vadd.f32 1.0, %v7886_v52  ;;  %v7501_v9 = vmul.f32 0.5, %v15290_v12 }
0x10a0   : > { %v7869_v33 = vsub.f32 1.0, %v7853_v3  ;;  %v7743_v4 = vmul.f32 %v15403_v17, %v7727_v40  ;;  %v7714_v32 = vmul.f32 %v15413_v34, %v7698_v43  ;;  %v7812_v58 = vmul.f32 %v7796_v1, %v15396_v63 }
0x10a1   : > { %v15442_v31 = vpop.eup %10386  ;;  %v7681_v18 = vmul.f32 %v15431_v39, %v7665_v60  ;;  %v7872_v38 = vsub.f32 1.0, %v7856_v15  ;;  %10394 = vpow2.f32 %v7837_v51  ;;  %v7918_v52 = vmul.f32 %v7902_v7, %v7502_v47 }
0x10a2   : > { %v7885_v57 = vmul.f32 %v7869_v33, %v7549_v14  ;;  %v7759_v11 = vadd.f32 0.2548296, %v7743_v4  ;;  %v7730_v41 = vadd.f32 -0.28449672, %v7714_v32  ;;  %v7552_v14 = vsel %vm7536_vm1, 1.0, %v15669_v5  ;;  %v10389_v20 = vpop.eup %10388 }
0x10a3   : > { %v7697_v2 = vadd.f32 1.4214138, %v7681_v18  ;;  %v7652_v3 = vmul.f32 1.0614054, %v15442_v31  ;;  %v10391_v22 = vpop.eup %10390  ;;  %v7795_v46 = vsub.f32 0.0, %v15424_v0  ;;  %vm7535_vm2 = vcmp.ge.f32.partialorder %v15341_v13, 0.0 }
0x10a4   : > { %v7901_v49 = vadd.f32 1.0, %v7885_v57  ;;  %v7775_v35 = vmul.f32 %v15403_v17, %v7759_v11  ;;  %v7746_v12 = vmul.f32 %v15413_v34, %v7730_v41  ;;  %v7843_v10 = vmul.f32 1.442695, %v7812_v58 }
0x10a5   : > { %v7713_v8 = vmul.f32 %v15431_v39, %v7697_v2  ;;  %v7668_v63 = vadd.f32 -1.4531521, %v7652_v3  ;;  %v7888_v33 = vmul.f32 %v7872_v38, %v7552_v14  ;;  %v7551_v60 = vsel %vm7535_vm2, 1.0, %v15669_v5 }
0x10a6   : > { %v7917_v19 = vmul.f32 %v7901_v49, %v7501_v9  ;;  %v7855_v36 = vmul.f32 %v10389_v20, %v7775_v35  ;;  %v7762_v48 = vadd.f32 0.2548296, %v7746_v12  ;;  %v7811_v4 = vmul.f32 %v7795_v46, %v15424_v0 }
0x10a7   : > { %v7729_v40 = vadd.f32 -0.28449672, %v7713_v8  ;;  %v7684_v17 = vmul.f32 %v15442_v31, %v7668_v63  ;;  %v10393_v15 = vpop.eup %10392  ;;  %10396 = vpow2.f32 %v7843_v10  ;;  %v7904_v7 = vadd.f32 1.0, %v7888_v33 }
0x10a8   : > { %9540 = vmatprep.mubr.msk.f32.mxu1 %vm4937_vm3, %v7917_v19  ;;  %v7871_v43 = vsub.f32 1.0, %v7855_v36  ;;  %v7778_v1 = vmul.f32 %v15413_v34, %v7762_v48  ;;  %v7651_v47 = vmul.f32 1.0614054, %v10393_v15  ;;  %vm7538_vm4 = vcmp.ge.f32.partialorder %v15360_v23, 0.0 }
0x10a9   : > { %9541 = vmatmul.mubr.msk.f32.gmra.mrb[212].mxu1 %vm4937_vm3, %v7918_v52  ;;  %v7745_v57 = vmul.f32 %v15431_v39, %v7729_v40  ;;  %v7700_v13 = vadd.f32 1.4214138, %v7684_v17  ;;  %v7503_v34 = vmul.f32 0.5, %v15331_v30  ;;  %v7504_v58 = vmul.f32 0.5, %v15296_v16 }
0x10aa   : > { %v7887_v32 = vmul.f32 %v7871_v43, %v7551_v60  ;;  %v7858_v51 = vmul.f32 %v10391_v22, %v7778_v1  ;;  %v7667_v41 = vadd.f32 -1.4531521, %v7651_v47  ;;  %v7841_v38 = vmul.f32 1.442695, %v7811_v4 }
0x10ab   : > { %v7761_v9 = vadd.f32 0.2548296, %v7745_v57  ;;  %v7716_v18 = vmul.f32 %v15442_v31, %v7700_v13  ;;  %v10395_v2 = vpop.eup %10394  ;;  %v7554_v20 = vsel %vm7538_vm4, 1.0, %v15669_v5  ;;  %v7920_v23 = vmul.f32 %v7904_v7, %v7504_v58 }
0x10ac   : > { %v7903_v49 = vadd.f32 1.0, %v7887_v32  ;;  %v7874_v11 = vsub.f32 1.0, %v7858_v51  ;;  %v7683_v19 = vmul.f32 %v10393_v15, %v7667_v41  ;;  %vm7537_vm5 = vcmp.ge.f32.partialorder %v15367_v62, 0.0 }
0x10ad   : > { %v7777_v14 = vmul.f32 %v15431_v39, %v7761_v9  ;;  %v7732_v0 = vadd.f32 -0.28449672, %v7716_v18  ;;  %10398 = vpow2.f32 %v7841_v38  ;;  %v7553_v39 = vsel %vm7537_vm5, 1.0, %v15669_v5 }
0x10ae   : > { %v7919_v3 = vmul.f32 %v7903_v49, %v7503_v34  ;;  %v7890_v12 = vmul.f32 %v7874_v11, %v7554_v20  ;;  %v7699_v22 = vadd.f32 1.4214138, %v7683_v19  ;;  %v7505_v10 = vmul.f32 0.5, %v15357_v26 }
0x10af   : > { %v7857_v35 = vmul.f32 %v10395_v2, %v7777_v14  ;;  %v7748_v30 = vmul.f32 %v15442_v31, %v7732_v0  ;;  %v7506_v17 = vmul.f32 0.5, %v15345_v56  ;;  %vm7540_vm6 = vcmp.ge.f32.partialorder %v15390_v44, 0.0  ;;  %v15501_v2 = vld [vmem:[%s15586_s11 + $0xb] ss:$0 sm:$0xff] }
0x10b0   : > { %9543 = vmatprep.mubr.msk.f32.mxu1 %vm4937_vm3, %v7919_v3  ;;  %v7715_v8 = vmul.f32 %v10393_v15, %v7699_v22  ;;  %v7906_v62 = vadd.f32 1.0, %v7890_v12  ;;  %v7556_v32 = vsel %vm7540_vm6, 1.0, %v15669_v5  ;;  %vm7539_vm7 = vcmp.ge.f32.partialorder %v15411_v21, 0.0 }
0x10b1   : > { %v7873_v16 = vsub.f32 1.0, %v7857_v35  ;;  %v7764_v52 = vadd.f32 0.2548296, %v7748_v30  ;;  %9544 = vmatmul.mubr.msk.f32.gmra.mrb[214].mxu1 %vm4937_vm3, %v7920_v23  ;;  %v10397_v36 = vpop.eup %10396  ;;  %v7555_v47 = vsel %vm7539_vm7, 1.0, %v15669_v5  ;;  %v7507_v44 = vmul.f32 0.5, %v15401_v53  ;;  %v15828_v53 = vld [vmem:[#allocation2_spill] sm:$0xff] }
0x10b2   : > { %v7731_v48 = vadd.f32 -0.28449672, %v7715_v8  ;;  %v7922_v60 = vmul.f32 %v7906_v62, %v7506_v17  ;;  %v7508_v34 = vmul.f32 0.5, %v15384_v50  ;;  %v15827_v11 = vlaneseq }
0x10b3   : > { %v7889_v63 = vmul.f32 %v7873_v16, %v7553_v39  ;;  %v7780_v46 = vmul.f32 %v15442_v31, %v7764_v52  ;;  %v10416_v50 = vmov 0.125   ;;  %vm8398_vm7 = vcmask 80896  }
0x10b4   : > { %v7747_v43 = vmul.f32 %v10393_v15, %v7731_v48  ;;  %v15489_v21 = vshrl.u32 %v15827_v11, 7 }
0x10b5   : > { %v7905_v33 = vadd.f32 1.0, %v7889_v63  ;;  %v7860_v40 = vmul.f32 %v10397_v36, %v7780_v46 }
0x10b6   : > { %v7763_v57 = vadd.f32 0.2548296, %v7747_v43  ;;  %v8171_v41 = vadd.s32 1, %v15489_v21  ;;  %v8167_v5 = vmul.u32 4, %v15489_v21 }
0x10b7   : > { %v7921_v1 = vmul.f32 %v7905_v33, %v7505_v10  ;;  %v7876_v13 = vsub.f32 1.0, %v7860_v40  ;;  %v10399_v31 = vpop.eup %10398 }
0x10b8   : > { %v7779_v4 = vmul.f32 %v10393_v15, %v7763_v57  ;;  %v8173_v58 = vmul.u32 4, %v8171_v41  ;;  %v8179_v14 = vadd.s32 64, %v8167_v5  ;;  %vm8169_vm8 = vcmp.ge.s32.totalorder %v15828_v53, %v8167_v5 }
0x10b9   : > { %9546 = vmatprep.mubr.msk.f32.mxu1 %vm4937_vm3, %v7921_v1  ;;  %v7892_v51 = vmul.f32 %v7876_v13, %v7556_v32 }
0x10ba   : > { %9547 = vmatmul.mubr.msk.f32.gmra.mrb[216].mxu1 %vm4937_vm3, %v7922_v60  ;;  %v7859_v26 = vmul.f32 %v10399_v31, %v7779_v4  ;;  %v8183_v0 = vadd.s32 64, %v8173_v58  ;;  %vm8175_vm9 = vcmp.lt.s32.totalorder %v15828_v53, %v8173_v58  ;;  %vm8181_vm10 = vcmp.ge.s32.totalorder %v15828_v53, %v8179_v14  ;;  %v15830_v14 = vld [vmem:[#allocation39_spill] sm:$0xff] }
0x10bb   : > { %v7908_v9 = vadd.f32 1.0, %v7892_v51  ;;  %vm8177_vm13 = vmand %vm8169_vm8, %vm8175_vm9 }
0x10bc   : > { %v7875_v56 = vsub.f32 1.0, %v7859_v26  ;;  %vm8185_vm11 = vcmp.lt.s32.totalorder %v15828_v53, %v8183_v0 }
0x10bd   : > { %v7924_v49 = vmul.f32 %v7908_v9, %v7508_v34 }
0x10be   : > { %v7891_v7 = vmul.f32 %v7875_v56, %v7555_v47  ;;  %v8166_v47 = vadd.s32 8, %v15489_v21 }
0x10c0   : > { %v7907_v18 = vadd.f32 1.0, %v7891_v7 }
0x10c2   : > { %v7923_v15 = vmul.f32 %v7907_v18, %v7507_v44  ;;  %v15829_v44 = vld [vmem:[#allocation35_spill] sm:$0xff] }
0x10c4   : > { %9549 = vmatprep.mubr.msk.f32.mxu1 %vm4937_vm3, %v7923_v15 }
0x10c5   : > { %9550 = vmatmul.mubr.msk.f32.gmra.mrb[218].mxu1 %vm4937_vm3, %v7924_v49  ;;  %vm8187_vm3 = vmand %vm8181_vm10, %vm8185_vm11  ;;  %v8168_v49 = vmul.u32 4, %v8166_v47 }
0x10c6   : > { %vm8189_vm14 = vmor %vm8177_vm13, %vm8187_vm3 }
0x10c7   : > { %9584 = vmatprep.mubr.msk.f32.mxu1 %vm8189_vm14, %v10416_v50  ;;  %v8180_v41 = vadd.s32 64, %v8168_v49  ;;  %vm8170_vm15 = vcmp.ge.s32.totalorder %v15828_v53, %v8168_v49 }
0x10c9   : > { %vm8182_vm1 = vcmp.ge.s32.totalorder %v15828_v53, %v8180_v41 }
0x1147   : > { %v9530_v38 = vpop.f32.mrb[204].mxu1 }
0x1148   : > { %v8128_v3 = vadd.f32 %v9530_v38, %v14858_v27  ;;  %v8048_v20 = vpop.f32.mrb[205].mxu1 }
0x1149   : > { %v8127_v19 = vadd.f32 %v8048_v20, %v14853_v6 }
0x114a   : > { %v8149_v23 = vadd.f32 %v15501_v2, %v8128_v3 }
0x114b   : > { %v8148_v35 = vadd.f32 %v15501_v2, %v8127_v19 }
0x114d   : > { %v9813_v30 = vpack.c.bf16 %v8149_v23, %v8148_v35 }
0x114f   : > { %v9533_v12 = vpop.f32.mrb[206].mxu1  ;;  %9814 = vmatprep.subr.bf16.mxu1 %v9813_v30 }
0x1150   : > { %v8130_v22 = vadd.f32 %v9533_v12, %v14868_v28  ;;  %v8058_v16 = vpop.f32.mrb[207].mxu1  ;;  %9816 = vmatpush3.bf16.msra.mxu1 %v9813_v30 }
0x1151   : > { %v8129_v52 = vadd.f32 %v8058_v16, %v14863_v45 }
0x1152   : > { %v8151_v39 = vadd.f32 %v15501_v2, %v8130_v22 }
0x1153   : > { %v8150_v27 = vadd.f32 %v15501_v2, %v8129_v52 }
0x1155   : > { %v9817_v8 = vpack.c.bf16 %v8151_v39, %v8150_v27 }
0x1157   : > { %9818 = vmatprep.subr.bf16.mxu1 %v9817_v8 }
0x1158   : > { %9820 = vmatpush3.bf16.msra.mxu1 %v9817_v8 }
0x1159   : > { %v9536_v6 = vpop.f32.mrb[208].mxu1 }
0x115a   : > { %v8132_v63 = vadd.f32 %v9536_v6, %v14878_v54  ;;  %v8068_v46 = vpop.f32.mrb[209].mxu1 }
0x115b   : > { %v8131_v36 = vadd.f32 %v8068_v46, %v14873_v37  ;;  %v8309_v46 = vld [vmem:[%s15587_s12 + $0x8] sm:$0xff] }
0x115c   : > { %v8153_v62 = vadd.f32 %v15501_v2, %v8132_v63  ;;  %v8308_v63 = vld [vmem:[%s15587_s12] sm:$0xff] }
0x115d   : > { %v8152_v28 = vadd.f32 %v15501_v2, %v8131_v36  ;;  %v9845_v36 = vpack.c.bf16 %v8309_v46, %v8308_v63 }
0x115f   : > { %v9821_v48 = vpack.c.bf16 %v8153_v62, %v8152_v28  ;;  %v8310_v62 = vld [vmem:[%s15587_s12 + $0x10] sm:$0xff]  ;;  %v8311_v28 = vld [vmem:[%s15587_s12 + $0x18] sm:$0xff] }
0x1161   : > { %9822 = vmatprep.subr.bf16.mxu1 %v9821_v48 }
0x1162   : > { %9824 = vmatpush3.bf16.msra.mxu1 %v9821_v48  ;;  %v9849_v48 = vpack.c.bf16 %v8311_v28, %v8310_v62 }
0x1164   : > { %v9539_v45 = vpop.f32.mrb[210].mxu1 }
0x1165   : > { %v8134_v10 = vadd.f32 %v9539_v45, %v14888_v42  ;;  %v8078_v33 = vpop.f32.mrb[211].mxu1 }
0x1166   : > { %v8133_v40 = vadd.f32 %v8078_v33, %v14883_v25 }
0x1167   : > { %v8155_v17 = vadd.f32 %v15501_v2, %v8134_v10 }
0x1168   : > { %v8154_v54 = vadd.f32 %v15501_v2, %v8133_v40 }
0x116a   : > { %v9825_v43 = vpack.c.bf16 %v8155_v17, %v8154_v54 }
0x116c   : > { %9826 = vmatprep.subr.bf16.mxu1 %v9825_v43 }
0x116d   : > { %9828 = vmatpush3.bf16.msra.mxu1 %v9825_v43 }
0x117c   : > { %v9542_v37 = vpop.f32.mrb[212].mxu1 }
0x117d   : > { %v8136_v1 = vadd.f32 %v9542_v37, %v14898_v29  ;;  %v8088_v60 = vpop.f32.mrb[213].mxu1  ;;  %v8831_v37 = vld [vmem:[%s15586_s11 + $0xc] ss:$0 sm:$0xff] }
0x117e   : > { %v8135_v57 = vadd.f32 %v8088_v60, %v14893_v24 }
0x117f   : > { %v8157_v13 = vadd.f32 %v15501_v2, %v8136_v1 }
0x1180   : > { %v8156_v42 = vadd.f32 %v15501_v2, %v8135_v57 }
0x1182   : > { %v9829_v4 = vpack.c.bf16 %v8157_v13, %v8156_v42  ;;  %v8832_v13 = vld [vmem:[%s15586_s11 + $0xd] ss:$0 sm:$0xff] }
0x1184   : > { %9830 = vmatprep.subr.bf16.mxu1 %v9829_v4  ;;  %v9545_v25 = vpop.f32.mrb[214].mxu1 }
0x1185   : > { %9832 = vmatpush3.bf16.msra.mxu1 %v9829_v4  ;;  %v8138_v31 = vadd.f32 %v9545_v25, %v14908_v55  ;;  %v8098_v32 = vpop.f32.mrb[215].mxu1 }
0x1186   : > { %v8137_v26 = vadd.f32 %v8098_v32, %v14903_v59  ;;  %v8172_v59 = vadd.s32 1, %v8166_v47  ;;  %v8833_v32 = vld [vmem:[%s15586_s11 + $0xe] ss:$0 sm:$0xff] }
0x1187   : > { %v8159_v51 = vadd.f32 %v15501_v2, %v8138_v31 }
0x1188   : > { %v8158_v29 = vadd.f32 %v15501_v2, %v8137_v26  ;;  %v8174_v11 = vmul.u32 4, %v8172_v59 }
0x118a   : > { %v9833_v56 = vpack.c.bf16 %v8159_v51, %v8158_v29  ;;  %v8184_v5 = vadd.s32 64, %v8174_v11  ;;  %vm8176_vm0 = vcmp.lt.s32.totalorder %v15828_v53, %v8174_v11 }
0x118b   : > { %vm8178_vm4 = vmand %vm8170_vm15, %vm8176_vm0 }
0x118c   : > { %9834 = vmatprep.subr.bf16.mxu1 %v9833_v56  ;;  %vm8186_vm2 = vcmp.lt.s32.totalorder %v15828_v53, %v8184_v5 }
0x118d   : > { %v9548_v24 = vpop.f32.mrb[216].mxu1  ;;  %9836 = vmatpush3.bf16.msra.mxu1 %v9833_v56  ;;  %vm8188_vm5 = vmand %vm8182_vm1, %vm8186_vm2 }
0x118e   : > { %v8140_v7 = vadd.f32 %v9548_v24, %v14918_v61  ;;  %v8108_v9 = vpop.f32.mrb[217].mxu1  ;;  %v15831_v61 = vld [vmem:[#allocation38_spill] sm:$0xff]  ;;  %vm8190_vm6 = vmor %vm8178_vm4, %vm8188_vm5 }
0x118f   : > { %v8139_v18 = vadd.f32 %v8108_v9, %v15829_v44 }
0x1190   : > { %v8161_v55 = vadd.f32 %v15501_v2, %v8140_v7 }
0x1191   : > { %v8160_v34 = vadd.f32 %v15501_v2, %v8139_v18 }
0x1193   : > { %v9837_v15 = vpack.c.bf16 %v8161_v55, %v8160_v34 }
0x1195   : > { %9838 = vmatprep.subr.bf16.mxu1 %v9837_v15 }
0x1196   : > { %9840 = vmatpush3.bf16.msra.mxu1 %v9837_v15 }
0x1198   : > { %v9551_v58 = vpop.f32.mrb[218].mxu1 }
0x1199   : > { %v8142_v21 = vadd.f32 %v9551_v58, %v15830_v14  ;;  %v8118_v0 = vpop.f32.mrb[219].mxu1 }
0x119a   : > { %v8141_v38 = vadd.f32 %v8118_v0, %v15831_v61 }
0x119b   : > { %v8163_v3 = vadd.f32 %v15501_v2, %v8142_v21 }
0x119c   : > { %v8162_v20 = vadd.f32 %v15501_v2, %v8141_v38 }
0x119e   : > { %v9841_v19 = vpack.c.bf16 %v8163_v3, %v8162_v20 }
0x11a0   : > { %9842 = vmatprep.subr.bf16.mxu1 %v9841_v19 }
0x11a1   : > { %9844 = vmatpush3.bf16.msra.mxu1 %v9841_v19 }
0x11a2   : > { %9846 = vmatprep.subr.bf16.mxu1 %v9845_v36 }
0x11a4   : > { %9585 = vmatmul.mubr.msk.f32.vlgmr.msra.gmra.mrb[220].mxu1 %vm8190_vm6, %v10416_v50 }
0x11a5   : > { %9848 = vmatpush3.bf16.msra.mxu1 %v9845_v36 }
0x11a6   : > { %9850 = vmatprep.subr.bf16.mxu1 %v9849_v48 }
0x11a9   : > { %9852 = vmatpush3.bf16.msra.mxu1 %v9849_v48 }
0x1277   : > { %v9586_v23 = vpop.f32.mrb[220].mxu1 }
0x1278   : > { %v8259_v35 = vpop.f32.mrb[221].mxu1  ;;  %v8273_v30 = vsel %vm2177_vm12, %v9586_v23, 0.0 }
0x1279   : > { %8274 = vadd.xlane.f32.xlu0 %v8273_v30  ;;  %v8270_v12 = vsel %vm2177_vm12, %v8259_v35, 0.0 }
0x127a   : > { %8271 = vadd.xlane.f32.xlu1 %v8270_v12 }
0x1306   : > { %v8275_v22 = vpop.xlane.xlu0 %8274 }
0x1307   : > { %v8277_v53 = vmul.f32 0.03125, %v8275_v22  ;;  %v8272_v16 = vpop.xlane.xlu1 %8271 }
0x1308   : > { %v8276_v2 = vmul.f32 0.03125, %v8272_v16 }
0x1309   : > { %v8279_v52 = vsub.f32 %v9586_v23, %v8277_v53 }
0x130a   : > { %v8278_v39 = vsub.f32 %v8259_v35, %v8276_v2 }
0x130b   : > { %v8281_v27 = vmul.f32 %v8279_v52, %v8279_v52 }
0x130c   : > { %v8280_v8 = vmul.f32 %v8278_v39, %v8278_v39 }
0x130d   : > { %v8285_v6 = vsel %vm2177_vm12, %v8281_v27, 0.0 }
0x130e   : > { %8286 = vadd.xlane.f32.xlu0 %v8285_v6  ;;  %v8282_v50 = vsel %vm2177_vm12, %v8280_v8, 0.0 }
0x130f   : > { %8283 = vadd.xlane.f32.xlu1 %v8282_v50 }
0x139b   : > { %v8287_v45 = vpop.xlane.xlu0 %8286 }
0x139c   : > { %v8289_v10 = vmul.f32 0.03125, %v8287_v45  ;;  %v8284_v33 = vpop.xlane.xlu1 %8283 }
0x139d   : > { %v8288_v40 = vmul.f32 0.03125, %v8284_v33 }
0x139e   : > { %v8291_v17 = vadd.f32 1e-05, %v8289_v10 }
0x139f   : > { %v8290_v54 = vadd.f32 1e-05, %v8288_v40 }
0x13a0   : > { %10400 = vrsqrt.f32 %v8291_v17 }
0x13a1   : > { %10402 = vrsqrt.f32 %v8290_v54 }
0x13aa   : > { %v10401_v43 = vpop.eup %10400 }
0x13ab   : > { %v10403_v1 = vpop.eup %10402  ;;  %v8295_v60 = vmul.f32 %v10401_v43, %v8279_v52 }
0x13ac   : > { %v8294_v57 = vmul.f32 %v10403_v1, %v8278_v39 }
0x13ad   : > { %v8301_v42 = vmul.f32 %v8831_v37, %v8295_v60 }
0x13ae   : > { %v8300_v4 = vmul.f32 %v8831_v37, %v8294_v57 }
0x13af   : > { %v8307_v31 = vadd.f32 %v8832_v13, %v8301_v42 }
0x13b0   : > { %v8306_v25 = vadd.f32 %v8832_v13, %v8300_v4 }
0x13b2   : > { %9595 = vmatprep.mubr.msk.f32.mxu1 %vm2177_vm12, %v8306_v25 }
0x13b3   : > { %9596 = vmatmul.mubr.msk.f32.vlgmr.msra.gmra.mrb[222].mxu1 %vm2177_vm12, %v8307_v31 }
0x1486   : > { %v9597_v26 = vpop.f32.mrb[222].mxu1 }
0x1487   : > { %v8389_v51 = vpop.f32.mrb[223].mxu1  ;;  %v8395_v56 = vadd.f32 %v9597_v26, %v8833_v32 }
0x1488   : > { %v8390_v29 = vadd.f32 %v8833_v32, %v8389_v51 }
0x1489   : > { %8400 = vst.msk [vmem:[%s467_s16 + $0x8] sm:$0xff] %vm8398_vm7, %v8395_v56 }
0x148a   : > { %8399 = vst.msk [vmem:[%s467_s16] sm:$0xff] %vm8398_vm7, %v8390_v29 }
0x148b PF: > { %s23_s25 = sadd.s32 1, %s10410_s25  }
0x148c   : > { %p20_p6 = scmp.ge.s32.totalorder %s23_s25, 4  }
0x148e   :  { %22 = sbr.rel (!%p20_p6) target bundleno = 1 (0x1), region = 111 }

</bundles_post_ra>
